<compile_context>
chip_gen: v7x
topology: tpu7x:2x2x1
jax: 0.10.0
libtpu: 0.0.40
codegen_flags: <defaults>
</compile_context>

<pallas_src>
import functools

import jax
import jax.numpy as jnp
from jax.experimental import pallas as pl
from jax.experimental.pallas import tpu as pltpu


def convnext_block_kernel(xpad_ref, dww_ref, dwb_ref, lnw_ref, lnb_ref,
                          w1_ref, b1_ref, w2_ref, b2_ref, o_ref,
                          *, TH, W, C, eps, conv_dtype, approx_gelu):
    t = pl.program_id(1)
    row0 = pl.multiple_of(t * TH, TH)

    # ---- depthwise 7x7 conv (groups == C), kw-outer / kh-inner ----
    # Only 7 width-shifted (second-minor) slabs are built; the kh slices are
    # cheap leading-dim slices. Tap math in `conv_dtype` (bf16 on v6e/v7x),
    # per-kw partials summed in f32.
    xcv = xpad_ref[0, pl.ds(row0, TH + 6), :, :].astype(conv_dtype)   # (TH+6, W+6, C)
    dww = dww_ref[...].astype(conv_dtype)                             # (7, 7, C)
    acc = None
    for kw in range(7):                                  # static, fully unrolled
        slab = xcv[:, kw:kw + W, :]                      # one shifted copy per kw
        part = None
        for kh in range(7):
            tap = slab[kh:kh + TH] * dww[kh, kw, :]      # (TH, W, C)
            part = tap if part is None else part + tap
        part = part.astype(jnp.float32)
        acc = part if acc is None else acc + part
    acc = acc + dwb_ref[0, :]                            # (TH, W, C) f32
    # xcv is not referenced below -> its live range ends here.

    # ---- LayerNorm over channels (channels_last, biased variance) ----
    x2d = acc.reshape(TH * W, C)
    u = jnp.mean(x2d, axis=-1, keepdims=True)
    d = x2d - u
    s = jnp.mean(d * d, axis=-1, keepdims=True)
    xn = d * jax.lax.rsqrt(s + eps)
    xn = xn * lnw_ref[0, :] + lnb_ref[0, :]

    # ---- pwconv1 (C -> 4C): bf16 operands, f32 accumulation on the MXU ----
    h = jnp.dot(xn.astype(jnp.bfloat16), w1_ref[...],
                preferred_element_type=jnp.float32) + b1_ref[0, :]

    # ---- GELU ----
    if approx_gelu:
        # tanh approximation goes to the EUP (idle slot) instead of the VALU,
        # but deviates slightly from nn.GELU's exact erf default.
        h = jax.nn.gelu(h, approximate=True)
    else:
        h = 0.5 * h * (1.0 + jax.lax.erf(h * jnp.float32(0.7071067811865476)))

    # ---- pwconv2 (4C -> C): gamma is pre-folded into w2/b2 in the wrapper ----
    y = jnp.dot(h.astype(jnp.bfloat16), w2_ref[...],
                preferred_element_type=jnp.float32) + b2_ref[0, :]

    # ---- residual add: re-read the interior (cheap VMEM load) ----
    x_in = xpad_ref[0, pl.ds(row0 + 3, TH), 3:3 + W, :].astype(jnp.float32)
    o_ref[0] = (x_in + y.reshape(TH, W, C)).astype(o_ref.dtype)


def _default_conv_dtype():
    """bf16 depthwise-conv math on generations with a bf16 VPU (v6e/v7x)."""
    try:
        kind = jax.devices()[0].device_kind.lower()
    except Exception:
        return jnp.float32
    if "tpu" not in kind:
        return jnp.float32
    for old in ("v2", "v3", "v4", "v5"):      # no bf16 VPU on these generations
        if old in kind:
            return jnp.float32
    return jnp.bfloat16


def _vmem_limit_bytes():
    """~3/4 of physical VMEM, capped at 100 MiB (96 MiB v5e/v6e, 48 MiB v7x)."""
    cap = 128 * 1024 * 1024
    try:
        cap = int(pltpu.get_tpu_info().vmem_capacity_bytes)
    except Exception:
        pass
    return min((cap * 3) // 4, 100 * 1024 * 1024)


def _pick_row_tile(H, W, target_rows=256, max_tile=64):
    """Smallest divisor of H (<= max_tile) with TH*W >= target_rows (MXU M dim)."""
    best = 1
    for th in range(1, H + 1):
        if H % th:
            continue
        if th > max_tile:
            break
        best = th
        if th * W >= target_rows:
            break
    return best


def _const_spec(shape):
    """BlockSpec for a grid-invariant operand: single pipeline buffer."""
    nd = len(shape)
    idx = lambda *_: (0,) * nd
    try:
        return pl.BlockSpec(shape, idx, pipeline_mode=pl.Buffered(1))
    except TypeError:   # older BlockSpec signature without pipeline_mode
        return pl.BlockSpec(shape, idx)


def convnext_block(x_nchw, params, *, eps=1e-6, row_tile=None, conv_dtype=None,
                   approx_gelu=False):
    """x_nchw: (B, C, H, W) float32. Returns (B, C, H, W)."""
    B, C, H, W = x_nchw.shape
    C4 = 4 * C
    if conv_dtype is None:
        conv_dtype = _default_conv_dtype()
    if row_tile is not None and H % row_tile == 0:
        TH = row_tile
    else:
        # TODO(synk): replace the divisor requirement with a cdiv grid + masked
        # tail rows so prime H doesn't force tiny tiles.
        TH = _pick_row_tile(H, W)

    # TODO(synk): for a full ConvNeXt, keep activations NHWC across blocks and
    # fold the zero-pad into the kernel; these wrapper transpose/pad passes are
    # serial full-tensor HBM round trips outside the kernel.
    x_nhwc = jnp.transpose(x_nchw, (0, 2, 3, 1))                       # (B, H, W, C)
    x_pad = jnp.pad(x_nhwc, ((0, 0), (3, 3), (3, 3), (0, 0)))          # (B, H+6, W+6, C)

    dww, dwb, lnw, lnb, w1, b1, w2, b2, gamma = params
    # Fold layer scale (gamma) into pwconv2 in f32, then cast to bf16.
    w2g = (w2 * gamma[0][None, :]).astype(jnp.bfloat16)                # (4C, C)
    b2g = b2 * gamma                                                   # (1, C) f32
    w1_bf = w1.astype(jnp.bfloat16)

    kernel = functools.partial(convnext_block_kernel, TH=TH, W=W, C=C, eps=eps,
                               conv_dtype=conv_dtype, approx_gelu=approx_gelu)

    out_nhwc = pl.pallas_call(
        kernel,
        out_shape=jax.ShapeDtypeStruct((B, H, W, C), x_nchw.dtype),
        grid_spec=pltpu.PrefetchScalarGridSpec(
            num_scalar_prefetch=0,
            grid=(B, H // TH),
            in_specs=[
                # padded image: resident per batch across the row-tile axis.
                # TODO(synk): on v7x (64 MiB VMEM) switch this to a per-row-tile
                # halo window / manual double-buffered DMA.
                pl.BlockSpec((1, H + 6, W + 6, C), lambda b, t: (b, 0, 0, 0)),
                _const_spec((7, 7, C)),       # dwconv weight
                _const_spec((1, C)),          # dwconv bias
                _const_spec((1, C)),          # LN weight
                _const_spec((1, C)),          # LN bias
                _const_spec((C, C4)),         # pwconv1 weight (bf16)
                _const_spec((1, C4)),         # pwconv1 bias
                _const_spec((C4, C)),         # pwconv2 weight * gamma (bf16)
                _const_spec((1, C)),          # pwconv2 bias * gamma
            ],
            out_specs=pl.BlockSpec((1, TH, W, C), lambda b, t: (b, t, 0, 0)),
        ),
        compiler_params=pltpu.CompilerParams(
            dimension_semantics=("parallel", "parallel"),
            vmem_limit_bytes=_vmem_limit_bytes()),
    )(x_pad, dww, dwb, lnw, lnb, w1_bf, b1, w2g, b2g)

    return jnp.transpose(out_nhwc, (0, 3, 1, 2))                        # back to NCHW


def make_params(key, dim, layer_scale_init_value=1e-6):
    C, C4 = dim, 4 * dim
    ks = jax.random.split(key, 6)
    dww = 0.1 * jax.random.normal(ks[0], (7, 7, C), jnp.float32)        # depthwise weight
    dwb = 0.1 * jax.random.normal(ks[1], (1, C), jnp.float32)
    lnw = jnp.ones((1, C), jnp.float32)                                 # LayerNorm init
    lnb = jnp.zeros((1, C), jnp.float32)
    w1 = 0.1 * jax.random.normal(ks[2], (C, C4), jnp.float32)
    b1 = 0.1 * jax.random.normal(ks[3], (1, C4), jnp.float32)
    w2 = 0.1 * jax.random.normal(ks[4], (C4, C), jnp.float32)
    b2 = 0.1 * jax.random.normal(ks[5], (1, C), jnp.float32)
    gamma = layer_scale_init_value * jnp.ones((1, C), jnp.float32)
    return (dww, dwb, lnw, lnb, w1, b1, w2, b2, gamma)


def reference_block(x_nchw, params, *, eps=1e-6, matmul_dtype=jnp.float32):
    """Pure-JAX reference mirroring the PyTorch Block.forward (gamma unfused).

    matmul_dtype=bf16 mirrors the kernel's bf16 MXU operands.
    """
    dww, dwb, lnw, lnb, w1, b1, w2, b2, gamma = params
    B, C, H, W = x_nchw.shape
    x = jnp.transpose(x_nchw, (0, 2, 3, 1))                             # NHWC
    xp = jnp.pad(x, ((0, 0), (3, 3), (3, 3), (0, 0)))
    y = jnp.zeros_like(x)
    for kh in range(7):
        for kw in range(7):
            y = y + xp[:, kh:kh + H, kw:kw + W, :] * dww[kh, kw, :]
    y = y + dwb[0]
    u = jnp.mean(y, axis=-1, keepdims=True)
    s = jnp.mean((y - u) ** 2, axis=-1, keepdims=True)
    yn = (y - u) * jax.lax.rsqrt(s + eps) * lnw[0] + lnb[0]
    h = jnp.dot(yn.astype(matmul_dtype), w1.astype(matmul_dtype),
                preferred_element_type=jnp.float32) + b1[0]
    h = 0.5 * h * (1.0 + jax.lax.erf(h * jnp.float32(0.7071067811865476)))
    o = jnp.dot(h.astype(matmul_dtype), w2.astype(matmul_dtype),
                preferred_element_type=jnp.float32) + b2[0]
    o = o * gamma[0]
    out = x + o
    return jnp.transpose(out, (0, 3, 1, 2))


if __name__ == "__main__":
    key = jax.random.PRNGKey(0)
    kx, kp = jax.random.split(key)

    B, C, H, W = 2, 4, 16, 16                                           # dim = 4
    x = jax.random.normal(kx, (B, C, H, W), jnp.float32)
    # gamma = 1.0 so the MLP branch actually contributes to the output check
    # (and so the folded w2*gamma is bitwise identical to w2 for the tight check).
    params = make_params(kp, C, layer_scale_init_value=1.0)

    # Generation-default path (bf16 conv on v6e/v7x), explicit multi-row-tile grid.
    out = jax.block_until_ready(convnext_block(x, params, row_tile=8))
    assert out.shape == (B, C, H, W)

    # f32-conv path: numerics match the bf16-matmul reference tightly.
    out_f32 = jax.block_until_ready(
        convnext_block(x, params, conv_dtype=jnp.float32))

    ref_bf16 = reference_block(x, params, matmul_dtype=jnp.bfloat16)    # kernel-matched matmul numerics
    ref_f32 = reference_block(x, params, matmul_dtype=jnp.float32)      # module (f32) semantics

    assert jnp.allclose(out_f32, ref_bf16, rtol=2e-3, atol=2e-3), "mismatch vs bf16-matched reference"
    assert jnp.allclose(out_f32, ref_f32, rtol=2e-2, atol=2e-2), "mismatch vs f32 reference (f32 conv)"
    assert jnp.allclose(out, ref_f32, rtol=2e-2, atol=2e-2), "mismatch vs f32 reference (default conv dtype)"

    print("KERNEL_OK")
</pallas_src>

<mosaic_0001>
module attributes {stable_mosaic.version = 11 : i64} {
  func.func @convnext_block_kernel(%arg0: i32, %arg1: i32, %arg2: memref<1x22x22x4xf32, #tpu.memory_space<vmem>>, %arg3: memref<7x7x4xf32, #tpu.memory_space<vmem>>, %arg4: memref<1x4xf32, #tpu.memory_space<vmem>>, %arg5: memref<1x4xf32, #tpu.memory_space<vmem>>, %arg6: memref<1x4xf32, #tpu.memory_space<vmem>>, %arg7: memref<4x16xbf16, #tpu.memory_space<vmem>>, %arg8: memref<1x16xf32, #tpu.memory_space<vmem>>, %arg9: memref<16x4xbf16, #tpu.memory_space<vmem>>, %arg10: memref<1x4xf32, #tpu.memory_space<vmem>>, %arg11: memref<1x8x16x4xf32, #tpu.memory_space<vmem>>) attributes {dimension_semantics = [#tpu.dimension_semantics<parallel>, #tpu.dimension_semantics<parallel>], iteration_bounds = array<i64: 2, 2>, scalar_prefetch = 0 : i64, scratch_operands = 0 : i64, tpu.core_type = #tpu.core_type<tc>, window_params = [{transform_indices = @transform_0, window_bounds = array<i64: 1, 22, 22, 4>}, {pipeline_mode = #tpu.pipeline_mode<synchronous>, transform_indices = @transform_1, window_bounds = array<i64: 7, 7, 4>}, {pipeline_mode = #tpu.pipeline_mode<synchronous>, transform_indices = @transform_2, window_bounds = array<i64: 1, 4>}, {pipeline_mode = #tpu.pipeline_mode<synchronous>, transform_indices = @transform_3, window_bounds = array<i64: 1, 4>}, {pipeline_mode = #tpu.pipeline_mode<synchronous>, transform_indices = @transform_4, window_bounds = array<i64: 1, 4>}, {pipeline_mode = #tpu.pipeline_mode<synchronous>, transform_indices = @transform_5, window_bounds = array<i64: 4, 16>}, {pipeline_mode = #tpu.pipeline_mode<synchronous>, transform_indices = @transform_6, window_bounds = array<i64: 1, 16>}, {pipeline_mode = #tpu.pipeline_mode<synchronous>, transform_indices = @transform_7, window_bounds = array<i64: 16, 4>}, {pipeline_mode = #tpu.pipeline_mode<synchronous>, transform_indices = @transform_8, window_bounds = array<i64: 1, 4>}, {transform_indices = @transform_9, window_bounds = array<i64: 1, 8, 16, 4>}]} {
    %c8_i32 = arith.constant 8 : i32
    %0 = arith.muli %arg1, %c8_i32 : i32
    %1 = tpu.assume_multiple %0, 8 : i32
    %c0 = arith.constant 0 : index
    %2 = arith.index_cast %1 : i32 to index
    %c0_0 = arith.constant 0 : index
    %c0_1 = arith.constant 0 : index
    %3 = vector.load %arg2[%c0, %2, %c0_0, %c0_1] : memref<1x22x22x4xf32, #tpu.memory_space<vmem>>, vector<1x14x22x4xf32>
    %4 = vector.shape_cast %3 : vector<1x14x22x4xf32> to vector<14x22x4xf32>
    %c0_2 = arith.constant 0 : index
    %c0_3 = arith.constant 0 : index
    %c0_4 = arith.constant 0 : index
    %5 = vector.load %arg3[%c0_2, %c0_3, %c0_4] : memref<7x7x4xf32, #tpu.memory_space<vmem>>, vector<7x7x4xf32>
    %6 = vector.extract_strided_slice %4 {offsets = [0, 0, 0], sizes = [14, 16, 4], strides = [1, 1, 1]} : vector<14x22x4xf32> to vector<14x16x4xf32>
    %7 = vector.extract_strided_slice %6 {offsets = [0, 0, 0], sizes = [8, 16, 4], strides = [1, 1, 1]} : vector<14x16x4xf32> to vector<8x16x4xf32>
    %8 = vector.extract_strided_slice %5 {offsets = [0, 0, 0], sizes = [1, 1, 4], strides = [1, 1, 1]} : vector<7x7x4xf32> to vector<1x1x4xf32>
    %9 = vector.shape_cast %8 : vector<1x1x4xf32> to vector<4xf32>
    %10 = vector.shape_cast %9 : vector<4xf32> to vector<1x1x4xf32>
    %11 = vector.broadcast %10 : vector<1x1x4xf32> to vector<8x16x4xf32>
    %12 = arith.mulf %7, %11 : vector<8x16x4xf32>
    %13 = vector.extract_strided_slice %6 {offsets = [1, 0, 0], sizes = [8, 16, 4], strides = [1, 1, 1]} : vector<14x16x4xf32> to vector<8x16x4xf32>
    %14 = vector.extract_strided_slice %5 {offsets = [1, 0, 0], sizes = [1, 1, 4], strides = [1, 1, 1]} : vector<7x7x4xf32> to vector<1x1x4xf32>
    %15 = vector.shape_cast %14 : vector<1x1x4xf32> to vector<4xf32>
    %16 = vector.shape_cast %15 : vector<4xf32> to vector<1x1x4xf32>
    %17 = vector.broadcast %16 : vector<1x1x4xf32> to vector<8x16x4xf32>
    %18 = arith.mulf %13, %17 : vector<8x16x4xf32>
    %19 = arith.addf %12, %18 : vector<8x16x4xf32>
    %20 = vector.extract_strided_slice %6 {offsets = [2, 0, 0], sizes = [8, 16, 4], strides = [1, 1, 1]} : vector<14x16x4xf32> to vector<8x16x4xf32>
    %21 = vector.extract_strided_slice %5 {offsets = [2, 0, 0], sizes = [1, 1, 4], strides = [1, 1, 1]} : vector<7x7x4xf32> to vector<1x1x4xf32>
    %22 = vector.shape_cast %21 : vector<1x1x4xf32> to vector<4xf32>
    %23 = vector.shape_cast %22 : vector<4xf32> to vector<1x1x4xf32>
    %24 = vector.broadcast %23 : vector<1x1x4xf32> to vector<8x16x4xf32>
    %25 = arith.mulf %20, %24 : vector<8x16x4xf32>
    %26 = arith.addf %19, %25 : vector<8x16x4xf32>
    %27 = vector.extract_strided_slice %6 {offsets = [3, 0, 0], sizes = [8, 16, 4], strides = [1, 1, 1]} : vector<14x16x4xf32> to vector<8x16x4xf32>
    %28 = vector.extract_strided_slice %5 {offsets = [3, 0, 0], sizes = [1, 1, 4], strides = [1, 1, 1]} : vector<7x7x4xf32> to vector<1x1x4xf32>
    %29 = vector.shape_cast %28 : vector<1x1x4xf32> to vector<4xf32>
    %30 = vector.shape_cast %29 : vector<4xf32> to vector<1x1x4xf32>
    %31 = vector.broadcast %30 : vector<1x1x4xf32> to vector<8x16x4xf32>
    %32 = arith.mulf %27, %31 : vector<8x16x4xf32>
    %33 = arith.addf %26, %32 : vector<8x16x4xf32>
    %34 = vector.extract_strided_slice %6 {offsets = [4, 0, 0], sizes = [8, 16, 4], strides = [1, 1, 1]} : vector<14x16x4xf32> to vector<8x16x4xf32>
    %35 = vector.extract_strided_slice %5 {offsets = [4, 0, 0], sizes = [1, 1, 4], strides = [1, 1, 1]} : vector<7x7x4xf32> to vector<1x1x4xf32>
    %36 = vector.shape_cast %35 : vector<1x1x4xf32> to vector<4xf32>
    %37 = vector.shape_cast %36 : vector<4xf32> to vector<1x1x4xf32>
    %38 = vector.broadcast %37 : vector<1x1x4xf32> to vector<8x16x4xf32>
    %39 = arith.mulf %34, %38 : vector<8x16x4xf32>
    %40 = arith.addf %33, %39 : vector<8x16x4xf32>
    %41 = vector.extract_strided_slice %6 {offsets = [5, 0, 0], sizes = [8, 16, 4], strides = [1, 1, 1]} : vector<14x16x4xf32> to vector<8x16x4xf32>
    %42 = vector.extract_strided_slice %5 {offsets = [5, 0, 0], sizes = [1, 1, 4], strides = [1, 1, 1]} : vector<7x7x4xf32> to vector<1x1x4xf32>
    %43 = vector.shape_cast %42 : vector<1x1x4xf32> to vector<4xf32>
    %44 = vector.shape_cast %43 : vector<4xf32> to vector<1x1x4xf32>
    %45 = vector.broadcast %44 : vector<1x1x4xf32> to vector<8x16x4xf32>
    %46 = arith.mulf %41, %45 : vector<8x16x4xf32>
    %47 = arith.addf %40, %46 : vector<8x16x4xf32>
    %48 = vector.extract_strided_slice %6 {offsets = [6, 0, 0], sizes = [8, 16, 4], strides = [1, 1, 1]} : vector<14x16x4xf32> to vector<8x16x4xf32>
    %49 = vector.extract_strided_slice %5 {offsets = [6, 0, 0], sizes = [1, 1, 4], strides = [1, 1, 1]} : vector<7x7x4xf32> to vector<1x1x4xf32>
    %50 = vector.shape_cast %49 : vector<1x1x4xf32> to vector<4xf32>
    %51 = vector.shape_cast %50 : vector<4xf32> to vector<1x1x4xf32>
    %52 = vector.broadcast %51 : vector<1x1x4xf32> to vector<8x16x4xf32>
    %53 = arith.mulf %48, %52 : vector<8x16x4xf32>
    %54 = arith.addf %47, %53 : vector<8x16x4xf32>
    %55 = vector.extract_strided_slice %4 {offsets = [0, 1, 0], sizes = [14, 16, 4], strides = [1, 1, 1]} : vector<14x22x4xf32> to vector<14x16x4xf32>
    %56 = vector.extract_strided_slice %55 {offsets = [0, 0, 0], sizes = [8, 16, 4], strides = [1, 1, 1]} : vector<14x16x4xf32> to vector<8x16x4xf32>
    %57 = vector.extract_strided_slice %5 {offsets = [0, 1, 0], sizes = [1, 1, 4], strides = [1, 1, 1]} : vector<7x7x4xf32> to vector<1x1x4xf32>
    %58 = vector.shape_cast %57 : vector<1x1x4xf32> to vector<4xf32>
    %59 = vector.shape_cast %58 : vector<4xf32> to vector<1x1x4xf32>
    %60 = vector.broadcast %59 : vector<1x1x4xf32> to vector<8x16x4xf32>
    %61 = arith.mulf %56, %60 : vector<8x16x4xf32>
    %62 = vector.extract_strided_slice %55 {offsets = [1, 0, 0], sizes = [8, 16, 4], strides = [1, 1, 1]} : vector<14x16x4xf32> to vector<8x16x4xf32>
    %63 = vector.extract_strided_slice %5 {offsets = [1, 1, 0], sizes = [1, 1, 4], strides = [1, 1, 1]} : vector<7x7x4xf32> to vector<1x1x4xf32>
    %64 = vector.shape_cast %63 : vector<1x1x4xf32> to vector<4xf32>
    %65 = vector.shape_cast %64 : vector<4xf32> to vector<1x1x4xf32>
    %66 = vector.broadcast %65 : vector<1x1x4xf32> to vector<8x16x4xf32>
    %67 = arith.mulf %62, %66 : vector<8x16x4xf32>
    %68 = arith.addf %61, %67 : vector<8x16x4xf32>
    %69 = vector.extract_strided_slice %55 {offsets = [2, 0, 0], sizes = [8, 16, 4], strides = [1, 1, 1]} : vector<14x16x4xf32> to vector<8x16x4xf32>
    %70 = vector.extract_strided_slice %5 {offsets = [2, 1, 0], sizes = [1, 1, 4], strides = [1, 1, 1]} : vector<7x7x4xf32> to vector<1x1x4xf32>
    %71 = vector.shape_cast %70 : vector<1x1x4xf32> to vector<4xf32>
    %72 = vector.shape_cast %71 : vector<4xf32> to vector<1x1x4xf32>
    %73 = vector.broadcast %72 : vector<1x1x4xf32> to vector<8x16x4xf32>
    %74 = arith.mulf %69, %73 : vector<8x16x4xf32>
    %75 = arith.addf %68, %74 : vector<8x16x4xf32>
    %76 = vector.extract_strided_slice %55 {offsets = [3, 0, 0], sizes = [8, 16, 4], strides = [1, 1, 1]} : vector<14x16x4xf32> to vector<8x16x4xf32>
    %77 = vector.extract_strided_slice %5 {offsets = [3, 1, 0], sizes = [1, 1, 4], strides = [1, 1, 1]} : vector<7x7x4xf32> to vector<1x1x4xf32>
    %78 = vector.shape_cast %77 : vector<1x1x4xf32> to vector<4xf32>
    %79 = vector.shape_cast %78 : vector<4xf32> to vector<1x1x4xf32>
    %80 = vector.broadcast %79 : vector<1x1x4xf32> to vector<8x16x4xf32>
    %81 = arith.mulf %76, %80 : vector<8x16x4xf32>
    %82 = arith.addf %75, %81 : vector<8x16x4xf32>
    %83 = vector.extract_strided_slice %55 {offsets = [4, 0, 0], sizes = [8, 16, 4], strides = [1, 1, 1]} : vector<14x16x4xf32> to vector<8x16x4xf32>
    %84 = vector.extract_strided_slice %5 {offsets = [4, 1, 0], sizes = [1, 1, 4], strides = [1, 1, 1]} : vector<7x7x4xf32> to vector<1x1x4xf32>
    %85 = vector.shape_cast %84 : vector<1x1x4xf32> to vector<4xf32>
    %86 = vector.shape_cast %85 : vector<4xf32> to vector<1x1x4xf32>
    %87 = vector.broadcast %86 : vector<1x1x4xf32> to vector<8x16x4xf32>
    %88 = arith.mulf %83, %87 : vector<8x16x4xf32>
    %89 = arith.addf %82, %88 : vector<8x16x4xf32>
    %90 = vector.extract_strided_slice %55 {offsets = [5, 0, 0], sizes = [8, 16, 4], strides = [1, 1, 1]} : vector<14x16x4xf32> to vector<8x16x4xf32>
    %91 = vector.extract_strided_slice %5 {offsets = [5, 1, 0], sizes = [1, 1, 4], strides = [1, 1, 1]} : vector<7x7x4xf32> to vector<1x1x4xf32>
    %92 = vector.shape_cast %91 : vector<1x1x4xf32> to vector<4xf32>
    %93 = vector.shape_cast %92 : vector<4xf32> to vector<1x1x4xf32>
    %94 = vector.broadcast %93 : vector<1x1x4xf32> to vector<8x16x4xf32>
    %95 = arith.mulf %90, %94 : vector<8x16x4xf32>
    %96 = arith.addf %89, %95 : vector<8x16x4xf32>
    %97 = vector.extract_strided_slice %55 {offsets = [6, 0, 0], sizes = [8, 16, 4], strides = [1, 1, 1]} : vector<14x16x4xf32> to vector<8x16x4xf32>
    %98 = vector.extract_strided_slice %5 {offsets = [6, 1, 0], sizes = [1, 1, 4], strides = [1, 1, 1]} : vector<7x7x4xf32> to vector<1x1x4xf32>
    %99 = vector.shape_cast %98 : vector<1x1x4xf32> to vector<4xf32>
    %100 = vector.shape_cast %99 : vector<4xf32> to vector<1x1x4xf32>
    %101 = vector.broadcast %100 : vector<1x1x4xf32> to vector<8x16x4xf32>
    %102 = arith.mulf %97, %101 : vector<8x16x4xf32>
    %103 = arith.addf %96, %102 : vector<8x16x4xf32>
    %104 = arith.addf %54, %103 : vector<8x16x4xf32>
    %105 = vector.extract_strided_slice %4 {offsets = [0, 2, 0], sizes = [14, 16, 4], strides = [1, 1, 1]} : vector<14x22x4xf32> to vector<14x16x4xf32>
    %106 = vector.extract_strided_slice %105 {offsets = [0, 0, 0], sizes = [8, 16, 4], strides = [1, 1, 1]} : vector<14x16x4xf32> to vector<8x16x4xf32>
    %107 = vector.extract_strided_slice %5 {offsets = [0, 2, 0], sizes = [1, 1, 4], strides = [1, 1, 1]} : vector<7x7x4xf32> to vector<1x1x4xf32>
    %108 = vector.shape_cast %107 : vector<1x1x4xf32> to vector<4xf32>
    %109 = vector.shape_cast %108 : vector<4xf32> to vector<1x1x4xf32>
    %110 = vector.broadcast %109 : vector<1x1x4xf32> to vector<8x16x4xf32>
    %111 = arith.mulf %106, %110 : vector<8x16x4xf32>
    %112 = vector.extract_strided_slice %105 {offsets = [1, 0, 0], sizes = [8, 16, 4], strides = [1, 1, 1]} : vector<14x16x4xf32> to vector<8x16x4xf32>
    %113 = vector.extract_strided_slice %5 {offsets = [1, 2, 0], sizes = [1, 1, 4], strides = [1, 1, 1]} : vector<7x7x4xf32> to vector<1x1x4xf32>
    %114 = vector.shape_cast %113 : vector<1x1x4xf32> to vector<4xf32>
    %115 = vector.shape_cast %114 : vector<4xf32> to vector<1x1x4xf32>
    %116 = vector.broadcast %115 : vector<1x1x4xf32> to vector<8x16x4xf32>
    %117 = arith.mulf %112, %116 : vector<8x16x4xf32>
    %118 = arith.addf %111, %117 : vector<8x16x4xf32>
    %119 = vector.extract_strided_slice %105 {offsets = [2, 0, 0], sizes = [8, 16, 4], strides = [1, 1, 1]} : vector<14x16x4xf32> to vector<8x16x4xf32>
    %120 = vector.extract_strided_slice %5 {offsets = [2, 2, 0], sizes = [1, 1, 4], strides = [1, 1, 1]} : vector<7x7x4xf32> to vector<1x1x4xf32>
    %121 = vector.shape_cast %120 : vector<1x1x4xf32> to vector<4xf32>
    %122 = vector.shape_cast %121 : vector<4xf32> to vector<1x1x4xf32>
    %123 = vector.broadcast %122 : vector<1x1x4xf32> to vector<8x16x4xf32>
    %124 = arith.mulf %119, %123 : vector<8x16x4xf32>
    %125 = arith.addf %118, %124 : vector<8x16x4xf32>
    %126 = vector.extract_strided_slice %105 {offsets = [3, 0, 0], sizes = [8, 16, 4], strides = [1, 1, 1]} : vector<14x16x4xf32> to vector<8x16x4xf32>
    %127 = vector.extract_strided_slice %5 {offsets = [3, 2, 0], sizes = [1, 1, 4], strides = [1, 1, 1]} : vector<7x7x4xf32> to vector<1x1x4xf32>
    %128 = vector.shape_cast %127 : vector<1x1x4xf32> to vector<4xf32>
    %129 = vector.shape_cast %128 : vector<4xf32> to vector<1x1x4xf32>
    %130 = vector.broadcast %129 : vector<1x1x4xf32> to vector<8x16x4xf32>
    %131 = arith.mulf %126, %130 : vector<8x16x4xf32>
    %132 = arith.addf %125, %131 : vector<8x16x4xf32>
    %133 = vector.extract_strided_slice %105 {offsets = [4, 0, 0], sizes = [8, 16, 4], strides = [1, 1, 1]} : vector<14x16x4xf32> to vector<8x16x4xf32>
    %134 = vector.extract_strided_slice %5 {offsets = [4, 2, 0], sizes = [1, 1, 4], strides = [1, 1, 1]} : vector<7x7x4xf32> to vector<1x1x4xf32>
    %135 = vector.shape_cast %134 : vector<1x1x4xf32> to vector<4xf32>
    %136 = vector.shape_cast %135 : vector<4xf32> to vector<1x1x4xf32>
    %137 = vector.broadcast %136 : vector<1x1x4xf32> to vector<8x16x4xf32>
    %138 = arith.mulf %133, %137 : vector<8x16x4xf32>
    %139 = arith.addf %132, %138 : vector<8x16x4xf32>
    %140 = vector.extract_strided_slice %105 {offsets = [5, 0, 0], sizes = [8, 16, 4], strides = [1, 1, 1]} : vector<14x16x4xf32> to vector<8x16x4xf32>
    %141 = vector.extract_strided_slice %5 {offsets = [5, 2, 0], sizes = [1, 1, 4], strides = [1, 1, 1]} : vector<7x7x4xf32> to vector<1x1x4xf32>
    %142 = vector.shape_cast %141 : vector<1x1x4xf32> to vector<4xf32>
    %143 = vector.shape_cast %142 : vector<4xf32> to vector<1x1x4xf32>
    %144 = vector.broadcast %143 : vector<1x1x4xf32> to vector<8x16x4xf32>
    %145 = arith.mulf %140, %144 : vector<8x16x4xf32>
    %146 = arith.addf %139, %145 : vector<8x16x4xf32>
    %147 = vector.extract_strided_slice %105 {offsets = [6, 0, 0], sizes = [8, 16, 4], strides = [1, 1, 1]} : vector<14x16x4xf32> to vector<8x16x4xf32>
    %148 = vector.extract_strided_slice %5 {offsets = [6, 2, 0], sizes = [1, 1, 4], strides = [1, 1, 1]} : vector<7x7x4xf32> to vector<1x1x4xf32>
    %149 = vector.shape_cast %148 : vector<1x1x4xf32> to vector<4xf32>
    %150 = vector.shape_cast %149 : vector<4xf32> to vector<1x1x4xf32>
    %151 = vector.broadcast %150 : vector<1x1x4xf32> to vector<8x16x4xf32>
    %152 = arith.mulf %147, %151 : vector<8x16x4xf32>
    %153 = arith.addf %146, %152 : vector<8x16x4xf32>
    %154 = arith.addf %104, %153 : vector<8x16x4xf32>
    %155 = vector.extract_strided_slice %4 {offsets = [0, 3, 0], sizes = [14, 16, 4], strides = [1, 1, 1]} : vector<14x22x4xf32> to vector<14x16x4xf32>
    %156 = vector.extract_strided_slice %155 {offsets = [0, 0, 0], sizes = [8, 16, 4], strides = [1, 1, 1]} : vector<14x16x4xf32> to vector<8x16x4xf32>
    %157 = vector.extract_strided_slice %5 {offsets = [0, 3, 0], sizes = [1, 1, 4], strides = [1, 1, 1]} : vector<7x7x4xf32> to vector<1x1x4xf32>
    %158 = vector.shape_cast %157 : vector<1x1x4xf32> to vector<4xf32>
    %159 = vector.shape_cast %158 : vector<4xf32> to vector<1x1x4xf32>
    %160 = vector.broadcast %159 : vector<1x1x4xf32> to vector<8x16x4xf32>
    %161 = arith.mulf %156, %160 : vector<8x16x4xf32>
    %162 = vector.extract_strided_slice %155 {offsets = [1, 0, 0], sizes = [8, 16, 4], strides = [1, 1, 1]} : vector<14x16x4xf32> to vector<8x16x4xf32>
    %163 = vector.extract_strided_slice %5 {offsets = [1, 3, 0], sizes = [1, 1, 4], strides = [1, 1, 1]} : vector<7x7x4xf32> to vector<1x1x4xf32>
    %164 = vector.shape_cast %163 : vector<1x1x4xf32> to vector<4xf32>
    %165 = vector.shape_cast %164 : vector<4xf32> to vector<1x1x4xf32>
    %166 = vector.broadcast %165 : vector<1x1x4xf32> to vector<8x16x4xf32>
    %167 = arith.mulf %162, %166 : vector<8x16x4xf32>
    %168 = arith.addf %161, %167 : vector<8x16x4xf32>
    %169 = vector.extract_strided_slice %155 {offsets = [2, 0, 0], sizes = [8, 16, 4], strides = [1, 1, 1]} : vector<14x16x4xf32> to vector<8x16x4xf32>
    %170 = vector.extract_strided_slice %5 {offsets = [2, 3, 0], sizes = [1, 1, 4], strides = [1, 1, 1]} : vector<7x7x4xf32> to vector<1x1x4xf32>
    %171 = vector.shape_cast %170 : vector<1x1x4xf32> to vector<4xf32>
    %172 = vector.shape_cast %171 : vector<4xf32> to vector<1x1x4xf32>
    %173 = vector.broadcast %172 : vector<1x1x4xf32> to vector<8x16x4xf32>
    %174 = arith.mulf %169, %173 : vector<8x16x4xf32>
    %175 = arith.addf %168, %174 : vector<8x16x4xf32>
    %176 = vector.extract_strided_slice %155 {offsets = [3, 0, 0], sizes = [8, 16, 4], strides = [1, 1, 1]} : vector<14x16x4xf32> to vector<8x16x4xf32>
    %177 = vector.extract_strided_slice %5 {offsets = [3, 3, 0], sizes = [1, 1, 4], strides = [1, 1, 1]} : vector<7x7x4xf32> to vector<1x1x4xf32>
    %178 = vector.shape_cast %177 : vector<1x1x4xf32> to vector<4xf32>
    %179 = vector.shape_cast %178 : vector<4xf32> to vector<1x1x4xf32>
    %180 = vector.broadcast %179 : vector<1x1x4xf32> to vector<8x16x4xf32>
    %181 = arith.mulf %176, %180 : vector<8x16x4xf32>
    %182 = arith.addf %175, %181 : vector<8x16x4xf32>
    %183 = vector.extract_strided_slice %155 {offsets = [4, 0, 0], sizes = [8, 16, 4], strides = [1, 1, 1]} : vector<14x16x4xf32> to vector<8x16x4xf32>
    %184 = vector.extract_strided_slice %5 {offsets = [4, 3, 0], sizes = [1, 1, 4], strides = [1, 1, 1]} : vector<7x7x4xf32> to vector<1x1x4xf32>
    %185 = vector.shape_cast %184 : vector<1x1x4xf32> to vector<4xf32>
    %186 = vector.shape_cast %185 : vector<4xf32> to vector<1x1x4xf32>
    %187 = vector.broadcast %186 : vector<1x1x4xf32> to vector<8x16x4xf32>
    %188 = arith.mulf %183, %187 : vector<8x16x4xf32>
    %189 = arith.addf %182, %188 : vector<8x16x4xf32>
    %190 = vector.extract_strided_slice %155 {offsets = [5, 0, 0], sizes = [8, 16, 4], strides = [1, 1, 1]} : vector<14x16x4xf32> to vector<8x16x4xf32>
    %191 = vector.extract_strided_slice %5 {offsets = [5, 3, 0], sizes = [1, 1, 4], strides = [1, 1, 1]} : vector<7x7x4xf32> to vector<1x1x4xf32>
    %192 = vector.shape_cast %191 : vector<1x1x4xf32> to vector<4xf32>
    %193 = vector.shape_cast %192 : vector<4xf32> to vector<1x1x4xf32>
    %194 = vector.broadcast %193 : vector<1x1x4xf32> to vector<8x16x4xf32>
    %195 = arith.mulf %190, %194 : vector<8x16x4xf32>
    %196 = arith.addf %189, %195 : vector<8x16x4xf32>
    %197 = vector.extract_strided_slice %155 {offsets = [6, 0, 0], sizes = [8, 16, 4], strides = [1, 1, 1]} : vector<14x16x4xf32> to vector<8x16x4xf32>
    %198 = vector.extract_strided_slice %5 {offsets = [6, 3, 0], sizes = [1, 1, 4], strides = [1, 1, 1]} : vector<7x7x4xf32> to vector<1x1x4xf32>
    %199 = vector.shape_cast %198 : vector<1x1x4xf32> to vector<4xf32>
    %200 = vector.shape_cast %199 : vector<4xf32> to vector<1x1x4xf32>
    %201 = vector.broadcast %200 : vector<1x1x4xf32> to vector<8x16x4xf32>
    %202 = arith.mulf %197, %201 : vector<8x16x4xf32>
    %203 = arith.addf %196, %202 : vector<8x16x4xf32>
    %204 = arith.addf %154, %203 : vector<8x16x4xf32>
    %205 = vector.extract_strided_slice %4 {offsets = [0, 4, 0], sizes = [14, 16, 4], strides = [1, 1, 1]} : vector<14x22x4xf32> to vector<14x16x4xf32>
    %206 = vector.extract_strided_slice %205 {offsets = [0, 0, 0], sizes = [8, 16, 4], strides = [1, 1, 1]} : vector<14x16x4xf32> to vector<8x16x4xf32>
    %207 = vector.extract_strided_slice %5 {offsets = [0, 4, 0], sizes = [1, 1, 4], strides = [1, 1, 1]} : vector<7x7x4xf32> to vector<1x1x4xf32>
    %208 = vector.shape_cast %207 : vector<1x1x4xf32> to vector<4xf32>
    %209 = vector.shape_cast %208 : vector<4xf32> to vector<1x1x4xf32>
    %210 = vector.broadcast %209 : vector<1x1x4xf32> to vector<8x16x4xf32>
    %211 = arith.mulf %206, %210 : vector<8x16x4xf32>
    %212 = vector.extract_strided_slice %205 {offsets = [1, 0, 0], sizes = [8, 16, 4], strides = [1, 1, 1]} : vector<14x16x4xf32> to vector<8x16x4xf32>
    %213 = vector.extract_strided_slice %5 {offsets = [1, 4, 0], sizes = [1, 1, 4], strides = [1, 1, 1]} : vector<7x7x4xf32> to vector<1x1x4xf32>
    %214 = vector.shape_cast %213 : vector<1x1x4xf32> to vector<4xf32>
    %215 = vector.shape_cast %214 : vector<4xf32> to vector<1x1x4xf32>
    %216 = vector.broadcast %215 : vector<1x1x4xf32> to vector<8x16x4xf32>
    %217 = arith.mulf %212, %216 : vector<8x16x4xf32>
    %218 = arith.addf %211, %217 : vector<8x16x4xf32>
    %219 = vector.extract_strided_slice %205 {offsets = [2, 0, 0], sizes = [8, 16, 4], strides = [1, 1, 1]} : vector<14x16x4xf32> to vector<8x16x4xf32>
    %220 = vector.extract_strided_slice %5 {offsets = [2, 4, 0], sizes = [1, 1, 4], strides = [1, 1, 1]} : vector<7x7x4xf32> to vector<1x1x4xf32>
    %221 = vector.shape_cast %220 : vector<1x1x4xf32> to vector<4xf32>
    %222 = vector.shape_cast %221 : vector<4xf32> to vector<1x1x4xf32>
    %223 = vector.broadcast %222 : vector<1x1x4xf32> to vector<8x16x4xf32>
    %224 = arith.mulf %219, %223 : vector<8x16x4xf32>
    %225 = arith.addf %218, %224 : vector<8x16x4xf32>
    %226 = vector.extract_strided_slice %205 {offsets = [3, 0, 0], sizes = [8, 16, 4], strides = [1, 1, 1]} : vector<14x16x4xf32> to vector<8x16x4xf32>
    %227 = vector.extract_strided_slice %5 {offsets = [3, 4, 0], sizes = [1, 1, 4], strides = [1, 1, 1]} : vector<7x7x4xf32> to vector<1x1x4xf32>
    %228 = vector.shape_cast %227 : vector<1x1x4xf32> to vector<4xf32>
    %229 = vector.shape_cast %228 : vector<4xf32> to vector<1x1x4xf32>
    %230 = vector.broadcast %229 : vector<1x1x4xf32> to vector<8x16x4xf32>
    %231 = arith.mulf %226, %230 : vector<8x16x4xf32>
    %232 = arith.addf %225, %231 : vector<8x16x4xf32>
    %233 = vector.extract_strided_slice %205 {offsets = [4, 0, 0], sizes = [8, 16, 4], strides = [1, 1, 1]} : vector<14x16x4xf32> to vector<8x16x4xf32>
    %234 = vector.extract_strided_slice %5 {offsets = [4, 4, 0], sizes = [1, 1, 4], strides = [1, 1, 1]} : vector<7x7x4xf32> to vector<1x1x4xf32>
    %235 = vector.shape_cast %234 : vector<1x1x4xf32> to vector<4xf32>
    %236 = vector.shape_cast %235 : vector<4xf32> to vector<1x1x4xf32>
    %237 = vector.broadcast %236 : vector<1x1x4xf32> to vector<8x16x4xf32>
    %238 = arith.mulf %233, %237 : vector<8x16x4xf32>
    %239 = arith.addf %232, %238 : vector<8x16x4xf32>
    %240 = vector.extract_strided_slice %205 {offsets = [5, 0, 0], sizes = [8, 16, 4], strides = [1, 1, 1]} : vector<14x16x4xf32> to vector<8x16x4xf32>
    %241 = vector.extract_strided_slice %5 {offsets = [5, 4, 0], sizes = [1, 1, 4], strides = [1, 1, 1]} : vector<7x7x4xf32> to vector<1x1x4xf32>
    %242 = vector.shape_cast %241 : vector<1x1x4xf32> to vector<4xf32>
    %243 = vector.shape_cast %242 : vector<4xf32> to vector<1x1x4xf32>
    %244 = vector.broadcast %243 : vector<1x1x4xf32> to vector<8x16x4xf32>
    %245 = arith.mulf %240, %244 : vector<8x16x4xf32>
    %246 = arith.addf %239, %245 : vector<8x16x4xf32>
    %247 = vector.extract_strided_slice %205 {offsets = [6, 0, 0], sizes = [8, 16, 4], strides = [1, 1, 1]} : vector<14x16x4xf32> to vector<8x16x4xf32>
    %248 = vector.extract_strided_slice %5 {offsets = [6, 4, 0], sizes = [1, 1, 4], strides = [1, 1, 1]} : vector<7x7x4xf32> to vector<1x1x4xf32>
    %249 = vector.shape_cast %248 : vector<1x1x4xf32> to vector<4xf32>
    %250 = vector.shape_cast %249 : vector<4xf32> to vector<1x1x4xf32>
    %251 = vector.broadcast %250 : vector<1x1x4xf32> to vector<8x16x4xf32>
    %252 = arith.mulf %247, %251 : vector<8x16x4xf32>
    %253 = arith.addf %246, %252 : vector<8x16x4xf32>
    %254 = arith.addf %204, %253 : vector<8x16x4xf32>
    %255 = vector.extract_strided_slice %4 {offsets = [0, 5, 0], sizes = [14, 16, 4], strides = [1, 1, 1]} : vector<14x22x4xf32> to vector<14x16x4xf32>
    %256 = vector.extract_strided_slice %255 {offsets = [0, 0, 0], sizes = [8, 16, 4], strides = [1, 1, 1]} : vector<14x16x4xf32> to vector<8x16x4xf32>
    %257 = vector.extract_strided_slice %5 {offsets = [0, 5, 0], sizes = [1, 1, 4], strides = [1, 1, 1]} : vector<7x7x4xf32> to vector<1x1x4xf32>
    %258 = vector.shape_cast %257 : vector<1x1x4xf32> to vector<4xf32>
    %259 = vector.shape_cast %258 : vector<4xf32> to vector<1x1x4xf32>
    %260 = vector.broadcast %259 : vector<1x1x4xf32> to vector<8x16x4xf32>
    %261 = arith.mulf %256, %260 : vector<8x16x4xf32>
    %262 = vector.extract_strided_slice %255 {offsets = [1, 0, 0], sizes = [8, 16, 4], strides = [1, 1, 1]} : vector<14x16x4xf32> to vector<8x16x4xf32>
    %263 = vector.extract_strided_slice %5 {offsets = [1, 5, 0], sizes = [1, 1, 4], strides = [1, 1, 1]} : vector<7x7x4xf32> to vector<1x1x4xf32>
    %264 = vector.shape_cast %263 : vector<1x1x4xf32> to vector<4xf32>
    %265 = vector.shape_cast %264 : vector<4xf32> to vector<1x1x4xf32>
    %266 = vector.broadcast %265 : vector<1x1x4xf32> to vector<8x16x4xf32>
    %267 = arith.mulf %262, %266 : vector<8x16x4xf32>
    %268 = arith.addf %261, %267 : vector<8x16x4xf32>
    %269 = vector.extract_strided_slice %255 {offsets = [2, 0, 0], sizes = [8, 16, 4], strides = [1, 1, 1]} : vector<14x16x4xf32> to vector<8x16x4xf32>
    %270 = vector.extract_strided_slice %5 {offsets = [2, 5, 0], sizes = [1, 1, 4], strides = [1, 1, 1]} : vector<7x7x4xf32> to vector<1x1x4xf32>
    %271 = vector.shape_cast %270 : vector<1x1x4xf32> to vector<4xf32>
    %272 = vector.shape_cast %271 : vector<4xf32> to vector<1x1x4xf32>
    %273 = vector.broadcast %272 : vector<1x1x4xf32> to vector<8x16x4xf32>
    %274 = arith.mulf %269, %273 : vector<8x16x4xf32>
    %275 = arith.addf %268, %274 : vector<8x16x4xf32>
    %276 = vector.extract_strided_slice %255 {offsets = [3, 0, 0], sizes = [8, 16, 4], strides = [1, 1, 1]} : vector<14x16x4xf32> to vector<8x16x4xf32>
    %277 = vector.extract_strided_slice %5 {offsets = [3, 5, 0], sizes = [1, 1, 4], strides = [1, 1, 1]} : vector<7x7x4xf32> to vector<1x1x4xf32>
    %278 = vector.shape_cast %277 : vector<1x1x4xf32> to vector<4xf32>
    %279 = vector.shape_cast %278 : vector<4xf32> to vector<1x1x4xf32>
    %280 = vector.broadcast %279 : vector<1x1x4xf32> to vector<8x16x4xf32>
    %281 = arith.mulf %276, %280 : vector<8x16x4xf32>
    %282 = arith.addf %275, %281 : vector<8x16x4xf32>
    %283 = vector.extract_strided_slice %255 {offsets = [4, 0, 0], sizes = [8, 16, 4], strides = [1, 1, 1]} : vector<14x16x4xf32> to vector<8x16x4xf32>
    %284 = vector.extract_strided_slice %5 {offsets = [4, 5, 0], sizes = [1, 1, 4], strides = [1, 1, 1]} : vector<7x7x4xf32> to vector<1x1x4xf32>
    %285 = vector.shape_cast %284 : vector<1x1x4xf32> to vector<4xf32>
    %286 = vector.shape_cast %285 : vector<4xf32> to vector<1x1x4xf32>
    %287 = vector.broadcast %286 : vector<1x1x4xf32> to vector<8x16x4xf32>
    %288 = arith.mulf %283, %287 : vector<8x16x4xf32>
    %289 = arith.addf %282, %288 : vector<8x16x4xf32>
    %290 = vector.extract_strided_slice %255 {offsets = [5, 0, 0], sizes = [8, 16, 4], strides = [1, 1, 1]} : vector<14x16x4xf32> to vector<8x16x4xf32>
    %291 = vector.extract_strided_slice %5 {offsets = [5, 5, 0], sizes = [1, 1, 4], strides = [1, 1, 1]} : vector<7x7x4xf32> to vector<1x1x4xf32>
    %292 = vector.shape_cast %291 : vector<1x1x4xf32> to vector<4xf32>
    %293 = vector.shape_cast %292 : vector<4xf32> to vector<1x1x4xf32>
    %294 = vector.broadcast %293 : vector<1x1x4xf32> to vector<8x16x4xf32>
    %295 = arith.mulf %290, %294 : vector<8x16x4xf32>
    %296 = arith.addf %289, %295 : vector<8x16x4xf32>
    %297 = vector.extract_strided_slice %255 {offsets = [6, 0, 0], sizes = [8, 16, 4], strides = [1, 1, 1]} : vector<14x16x4xf32> to vector<8x16x4xf32>
    %298 = vector.extract_strided_slice %5 {offsets = [6, 5, 0], sizes = [1, 1, 4], strides = [1, 1, 1]} : vector<7x7x4xf32> to vector<1x1x4xf32>
    %299 = vector.shape_cast %298 : vector<1x1x4xf32> to vector<4xf32>
    %300 = vector.shape_cast %299 : vector<4xf32> to vector<1x1x4xf32>
    %301 = vector.broadcast %300 : vector<1x1x4xf32> to vector<8x16x4xf32>
    %302 = arith.mulf %297, %301 : vector<8x16x4xf32>
    %303 = arith.addf %296, %302 : vector<8x16x4xf32>
    %304 = arith.addf %254, %303 : vector<8x16x4xf32>
    %305 = vector.extract_strided_slice %4 {offsets = [0, 6, 0], sizes = [14, 16, 4], strides = [1, 1, 1]} : vector<14x22x4xf32> to vector<14x16x4xf32>
    %306 = vector.extract_strided_slice %305 {offsets = [0, 0, 0], sizes = [8, 16, 4], strides = [1, 1, 1]} : vector<14x16x4xf32> to vector<8x16x4xf32>
    %307 = vector.extract_strided_slice %5 {offsets = [0, 6, 0], sizes = [1, 1, 4], strides = [1, 1, 1]} : vector<7x7x4xf32> to vector<1x1x4xf32>
    %308 = vector.shape_cast %307 : vector<1x1x4xf32> to vector<4xf32>
    %309 = vector.shape_cast %308 : vector<4xf32> to vector<1x1x4xf32>
    %310 = vector.broadcast %309 : vector<1x1x4xf32> to vector<8x16x4xf32>
    %311 = arith.mulf %306, %310 : vector<8x16x4xf32>
    %312 = vector.extract_strided_slice %305 {offsets = [1, 0, 0], sizes = [8, 16, 4], strides = [1, 1, 1]} : vector<14x16x4xf32> to vector<8x16x4xf32>
    %313 = vector.extract_strided_slice %5 {offsets = [1, 6, 0], sizes = [1, 1, 4], strides = [1, 1, 1]} : vector<7x7x4xf32> to vector<1x1x4xf32>
    %314 = vector.shape_cast %313 : vector<1x1x4xf32> to vector<4xf32>
    %315 = vector.shape_cast %314 : vector<4xf32> to vector<1x1x4xf32>
    %316 = vector.broadcast %315 : vector<1x1x4xf32> to vector<8x16x4xf32>
    %317 = arith.mulf %312, %316 : vector<8x16x4xf32>
    %318 = arith.addf %311, %317 : vector<8x16x4xf32>
    %319 = vector.extract_strided_slice %305 {offsets = [2, 0, 0], sizes = [8, 16, 4], strides = [1, 1, 1]} : vector<14x16x4xf32> to vector<8x16x4xf32>
    %320 = vector.extract_strided_slice %5 {offsets = [2, 6, 0], sizes = [1, 1, 4], strides = [1, 1, 1]} : vector<7x7x4xf32> to vector<1x1x4xf32>
    %321 = vector.shape_cast %320 : vector<1x1x4xf32> to vector<4xf32>
    %322 = vector.shape_cast %321 : vector<4xf32> to vector<1x1x4xf32>
    %323 = vector.broadcast %322 : vector<1x1x4xf32> to vector<8x16x4xf32>
    %324 = arith.mulf %319, %323 : vector<8x16x4xf32>
    %325 = arith.addf %318, %324 : vector<8x16x4xf32>
    %326 = vector.extract_strided_slice %305 {offsets = [3, 0, 0], sizes = [8, 16, 4], strides = [1, 1, 1]} : vector<14x16x4xf32> to vector<8x16x4xf32>
    %327 = vector.extract_strided_slice %5 {offsets = [3, 6, 0], sizes = [1, 1, 4], strides = [1, 1, 1]} : vector<7x7x4xf32> to vector<1x1x4xf32>
    %328 = vector.shape_cast %327 : vector<1x1x4xf32> to vector<4xf32>
    %329 = vector.shape_cast %328 : vector<4xf32> to vector<1x1x4xf32>
    %330 = vector.broadcast %329 : vector<1x1x4xf32> to vector<8x16x4xf32>
    %331 = arith.mulf %326, %330 : vector<8x16x4xf32>
    %332 = arith.addf %325, %331 : vector<8x16x4xf32>
    %333 = vector.extract_strided_slice %305 {offsets = [4, 0, 0], sizes = [8, 16, 4], strides = [1, 1, 1]} : vector<14x16x4xf32> to vector<8x16x4xf32>
    %334 = vector.extract_strided_slice %5 {offsets = [4, 6, 0], sizes = [1, 1, 4], strides = [1, 1, 1]} : vector<7x7x4xf32> to vector<1x1x4xf32>
    %335 = vector.shape_cast %334 : vector<1x1x4xf32> to vector<4xf32>
    %336 = vector.shape_cast %335 : vector<4xf32> to vector<1x1x4xf32>
    %337 = vector.broadcast %336 : vector<1x1x4xf32> to vector<8x16x4xf32>
    %338 = arith.mulf %333, %337 : vector<8x16x4xf32>
    %339 = arith.addf %332, %338 : vector<8x16x4xf32>
    %340 = vector.extract_strided_slice %305 {offsets = [5, 0, 0], sizes = [8, 16, 4], strides = [1, 1, 1]} : vector<14x16x4xf32> to vector<8x16x4xf32>
    %341 = vector.extract_strided_slice %5 {offsets = [5, 6, 0], sizes = [1, 1, 4], strides = [1, 1, 1]} : vector<7x7x4xf32> to vector<1x1x4xf32>
    %342 = vector.shape_cast %341 : vector<1x1x4xf32> to vector<4xf32>
    %343 = vector.shape_cast %342 : vector<4xf32> to vector<1x1x4xf32>
    %344 = vector.broadcast %343 : vector<1x1x4xf32> to vector<8x16x4xf32>
    %345 = arith.mulf %340, %344 : vector<8x16x4xf32>
    %346 = arith.addf %339, %345 : vector<8x16x4xf32>
    %347 = vector.extract_strided_slice %305 {offsets = [6, 0, 0], sizes = [8, 16, 4], strides = [1, 1, 1]} : vector<14x16x4xf32> to vector<8x16x4xf32>
    %348 = vector.extract_strided_slice %5 {offsets = [6, 6, 0], sizes = [1, 1, 4], strides = [1, 1, 1]} : vector<7x7x4xf32> to vector<1x1x4xf32>
    %349 = vector.shape_cast %348 : vector<1x1x4xf32> to vector<4xf32>
    %350 = vector.shape_cast %349 : vector<4xf32> to vector<1x1x4xf32>
    %351 = vector.broadcast %350 : vector<1x1x4xf32> to vector<8x16x4xf32>
    %352 = arith.mulf %347, %351 : vector<8x16x4xf32>
    %353 = arith.addf %346, %352 : vector<8x16x4xf32>
    %354 = arith.addf %304, %353 : vector<8x16x4xf32>
    %c0_5 = arith.constant 0 : index
    %c0_6 = arith.constant 0 : index
    %355 = vector.load %arg4[%c0_5, %c0_6] : memref<1x4xf32, #tpu.memory_space<vmem>>, vector<1x4xf32>
    %356 = vector.shape_cast %355 : vector<1x4xf32> to vector<4xf32>
    %357 = vector.shape_cast %356 : vector<4xf32> to vector<1x1x4xf32>
    %358 = vector.broadcast %357 : vector<1x1x4xf32> to vector<8x16x4xf32>
    %359 = arith.addf %354, %358 : vector<8x16x4xf32>
    %360 = vector.shape_cast %359 : vector<8x16x4xf32> to vector<128x4xf32>
    %cst = arith.constant dense<0.000000e+00> : vector<128xf32>
    %361 = vector.multi_reduction <add>, %360, %cst [1] : vector<128x4xf32> to vector<128xf32>
    %362 = vector.shape_cast %361 : vector<128xf32> to vector<128x1xf32>
    %cst_7 = arith.constant 4.000000e+00 : f32
    %363 = vector.broadcast %cst_7 : f32 to vector<128x1xf32>
    %364 = arith.divf %362, %363 : vector<128x1xf32>
    %365 = vector.broadcast %364 : vector<128x1xf32> to vector<128x4xf32>
    %366 = arith.subf %360, %365 : vector<128x4xf32>
    %367 = arith.mulf %366, %366 : vector<128x4xf32>
    %cst_8 = arith.constant dense<0.000000e+00> : vector<128xf32>
    %368 = vector.multi_reduction <add>, %367, %cst_8 [1] : vector<128x4xf32> to vector<128xf32>
    %369 = vector.shape_cast %368 : vector<128xf32> to vector<128x1xf32>
    %cst_9 = arith.constant 4.000000e+00 : f32
    %370 = vector.broadcast %cst_9 : f32 to vector<128x1xf32>
    %371 = arith.divf %369, %370 : vector<128x1xf32>
    %cst_10 = arith.constant 9.99999997E-7 : f32
    %372 = vector.broadcast %cst_10 : f32 to vector<128x1xf32>
    %373 = arith.addf %371, %372 : vector<128x1xf32>
    %374 = math.rsqrt %373 : vector<128x1xf32>
    %375 = vector.broadcast %374 : vector<128x1xf32> to vector<128x4xf32>
    %376 = arith.mulf %366, %375 : vector<128x4xf32>
    %c0_11 = arith.constant 0 : index
    %c0_12 = arith.constant 0 : index
    %377 = vector.load %arg5[%c0_11, %c0_12] : memref<1x4xf32, #tpu.memory_space<vmem>>, vector<1x4xf32>
    %378 = vector.shape_cast %377 : vector<1x4xf32> to vector<4xf32>
    %379 = vector.shape_cast %378 : vector<4xf32> to vector<1x4xf32>
    %380 = vector.broadcast %379 : vector<1x4xf32> to vector<128x4xf32>
    %381 = arith.mulf %376, %380 : vector<128x4xf32>
    %c0_13 = arith.constant 0 : index
    %c0_14 = arith.constant 0 : index
    %382 = vector.load %arg6[%c0_13, %c0_14] : memref<1x4xf32, #tpu.memory_space<vmem>>, vector<1x4xf32>
    %383 = vector.shape_cast %382 : vector<1x4xf32> to vector<4xf32>
    %384 = vector.shape_cast %383 : vector<4xf32> to vector<1x4xf32>
    %385 = vector.broadcast %384 : vector<1x4xf32> to vector<128x4xf32>
    %386 = arith.addf %381, %385 : vector<128x4xf32>
    %387 = arith.truncf %386 : vector<128x4xf32> to vector<128x4xbf16>
    %c0_15 = arith.constant 0 : index
    %c0_16 = arith.constant 0 : index
    %388 = vector.load %arg7[%c0_15, %c0_16] : memref<4x16xbf16, #tpu.memory_space<vmem>>, vector<4x16xbf16>
    %cst_17 = arith.constant dense<0.000000e+00> : vector<128x16xf32>
    %389 = tpu.matmul %387, %388, %cst_17 {dimension_numbers = #tpu.dot_dimension_numbers<[1], [0], [0], [1], [0, 0, 1, 1], [], []>} : vector<128x4xbf16>, vector<4x16xbf16>, vector<128x16xf32> -> vector<128x16xf32>
    %c0_18 = arith.constant 0 : index
    %c0_19 = arith.constant 0 : index
    %390 = vector.load %arg8[%c0_18, %c0_19] : memref<1x16xf32, #tpu.memory_space<vmem>>, vector<1x16xf32>
    %391 = vector.shape_cast %390 : vector<1x16xf32> to vector<16xf32>
    %392 = vector.shape_cast %391 : vector<16xf32> to vector<1x16xf32>
    %393 = vector.broadcast %392 : vector<1x16xf32> to vector<128x16xf32>
    %394 = arith.addf %389, %393 : vector<128x16xf32>
    %cst_20 = arith.constant 5.000000e-01 : f32
    %395 = vector.broadcast %cst_20 : f32 to vector<128x16xf32>
    %396 = arith.mulf %395, %394 : vector<128x16xf32>
    %cst_21 = arith.constant 0.707106769 : f32
    %397 = vector.broadcast %cst_21 : f32 to vector<128x16xf32>
    %398 = arith.mulf %394, %397 : vector<128x16xf32>
    %399 = math.erf %398 : vector<128x16xf32>
    %cst_22 = arith.constant 1.000000e+00 : f32
    %400 = vector.broadcast %cst_22 : f32 to vector<128x16xf32>
    %401 = arith.addf %400, %399 : vector<128x16xf32>
    %402 = arith.mulf %396, %401 : vector<128x16xf32>
    %403 = arith.truncf %402 : vector<128x16xf32> to vector<128x16xbf16>
    %c0_23 = arith.constant 0 : index
    %c0_24 = arith.constant 0 : index
    %404 = vector.load %arg9[%c0_23, %c0_24] : memref<16x4xbf16, #tpu.memory_space<vmem>>, vector<16x4xbf16>
    %cst_25 = arith.constant dense<0.000000e+00> : vector<128x4xf32>
    %405 = tpu.matmul %403, %404, %cst_25 {dimension_numbers = #tpu.dot_dimension_numbers<[1], [0], [0], [1], [0, 0, 1, 1], [], []>} : vector<128x16xbf16>, vector<16x4xbf16>, vector<128x4xf32> -> vector<128x4xf32>
    %c0_26 = arith.constant 0 : index
    %c0_27 = arith.constant 0 : index
    %406 = vector.load %arg10[%c0_26, %c0_27] : memref<1x4xf32, #tpu.memory_space<vmem>>, vector<1x4xf32>
    %407 = vector.shape_cast %406 : vector<1x4xf32> to vector<4xf32>
    %408 = vector.shape_cast %407 : vector<4xf32> to vector<1x4xf32>
    %409 = vector.broadcast %408 : vector<1x4xf32> to vector<128x4xf32>
    %410 = arith.addf %405, %409 : vector<128x4xf32>
    %c3_i32 = arith.constant 3 : i32
    %411 = arith.addi %1, %c3_i32 : i32
    %c0_28 = arith.constant 0 : index
    %412 = arith.index_cast %411 : i32 to index
    %c3 = arith.constant 3 : index
    %c0_29 = arith.constant 0 : index
    %413 = vector.load %arg2[%c0_28, %412, %c3, %c0_29] : memref<1x22x22x4xf32, #tpu.memory_space<vmem>>, vector<1x8x16x4xf32>
    %414 = vector.shape_cast %413 : vector<1x8x16x4xf32> to vector<8x16x4xf32>
    %415 = vector.shape_cast %410 : vector<128x4xf32> to vector<8x16x4xf32>
    %416 = arith.addf %414, %415 : vector<8x16x4xf32>
    %c0_30 = arith.constant 0 : index
    %c0_31 = arith.constant 0 : index
    %c0_32 = arith.constant 0 : index
    %c0_33 = arith.constant 0 : index
    %417 = vector.load %arg11[%c0_30, %c0_31, %c0_32, %c0_33] : memref<1x8x16x4xf32, #tpu.memory_space<vmem>>, vector<1x8x16x4xf32>
    %418 = vector.shape_cast %417 : vector<1x8x16x4xf32> to vector<8x16x4xf32>
    %419 = vector.shape_cast %416 : vector<8x16x4xf32> to vector<1x8x16x4xf32>
    tpu.vector_store %arg11[%c0_30, %c0_31, %c0_32, %c0_33], %419 {strides = array<i32>} : memref<1x8x16x4xf32, #tpu.memory_space<vmem>>, vector<1x8x16x4xf32>,
    return
  }
  func.func @transform_0(%arg0: i32, %arg1: i32) -> (i32, i32, i32, i32) {
    %c0_i32 = arith.constant 0 : i32
    %c0_i32_0 = arith.constant 0 : i32
    %c0_i32_1 = arith.constant 0 : i32
    %c0_i32_2 = arith.constant 0 : i32
    return %arg0, %c0_i32, %c0_i32_0, %c0_i32_1 : i32, i32, i32, i32
  }
  func.func @transform_1(%arg0: i32, %arg1: i32) -> (i32, i32, i32) {
    %c0_i32 = arith.constant 0 : i32
    %c0_i32_0 = arith.constant 0 : i32
    %c0_i32_1 = arith.constant 0 : i32
    %c0_i32_2 = arith.constant 0 : i32
    return %c0_i32, %c0_i32_0, %c0_i32_1 : i32, i32, i32
  }
  func.func @transform_2(%arg0: i32, %arg1: i32) -> (i32, i32) {
    %c0_i32 = arith.constant 0 : i32
    %c0_i32_0 = arith.constant 0 : i32
    %c0_i32_1 = arith.constant 0 : i32
    return %c0_i32, %c0_i32_0 : i32, i32
  }
  func.func @transform_3(%arg0: i32, %arg1: i32) -> (i32, i32) {
    %c0_i32 = arith.constant 0 : i32
    %c0_i32_0 = arith.constant 0 : i32
    %c0_i32_1 = arith.constant 0 : i32
    return %c0_i32, %c0_i32_0 : i32, i32
  }
  func.func @transform_4(%arg0: i32, %arg1: i32) -> (i32, i32) {
    %c0_i32 = arith.constant 0 : i32
    %c0_i32_0 = arith.constant 0 : i32
    %c0_i32_1 = arith.constant 0 : i32
    return %c0_i32, %c0_i32_0 : i32, i32
  }
  func.func @transform_5(%arg0: i32, %arg1: i32) -> (i32, i32) {
    %c0_i32 = arith.constant 0 : i32
    %c0_i32_0 = arith.constant 0 : i32
    %c0_i32_1 = arith.constant 0 : i32
    return %c0_i32, %c0_i32_0 : i32, i32
  }
  func.func @transform_6(%arg0: i32, %arg1: i32) -> (i32, i32) {
    %c0_i32 = arith.constant 0 : i32
    %c0_i32_0 = arith.constant 0 : i32
    %c0_i32_1 = arith.constant 0 : i32
    return %c0_i32, %c0_i32_0 : i32, i32
  }
  func.func @transform_7(%arg0: i32, %arg1: i32) -> (i32, i32) {
    %c0_i32 = arith.constant 0 : i32
    %c0_i32_0 = arith.constant 0 : i32
    %c0_i32_1 = arith.constant 0 : i32
    return %c0_i32, %c0_i32_0 : i32, i32
  }
  func.func @transform_8(%arg0: i32, %arg1: i32) -> (i32, i32) {
    %c0_i32 = arith.constant 0 : i32
    %c0_i32_0 = arith.constant 0 : i32
    %c0_i32_1 = arith.constant 0 : i32
    return %c0_i32, %c0_i32_0 : i32, i32
  }
  func.func @transform_9(%arg0: i32, %arg1: i32) -> (i32, i32, i32, i32) {
    %c0_i32 = arith.constant 0 : i32
    %c0_i32_0 = arith.constant 0 : i32
    %c0_i32_1 = arith.constant 0 : i32
    return %arg0, %arg1, %c0_i32, %c0_i32_0 : i32, i32, i32, i32
  }
}

</mosaic_0001>

<bundles_post_ra>
// kernel: tpu_custom_call.1
= control target key start
LH: loop header
LB: loop body
LE: loop exit
PB: predicated region body
PF: predicated region fallthrough
CT: control target
= control target key end

     0   :  { %s9143_s0 = inlined_call_operand.hbm [shape: f32[2,22,22,4], index: 0, kind: input, shape index: {}]   ;;  %s9144_s1 = inlined_call_operand.hbm [shape: f32[7,7,4], index: 1, kind: input, shape index: {}]   ;;  %s9145_s2 = inlined_call_operand.hbm [shape: f32[1,4], index: 2, kind: input, shape index: {}]   ;;  %s9146_s3 = inlined_call_operand.hbm [shape: f32[1,4], index: 3, kind: input, shape index: {}]   ;;  %s9147_s4 = inlined_call_operand.hbm [shape: f32[1,4], index: 4, kind: input, shape index: {}]   ;;  %s9148_s5 = inlined_call_operand.hbm [shape: bf16[4,16], index: 5, kind: input, shape index: {}]   ;;  %s9149_s6 = inlined_call_operand.hbm [shape: f32[1,16], index: 6, kind: input, shape index: {}]   ;;  %s9150_s7 = inlined_call_operand.hbm [shape: bf16[16,4], index: 7, kind: input, shape index: {}]   ;;  %s9151_s8 = inlined_call_operand.hbm [shape: f32[1,4], index: 8, kind: input, shape index: {}]   ;;  %s9152_s9 = inlined_call_operand.hbm [shape: f32[2,16,16,4], index: 9, kind: output, shape index: {}]  }
   0x1   :  { %9672 = sst [smem:[#allocation94_spill]] %s9143_s0 }
   0x2   :  { %9673 = sst [smem:[#allocation95_spill]] %s9144_s1 }
   0x3   :  { %9674 = sst [smem:[#allocation96_spill]] %s9145_s2 }
   0x4   :  { %9675 = sst [smem:[#allocation97_spill]] %s9146_s3 }
   0x5   :  { %9676 = sst [smem:[#allocation98_spill]] %s9147_s4 }
   0x6   :  { %9677 = sst [smem:[#allocation99_spill]] %s9152_s9 }
   0x7   :  { %14 = vsyncpa [#allocation3], 0 }
   0x8   :  { %16 = vsyncpa [#allocation3 + $0x1], 0 }
   0x9   :  { %17 = vsyncpa [#allocation6], 0 }
   0xa   :  { %18 = vsyncpa [#allocation9], 0 }
   0xb   :  { %19 = vsyncpa [#allocation12], 0 }
   0xc   :  { %20 = vsyncpa [#allocation15], 0 }
   0xd   :  { %21 = vsyncpa [#allocation4], 0 }
   0xe   :  { %23 = vsyncpa [#allocation4 + $0x1], 0  ;;  %s5167_s30 = smov 0   ;;  %s5169_s10 = smov 0  }
   0xf   :  { %s5171_s11 = smov 0   ;;  %s5173_s12 = smov 0  }
  0x10   :  { %s5175_s13 = smov 0   ;;  %s5177_s14 = smov 0  }
  0x11   :  { %s5179_s15 = smov 0   ;;  %s5181_s16 = smov 0  }
  0x12   :  { %s5183_s17 = smov 0   ;;  %s5185_s18 = smov 0  }
  0x13   :  { %s5187_s19 = smov 0  }
  0x14 LB: > { %9678 = sst [smem:[#allocation24_spill]] %s5059_s30  ;;  %s9153_s20 = sadd.s32 4294967295, %s5099_s19   ;;  %s5099_s19 = sphi %s5187_s19, %s29_s19   ;;  %s5095_s18 = sphi %s5185_s18, %s10401_s18   ;;  %s5091_s17 = sphi %s5183_s17, %s10400_s17   ;;  %s5087_s16 = sphi %s5181_s16, %s10399_s16   ;;  %s5083_s15 = sphi %s5179_s15, %s10398_s15   ;;  %s5079_s14 = sphi %s5177_s14, %s10397_s14   ;;  %s5075_s13 = sphi %s5175_s13, %s10396_s13   ;;  %s5071_s12 = sphi %s5173_s12, %s10395_s12   ;;  %s5067_s11 = sphi %s5171_s11, %s10394_s11   ;;  %s5063_s10 = sphi %s5169_s10, %s10391_s10   ;;  %s5059_s30 = sphi %s5167_s30, %s10390_s30  }
  0x15   : > { %9679 = sst [smem:[#allocation25_spill]] %s5063_s10  ;;  %p4264_p0 = scmp.ge.s32.totalorder %s5099_s19, 1 }
  0x16   : > { %9680 = sst [smem:[#allocation26_spill]] %s5067_s11  ;;  %p5226_p1 = scmp.eq.s32.totalorder %s9153_s20, 0 }
  0x17   : > { %9681 = sst [smem:[#allocation27_spill]] %s5083_s15  ;;  %p268_p2 = scmp.lt.s32.totalorder %s5099_s19, 5 }
  0x18   : > { %9682 = sst [smem:[#allocation28_spill]] %s5087_s16  ;;  %s5101_s23 = smov [#allocation5]  }
  0x19   : > { %s9683_s21 = scalar_select %p5226_p1, 1, 0 }
  0x1a   : > { %p5231_p3 = pnand %p4264_p0, %p268_p2  ;;  %s280_s24 = sshll.u32 %s5101_s23, 4  ;;  %s5235_s24 = int_to_ptr.vmem [resolvable:$true] %s280_s24 }
  0x1b   : > { %s5102_s26 = smov [#allocation8]   ;;  %s5103_s28 = smov [#allocation11]  }
  0x1c   : > { %s9684_s22 = scalar_select %p5231_p3, 1, 0 }
  0x1d   : > { %p4429_p4 = pneg %p5231_p3  ;;  %s305_s27 = sshll.u32 %s5102_s26, 4  ;;  %s5245_s27 = int_to_ptr.vmem [resolvable:$true] %s305_s27 }
  0x1e   : > { %9685 = sst [smem:[#allocation29_spill]] %s9684_s22  ;;  %s5247_s29 = sshll.u32 %s5103_s28, 4  ;;  %s328_s29 = int_to_ptr.vmem [resolvable:$true] %s5247_s29 }
  0x1f   : > { %p5241_p5 = pnand %p4429_p4, %p5226_p1  ;;  %s9687_s1 = sld [smem:[#allocation95_spill]] }
  0x21   : > { %p5257_p7 = pneg %p5241_p5 }
  0x25   : > { %s4707_s23 = scalar_lea.hbm %s9687_s1, 896 }
  0x26   : > { %p4708_p6 = scmp.ne.s32.totalorder %s9687_s1, %s4707_s23  ;;  %p4714_p10 = scmp.lt.u32.totalorder %s4707_s23, %s9687_s1 }
  0x28   : > { %p4710_p8 = pnand %p5257_p7, %p4708_p6 }
  0x2a   : > { %p4711_p9 = pneg %p4710_p8 }
  0x2c   : > { %p4716_p11 = pnand %p4714_p10, %p4711_p9 }
  0x2e   : > { %4719 = shalt.err (!%p4716_p11)
}
  0x2f   : > { %s4720_s9 = scalar_lea.vmem %s5235_s24, 896  ;;  %p4728_p2 = scmp.lt.s32.totalorder %s5235_s24, %s5235_s24 }
  0x30   : > { %p4721_p12 = scmp.ne.s32.totalorder %s5235_s24, %s4720_s9  ;;  %p4729_p4 = scmp.lt.s32.totalorder %s4720_s9, %s4720_s9 }
  0x32   : > { %p4723_p13 = pnand %p4721_p12, %p5257_p7  ;;  %p4730_p6 = por %p4729_p4, %p4728_p2 }
  0x34   : > { %p4724_p0 = pneg %p4723_p13 }
  0x36   : > { %p4731_p8 = pnand %p4730_p6, %p4724_p0 }
  0x38   : > { %4734 = shalt.err (!%p4731_p8)
}
  0x39   : > { %s9164_s15 = smov 128   ;;  %s9165_s16 = smov 8  }
  0x3a   : > { %4432 = dma.hbm_to_vmem [thread:$0]  (!%p5241_p5), %s9687_s1, 896, %s5235_s24, [#allocation6], %s9164_s15, %s9164_s15, %s9165_s16  }
  0x3b   : > { %s9689_s3 = sld [smem:[#allocation97_spill]] }
  0x41   : > { %s4735_s9 = scalar_lea.hbm %s9689_s3, 16 }
  0x42   : > { %p4736_p9 = scmp.ne.s32.totalorder %s9689_s3, %s4735_s9  ;;  %p4742_p12 = scmp.lt.u32.totalorder %s4735_s9, %s9689_s3 }
  0x44   : > { %p4738_p10 = pnand %p4736_p9, %p5257_p7 }
  0x46   : > { %p4739_p11 = pneg %p4738_p10 }
  0x48   : > { %p4744_p13 = pnand %p4742_p12, %p4739_p11 }
  0x4a   : > { %4747 = shalt.err (!%p4744_p13)
}
  0x4b   : > { %s4748_s24 = scalar_lea.vmem %s5245_s27, 16  ;;  %s4755_s0 = scalar_lea.vmem %s5245_s27, 32 }
  0x4c   : > { %p4749_p0 = scmp.ne.s32.totalorder %s5245_s27, %s4748_s24  ;;  %p4756_p6 = scmp.lt.s32.totalorder %s5245_s27, %s5245_s27 }
  0x4d   : > { %p4757_p8 = scmp.lt.s32.totalorder %s4755_s0, %s4748_s24 }
  0x4e   : > { %p4751_p2 = pnand %p4749_p0, %p5257_p7 }
  0x4f   : > { %p4758_p9 = por %p4757_p8, %p4756_p6 }
  0x50   : > { %p4752_p4 = pneg %p4751_p2 }
  0x52   : > { %p4759_p10 = pnand %p4758_p9, %p4752_p4 }
  0x54   : > { %4762 = shalt.err (!%p4759_p10)
}
  0x55   : > { %4438 = dma.hbm_to_vmem [thread:$0]  (!%p5241_p5), %s9689_s3, 16, %s5245_s27, [#allocation9]  }
  0x56   : > { %s4763_s23 = scalar_lea.hbm %s9148_s5, 32 }
  0x57   : > { %p4764_p11 = scmp.ne.s32.totalorder %s9148_s5, %s4763_s23  ;;  %p4770_p0 = scmp.lt.u32.totalorder %s4763_s23, %s9148_s5 }
  0x59   : > { %p4766_p12 = pnand %p4764_p11, %p5257_p7 }
  0x5b   : > { %p4767_p13 = pneg %p4766_p12 }
  0x5d   : > { %p4772_p2 = pnand %p4770_p0, %p4767_p13 }
  0x5f   : > { %4775 = shalt.err (!%p4772_p2)
}
  0x60   : > { %s4776_s0 = scalar_lea.vmem %s328_s29, 32  ;;  %p4784_p9 = scmp.lt.s32.totalorder %s328_s29, %s328_s29 }
  0x61   : > { %p4777_p4 = scmp.ne.s32.totalorder %s328_s29, %s4776_s0  ;;  %p4785_p10 = scmp.lt.s32.totalorder %s4776_s0, %s4776_s0 }
  0x63   : > { %p4779_p6 = pnand %p4777_p4, %p5257_p7  ;;  %p4786_p3 = por %p4785_p10, %p4784_p9 }
  0x65   : > { %p4780_p8 = pneg %p4779_p6 }
  0x67   : > { %p4787_p1 = pnand %p4786_p3, %p4780_p8 }
  0x69   : > { %4790 = shalt.err (!%p4787_p1)
}
  0x6a   : > { %4444 = dma.hbm_to_vmem [thread:$0]  (!%p5241_p5), %s9148_s5, 32, %s328_s29, [#allocation12]  }
  0x6b   : > { %s5106_s10 = smov [#allocation14]   ;;  %s4791_s26 = scalar_lea.hbm %s9150_s7, 128 }
  0x6c   : > { %s348_s11 = sshll.u32 %s5106_s10, 4  ;;  %p4792_p11 = scmp.ne.s32.totalorder %s9150_s7, %s4791_s26  ;;  %s349_s11 = int_to_ptr.vmem [resolvable:$true] %s348_s11 }
  0x6d   : > { %p4798_p12 = scmp.lt.u32.totalorder %s4791_s26, %s9150_s7 }
  0x6e   : > { %p4794_p1 = pnand %p4792_p11, %p5257_p7 }
  0x70   : > { %p4795_p3 = pneg %p4794_p1 }
  0x72   : > { %p4800_p13 = pnand %p4798_p12, %p4795_p3 }
  0x74   : > { %4803 = shalt.err (!%p4800_p13)
}
  0x75   : > { %s4804_s29 = scalar_lea.vmem %s349_s11, 128  ;;  %p4812_p6 = scmp.lt.s32.totalorder %s349_s11, %s349_s11 }
  0x76   : > { %p4805_p0 = scmp.ne.s32.totalorder %s349_s11, %s4804_s29  ;;  %p4813_p8 = scmp.lt.s32.totalorder %s4804_s29, %s4804_s29 }
  0x78   : > { %p4807_p2 = pnand %p4805_p0, %p5257_p7  ;;  %p4814_p9 = por %p4813_p8, %p4812_p6 }
  0x7a   : > { %p4808_p4 = pneg %p4807_p2 }
  0x7c   : > { %p4815_p10 = pnand %p4814_p9, %p4808_p4 }
  0x7e   : > { %4818 = shalt.err (!%p4815_p10)
}
  0x7f   : > { %s5107_s27 = smov 64   ;;  %s5108_s30 = smov 4  }
  0x80   : > { %4450 = dma.hbm_to_vmem [thread:$0]  (!%p5241_p5), %s9150_s7, 128, %s349_s11, [#allocation15], %s5107_s27, %s5107_s27, %s5108_s30  }
  0x81   : > { %s5109_s23 = smov [#allocation7]   ;;  %s5110_s28 = smov [#allocation10]  }
  0x82   : > { %s294_s26 = sshll.u32 %s5109_s23, 4  ;;  %s316_s9 = sshll.u32 %s5110_s28, 4  ;;  %s295_s26 = int_to_ptr.vmem [resolvable:$true] %s294_s26  ;;  %s5342_s9 = int_to_ptr.vmem [resolvable:$true] %s316_s9 }
  0x83   : > { %s9690_s2 = sld [smem:[#allocation96_spill]] }
  0x89   : > { %s4819_s29 = scalar_lea.hbm %s9690_s2, 16 }
  0x8a   : > { %p4820_p11 = scmp.ne.s32.totalorder %s9690_s2, %s4819_s29  ;;  %p4826_p12 = scmp.lt.u32.totalorder %s4819_s29, %s9690_s2 }
  0x8c   : > { %p4822_p1 = pnand %p4820_p11, %p5257_p7 }
  0x8e   : > { %p4823_p3 = pneg %p4822_p1 }
  0x90   : > { %p4828_p13 = pnand %p4826_p12, %p4823_p3 }
  0x92   : > { %4831 = shalt.err (!%p4828_p13)
}
  0x93   : > { %s4832_s27 = scalar_lea.vmem %s295_s26, 16  ;;  %s4839_s30 = scalar_lea.vmem %s295_s26, 32 }
  0x94   : > { %p4833_p0 = scmp.ne.s32.totalorder %s295_s26, %s4832_s27  ;;  %p4840_p6 = scmp.lt.s32.totalorder %s295_s26, %s295_s26 }
  0x95   : > { %p4841_p8 = scmp.lt.s32.totalorder %s4839_s30, %s4832_s27 }
  0x96   : > { %p4835_p2 = pnand %p4833_p0, %p5257_p7 }
  0x97   : > { %p4842_p9 = por %p4841_p8, %p4840_p6 }
  0x98   : > { %p4836_p4 = pneg %p4835_p2 }
  0x9a   : > { %p4843_p10 = pnand %p4842_p9, %p4836_p4 }
  0x9c   : > { %4846 = shalt.err (!%p4843_p10)
}
  0x9d   : > { %4435 = dma.hbm_to_vmem [thread:$0]  (!%p5241_p5), %s9690_s2, 16, %s295_s26, [#allocation6]  }
  0x9e   : > { %s9691_s4 = sld [smem:[#allocation98_spill]] }
  0xa4   : > { %s4847_s28 = scalar_lea.hbm %s9691_s4, 16 }
  0xa5   : > { %p4848_p11 = scmp.ne.s32.totalorder %s9691_s4, %s4847_s28  ;;  %p4854_p12 = scmp.lt.u32.totalorder %s4847_s28, %s9691_s4 }
  0xa7   : > { %p4850_p1 = pnand %p4848_p11, %p5257_p7 }
  0xa9   : > { %p4851_p3 = pneg %p4850_p1 }
  0xab   : > { %p4856_p13 = pnand %p4854_p12, %p4851_p3 }
  0xad   : > { %4859 = shalt.err (!%p4856_p13)
}
  0xae   : > { %s4860_s26 = scalar_lea.vmem %s5342_s9, 16  ;;  %s4867_s11 = scalar_lea.vmem %s5342_s9, 32 }
  0xaf   : > { %p4861_p0 = scmp.ne.s32.totalorder %s5342_s9, %s4860_s26  ;;  %p4868_p6 = scmp.lt.s32.totalorder %s5342_s9, %s5342_s9 }
  0xb0   : > { %p4869_p8 = scmp.lt.s32.totalorder %s4867_s11, %s4860_s26 }
  0xb1   : > { %p4863_p2 = pnand %p4861_p0, %p5257_p7 }
  0xb2   : > { %p4870_p9 = por %p4869_p8, %p4868_p6 }
  0xb3   : > { %p4864_p4 = pneg %p4863_p2 }
  0xb5   : > { %p4871_p10 = pnand %p4870_p9, %p4864_p4 }
  0xb7   : > { %4874 = shalt.err (!%p4871_p10)
}
  0xb8   : > { %4441 = dma.hbm_to_vmem [thread:$0]  (!%p5241_p5), %s9691_s4, 16, %s5342_s9, [#allocation9]  }
  0xb9   : > { %s5111_s15 = smov [#allocation13]   ;;  %s5112_s20 = smov [#allocation16]  }
  0xba   : > { %s338_s16 = sshll.u32 %s5111_s15, 4  ;;  %s362_s23 = sshll.u32 %s5112_s20, 4  ;;  %s339_s16 = int_to_ptr.vmem [resolvable:$true] %s338_s16  ;;  %s5386_s23 = int_to_ptr.vmem [resolvable:$true] %s362_s23 }
  0xbb   : > { %s4875_s0 = scalar_lea.hbm %s9149_s6, 16 }
  0xbc   : > { %p4876_p11 = scmp.ne.s32.totalorder %s9149_s6, %s4875_s0  ;;  %p4882_p12 = scmp.lt.u32.totalorder %s4875_s0, %s9149_s6 }
  0xbe   : > { %p4878_p1 = pnand %p4876_p11, %p5257_p7 }
  0xc0   : > { %p4879_p3 = pneg %p4878_p1 }
  0xc2   : > { %p4884_p13 = pnand %p4882_p12, %p4879_p3 }
  0xc4   : > { %4887 = shalt.err (!%p4884_p13)
}
  0xc5   : > { %s4888_s11 = scalar_lea.vmem %s339_s16, 16  ;;  %s4895_s27 = scalar_lea.vmem %s339_s16, 32 }
  0xc6   : > { %p4889_p0 = scmp.ne.s32.totalorder %s339_s16, %s4888_s11  ;;  %p4896_p6 = scmp.lt.s32.totalorder %s339_s16, %s339_s16 }
  0xc7   : > { %p4897_p8 = scmp.lt.s32.totalorder %s4895_s27, %s4888_s11 }
  0xc8   : > { %p4891_p2 = pnand %p4889_p0, %p5257_p7 }
  0xc9   : > { %p4898_p9 = por %p4897_p8, %p4896_p6 }
  0xca   : > { %p4892_p4 = pneg %p4891_p2 }
  0xcc   : > { %p4899_p10 = pnand %p4898_p9, %p4892_p4 }
  0xce   : > { %4902 = shalt.err (!%p4899_p10)
}
  0xcf   : > { %4447 = dma.hbm_to_vmem [thread:$0]  (!%p5241_p5), %s9149_s6, 16, %s339_s16, [#allocation12]  }
  0xd0   : > { %s4903_s24 = scalar_lea.hbm %s9151_s8, 16 }
  0xd1   : > { %p4904_p11 = scmp.ne.s32.totalorder %s9151_s8, %s4903_s24  ;;  %p4910_p12 = scmp.lt.u32.totalorder %s4903_s24, %s9151_s8 }
  0xd3   : > { %p4906_p1 = pnand %p4904_p11, %p5257_p7 }
  0xd5   : > { %p4907_p3 = pneg %p4906_p1 }
  0xd7   : > { %p4912_p13 = pnand %p4910_p12, %p4907_p3 }
  0xd9   : > { %4915 = shalt.err (!%p4912_p13)
}
  0xda   : > { %s4916_s16 = scalar_lea.vmem %s5386_s23, 16  ;;  %s4923_s9 = scalar_lea.vmem %s5386_s23, 32 }
  0xdb   : > { %p4917_p0 = scmp.ne.s32.totalorder %s5386_s23, %s4916_s16  ;;  %p4924_p6 = scmp.lt.s32.totalorder %s5386_s23, %s5386_s23 }
  0xdc   : > { %p4925_p8 = scmp.lt.s32.totalorder %s4923_s9, %s4916_s16 }
  0xdd   : > { %p4919_p2 = pnand %p4917_p0, %p5257_p7 }
  0xde   : > { %p4926_p9 = por %p4925_p8, %p4924_p6 }
  0xdf   : > { %p4920_p4 = pneg %p4919_p2 }
  0xe1   : > { %p4927_p10 = pnand %p4926_p9, %p4920_p4 }
  0xe3   : > { %4930 = shalt.err (!%p4927_p10)
}
  0xe4   : > { %4453 = dma.hbm_to_vmem [thread:$0]  (!%p5241_p5), %s9151_s8, 16, %s5386_s23, [#allocation15]  }
  0xe5   : > { %s9692_s22 = sld [smem:[#allocation26_spill]]  ;;  %s4263_s30 = sadd.s32 4294967294, %s5099_s19  }
  0xe6   : > { %s9693_s25 = sld [smem:[#allocation25_spill]]  ;;  %s38_s15 = sadd.s32 1, %s5091_s17 }
  0xe7   : > { %p39_p7 = scmp.ge.s32.totalorder %s38_s15, 2  ;;  %s41_s20 = sadd.s32 1, %s5095_s18 }
  0xe8   : > { %s48_s28 = sadd.s32 1, %s5079_s14  ;;  %p55_p11 = scmp.ne.s32.totalorder %s5079_s14, %s5075_s13 }
  0xe9   : > { %s10403_s15 = smov (%p39_p7, %s38_s15), 0  ;;  %s10405_s20 = smov (!%p39_p7, %s41_s20), %s5095_s18 }
  0xea   : > { %p56_p1 = scmp.eq.s32.totalorder %s5099_s19, 0  ;;  %p61_p3 = scmp.ne.s32.totalorder %s5075_s13, %s5071_s12 }
  0xeb   : > { %s9694_s23 = sld [smem:[#allocation24_spill]]  ;;  %p43_p5 = scmp.ge.s32.totalorder %s10405_s20, 2 }
  0xec   : > { %s240_s24 = ssub.s32 %s5091_s17, %s10403_s15  ;;  %p5444_p12 = por %p56_p1, %p55_p11 }
  0xed   : > { %p9696_p13 = scmp.ne.s32.totalorder %s9683_s21, 0  ;;  %s10407_s20 = smov (%p43_p5, %s10405_s20), 0 }
  0xee   : > { %s244_s10 = sadd.s32 1, %s9692_s22  ;;  %p254_p2 = scmp.ne.s32.totalorder %s9692_s22, %s9693_s25 }
  0xef   : > { %p5450_p0 = por %p9696_p13, %p61_p3  ;;  %s45_s12 = ssub.s32 %s5095_s18, %s10407_s20 }
  0xf0   : > { %s9698_s26 = sadd.s32 4294967295, %s5099_s19   ;;  %p46_p6 = scmp.eq.s32.totalorder %s45_s12, 0 }
  0xf1   : > { %p255_p4 = scmp.eq.s32.totalorder %s9698_s26, 3  ;;  %s241_s16 = sor.u32 %s240_s24, %s45_s12 }
  0xf2   : > { %p242_p8 = scmp.eq.s32.totalorder %s241_s16, 0  ;;  %p260_p10 = scmp.ne.s32.totalorder %s9693_s25, %s9694_s23 }
  0xf3   : > { %p5463_p9 = por %p255_p4, %p254_p2  ;;  %p261_p7 = scmp.eq.s32.totalorder %s4263_s30, 3 }
  0xf4   : > { %s5468_s11 = scalar_select %p46_p6, %s5079_s14, %s48_s28  }
  0xf5   : > { %s9699_s9 = scalar_select %p5463_p9, 1, 0 }
  0xf6   : > { %s10409_s22 = smov (!%p242_p8, %s9692_s22), %s244_s10  ;;  %p4470_p11 = scmp.lt.s32.totalorder %s5099_s19, 4 }
  0xf7   : > { %s373_s27 = sand.u32 1, %s5079_s14   ;;  %p5477_p1 = por %p261_p7, %p260_p10 }
  0xf8   : > { %s4390_s26 = smul.u32 528, %s373_s27  ;;  %p5483_p3 = pnand %p4470_p11, %p5444_p12 }
  0xf9   : > { %s9700_s1 = scalar_select %p5477_p1, 1, 0 }
  0xfa   : > { %s4391_s28 = smul.u32 8448, %s5095_s18  ;;  %s9702_s16 = sld [smem:[#allocation94_spill]] }
  0xfb   : > { %s377_s30 = scalar_lea.vmem [#allocation2], %s4390_s26  ;;  %s5495_s0 = scalar_lea.sflag [#allocation3], %s373_s27 }
  0xfc   : > { %s384_s23 = sshll.u32 %s377_s30, 4  ;;  %p4933_p12 = pneg %p5483_p3  ;;  %s5493_s23 = int_to_ptr.vmem [resolvable:$true] %s384_s23 }
 0x100   : > { %s9703_s2 = smov %s9702_s16  ;;  %s5491_s25 = scalar_lea.hbm %s9702_s16, %s4391_s28 }
 0x101   : > { %s4931_s3 = scalar_lea.hbm %s5491_s25, 8448  ;;  %s4936_s10 = scalar_lea.hbm %s9703_s2, 16896 }
 0x102   : > { %p4932_p5 = scmp.ne.s32.totalorder %s5491_s25, %s4931_s3  ;;  %p4937_p4 = scmp.lt.u32.totalorder %s5491_s25, %s9703_s2 }
 0x103   : > { %p4938_p6 = scmp.lt.u32.totalorder %s4936_s10, %s4931_s3  ;;  %p4940_p10 = scmp.lt.u32.totalorder %s4931_s3, %s5491_s25 }
 0x104   : > { %p4934_p13 = pnand %p4933_p12, %p4932_p5 }
 0x105   : > { %p4939_p8 = por %p4938_p6, %p4937_p4 }
 0x106   : > { %p4935_p2 = pneg %p4934_p13 }
 0x107   : > { %p4941_p7 = por %p4940_p10, %p4939_p8 }
 0x109   : > { %p4942_p11 = pnand %p4941_p7, %p4935_p2 }
 0x10b   : > { %4945 = shalt.err (!%p4942_p11)
}
 0x10c   : > { %s4946_s27 = scalar_lea.vmem %s5493_s23, 8448  ;;  %s5113_s26 = smov [#allocation2]  }
 0x10d   : > { %p4947_p5 = scmp.ne.s32.totalorder %s5493_s23, %s4946_s27  ;;  %s4951_s30 = sshll.u32 %s5113_s26, 4  ;;  %s4952_s30 = int_to_ptr.vmem [resolvable:$false] %s4951_s30 }
 0x10e   : > { %s4953_s4 = scalar_lea.vmem %s4952_s30, 16896  ;;  %p4954_p9 = scmp.lt.s32.totalorder %s5493_s23, %s4952_s30 }
 0x10f   : > { %p4949_p13 = pnand %p4947_p5, %p4933_p12  ;;  %p4955_p4 = scmp.lt.s32.totalorder %s4953_s4, %s4946_s27 }
 0x111   : > { %p4950_p1 = pneg %p4949_p13  ;;  %p4956_p6 = por %p4955_p4, %p4954_p9 }
 0x113   : > { %p4957_p8 = pnand %p4956_p6, %p4950_p1 }
 0x115   : > { %4960 = shalt.err (!%p4957_p8)
}
 0x116   : > { %s9704_s3 = smov 8   ;;  %s9705_s28 = smov 128  }
 0x117   : > { %4457 = dma.hbm_to_vmem [thread:$0]  (!%p5483_p3), %s5491_s25, 8448, %s5493_s23, %s5495_s0, %s9705_s28, %s9705_s28, %s9704_s3  }
 0x118   : > { %s9706_s12 = sld [smem:[#allocation29_spill]] }
 0x11e   : > { %p9707_p12 = scmp.ne.s32.totalorder %s9706_s12, 0 }
 0x120   : > { %396 = sbr.rel (%p9707_p12) target bundleno = 1753 (0x6d9), region = 56 }
 0x127   : > { %s398_s10 = sand.u32 1, %s5075_s13  }
 0x128   : > { %s4392_s16 = smul.u32 528, %s398_s10  ;;  %s399_s27 = scalar_lea.sflag [#allocation3], %s398_s10 }
 0x12a   : > { %s402_s26 = scalar_lea.vmem [#allocation2], %s4392_s16 }
 0x12b   : > { %5034 = dma.done.wait (%p5450_p0), %s399_s27, 8448  }
 0x12c   : > { %5036 = vsyncadd (%p5450_p0), %s399_s27, 4294958848  ;;  %p9708_p9 = scmp.ne.s32.totalorder %s9683_s21, 0 }
 0x12e   : > { %5038 = dma.done.wait (%p9708_p9), [#allocation6], 912  }
 0x12f   : > { %5040 = vsyncadd (%p9708_p9), [#allocation6], 4294966384 }
 0x130   : > { %5042 = dma.done.wait (%p9708_p9), [#allocation9], 32  }
 0x131   : > { %5044 = vsyncadd (%p9708_p9), [#allocation9], 4294967264 }
 0x132   : > { %5046 = dma.done.wait (%p9708_p9), [#allocation12], 48  }
 0x133   : > { %5048 = vsyncadd (%p9708_p9), [#allocation12], 4294967248 }
 0x134   : > { %5050 = dma.done.wait (%p9708_p9), [#allocation15], 144  }
 0x135   : > { %5052 = vsyncadd (%p9708_p9), [#allocation15], 4294967152  ;;  %s9709_s29 = sld [smem:[#allocation27_spill]]  ;;  %v523_v0 = vlaneseq  ;;  %v5564_v9 = vld [vmem:[#allocation5] sm:$0x7f]  ;;  %vm1123_vm0 = vcmask 1046528  }
 0x136   : > { %v5573_v13 = vld [vmem:[#allocation5 + $0x8] sm:$0x7f]  ;;  %v5575_v14 = vld [vmem:[#allocation5 + $0x10] sm:$0x7f]  ;;  %v5577_v15 = vld [vmem:[#allocation5 + $0x18] sm:$0x7f] }
 0x137   : > { %v524_v1 = vshrl.u32 %v523_v0, 7  ;;  %v5593_v20 = vld [vmem:[#allocation5 + $0x20] sm:$0x7f]  ;;  %v5595_v21 = vld [vmem:[#allocation5 + $0x28] sm:$0x7f]  ;;  %vm1560_vm1 = vcmask 1045504  }
 0x138   : > { %v5597_v22 = vld [vmem:[#allocation5 + $0x30] sm:$0x7f]  ;;  %vm1997_vm2 = vcmask 1044480   ;;  %vm2434_vm3 = vcmask 1043456   ;;  %vm2871_vm4 = vcmask 1042432   ;;  %vm3308_vm5 = vcmask 1041408  }
 0x139   : > { %v525_v2 = vsub.s32 0, %v524_v1  ;;  %v761_v3 = vsub.s32 1, %v524_v1  ;;  %v5552_v4 = vsub.s32 2, %v524_v1  ;;  %v5554_v5 = vsub.s32 3, %v524_v1  ;;  %s10384_s21 = sld [smem:[#allocation25_spill]]  ;;  %s10385_s4 = sld [smem:[#allocation28_spill]] }
 0x13a   : > { %v5556_v6 = vsub.s32 4, %v524_v1  ;;  %v5566_v10 = vsub.s32 5, %v524_v1  ;;  %v5568_v11 = vsub.s32 6, %v524_v1  ;;  %vm3404_vm6 = vcmask 31744   ;;  %p10387_p1 = scmp.ne.s32.totalorder %s9699_s9, 0 }
 0x13b   : > { %s4286_s24 = smul.u32 192, %s9709_s29  ;;  %v5580_v16 = vrot.slane %v5564_v9, %v525_v2  ;;  %v5583_v17 = vrot.slane %v5564_v9, %v761_v3  ;;  %v5587_v18 = vrot.slane %v5564_v9, %v5552_v4  ;;  %v5591_v19 = vrot.slane %v5564_v9, %v5554_v5  ;;  %s4334_s3 = sshll.u32 %s9709_s29, 4 }
 0x13c   : > { %v5600_v23 = vrot.slane %v5573_v13, %v525_v2  ;;  %v5603_v24 = vrot.slane %v5575_v14, %v525_v2  ;;  %v5606_v25 = vrot.slane %v5577_v15, %v525_v2  ;;  %v5609_v26 = vrot.slane %v5573_v13, %v761_v3  ;;  %s10386_s29 = sld [smem:[#allocation99_spill]] }
 0x13d   : > { %s5550_s25 = scalar_lea.vmem %s402_s26, %s4286_s24 [#allocation2]  ;;  %9710 = vst [vmem:[#allocation30_spill] sm:$0xff] %v5580_v16  ;;  %9711 = vst [vmem:[#allocation31_spill] sm:$0xff] %v5583_v17  ;;  %v5623_v31 = vrot.slane %v5593_v20, %v525_v2  ;;  %v5626_v32 = vrot.slane %v5595_v21, %v525_v2  ;;  %v5629_v33 = vrot.slane %v5597_v22, %v525_v2  ;;  %vm3903_vm7 = vcmask 130048  }
 0x13e   : > { %v5559_v7 = vld [vmem:[%s5550_s25] sm:$0xff]  ;;  %v5562_v8 = vld [vmem:[%s5550_s25 + $0x8] sm:$0xff]  ;;  %v5571_v12 = vld [vmem:[%s5550_s25 + $0x18] sm:$0xff]  ;;  %9712 = vst [vmem:[#allocation32_spill] sm:$0xff] %v5587_v18  ;;  %v5667_v50 = vrot.slane %v5575_v14, %v761_v3  ;;  %v5673_v52 = vrot.slane %v5577_v15, %v761_v3  ;;  %v5676_v53 = vrot.slane %v5593_v20, %v761_v3  ;;  %v5679_v54 = vrot.slane %v5595_v21, %v761_v3 }
 0x13f   : > { %9713 = vst [vmem:[#allocation33_spill] sm:$0xff] %v5591_v19  ;;  %9714 = vst [vmem:[#allocation34_spill] sm:$0xff] %v5600_v23  ;;  %v5612_v27 = vld [vmem:[%s5550_s25 + $0x20] sm:$0xff]  ;;  %v5615_v28 = vld [vmem:[%s5550_s25 + $0x30] sm:$0xff]  ;;  %v527_v30 = vmul.f32 %v5580_v16, %v5559_v7  ;;  %v547_v37 = vmul.f32 %v5600_v23, %v5571_v12  ;;  %v763_v40 = vmul.f32 %v5583_v17, %v5559_v7  ;;  %s466_s23 = sand.u32 1, %s10384_s21   ;;  %s4330_s28 = sshll.u32 %s10385_s4, 5 }
 0x140   : > { %9715 = vst [vmem:[#allocation35_spill] sm:$0xff] %v5603_v24  ;;  %9716 = vst [vmem:[#allocation36_spill] sm:$0xff] %v5606_v25  ;;  %v5618_v29 = vld [vmem:[%s5550_s25 + $0x48] sm:$0xff]  ;;  %v5632_v34 = vld [vmem:[%s5550_s25 + $0x60] sm:$0xff]  ;;  %v583_v38 = vmul.f32 %v5603_v24, %v5615_v28  ;;  %v764_v44 = vmul.f32 %v5583_v17, %v5562_v8  ;;  %v791_v48 = vmul.f32 %v5609_v26, %v5571_v12  ;;  %s4284_s0 = sshll.u32 %s466_s23, 7  ;;  %s4090_s12 = sadd.s32 %s4334_s3, %s4330_s28 }
 0x141   : > { %9717 = vst [vmem:[#allocation37_spill] sm:$0xff] %v5609_v26  ;;  %9718 = vst [vmem:[#allocation38_spill] sm:$0xff] %v5623_v31  ;;  %v5635_v35 = vld [vmem:[%s5550_s25 + $0x78] sm:$0xff]  ;;  %v5638_v36 = vld [vmem:[%s5550_s25 + $0x90] sm:$0xff]  ;;  %v619_v39 = vmul.f32 %v5606_v25, %v5618_v29  ;;  %v655_v41 = vmul.f32 %v5623_v31, %v5632_v34  ;;  %v563_v47 = vadd.f32 %v547_v37, %v527_v30  ;;  %s9012_s30 = scalar_lea.vmem [#allocation17], %s4284_s0  ;;  %s4331_s10 = sshll.u32 %s4090_s12, 7 }
 0x142   : > { %9719 = vst [vmem:[#allocation39_spill] sm:$0xff] %v5626_v32  ;;  %9720 = vst [vmem:[#allocation40_spill] sm:$0xff] %v5629_v33  ;;  %v691_v42 = vmul.f32 %v5626_v32, %v5635_v35  ;;  %v727_v43 = vmul.f32 %v5629_v33, %v5638_v36  ;;  %v5657_v45 = vld [vmem:[%s5550_s25 + $0x38] sm:$0xff]  ;;  %v5660_v46 = vld [vmem:[%s5550_s25 + $0x50] sm:$0xff]  ;;  %v792_v49 = vmul.f32 %v5609_v26, %v5612_v27  ;;  %s4093_s16 = sshll.u32 %s9012_s30, 4  ;;  %s9070_s24 = scalar_lea.hbm %s10386_s29, %s4331_s10  ;;  %s9072_s16 = int_to_ptr.vmem [resolvable:$true] %s4093_s16 }
 0x143   : > { %9721 = vst [vmem:[#allocation41_spill] sm:$0xff] %v5667_v50  ;;  %v5670_v51 = vld [vmem:[%s5550_s25 + $0x68] sm:$0xff]  ;;  %9722 = vst [vmem:[#allocation42_spill] sm:$0xff] %v5673_v52  ;;  %v5682_v55 = vrot.slane %v5597_v22, %v761_v3  ;;  %v5685_v56 = vld [vmem:[%s5550_s25 + $0x80] sm:$0xff]  ;;  %v599_v58 = vadd.f32 %v583_v38, %v563_v47  ;;  %v815_v59 = vadd.f32 %v791_v48, %v763_v40  ;;  %s4961_s0 = scalar_lea.vmem %s9072_s16, 2048  ;;  %s5114_s4 = smov [#allocation17]  }
 0x144   : > { %9723 = vst [vmem:[#allocation43_spill] sm:$0xff] %v5676_v53  ;;  %9724 = vst [vmem:[#allocation44_spill] sm:$0xff] %v5679_v54  ;;  %v5688_v57 = vld [vmem:[%s5550_s25 + $0x98] sm:$0xff]  ;;  %v816_v60 = vadd.f32 %v792_v49, %v764_v44  ;;  %v843_v61 = vmul.f32 %v5667_v50, %v5615_v28  ;;  %v844_v62 = vmul.f32 %v5667_v50, %v5657_v45  ;;  %p4962_p0 = scmp.ne.s32.totalorder %s9072_s16, %s4961_s0  ;;  %s4965_s3 = sshll.u32 %s5114_s4, 4  ;;  %s4966_s3 = int_to_ptr.vmem [resolvable:$false] %s4965_s3 }
 0x145   : > { %9725 = vst [vmem:[#allocation45_spill] sm:$0xff] %v5682_v55  ;;  %v895_v63 = vmul.f32 %v5673_v52, %v5618_v29  ;;  %v896_v0 = vmul.f32 %v5673_v52, %v5660_v46  ;;  %v947_v1 = vmul.f32 %v5676_v53, %v5632_v34  ;;  %v635_v2 = vadd.f32 %v619_v39, %v599_v58  ;;  %s4967_s28 = scalar_lea.vmem %s4966_s3, 4096  ;;  %p4968_p10 = scmp.lt.s32.totalorder %s9072_s16, %s4966_s3 }
 0x146   : > { %v867_v3 = vadd.f32 %v843_v61, %v815_v59  ;;  %v948_v30 = vmul.f32 %v5676_v53, %v5670_v51  ;;  %v999_v37 = vmul.f32 %v5679_v54, %v5635_v35  ;;  %v868_v38 = vadd.f32 %v844_v62, %v816_v60  ;;  %p4963_p3 = pnand %p4962_p0, %p10387_p1  ;;  %p4969_p7 = scmp.lt.s32.totalorder %s4967_s28, %s4961_s0 }
 0x147   : > { %v1000_v40 = vmul.f32 %v5679_v54, %v5685_v56  ;;  %v1051_v44 = vmul.f32 %v5682_v55, %v5638_v36  ;;  %v1052_v47 = vmul.f32 %v5682_v55, %v5688_v57  ;;  %v671_v48 = vadd.f32 %v655_v41, %v635_v2 }
 0x148   : > { %v919_v49 = vadd.f32 %v895_v63, %v867_v3  ;;  %v1200_v39 = vmul.f32 %v5587_v18, %v5559_v7  ;;  %v1201_v58 = vmul.f32 %v5587_v18, %v5562_v8  ;;  %v920_v59 = vadd.f32 %v896_v0, %v868_v38  ;;  %p4964_p2 = pneg %p4963_p3  ;;  %p4970_p11 = por %p4969_p7, %p4968_p10 }
 0x149   : > { %v5716_v60 = vrot.slane %v5573_v13, %v5552_v4  ;;  %v5720_v61 = vrot.slane %v5575_v14, %v5552_v4  ;;  %v5724_v41 = vrot.slane %v5577_v15, %v5552_v4  ;;  %v707_v62 = vadd.f32 %v691_v42, %v671_v48 }
 0x14a   : > { %v971_v63 = vadd.f32 %v947_v1, %v919_v49  ;;  %v5728_v2 = vrot.slane %v5593_v20, %v5552_v4  ;;  %v5732_v0 = vrot.slane %v5595_v21, %v5552_v4  ;;  %v972_v3 = vadd.f32 %v948_v30, %v920_v59  ;;  %p4971_p5 = pnand %p4970_p11, %p4964_p2 }
 0x14b   : > { %9726 = vst [vmem:[#allocation46_spill] sm:$0xff] %v5716_v60  ;;  %9727 = vst [vmem:[#allocation47_spill] sm:$0xff] %v5720_v61  ;;  %v1228_v38 = vmul.f32 %v5716_v60, %v5571_v12  ;;  %v1229_v18 = vmul.f32 %v5716_v60, %v5612_v27  ;;  %v1280_v55 = vmul.f32 %v5720_v61, %v5615_v28 }
 0x14c   : > { %9728 = vst [vmem:[#allocation48_spill] sm:$0xff] %v5724_v41  ;;  %9729 = vst [vmem:[#allocation49_spill] sm:$0xff] %v5728_v2  ;;  %v743_v42 = vadd.f32 %v727_v43, %v707_v62  ;;  %v1023_v1 = vadd.f32 %v999_v37, %v971_v63  ;;  %v1281_v48 = vmul.f32 %v5720_v61, %v5657_v45 }
 0x14d   : > { %9730 = vst [vmem:[#allocation50_spill] sm:$0xff] %v5732_v0  ;;  %v1332_v49 = vmul.f32 %v5724_v41, %v5618_v29  ;;  %v1024_v54 = vadd.f32 %v1000_v40, %v972_v3  ;;  %v1252_v53 = vadd.f32 %v1228_v38, %v1200_v39  ;;  %v1253_v30 = vadd.f32 %v1229_v18, %v1201_v58 }
 0x14e   : > { %v1333_v59 = vmul.f32 %v5724_v41, %v5660_v46  ;;  %v1075_v52 = vadd.f32 %v1051_v44, %v1023_v1  ;;  %v1384_v60 = vmul.f32 %v5728_v2, %v5632_v34  ;;  %v1385_v43 = vmul.f32 %v5728_v2, %v5670_v51 }
 0x14f   : > { %v1436_v37 = vmul.f32 %v5732_v0, %v5635_v35  ;;  %v5752_v62 = vadd.f32 %v1052_v47, %v1024_v54  ;;  %v1304_v63 = vadd.f32 %v1280_v55, %v1252_v53  ;;  %v1305_v61 = vadd.f32 %v1281_v48, %v1253_v30 }
 0x150   : > { %v1437_v18 = vmul.f32 %v5732_v0, %v5685_v56  ;;  %v1124_v40 = vrot.slane %v1075_v52, 1  ;;  %v5758_v44 = vrot.slane %v5597_v22, %v5552_v4  ;;  %v1637_v39 = vmul.f32 %v5591_v19, %v5559_v7 }
 0x151   : > { %9731 = vst [vmem:[#allocation51_spill] sm:$0xff] %v5752_v62  ;;  %v1638_v58 = vmul.f32 %v5591_v19, %v5562_v8  ;;  %v9188_v54 = vrot.slane %v5752_v62, 1  ;;  %v1356_v47 = vadd.f32 %v1332_v49, %v1304_v63  ;;  %v1357_v53 = vadd.f32 %v1333_v59, %v1305_v61 }
 0x152   : > { %9732 = vst [vmem:[#allocation52_spill] sm:$0xff] %v5758_v44  ;;  %v5767_v55 = vrot.slane %v5573_v13, %v5554_v5  ;;  %v1488_v52 = vmul.f32 %v5758_v44, %v5638_v36  ;;  %v1489_v4 = vmul.f32 %v5758_v44, %v5688_v57  ;;  %v5775_v3 = vrot.slane %v5575_v14, %v5554_v5 }
 0x153   : > { %v5779_v38 = vrot.slane %v5577_v15, %v5554_v5  ;;  %v1126_v61 = vsel %vm1123_vm0, %v1124_v40, %v9188_v54  ;;  %v1408_v1 = vadd.f32 %v1384_v60, %v1356_v47  ;;  %v1409_v48 = vadd.f32 %v1385_v43, %v1357_v53 }
 0x154   : > { %9733 = vst [vmem:[#allocation53_spill] sm:$0xff] %v5767_v55  ;;  %9734 = vst [vmem:[#allocation54_spill] sm:$0xff] %v5775_v3  ;;  %v1665_v49 = vmul.f32 %v5767_v55, %v5571_v12  ;;  %v1180_v30 = vadd.f32 %v1126_v61, %v743_v42  ;;  %v1666_v59 = vmul.f32 %v5767_v55, %v5612_v27 }
 0x155   : > { %9735 = vst [vmem:[#allocation55_spill] sm:$0xff] %v5779_v38  ;;  %v1717_v63 = vmul.f32 %v5775_v3, %v5615_v28  ;;  %v1718_v19 = vmul.f32 %v5775_v3, %v5657_v45  ;;  %v1460_v44 = vadd.f32 %v1436_v37, %v1408_v1  ;;  %v1461_v0 = vadd.f32 %v1437_v18, %v1409_v48 }
 0x156   : > { %v1689_v62 = vadd.f32 %v1665_v49, %v1637_v39  ;;  %v1769_v60 = vmul.f32 %v5779_v38, %v5618_v29  ;;  %v1690_v43 = vadd.f32 %v1666_v59, %v1638_v58  ;;  %v1770_v40 = vmul.f32 %v5779_v38, %v5660_v46 }
 0x157   : > { %v5798_v42 = vrot.slane %v5593_v20, %v5554_v5  ;;  %v5802_v47 = vrot.slane %v5595_v21, %v5554_v5  ;;  %v1512_v53 = vadd.f32 %v1488_v52, %v1460_v44  ;;  %v5804_v61 = vadd.f32 %v1489_v4, %v1461_v0 }
 0x158   : > { %v1741_v37 = vadd.f32 %v1717_v63, %v1689_v62  ;;  %v5808_v18 = vrot.slane %v5597_v22, %v5554_v5  ;;  %v1742_v39 = vadd.f32 %v1718_v19, %v1690_v43  ;;  %v5825_v4 = vrot.slane %v5564_v9, %v5556_v6 }
 0x159   : > { %9736 = vst [vmem:[#allocation56_spill] sm:$0xff] %v5798_v42  ;;  %9737 = vst [vmem:[#allocation57_spill] sm:$0xff] %v5802_v47  ;;  %v1821_v58 = vmul.f32 %v5798_v42, %v5632_v34  ;;  %v1822_v1 = vmul.f32 %v5798_v42, %v5670_v51  ;;  %v1873_v48 = vmul.f32 %v5802_v47, %v5635_v35  ;;  %v1561_v49 = vrot.slane %v1512_v53, 2 }
 0x15a   : > { %9738 = vst [vmem:[#allocation58_spill] sm:$0xff] %v5804_v61  ;;  %9739 = vst [vmem:[#allocation59_spill] sm:$0xff] %v5808_v18  ;;  %v9189_v44 = vrot.slane %v5804_v61, 2  ;;  %v1793_v0 = vadd.f32 %v1769_v60, %v1741_v37  ;;  %v1874_v62 = vmul.f32 %v5802_v47, %v5685_v56  ;;  %v1794_v5 = vadd.f32 %v1770_v40, %v1742_v39 }
 0x15b   : > { %v1925_v19 = vmul.f32 %v5808_v18, %v5638_v36  ;;  %v1926_v52 = vmul.f32 %v5808_v18, %v5688_v57  ;;  %9740 = vst [vmem:[#allocation60_spill] sm:$0xff] %v5825_v4  ;;  %v5832_v60 = vrot.slane %v5573_v13, %v5556_v6  ;;  %v5836_v43 = vrot.slane %v5575_v14, %v5556_v6 }
 0x15c   : > { %v1563_v59 = vsel %vm1560_vm1, %v1561_v49, %v9189_v44  ;;  %v1845_v63 = vadd.f32 %v1821_v58, %v1793_v0  ;;  %v1846_v53 = vadd.f32 %v1822_v1, %v1794_v5  ;;  %v2074_v37 = vmul.f32 %v5825_v4, %v5559_v7 }
 0x15d   : > { %9741 = vst [vmem:[#allocation61_spill] sm:$0xff] %v5832_v60  ;;  %9742 = vst [vmem:[#allocation62_spill] sm:$0xff] %v5836_v43  ;;  %v1617_v40 = vadd.f32 %v1563_v59, %v1180_v30  ;;  %v2075_v39 = vmul.f32 %v5825_v4, %v5562_v8  ;;  %v2102_v58 = vmul.f32 %v5832_v60, %v5571_v12 }
 0x15e   : > { %v1897_v54 = vadd.f32 %v1873_v48, %v1845_v63  ;;  %v2103_v49 = vmul.f32 %v5832_v60, %v5612_v27  ;;  %v2154_v0 = vmul.f32 %v5836_v43, %v5615_v28  ;;  %v1898_v44 = vadd.f32 %v1874_v62, %v1846_v53 }
 0x15f   : > { %v2155_v30 = vmul.f32 %v5836_v43, %v5657_v45  ;;  %v5852_v1 = vrot.slane %v5577_v15, %v5556_v6  ;;  %v5856_v48 = vrot.slane %v5593_v20, %v5556_v6  ;;  %v2126_v59 = vadd.f32 %v2102_v58, %v2074_v37 }
 0x160   : > { %v1949_v5 = vadd.f32 %v1925_v19, %v1897_v54  ;;  %v2127_v63 = vadd.f32 %v2103_v49, %v2075_v39  ;;  %v5860_v61 = vrot.slane %v5595_v21, %v5556_v6  ;;  %v5862_v60 = vadd.f32 %v1926_v52, %v1898_v44 }
 0x161   : > { %9743 = vst [vmem:[#allocation63_spill] sm:$0xff] %v5852_v1  ;;  %9744 = vst [vmem:[#allocation64_spill] sm:$0xff] %v5856_v48  ;;  %v2206_v62 = vmul.f32 %v5852_v1, %v5618_v29  ;;  %v2207_v53 = vmul.f32 %v5852_v1, %v5660_v46  ;;  %v2258_v43 = vmul.f32 %v5856_v48, %v5632_v34 }
 0x162   : > { %9745 = vst [vmem:[#allocation65_spill] sm:$0xff] %v5860_v61  ;;  %9746 = vst [vmem:[#allocation66_spill] sm:$0xff] %v5862_v60  ;;  %v1998_v4 = vrot.slane %v1949_v5, 3  ;;  %v2178_v18 = vadd.f32 %v2154_v0, %v2126_v59  ;;  %v2179_v54 = vadd.f32 %v2155_v30, %v2127_v63  ;;  %v2259_v19 = vmul.f32 %v5856_v48, %v5670_v51 }
 0x163   : > { %v9200_v37 = vrot.slane %v5862_v60, 3  ;;  %v2310_v44 = vmul.f32 %v5860_v61, %v5635_v35  ;;  %v2311_v52 = vmul.f32 %v5860_v61, %v5685_v56  ;;  %v5879_v39 = vrot.slane %v5597_v22, %v5556_v6 }
 0x164   : > { %v2230_v58 = vadd.f32 %v2206_v62, %v2178_v18  ;;  %v2231_v49 = vadd.f32 %v2207_v53, %v2179_v54  ;;  %v5883_v0 = vrot.slane %v5564_v9, %v5566_v10  ;;  %v5887_v30 = vrot.slane %v5573_v13, %v5566_v10 }
 0x165   : > { %9747 = vst [vmem:[#allocation67_spill] sm:$0xff] %v5879_v39  ;;  %v2000_v5 = vsel %vm1997_vm2, %v1998_v4, %v9200_v37  ;;  %v2362_v59 = vmul.f32 %v5879_v39, %v5638_v36  ;;  %v2363_v6 = vmul.f32 %v5879_v39, %v5688_v57  ;;  %v5898_v18 = vrot.slane %v5575_v14, %v5566_v10 }
 0x166   : > { %9748 = vst [vmem:[#allocation68_spill] sm:$0xff] %v5883_v0  ;;  %9749 = vst [vmem:[#allocation69_spill] sm:$0xff] %v5887_v30  ;;  %v2054_v63 = vadd.f32 %v2000_v5, %v1617_v40  ;;  %v2282_v62 = vadd.f32 %v2258_v43, %v2230_v58  ;;  %v2283_v53 = vadd.f32 %v2259_v19, %v2231_v49 }
 0x167   : > { %9750 = vst [vmem:[#allocation70_spill] sm:$0xff] %v5898_v18  ;;  %v2511_v54 = vmul.f32 %v5883_v0, %v5559_v7  ;;  %v2512_v60 = vmul.f32 %v5883_v0, %v5562_v8  ;;  %v2539_v4 = vmul.f32 %v5887_v30, %v5571_v12  ;;  %v2540_v37 = vmul.f32 %v5887_v30, %v5612_v27 }
 0x168   : > { %v2591_v39 = vmul.f32 %v5898_v18, %v5615_v28  ;;  %v2334_v61 = vadd.f32 %v2310_v44, %v2282_v62  ;;  %v2335_v48 = vadd.f32 %v2311_v52, %v2283_v53  ;;  %v2592_v43 = vmul.f32 %v5898_v18, %v5657_v45 }
 0x169   : > { %v5914_v40 = vrot.slane %v5577_v15, %v5566_v10  ;;  %v2563_v19 = vadd.f32 %v2539_v4, %v2511_v54  ;;  %v2564_v58 = vadd.f32 %v2540_v37, %v2512_v60  ;;  %v5918_v49 = vrot.slane %v5593_v20, %v5566_v10 }
 0x16a   : > { %v5922_v5 = vrot.slane %v5595_v21, %v5566_v10  ;;  %v2386_v30 = vadd.f32 %v2362_v59, %v2334_v61  ;;  %v5924_v44 = vadd.f32 %v2363_v6, %v2335_v48 }
 0x16b   : > { %9751 = vst [vmem:[#allocation71_spill] sm:$0xff] %v5914_v40  ;;  %9752 = vst [vmem:[#allocation72_spill] sm:$0xff] %v5918_v49  ;;  %v2643_v52 = vmul.f32 %v5914_v40, %v5618_v29  ;;  %v2644_v62 = vmul.f32 %v5914_v40, %v5660_v46  ;;  %v2615_v53 = vadd.f32 %v2591_v39, %v2563_v19 }
 0x16c   : > { %9753 = vst [vmem:[#allocation73_spill] sm:$0xff] %v5924_v44  ;;  %v2616_v54 = vadd.f32 %v2592_v43, %v2564_v58  ;;  %v2695_v60 = vmul.f32 %v5918_v49, %v5632_v34  ;;  %v2696_v37 = vmul.f32 %v5918_v49, %v5670_v51  ;;  %v2435_v4 = vrot.slane %v2386_v30, 4 }
 0x16d   : > { %v9211_v18 = vrot.slane %v5924_v44, 4  ;;  %v2747_v61 = vmul.f32 %v5922_v5, %v5635_v35  ;;  %v2748_v48 = vmul.f32 %v5922_v5, %v5685_v56  ;;  %v2667_v59 = vadd.f32 %v2643_v52, %v2615_v53 }
 0x16e   : > { %v2668_v6 = vadd.f32 %v2644_v62, %v2616_v54  ;;  %v5941_v39 = vrot.slane %v5597_v22, %v5566_v10  ;;  %v5945_v43 = vrot.slane %v5564_v9, %v5568_v11  ;;  %v5952_v19 = vrot.slane %v5573_v13, %v5568_v11 }
 0x16f   : > { %v2437_v30 = vsel %vm2434_vm3, %v2435_v4, %v9211_v18  ;;  %v5956_v58 = vrot.slane %v5575_v14, %v5568_v11  ;;  %v5960_v10 = vrot.slane %v5577_v15, %v5568_v11  ;;  %v2719_v62 = vadd.f32 %v2695_v60, %v2667_v59 }
 0x170   : > { %v2491_v52 = vadd.f32 %v2437_v30, %v2054_v63  ;;  %v2720_v9 = vadd.f32 %v2696_v37, %v2668_v6  ;;  %v2799_v53 = vmul.f32 %v5941_v39, %v5638_v36  ;;  %v2800_v54 = vmul.f32 %v5941_v39, %v5688_v57 }
 0x171   : > { %v2948_v13 = vmul.f32 %v5945_v43, %v5559_v7  ;;  %v2949_v14 = vmul.f32 %v5945_v43, %v5562_v8  ;;  %v2976_v4 = vmul.f32 %v5952_v19, %v5571_v12  ;;  %v2771_v15 = vadd.f32 %v2747_v61, %v2719_v62 }
 0x172   : > { %v2772_v18 = vadd.f32 %v2748_v48, %v2720_v9  ;;  %v2977_v63 = vmul.f32 %v5952_v19, %v5612_v27  ;;  %v3028_v60 = vmul.f32 %v5956_v58, %v5615_v28  ;;  %v3029_v59 = vmul.f32 %v5956_v58, %v5657_v45 }
 0x173   : > { %v3000_v37 = vadd.f32 %v2976_v4, %v2948_v13  ;;  %v3080_v7 = vmul.f32 %v5960_v10, %v5618_v29  ;;  %v3081_v6 = vmul.f32 %v5960_v10, %v5660_v46  ;;  %v2823_v30 = vadd.f32 %v2799_v53, %v2771_v15 }
 0x174   : > { %v5982_v44 = vadd.f32 %v2800_v54, %v2772_v18  ;;  %v3001_v61 = vadd.f32 %v2977_v63, %v2949_v14  ;;  %v5986_v48 = vrot.slane %v5593_v20, %v5568_v11  ;;  %v5990_v9 = vrot.slane %v5595_v21, %v5568_v11 }
 0x175   : > { %v3052_v62 = vadd.f32 %v3028_v60, %v3000_v37  ;;  %v5994_v13 = vrot.slane %v5597_v22, %v5568_v11  ;;  %v529_v4 = vmul.f32 %v5580_v16, %v5571_v12  ;;  %v2872_v53 = vrot.slane %v2823_v30, 5  ;;  %v6019_v16 = vld [vmem:[%s5550_s25 + $0xa8] sm:$0xff] }
 0x176   : > { %9754 = vst [vmem:[#allocation74_spill] sm:$0xff] %v5982_v44  ;;  %v9215_v18 = vrot.slane %v5982_v44, 5  ;;  %v3053_v54 = vadd.f32 %v3029_v59, %v3001_v61  ;;  %v3132_v20 = vmul.f32 %v5986_v48, %v5632_v34  ;;  %v3133_v21 = vmul.f32 %v5986_v48, %v5670_v51  ;;  %9755 = vst [vmem:[#allocation75_spill] sm:$0xff] %v6019_v16 }
 0x177   : > { %v3104_v14 = vadd.f32 %v3080_v7, %v3052_v62  ;;  %v3184_v15 = vmul.f32 %v5990_v9, %v5635_v35  ;;  %v3185_v11 = vmul.f32 %v5990_v9, %v5685_v56  ;;  %v3236_v60 = vmul.f32 %v5994_v13, %v5638_v36 }
 0x178   : > { %v2874_v22 = vsel %vm2871_vm4, %v2872_v53, %v9215_v18  ;;  %v3105_v63 = vadd.f32 %v3081_v6, %v3053_v54  ;;  %v3237_v37 = vmul.f32 %v5994_v13, %v5688_v57  ;;  %v549_v30 = vmul.f32 %v5600_v23, %v5615_v28 }
 0x179   : > { %v2928_v59 = vadd.f32 %v2874_v22, %v2491_v52  ;;  %v3156_v7 = vadd.f32 %v3132_v20, %v3104_v14  ;;  %v585_v61 = vmul.f32 %v5603_v24, %v5618_v29  ;;  %v621_v6 = vmul.f32 %v5606_v25, %v5632_v34  ;;  %v6046_v25 = vld [vmem:[%s5550_s25 + $0xb0] sm:$0xff] }
 0x17a   : > { %v3157_v62 = vadd.f32 %v3133_v21, %v3105_v63  ;;  %v657_v53 = vmul.f32 %v5623_v31, %v5635_v35  ;;  %v693_v54 = vmul.f32 %v5626_v32, %v5638_v36  ;;  %v565_v20 = vadd.f32 %v549_v30, %v529_v4  ;;  %9758 = vst [vmem:[#allocation77_spill] sm:$0xff] %v6046_v25 }
 0x17b   : > { %v3208_v52 = vadd.f32 %v3184_v15, %v3156_v7  ;;  %v729_v14 = vmul.f32 %v5629_v33, %v6019_v16  ;;  %v766_v21 = vmul.f32 %v5583_v17, %v5571_v12  ;;  %v767_v63 = vmul.f32 %v5583_v17, %v5612_v27  ;;  %v9757_v17 = vld [vmem:[#allocation42_spill] sm:$0xff] }
 0x17c   : > { %v3209_v22 = vadd.f32 %v3185_v11, %v3157_v62  ;;  %v794_v18 = vmul.f32 %v5609_v26, %v5615_v28  ;;  %v795_v44 = vmul.f32 %v5609_v26, %v5657_v45  ;;  %v601_v4 = vadd.f32 %v585_v61, %v565_v20  ;;  %v9759_v61 = vld [vmem:[#allocation43_spill] sm:$0xff] }
 0x17d   : > { %v3260_v15 = vadd.f32 %v3236_v60, %v3208_v52  ;;  %v846_v7 = vmul.f32 %v5667_v50, %v5618_v29  ;;  %v847_v30 = vmul.f32 %v5667_v50, %v5660_v46  ;;  %v898_v32 = vmul.f32 %v9757_v17, %v5632_v34 }
 0x17e   : > { %v6041_v33 = vadd.f32 %v3237_v37, %v3209_v22  ;;  %v818_v11 = vadd.f32 %v794_v18, %v766_v21  ;;  %v819_v62 = vadd.f32 %v795_v44, %v767_v63  ;;  %v637_v24 = vadd.f32 %v621_v6, %v601_v4  ;;  %v9760_v21 = vld [vmem:[#allocation44_spill] sm:$0xff]  ;;  %v9761_v63 = vld [vmem:[#allocation45_spill] sm:$0xff] }
 0x17f   : > { %v3309_v31 = vrot.slane %v3260_v15, 6  ;;  %v899_v60 = vmul.f32 %v9757_v17, %v5670_v51  ;;  %v950_v52 = vmul.f32 %v9759_v61, %v5635_v35  ;;  %v951_v44 = vmul.f32 %v9759_v61, %v5685_v56  ;;  %v6064_v17 = vld [vmem:[#allocation7] ss:$0 sm:$0xff] }
 0x180   : > { %9756 = vst [vmem:[#allocation76_spill] sm:$0xff] %v6041_v33  ;;  %v9239_v20 = vrot.slane %v6041_v33, 6  ;;  %v870_v50 = vadd.f32 %v846_v7, %v818_v11  ;;  %v871_v37 = vadd.f32 %v847_v30, %v819_v62  ;;  %v673_v18 = vadd.f32 %v657_v53, %v637_v24  ;;  %9762 = vst [vmem:[#allocation78_spill] sm:$0xff] %v6064_v17  ;;  %v9763_v62 = vld [vmem:[#allocation32_spill] sm:$0xff]  ;;  %v9764_v33 = vld [vmem:[#allocation46_spill] sm:$0xff] }
 0x181   : > { %v1002_v22 = vmul.f32 %v9760_v21, %v5638_v36  ;;  %v1003_v6 = vmul.f32 %v9760_v21, %v5688_v57  ;;  %v1054_v15 = vmul.f32 %v9761_v63, %v6019_v16  ;;  %v1055_v24 = vmul.f32 %v9761_v63, %v6046_v25 }
 0x182   : > { %v3311_v4 = vsel %vm3308_vm5, %v3309_v31, %v9239_v20  ;;  %v922_v7 = vadd.f32 %v898_v32, %v870_v50  ;;  %v923_v30 = vadd.f32 %v899_v60, %v871_v37  ;;  %v709_v11 = vadd.f32 %v693_v54, %v673_v18 }
 0x183   : > { %v3365_v53 = vadd.f32 %v3311_v4, %v2928_v59  ;;  %v1203_v61 = vmul.f32 %v9763_v62, %v5571_v12  ;;  %v1204_v21 = vmul.f32 %v9763_v62, %v5612_v27  ;;  %v1231_v31 = vmul.f32 %v9764_v33, %v5615_v28  ;;  %v9766_v59 = vld [vmem:[#allocation47_spill] sm:$0xff] }
 0x184   : > { %v974_v26 = vadd.f32 %v950_v52, %v922_v7  ;;  %v975_v23 = vadd.f32 %v951_v44, %v923_v30  ;;  %v1232_v32 = vmul.f32 %v9764_v33, %v5657_v45  ;;  %v745_v60 = vadd.f32 %v729_v14, %v709_v11 }
 0x185   : > { %v6077_v50 = vadd.f32 %v6064_v17, %v3365_v53  ;;  %v1283_v54 = vmul.f32 %v9766_v59, %v5618_v29  ;;  %v1284_v37 = vmul.f32 %v9766_v59, %v5660_v46  ;;  %v1255_v52 = vadd.f32 %v1231_v31, %v1203_v61  ;;  %v9769_v31 = vld [vmem:[#allocation52_spill] sm:$0xff] }
 0x186   : > { %v1026_v18 = vadd.f32 %v1002_v22, %v974_v26  ;;  %v1027_v4 = vadd.f32 %v1003_v6, %v975_v23  ;;  %v1256_v44 = vadd.f32 %v1232_v32, %v1204_v21  ;;  %v1335_v30 = vmul.f32 %v5724_v41, %v5632_v34  ;;  %v9768_v21 = vld [vmem:[#allocation50_spill] sm:$0xff] }
 0x187   : > { %9765 = vst [vmem:[#allocation79_spill] sm:$0xff] %v6077_v50  ;;  %v3405_v7 = vsel %vm3404_vm6, %v6077_v50, 0.0  ;;  %v1336_v53 = vmul.f32 %v5724_v41, %v5670_v51  ;;  %v1387_v14 = vmul.f32 %v5728_v2, %v5635_v35  ;;  %v1307_v26 = vadd.f32 %v1283_v54, %v1255_v52 }
 0x188   : > { %3406 = vadd.xlane.f32.xlu0 %v3405_v7  ;;  %v1078_v11 = vadd.f32 %v1054_v15, %v1026_v18  ;;  %v6091_v20 = vadd.f32 %v1055_v24, %v1027_v4  ;;  %v1308_v23 = vadd.f32 %v1284_v37, %v1256_v44  ;;  %v1388_v61 = vmul.f32 %v5728_v2, %v5685_v56  ;;  %v9770_v37 = vld [vmem:[#allocation33_spill] sm:$0xff] }
 0x189   : > { %v1439_v22 = vmul.f32 %v9768_v21, %v5638_v36  ;;  %v1440_v6 = vmul.f32 %v9768_v21, %v5688_v57  ;;  %v1491_v32 = vmul.f32 %v9769_v31, %v6019_v16  ;;  %v1359_v15 = vadd.f32 %v1335_v30, %v1307_v26 }
 0x18a   : > { %9767 = vst [vmem:[#allocation80_spill] sm:$0xff] %v6091_v20  ;;  %v1129_v50 = vrot.slane %v1078_v11, 1  ;;  %v9249_v7 = vrot.slane %v6091_v20, 1  ;;  %v1360_v24 = vadd.f32 %v1336_v53, %v1308_v23  ;;  %v1492_v54 = vmul.f32 %v9769_v31, %v6046_v25 }
 0x18b   : > { %v1640_v18 = vmul.f32 %v9770_v37, %v5571_v12  ;;  %v1641_v4 = vmul.f32 %v9770_v37, %v5612_v27  ;;  %v1668_v52 = vmul.f32 %v5767_v55, %v5615_v28  ;;  %v1411_v11 = vadd.f32 %v1387_v14, %v1359_v15 }
 0x18c   : > { %v1131_v44 = vsel %vm1123_vm0, %v1129_v50, %v9249_v7  ;;  %v1412_v17 = vadd.f32 %v1388_v61, %v1360_v24  ;;  %v1669_v30 = vmul.f32 %v5767_v55, %v5657_v45  ;;  %v1720_v23 = vmul.f32 %v5775_v3, %v5618_v29 }
 0x18d   : > { %v1182_v53 = vadd.f32 %v1131_v44, %v745_v60  ;;  %v1692_v26 = vadd.f32 %v1668_v52, %v1640_v18  ;;  %v1721_v37 = vmul.f32 %v5775_v3, %v5660_v46  ;;  %v1463_v31 = vadd.f32 %v1439_v22, %v1411_v11 }
 0x18e   : > { %v1464_v21 = vadd.f32 %v1440_v6, %v1412_v17  ;;  %v1693_v2 = vadd.f32 %v1669_v30, %v1641_v4  ;;  %v1772_v20 = vmul.f32 %v5779_v38, %v5632_v34  ;;  %v1773_v14 = vmul.f32 %v5779_v38, %v5670_v51  ;;  %v9772_v4 = vld [vmem:[#allocation59_spill] sm:$0xff] }
 0x18f   : > { %v1744_v50 = vadd.f32 %v1720_v23, %v1692_v26  ;;  %v1824_v60 = vmul.f32 %v5798_v42, %v5635_v35  ;;  %v1825_v61 = vmul.f32 %v5798_v42, %v5685_v56  ;;  %v1515_v15 = vadd.f32 %v1491_v32, %v1463_v31 }
 0x190   : > { %v6127_v24 = vadd.f32 %v1492_v54, %v1464_v21  ;;  %v1745_v18 = vadd.f32 %v1721_v37, %v1693_v2  ;;  %v1876_v17 = vmul.f32 %v5802_v47, %v5638_v36  ;;  %v1877_v6 = vmul.f32 %v5802_v47, %v5688_v57  ;;  %v9773_v21 = vld [vmem:[#allocation60_spill] sm:$0xff]  ;;  %v9774_v54 = vld [vmem:[#allocation61_spill] sm:$0xff] }
 0x191   : > { %v1796_v22 = vadd.f32 %v1772_v20, %v1744_v50  ;;  %v1928_v52 = vmul.f32 %v9772_v4, %v6019_v16  ;;  %v1929_v44 = vmul.f32 %v9772_v4, %v6046_v25  ;;  %v1566_v11 = vrot.slane %v1515_v15, 2 }
 0x192   : > { %9771 = vst [vmem:[#allocation81_spill] sm:$0xff] %v6127_v24  ;;  %v9255_v30 = vrot.slane %v6127_v24, 2  ;;  %v1797_v31 = vadd.f32 %v1773_v14, %v1745_v18  ;;  %v2077_v2 = vmul.f32 %v9773_v21, %v5571_v12  ;;  %v2078_v20 = vmul.f32 %v9773_v21, %v5612_v27  ;;  %v9775_v14 = vld [vmem:[#allocation62_spill] sm:$0xff] }
 0x193   : > { %v1848_v32 = vadd.f32 %v1824_v60, %v1796_v22  ;;  %v2105_v37 = vmul.f32 %v9774_v54, %v5615_v28  ;;  %v2106_v26 = vmul.f32 %v9774_v54, %v5657_v45  ;;  %v2157_v15 = vmul.f32 %v9775_v14, %v5618_v29 }
 0x194   : > { %v1568_v23 = vsel %vm1560_vm1, %v1566_v11, %v9255_v30  ;;  %v1849_v50 = vadd.f32 %v1825_v61, %v1797_v31  ;;  %v2158_v60 = vmul.f32 %v9775_v14, %v5660_v46  ;;  %v2209_v47 = vmul.f32 %v5852_v1, %v5632_v34  ;;  %v9776_v11 = vld [vmem:[#allocation64_spill] sm:$0xff] }
 0x195   : > { %v1619_v18 = vadd.f32 %v1568_v23, %v1182_v53  ;;  %v1900_v22 = vadd.f32 %v1876_v17, %v1848_v32  ;;  %v2129_v7 = vadd.f32 %v2105_v37, %v2077_v2  ;;  %v2130_v21 = vadd.f32 %v2106_v26, %v2078_v20  ;;  %v9778_v17 = vld [vmem:[#allocation65_spill] sm:$0xff]  ;;  %v9779_v32 = vld [vmem:[#allocation67_spill] sm:$0xff] }
 0x196   : > { %v1901_v4 = vadd.f32 %v1877_v6, %v1849_v50  ;;  %v2210_v24 = vmul.f32 %v5852_v1, %v5670_v51  ;;  %v2261_v61 = vmul.f32 %v9776_v11, %v5635_v35  ;;  %v2262_v14 = vmul.f32 %v9776_v11, %v5685_v56 }
 0x197   : > { %v1952_v31 = vadd.f32 %v1928_v52, %v1900_v22  ;;  %v2181_v30 = vadd.f32 %v2157_v15, %v2129_v7  ;;  %v2182_v54 = vadd.f32 %v2158_v60, %v2130_v21  ;;  %v2313_v6 = vmul.f32 %v9778_v17, %v5638_v36  ;;  %v9780_v21 = vld [vmem:[#allocation69_spill] sm:$0xff] }
 0x198   : > { %v6161_v53 = vadd.f32 %v1929_v44, %v1901_v4  ;;  %v2314_v2 = vmul.f32 %v9778_v17, %v5688_v57  ;;  %v2365_v20 = vmul.f32 %v9779_v32, %v6019_v16  ;;  %v2366_v7 = vmul.f32 %v9779_v32, %v6046_v25 }
 0x199   : > { %v2003_v37 = vrot.slane %v1952_v31, 3  ;;  %v2233_v26 = vadd.f32 %v2209_v47, %v2181_v30  ;;  %v2234_v23 = vadd.f32 %v2210_v24, %v2182_v54  ;;  %v2514_v4 = vmul.f32 %v5883_v0, %v5571_v12  ;;  %v9781_v24 = vld [vmem:[#allocation70_spill] sm:$0xff] }
 0x19a   : > { %9777 = vst [vmem:[#allocation82_spill] sm:$0xff] %v6161_v53  ;;  %v9263_v52 = vrot.slane %v6161_v53, 3  ;;  %v2515_v44 = vmul.f32 %v5883_v0, %v5612_v27  ;;  %v2542_v50 = vmul.f32 %v9780_v21, %v5615_v28  ;;  %v2543_v47 = vmul.f32 %v9780_v21, %v5657_v45 }
 0x19b   : > { %v2285_v15 = vadd.f32 %v2261_v61, %v2233_v26  ;;  %v2286_v60 = vadd.f32 %v2262_v14, %v2234_v23  ;;  %v2594_v30 = vmul.f32 %v9781_v24, %v5618_v29  ;;  %v2595_v31 = vmul.f32 %v9781_v24, %v5660_v46 }
 0x19c   : > { %v2005_v54 = vsel %vm1997_vm2, %v2003_v37, %v9263_v52  ;;  %v2566_v22 = vadd.f32 %v2542_v50, %v2514_v4  ;;  %v2646_v0 = vmul.f32 %v5914_v40, %v5632_v34  ;;  %v2567_v26 = vadd.f32 %v2543_v47, %v2515_v44 }
 0x19d   : > { %v2056_v32 = vadd.f32 %v2005_v54, %v1619_v18  ;;  %v2337_v61 = vadd.f32 %v2313_v6, %v2285_v15  ;;  %v2338_v14 = vadd.f32 %v2314_v2, %v2286_v60  ;;  %v2647_v21 = vmul.f32 %v5914_v40, %v5670_v51 }
 0x19e   : > { %v2618_v23 = vadd.f32 %v2594_v30, %v2566_v22  ;;  %v2698_v53 = vmul.f32 %v5918_v49, %v5635_v35  ;;  %v2699_v37 = vmul.f32 %v5918_v49, %v5685_v56  ;;  %v2619_v52 = vadd.f32 %v2595_v31, %v2567_v26 }
 0x19f   : > { %v2389_v4 = vadd.f32 %v2365_v20, %v2337_v61  ;;  %v6195_v50 = vadd.f32 %v2366_v7, %v2338_v14  ;;  %v2750_v18 = vmul.f32 %v5922_v5, %v5638_v36  ;;  %v2751_v2 = vmul.f32 %v5922_v5, %v5688_v57 }
 0x1a0   : > { %v2670_v6 = vadd.f32 %v2646_v0, %v2618_v23  ;;  %v2802_v44 = vmul.f32 %v5941_v39, %v6019_v16  ;;  %v2803_v15 = vmul.f32 %v5941_v39, %v6046_v25  ;;  %v2671_v20 = vadd.f32 %v2647_v21, %v2619_v52 }
 0x1a1   : > { %9782 = vst [vmem:[#allocation83_spill] sm:$0xff] %v6195_v50  ;;  %v2440_v60 = vrot.slane %v2389_v4, 4  ;;  %v9264_v47 = vrot.slane %v6195_v50, 4  ;;  %v2951_v7 = vmul.f32 %v5945_v43, %v5571_v12  ;;  %v2952_v0 = vmul.f32 %v5945_v43, %v5612_v27 }
 0x1a2   : > { %v2722_v30 = vadd.f32 %v2698_v53, %v2670_v6  ;;  %v2979_v54 = vmul.f32 %v5952_v19, %v5615_v28  ;;  %v2980_v22 = vmul.f32 %v5952_v19, %v5657_v45  ;;  %v2723_v61 = vadd.f32 %v2699_v37, %v2671_v20 }
 0x1a3   : > { %v2442_v31 = vsel %vm2434_vm3, %v2440_v60, %v9264_v47  ;;  %v3031_v52 = vmul.f32 %v5956_v58, %v5618_v29  ;;  %v3032_v12 = vmul.f32 %v5956_v58, %v5660_v46  ;;  %v3083_v28 = vmul.f32 %v5960_v10, %v5632_v34 }
 0x1a4   : > { %v2493_v53 = vadd.f32 %v2442_v31, %v2056_v32  ;;  %v2774_v21 = vadd.f32 %v2750_v18, %v2722_v30  ;;  %v3003_v14 = vadd.f32 %v2979_v54, %v2951_v7  ;;  %v3004_v26 = vadd.f32 %v2980_v22, %v2952_v0  ;;  %v6241_v0 = vld [vmem:[%s5550_s25 + $0x10] sm:$0x3f] }
 0x1a5   : > { %v2775_v23 = vadd.f32 %v2751_v2, %v2723_v61  ;;  %v3084_v4 = vmul.f32 %v5960_v10, %v5670_v51  ;;  %v3135_v37 = vmul.f32 %v5986_v48, %v5635_v35  ;;  %v3136_v32 = vmul.f32 %v5986_v48, %v5685_v56  ;;  %v9785_v22 = vld [vmem:[#allocation34_spill] sm:$0xff]  ;;  %v9786_v61 = vld [vmem:[#allocation35_spill] sm:$0xff] }
 0x1a6   : > { %v2826_v6 = vadd.f32 %v2802_v44, %v2774_v21  ;;  %v3055_v29 = vadd.f32 %v3031_v52, %v3003_v14  ;;  %v3056_v60 = vadd.f32 %v3032_v12, %v3004_v26  ;;  %v3187_v34 = vmul.f32 %v5990_v9, %v5638_v36  ;;  %v9784_v36 = vld [vmem:[#allocation30_spill] sm:$0xff]  ;;  %v6253_v26 = vld [vmem:[%s5550_s25 + $0x40] sm:$0x3f] }
 0x1a7   : > { %v6229_v18 = vadd.f32 %v2803_v15, %v2775_v23  ;;  %v3188_v2 = vmul.f32 %v5990_v9, %v5688_v57  ;;  %v3239_v35 = vmul.f32 %v5994_v13, %v6019_v16  ;;  %v3240_v15 = vmul.f32 %v5994_v13, %v6046_v25  ;;  %v6250_v14 = vld [vmem:[%s5550_s25 + $0x28] sm:$0x3f]  ;;  %9787 = vst [vmem:[#allocation85_spill] sm:$0xff] %v6253_v26  ;;  %v6256_v23 = vld [vmem:[%s5550_s25 + $0x58] sm:$0x3f] }
 0x1a8   : > { %v2877_v44 = vrot.slane %v2826_v6, 5  ;;  %v3107_v20 = vadd.f32 %v3083_v28, %v3055_v29  ;;  %v3108_v7 = vadd.f32 %v3084_v4, %v3056_v60  ;;  %v528_v54 = vmul.f32 %v9784_v36, %v5562_v8  ;;  %9788 = vst [vmem:[#allocation86_spill] sm:$0xff] %v6256_v23  ;;  %v9789_v28 = vld [vmem:[#allocation36_spill] sm:$0xff]  ;;  %v9790_v8 = vld [vmem:[#allocation38_spill] sm:$0xff]  ;;  %v9793_v60 = vld [vmem:[#allocation39_spill] sm:$0xff] }
 0x1a9   : > { %9783 = vst [vmem:[#allocation84_spill] sm:$0xff] %v6229_v18  ;;  %v9269_v30 = vrot.slane %v6229_v18, 5  ;;  %v548_v31 = vmul.f32 %v9785_v22, %v5612_v27  ;;  %v584_v52 = vmul.f32 %v9786_v61, %v5657_v45  ;;  %v620_v4 = vmul.f32 %v9789_v28, %v5660_v46  ;;  %v6266_v45 = vld [vmem:[%s5550_s25 + $0x70] sm:$0x3f]  ;;  %v6276_v16 = vld [vmem:[%s5550_s25 + $0xa0] sm:$0x3f] }
 0x1aa   : > { %v3159_v12 = vadd.f32 %v3135_v37, %v3107_v20  ;;  %v3160_v21 = vadd.f32 %v3136_v32, %v3108_v7  ;;  %v656_v6 = vmul.f32 %v9790_v8, %v5670_v51  ;;  %9791 = vst [vmem:[#allocation87_spill] sm:$0xff] %v6266_v45  ;;  %v6269_v37 = vld [vmem:[%s5550_s25 + $0x88] sm:$0x3f]  ;;  %v692_v32 = vmul.f32 %v9793_v60, %v5685_v56  ;;  %v9794_v20 = vld [vmem:[#allocation40_spill] sm:$0xff]  ;;  %v9796_v51 = vld [vmem:[#allocation31_spill] sm:$0xff] }
 0x1ab   : > { %v2879_v27 = vsel %vm2871_vm4, %v2877_v44, %v9269_v30  ;;  %9792 = vst [vmem:[#allocation88_spill] sm:$0xff] %v6269_v37  ;;  %v564_v29 = vadd.f32 %v548_v31, %v528_v54  ;;  %v728_v7 = vmul.f32 %v9794_v20, %v5688_v57  ;;  %9795 = vst [vmem:[#allocation89_spill] sm:$0xff] %v6276_v16  ;;  %v9797_v30 = vld [vmem:[#allocation37_spill] sm:$0xff]  ;;  %v9799_v56 = vld [vmem:[#allocation42_spill] sm:$0xff] }
 0x1ac   : > { %v2930_v47 = vadd.f32 %v2879_v27, %v2493_v53  ;;  %v3211_v46 = vadd.f32 %v3187_v34, %v3159_v12  ;;  %v3212_v50 = vadd.f32 %v3188_v2, %v3160_v21  ;;  %v765_v18 = vmul.f32 %v9796_v51, %v6241_v0  ;;  %v9798_v54 = vld [vmem:[#allocation41_spill] sm:$0xff]  ;;  %v9801_v53 = vld [vmem:[#allocation43_spill] sm:$0xff]  ;;  %v9802_v2 = vld [vmem:[#allocation44_spill] sm:$0xff] }
 0x1ad   : > { %v600_v44 = vadd.f32 %v584_v52, %v564_v29  ;;  %v793_v25 = vmul.f32 %v9797_v30, %v6250_v14  ;;  %v845_v31 = vmul.f32 %v9798_v54, %v6253_v26  ;;  %v897_v60 = vmul.f32 %v9799_v56, %v6256_v23 }
 0x1ae   : > { %v3263_v8 = vadd.f32 %v3239_v35, %v3211_v46  ;;  %v6286_v57 = vadd.f32 %v3240_v15, %v3212_v50  ;;  %v949_v34 = vmul.f32 %v9801_v53, %v6266_v45  ;;  %v1001_v12 = vmul.f32 %v9802_v2, %v6269_v37 }
 0x1af   : > { %v636_v21 = vadd.f32 %v620_v4, %v600_v44  ;;  %v817_v52 = vadd.f32 %v793_v25, %v765_v18  ;;  %v1053_v27 = vmul.f32 %v9761_v63, %v6276_v16  ;;  %v1202_v29 = vmul.f32 %v9763_v62, %v6241_v0  ;;  %v9803_v18 = vld [vmem:[#allocation49_spill] sm:$0xff]  ;;  %v9804_v62 = vld [vmem:[#allocation50_spill] sm:$0xff] }
 0x1b0   : > { %9800 = vst [vmem:[#allocation90_spill] sm:$0xff] %v6286_v57  ;;  %v3314_v54 = vrot.slane %v3263_v8, 6  ;;  %v9278_v56 = vrot.slane %v6286_v57, 6  ;;  %v1230_v50 = vmul.f32 %v9764_v33, %v6250_v14  ;;  %v1282_v35 = vmul.f32 %v9766_v59, %v6253_v26  ;;  %v9805_v33 = vld [vmem:[#allocation52_spill] sm:$0xff] }
 0x1b1   : > { %v672_v15 = vadd.f32 %v656_v6, %v636_v21  ;;  %v869_v46 = vadd.f32 %v845_v31, %v817_v52  ;;  %v1334_v25 = vmul.f32 %v5724_v41, %v6256_v23  ;;  %v1386_v4 = vmul.f32 %v9803_v18, %v6266_v45  ;;  %v9806_v21 = vld [vmem:[#allocation33_spill] sm:$0xff] }
 0x1b2   : > { %v3316_v8 = vsel %vm3308_vm5, %v3314_v54, %v9278_v56  ;;  %v1254_v44 = vadd.f32 %v1230_v50, %v1202_v29  ;;  %v1438_v63 = vmul.f32 %v9804_v62, %v6269_v37  ;;  %v1490_v2 = vmul.f32 %v9805_v33, %v6276_v16  ;;  %v9807_v50 = vld [vmem:[#allocation78_spill] sm:$0xff] }
 0x1b3   : > { %v3367_v59 = vadd.f32 %v3316_v8, %v2930_v47  ;;  %v708_v6 = vadd.f32 %v692_v32, %v672_v15  ;;  %v921_v31 = vadd.f32 %v897_v60, %v869_v46  ;;  %v1639_v52 = vmul.f32 %v9806_v21, %v6241_v0  ;;  %v9810_v8 = vld [vmem:[#allocation59_spill] sm:$0xff] }
 0x1b4   : > { %v1306_v41 = vadd.f32 %v1282_v35, %v1254_v44  ;;  %v1667_v18 = vmul.f32 %v5767_v55, %v6250_v14  ;;  %v1719_v54 = vmul.f32 %v5775_v3, %v6253_v26  ;;  %v1771_v29 = vmul.f32 %v5779_v38, %v6256_v23  ;;  %v9809_v35 = vld [vmem:[#allocation57_spill] sm:$0xff] }
 0x1b5   : > { %v6321_v56 = vadd.f32 %v9807_v50, %v3367_v59  ;;  %v744_v57 = vadd.f32 %v728_v7, %v708_v6  ;;  %v973_v47 = vadd.f32 %v949_v34, %v921_v31  ;;  %v1823_v60 = vmul.f32 %v5798_v42, %v6266_v45  ;;  %v9811_v59 = vld [vmem:[#allocation60_spill] sm:$0xff]  ;;  %v9812_v7 = vld [vmem:[#allocation61_spill] sm:$0xff] }
 0x1b6   : > { %v1358_v32 = vadd.f32 %v1334_v25, %v1306_v41  ;;  %v1691_v15 = vadd.f32 %v1667_v18, %v1639_v52  ;;  %v1875_v46 = vmul.f32 %v9809_v35, %v6269_v37  ;;  %v1927_v44 = vmul.f32 %v9810_v8, %v6276_v16  ;;  %v9813_v25 = vld [vmem:[#allocation62_spill] sm:$0xff] }
 0x1b7   : > { %9808 = vst [vmem:[#allocation91_spill] sm:$0xff] %v6321_v56  ;;  %v3411_v3 = vsel %vm3404_vm6, %v6321_v56, 0.0  ;;  %v1025_v38 = vadd.f32 %v1001_v12, %v973_v47  ;;  %v2076_v50 = vmul.f32 %v9811_v59, %v6241_v0  ;;  %v2104_v34 = vmul.f32 %v9812_v7, %v6250_v14 }
 0x1b8   : > { %3412 = vadd.xlane.f32.xlu1 %v3411_v3  ;;  %v1410_v6 = vadd.f32 %v1386_v4, %v1358_v32  ;;  %v1743_v41 = vadd.f32 %v1719_v54, %v1691_v15  ;;  %v2156_v18 = vmul.f32 %v9813_v25, %v6253_v26  ;;  %v2208_v31 = vmul.f32 %v5852_v1, %v6256_v23  ;;  %v9814_v3 = vld [vmem:[#allocation67_spill] sm:$0xff]  ;;  %v9815_v54 = vld [vmem:[#allocation68_spill] sm:$0xff]  ;;  %v9816_v1 = vld [vmem:[#allocation69_spill] sm:$0xff] }
 0x1b9   : > { %v1077_v52 = vadd.f32 %v1053_v27, %v1025_v38  ;;  %v2128_v8 = vadd.f32 %v2104_v34, %v2076_v50  ;;  %v2260_v12 = vmul.f32 %v9776_v11, %v6266_v45  ;;  %v2312_v47 = vmul.f32 %v9778_v17, %v6269_v37 }
 0x1ba   : > { %v1462_v56 = vadd.f32 %v1438_v63, %v1410_v6  ;;  %v1795_v59 = vadd.f32 %v1771_v29, %v1743_v41  ;;  %v2364_v4 = vmul.f32 %v9814_v3, %v6276_v16  ;;  %v2513_v32 = vmul.f32 %v9815_v54, %v6241_v0  ;;  %v9817_v6 = vld [vmem:[#allocation51_spill] sm:$0xff] }
 0x1bb   : > { %v1127_v15 = vrot.slane %v1077_v52, 1  ;;  %v2180_v25 = vadd.f32 %v2156_v18, %v2128_v8  ;;  %v2541_v38 = vmul.f32 %v9816_v1, %v6250_v14  ;;  %v2593_v27 = vmul.f32 %v9781_v24, %v6253_v26 }
 0x1bc   : > { %v1514_v50 = vadd.f32 %v1490_v2, %v1462_v56  ;;  %v1847_v34 = vadd.f32 %v1823_v60, %v1795_v59  ;;  %v2645_v63 = vmul.f32 %v5914_v40, %v6256_v23  ;;  %v2697_v29 = vmul.f32 %v5918_v49, %v6266_v45 }
 0x1bd   : > { %v9818_v41 = vrot.slane %v9817_v6, 1  ;;  %v2232_v52 = vadd.f32 %v2208_v31, %v2180_v25  ;;  %v2565_v8 = vadd.f32 %v2541_v38, %v2513_v32  ;;  %v2749_v18 = vmul.f32 %v5922_v5, %v6269_v37 }
 0x1be   : > { %v1564_v3 = vrot.slane %v1514_v50, 2  ;;  %v1899_v24 = vadd.f32 %v1875_v46, %v1847_v34  ;;  %v2801_v56 = vmul.f32 %v5941_v39, %v6276_v16  ;;  %v2950_v59 = vmul.f32 %v5945_v43, %v6241_v0 }
 0x1bf   : > { %v1128_v54 = vsel %vm1123_vm0, %v9818_v41, %v1127_v15  ;;  %v2284_v2 = vadd.f32 %v2260_v12, %v2232_v52  ;;  %v2617_v60 = vadd.f32 %v2593_v27, %v2565_v8  ;;  %v2978_v6 = vmul.f32 %v5952_v19, %v6250_v14  ;;  %v9819_v15 = vld [vmem:[#allocation58_spill] sm:$0xff] }
 0x1c0   : > { %v1181_v1 = vadd.f32 %v1128_v54, %v744_v57  ;;  %v9820_v25 = vrot.slane %v9819_v15, 2  ;;  %v1951_v32 = vadd.f32 %v1927_v44, %v1899_v24  ;;  %v3030_v57 = vmul.f32 %v5956_v58, %v6253_v26 }
 0x1c1   : > { %v3082_v46 = vmul.f32 %v5960_v10, %v6256_v23  ;;  %v2336_v54 = vadd.f32 %v2312_v47, %v2284_v2  ;;  %v2669_v0 = vadd.f32 %v2645_v63, %v2617_v60  ;;  %v3002_v38 = vadd.f32 %v2978_v6, %v2950_v59  ;;  %v9821_v63 = vld [vmem:[#allocation66_spill] sm:$0xff]  ;;  %v6385_v2 = vld [vmem:[%s5550_s25 + $0x38] sm:$0xff] }
 0x1c2   : > { %v1565_v31 = vsel %vm1560_vm1, %v9820_v25, %v1564_v3  ;;  %v2001_v27 = vrot.slane %v1951_v32, 3  ;;  %v3134_v50 = vmul.f32 %v5986_v48, %v6266_v45  ;;  %v3186_v24 = vmul.f32 %v5990_v9, %v6269_v37  ;;  %9823 = vst [vmem:[#allocation51_spill] sm:$0xff] %v6385_v2  ;;  %v6390_v59 = vld [vmem:[%s5550_s25 + $0x50] sm:$0xff] }
 0x1c3   : > { %v1618_v12 = vadd.f32 %v1565_v31, %v1181_v1  ;;  %v3238_v44 = vmul.f32 %v5994_v13, %v6276_v16  ;;  %v2388_v3 = vadd.f32 %v2364_v4, %v2336_v54  ;;  %v2721_v34 = vadd.f32 %v2697_v29, %v2669_v0  ;;  %v4647_v1 = vld [vmem:[%s5550_s25 + $0x20] sm:$0xff]  ;;  %9824 = vst [vmem:[#allocation58_spill] sm:$0xff] %v6390_v59  ;;  %v6395_v29 = vld [vmem:[%s5550_s25 + $0x68] sm:$0xff] }
 0x1c4   : > { %v3054_v41 = vadd.f32 %v3030_v57, %v3002_v38  ;;  %v530_v47 = vmul.f32 %v4647_v1, %v9784_v36  ;;  %v9822_v52 = vrot.slane %v9821_v63, 3  ;;  %v550_v60 = vmul.f32 %v6385_v2, %v9785_v22  ;;  %9825 = vst [vmem:[#allocation66_spill] sm:$0xff] %v6395_v29  ;;  %v6400_v54 = vld [vmem:[%s5550_s25 + $0x80] sm:$0xff]  ;;  %v9827_v0 = vld [vmem:[#allocation38_spill] sm:$0xff]  ;;  %v9829_v1 = vld [vmem:[#allocation39_spill] sm:$0xff] }
 0x1c5   : > { %v586_v4 = vmul.f32 %v6390_v59, %v9786_v61  ;;  %v622_v6 = vmul.f32 %v6395_v29, %v9789_v28  ;;  %v2438_v25 = vrot.slane %v2388_v3, 4  ;;  %v2773_v31 = vadd.f32 %v2749_v18, %v2721_v34  ;;  %9826 = vst [vmem:[#allocation92_spill] sm:$0xff] %v6400_v54  ;;  %v9831_v2 = vld [vmem:[#allocation73_spill] sm:$0xff]  ;;  %v6415_v3 = vld [vmem:[%s5550_s25 + $0xb8] sm:$0x3f] }
 0x1c6   : > { %v2002_v8 = vsel %vm1997_vm2, %v9822_v52, %v2001_v27  ;;  %v3106_v32 = vadd.f32 %v3082_v46, %v3054_v41  ;;  %v566_v57 = vadd.f32 %v550_v60, %v530_v47  ;;  %v658_v38 = vmul.f32 %v6400_v54, %v9827_v0  ;;  %v6405_v27 = vld [vmem:[%s5550_s25 + $0x98] sm:$0xff]  ;;  %v9830_v52 = vld [vmem:[#allocation77_spill] sm:$0xff]  ;;  %9833 = vst [vmem:[#allocation73_spill] sm:$0xff] %v6415_v3 }
 0x1c7   : > { %v2055_v15 = vadd.f32 %v2002_v8, %v1618_v12  ;;  %9828 = vst [vmem:[#allocation93_spill] sm:$0xff] %v6405_v27  ;;  %v694_v63 = vmul.f32 %v6405_v27, %v9829_v1  ;;  %v730_v59 = vmul.f32 %v9794_v20, %v9830_v52  ;;  %v9832_v29 = vrot.slane %v9831_v2, 4  ;;  %v9834_v60 = vld [vmem:[#allocation41_spill] sm:$0xff]  ;;  %v9835_v2 = vld [vmem:[#allocation42_spill] sm:$0xff] }
 0x1c8   : > { %v2825_v18 = vadd.f32 %v2801_v56, %v2773_v31  ;;  %v3158_v46 = vadd.f32 %v3134_v50, %v3106_v32  ;;  %v768_v34 = vmul.f32 %v9796_v51, %v6250_v14  ;;  %v602_v47 = vadd.f32 %v586_v4, %v566_v57  ;;  %v9836_v31 = vld [vmem:[#allocation44_spill] sm:$0xff]  ;;  %v9837_v4 = vld [vmem:[#allocation45_spill] sm:$0xff]  ;;  %v9838_v57 = vld [vmem:[#allocation74_spill] sm:$0xff] }
 0x1c9   : > { %v2439_v12 = vsel %vm2434_vm3, %v9832_v29, %v2438_v25  ;;  %v796_v8 = vmul.f32 %v9797_v30, %v6253_v26  ;;  %v848_v27 = vmul.f32 %v9834_v60, %v6256_v23  ;;  %v900_v29 = vmul.f32 %v9835_v2, %v6266_v45  ;;  %v9841_v2 = vld [vmem:[#allocation46_spill] sm:$0xff] }
 0x1ca   : > { %v2492_v41 = vadd.f32 %v2439_v12, %v2055_v15  ;;  %v2875_v52 = vrot.slane %v2825_v18, 5  ;;  %v3210_v54 = vadd.f32 %v3186_v24, %v3158_v46  ;;  %v952_v56 = vmul.f32 %v9801_v53, %v6269_v37  ;;  %v9840_v24 = vld [vmem:[#allocation32_spill] sm:$0xff] }
 0x1cb   : > { %v638_v50 = vadd.f32 %v622_v6, %v602_v47  ;;  %v820_v25 = vadd.f32 %v796_v8, %v768_v34  ;;  %v1004_v15 = vmul.f32 %v9836_v31, %v6276_v16  ;;  %v1056_v32 = vmul.f32 %v9837_v4, %v6415_v3  ;;  %v9842_v47 = vld [vmem:[#allocation47_spill] sm:$0xff]  ;;  %v9843_v4 = vld [vmem:[#allocation48_spill] sm:$0xff] }
 0x1cc   : > { %v9839_v12 = vrot.slane %v9838_v57, 5  ;;  %v3262_v18 = vadd.f32 %v3238_v44, %v3210_v54  ;;  %v1205_v46 = vmul.f32 %v9840_v24, %v6250_v14  ;;  %v1233_v30 = vmul.f32 %v9841_v2, %v6253_v26 }
 0x1cd   : > { %v674_v6 = vadd.f32 %v658_v38, %v638_v50  ;;  %v872_v34 = vadd.f32 %v848_v27, %v820_v25  ;;  %v1285_v8 = vmul.f32 %v9842_v47, %v6256_v23  ;;  %v1337_v57 = vmul.f32 %v9843_v4, %v6266_v45  ;;  %v9845_v27 = vld [vmem:[#allocation76_spill] sm:$0xff] }
 0x1ce   : > { %v2876_v60 = vsel %vm2871_vm4, %v9839_v12, %v2875_v52  ;;  %v3312_v31 = vrot.slane %v3262_v18, 6  ;;  %v1257_v51 = vadd.f32 %v1233_v30, %v1205_v46  ;;  %v9844_v52 = vld [vmem:[#allocation49_spill] sm:$0xff]  ;;  %v1441_v24 = vmul.f32 %v9804_v62, %v6276_v16  ;;  %v9847_v46 = vld [vmem:[#allocation54_spill] sm:$0xff] }
 0x1cf   : > { %v2929_v53 = vadd.f32 %v2876_v60, %v2492_v41  ;;  %v1389_v44 = vmul.f32 %v9844_v52, %v6269_v37  ;;  %v710_v54 = vadd.f32 %v694_v63, %v674_v6  ;;  %v924_v12 = vadd.f32 %v900_v29, %v872_v34 }
 0x1d0   : > { %v1493_v38 = vmul.f32 %v9805_v33, %v6415_v3  ;;  %v9846_v41 = vrot.slane %v9845_v27, 6  ;;  %v1309_v50 = vadd.f32 %v1285_v8, %v1257_v51  ;;  %v1642_v30 = vmul.f32 %v9806_v21, %v6250_v14  ;;  %v9848_v33 = vld [vmem:[#allocation55_spill] sm:$0xff] }
 0x1d1   : > { %v1670_v25 = vmul.f32 %v5767_v55, %v6253_v26  ;;  %v746_v63 = vadd.f32 %v730_v59, %v710_v54  ;;  %v976_v29 = vadd.f32 %v952_v56, %v924_v12  ;;  %v1722_v6 = vmul.f32 %v9847_v46, %v6256_v23  ;;  %v9851_v59 = vld [vmem:[#allocation59_spill] sm:$0xff] }
 0x1d2   : > { %v3313_v60 = vsel %vm3308_vm5, %v9846_v41, %v3312_v31  ;;  %v1361_v34 = vadd.f32 %v1337_v57, %v1309_v50  ;;  %v1774_v27 = vmul.f32 %v9848_v33, %v6266_v45  ;;  %v1826_v51 = vmul.f32 %v5798_v42, %v6269_v37  ;;  %v9849_v31 = vld [vmem:[#allocation78_spill] sm:$0xff]  ;;  %v9852_v57 = vld [vmem:[#allocation60_spill] sm:$0xff] }
 0x1d3   : > { %v3366_v18 = vadd.f32 %v3313_v60, %v2929_v53  ;;  %v1694_v62 = vadd.f32 %v1670_v25, %v1642_v30  ;;  %v1028_v41 = vadd.f32 %v1004_v15, %v976_v29  ;;  %v1878_v53 = vmul.f32 %v9809_v35, %v6276_v16  ;;  %v9853_v15 = vld [vmem:[#allocation62_spill] sm:$0xff]  ;;  %v9854_v29 = vld [vmem:[#allocation63_spill] sm:$0xff] }
 0x1d4   : > { %v1930_v56 = vmul.f32 %v9851_v59, %v6415_v3  ;;  %v1413_v54 = vadd.f32 %v1389_v44, %v1361_v34  ;;  %v2079_v60 = vmul.f32 %v9852_v57, %v6250_v14  ;;  %v2107_v50 = vmul.f32 %v9812_v7, %v6253_v26 }
 0x1d5   : > { %v6462_v8 = vadd.f32 %v9849_v31, %v3366_v18  ;;  %v1746_v12 = vadd.f32 %v1722_v6, %v1694_v62  ;;  %v1080_v25 = vadd.f32 %v1056_v32, %v1028_v41  ;;  %v2159_v18 = vmul.f32 %v9853_v15, %v6256_v23  ;;  %v9856_v41 = vld [vmem:[#allocation68_spill] sm:$0xff] }
 0x1d6   : > { %v2211_v35 = vmul.f32 %v9854_v29, %v6266_v45  ;;  %v1465_v59 = vadd.f32 %v1441_v24, %v1413_v54  ;;  %v2131_v62 = vadd.f32 %v2107_v50, %v2079_v60  ;;  %v2263_v6 = vmul.f32 %v9776_v11, %v6269_v37  ;;  %v9857_v24 = vld [vmem:[#allocation69_spill] sm:$0xff]  ;;  %v9858_v54 = vld [vmem:[#allocation80_spill] sm:$0xff]  ;;  %v9860_v50 = vld [vmem:[#allocation70_spill] sm:$0xff] }
 0x1d7   : > { %9850 = vst [vmem:[#allocation74_spill] sm:$0xff] %v6462_v8  ;;  %v3408_v30 = vsel %vm3404_vm6, %v6462_v8, 0.0  ;;  %v1798_v44 = vadd.f32 %v1774_v27, %v1746_v12  ;;  %v1132_v34 = vrot.slane %v1080_v25, 1  ;;  %v2315_v7 = vmul.f32 %v9778_v17, %v6276_v16  ;;  %v9855_v8 = vld [vmem:[#allocation67_spill] sm:$0xff] }
 0x1d8   : > { %3409 = vadd.xlane.f32.xlu0 %v3408_v30  ;;  %v2367_v32 = vmul.f32 %v9855_v8, %v6415_v3  ;;  %v2516_v15 = vmul.f32 %v9856_v41, %v6250_v14  ;;  %v1517_v57 = vadd.f32 %v1493_v38, %v1465_v59  ;;  %v2183_v29 = vadd.f32 %v2159_v18, %v2131_v62 }
 0x1d9   : > { %v1850_v42 = vadd.f32 %v1826_v51, %v1798_v44  ;;  %v2544_v27 = vmul.f32 %v9857_v24, %v6253_v26  ;;  %v9859_v12 = vrot.slane %v9858_v54, 1  ;;  %v2596_v30 = vmul.f32 %v9860_v50, %v6256_v23  ;;  %v9861_v54 = vld [vmem:[#allocation81_spill] sm:$0xff] }
 0x1da   : > { %v2648_v25 = vmul.f32 %v5914_v40, %v6266_v45  ;;  %v2700_v8 = vmul.f32 %v5918_v49, %v6269_v37  ;;  %v1569_v38 = vrot.slane %v1517_v57, 2  ;;  %v2235_v59 = vadd.f32 %v2211_v35, %v2183_v29 }
 0x1db   : > { %v1133_v60 = vsel %vm1123_vm0, %v9859_v12, %v1132_v34  ;;  %v1902_v51 = vadd.f32 %v1878_v53, %v1850_v42  ;;  %v2568_v18 = vadd.f32 %v2544_v27, %v2516_v15  ;;  %v2752_v44 = vmul.f32 %v5922_v5, %v6276_v16 }
 0x1dc   : > { %v1183_v41 = vadd.f32 %v1133_v60, %v746_v63  ;;  %v2804_v62 = vmul.f32 %v5941_v39, %v6415_v3  ;;  %v2953_v34 = vmul.f32 %v5945_v43, %v6250_v14  ;;  %v9862_v12 = vrot.slane %v9861_v54, 2  ;;  %v6519_v60 = vld [vmem:[%s5550_s25 + $0x30] sm:$0xff] }
 0x1dd   : > { %v1954_v49 = vadd.f32 %v1930_v56, %v1902_v51  ;;  %v2287_v63 = vadd.f32 %v2263_v6, %v2235_v59  ;;  %v2981_v42 = vmul.f32 %v5952_v19, %v6253_v26  ;;  %v2620_v53 = vadd.f32 %v2596_v30, %v2568_v18  ;;  %v9863_v30 = vld [vmem:[#allocation82_spill] sm:$0xff] }
 0x1de   : > { %v1570_v40 = vsel %vm1560_vm1, %v9862_v12, %v1569_v38  ;;  %v3033_v57 = vmul.f32 %v5956_v58, %v6256_v23  ;;  %v3085_v15 = vmul.f32 %v5960_v10, %v6266_v45  ;;  %v3137_v56 = vmul.f32 %v5986_v48, %v6269_v37  ;;  %v6532_v12 = vld [vmem:[%s5550_s25 + $0x60] sm:$0xff]  ;;  %v9873_v26 = vld [vmem:[#allocation58_spill] sm:$0xff] }
 0x1df   : > { %v1620_v35 = vadd.f32 %v1570_v40, %v1183_v41  ;;  %v2006_v14 = vrot.slane %v1954_v49, 3  ;;  %v2339_v29 = vadd.f32 %v2315_v7, %v2287_v63  ;;  %v3005_v27 = vadd.f32 %v2981_v42, %v2953_v34  ;;  %v6537_v42 = vld [vmem:[%s5550_s25 + $0x78] sm:$0xff] }
 0x1e0   : > { %v2672_v6 = vadd.f32 %v2648_v25, %v2620_v53  ;;  %v3189_v40 = vmul.f32 %v5990_v9, %v6276_v16  ;;  %v3241_v41 = vmul.f32 %v5994_v13, %v6415_v3  ;;  %v531_v49 = vmul.f32 %v6519_v60, %v9784_v36  ;;  %v6527_v25 = vld [vmem:[%s5550_s25 + $0x48] sm:$0xff]  ;;  %v9871_v16 = vld [vmem:[#allocation51_spill] sm:$0xff] }
 0x1e1   : > { %v9864_v7 = vrot.slane %v9863_v30, 3  ;;  %v2391_v51 = vadd.f32 %v2367_v32, %v2339_v29  ;;  %v3057_v59 = vadd.f32 %v3033_v57, %v3005_v27  ;;  %v551_v18 = vmul.f32 %v6527_v25, %v9785_v22  ;;  %v6542_v57 = vld [vmem:[%s5550_s25 + $0xc0] sm:$0xff]  ;;  %v6545_v27 = vld [vmem:[%s5550_s25 + $0x90] sm:$0xff] }
 0x1e2   : > { %v2724_v54 = vadd.f32 %v2700_v8, %v2672_v6  ;;  %v587_v63 = vmul.f32 %v6532_v12, %v9786_v61  ;;  %v623_v53 = vmul.f32 %v6537_v42, %v9789_v28  ;;  %9865 = vst [vmem:[#allocation76_spill] sm:$0xff] %v6542_v57  ;;  %9866 = vst [vmem:[#allocation78_spill] sm:$0xff] %v6545_v27  ;;  %v9867_v6 = vld [vmem:[#allocation75_spill] sm:$0xff]  ;;  %v9874_v28 = vld [vmem:[#allocation41_spill] sm:$0xff] }
 0x1e3   : > { %v2007_v38 = vsel %vm1997_vm2, %v9864_v7, %v2006_v14  ;;  %v2443_v14 = vrot.slane %v2391_v51, 4  ;;  %v3109_v32 = vadd.f32 %v3085_v15, %v3057_v59  ;;  %v567_v29 = vadd.f32 %v551_v18, %v531_v49  ;;  %v9869_v51 = vld [vmem:[#allocation83_spill] sm:$0xff]  ;;  %v6578_v61 = vld [vmem:[%s5550_s25 + $0xc8] sm:$0xff] }
 0x1e4   : > { %v2057_v34 = vadd.f32 %v2007_v38, %v1620_v35  ;;  %v659_v8 = vmul.f32 %v6545_v27, %v9827_v0  ;;  %v2776_v35 = vadd.f32 %v2752_v44, %v2724_v54  ;;  %v695_v30 = vmul.f32 %v9829_v1, %v9867_v6  ;;  %v9868_v38 = vld [vmem:[#allocation31_spill] sm:$0xff]  ;;  %v9872_v54 = vld [vmem:[#allocation37_spill] sm:$0xff]  ;;  %9881 = vst [vmem:[#allocation80_spill] sm:$0xff] %v6578_v61  ;;  %v9886_v36 = vld [vmem:[#allocation90_spill] sm:$0xff] }
 0x1e5   : > { %v731_v7 = vmul.f32 %v9794_v20, %v6542_v57  ;;  %v769_v3 = vmul.f32 %v6519_v60, %v9868_v38  ;;  %v9870_v15 = vrot.slane %v9869_v51, 4  ;;  %v3161_v49 = vadd.f32 %v3137_v56, %v3109_v32  ;;  %v9875_v56 = vld [vmem:[#allocation66_spill] sm:$0xff]  ;;  %v9884_v22 = vld [vmem:[#allocation77_spill] sm:$0xff] }
 0x1e6   : > { %v603_v18 = vadd.f32 %v587_v63, %v567_v29  ;;  %v770_v37 = vmul.f32 %v9871_v16, %v9868_v38  ;;  %v2828_v44 = vadd.f32 %v2804_v62, %v2776_v35  ;;  %v797_v23 = vmul.f32 %v6527_v25, %v9872_v54 }
 0x1e7   : > { %v2444_v59 = vsel %vm2434_vm3, %v9870_v15, %v2443_v14  ;;  %v798_v20 = vmul.f32 %v9873_v26, %v9872_v54  ;;  %v3213_v1 = vadd.f32 %v3189_v40, %v3161_v49  ;;  %v849_v51 = vmul.f32 %v6532_v12, %v9874_v28  ;;  %v9878_v54 = vld [vmem:[#allocation43_spill] sm:$0xff] }
 0x1e8   : > { %v2494_v45 = vadd.f32 %v2444_v59, %v2057_v34  ;;  %v639_v0 = vadd.f32 %v623_v53, %v603_v18  ;;  %v850_v63 = vmul.f32 %v9875_v56, %v9874_v28  ;;  %v2880_v14 = vrot.slane %v2828_v44, 5  ;;  %v9876_v34 = vld [vmem:[#allocation42_spill] sm:$0xff]  ;;  %v9877_v59 = vld [vmem:[#allocation92_spill] sm:$0xff] }
 0x1e9   : > { %v821_v32 = vadd.f32 %v797_v23, %v769_v3  ;;  %v822_v29 = vadd.f32 %v798_v20, %v770_v37  ;;  %v901_v62 = vmul.f32 %v6537_v42, %v9876_v34  ;;  %v3265_v35 = vadd.f32 %v3241_v41, %v3213_v1  ;;  %v9879_v53 = vld [vmem:[#allocation84_spill] sm:$0xff]  ;;  %v9882_v37 = vld [vmem:[#allocation93_spill] sm:$0xff] }
 0x1ea   : > { %v675_v15 = vadd.f32 %v659_v8, %v639_v0  ;;  %v902_v38 = vmul.f32 %v9877_v59, %v9876_v34  ;;  %v953_v40 = vmul.f32 %v6545_v27, %v9878_v54  ;;  %v9880_v49 = vrot.slane %v9879_v53, 5  ;;  %v9883_v41 = vld [vmem:[#allocation44_spill] sm:$0xff] }
 0x1eb   : > { %v873_v44 = vadd.f32 %v849_v51, %v821_v32  ;;  %v874_v23 = vadd.f32 %v850_v63, %v822_v29  ;;  %v954_v20 = vmul.f32 %v9882_v37, %v9878_v54  ;;  %v3317_v1 = vrot.slane %v3265_v35, 6 }
 0x1ec   : > { %v2881_v18 = vsel %vm2871_vm4, %v9880_v49, %v2880_v14  ;;  %v711_v0 = vadd.f32 %v695_v30, %v675_v15  ;;  %v1005_v8 = vmul.f32 %v9883_v41, %v9867_v6  ;;  %v1006_v53 = vmul.f32 %v9883_v41, %v9884_v22  ;;  %v9885_v14 = vld [vmem:[#allocation45_spill] sm:$0xff]  ;;  %v9888_v30 = vld [vmem:[#allocation32_spill] sm:$0xff] }
 0x1ed   : > { %v2931_v3 = vadd.f32 %v2881_v18, %v2494_v45  ;;  %v925_v34 = vadd.f32 %v901_v62, %v873_v44  ;;  %v926_v28 = vadd.f32 %v902_v38, %v874_v23  ;;  %v1057_v49 = vmul.f32 %v9885_v14, %v6542_v57 }
 0x1ee   : > { %v9887_v51 = vrot.slane %v9886_v36, 6  ;;  %v747_v32 = vadd.f32 %v731_v7, %v711_v0  ;;  %v1058_v45 = vmul.f32 %v9885_v14, %v6578_v61  ;;  %v1206_v29 = vmul.f32 %v6519_v60, %v9888_v30 }
 0x1ef   : > { %v977_v62 = vadd.f32 %v953_v40, %v925_v34  ;;  %v978_v38 = vadd.f32 %v954_v20, %v926_v28  ;;  %v1207_v15 = vmul.f32 %v9871_v16, %v9888_v30  ;;  %v1234_v18 = vmul.f32 %v6527_v25, %v9841_v2 }
 0x1f0   : > { %v3318_v63 = vsel %vm3308_vm5, %v9887_v51, %v3317_v1  ;;  %v1235_v36 = vmul.f32 %v9873_v26, %v9841_v2  ;;  %v1286_v7 = vmul.f32 %v6532_v12, %v9842_v47  ;;  %v1287_v44 = vmul.f32 %v9875_v56, %v9842_v47 }
 0x1f1   : > { %v3368_v35 = vadd.f32 %v3318_v63, %v2931_v3  ;;  %v1029_v34 = vadd.f32 %v1005_v8, %v977_v62  ;;  %v1030_v28 = vadd.f32 %v1006_v53, %v978_v38  ;;  %v1338_v40 = vmul.f32 %v6537_v42, %v9843_v4 }
 0x1f2   : > { %v1258_v20 = vadd.f32 %v1234_v18, %v1206_v29  ;;  %v1259_v3 = vadd.f32 %v1235_v36, %v1207_v15  ;;  %v1339_v1 = vmul.f32 %v9877_v59, %v9843_v4  ;;  %v1390_v0 = vmul.f32 %v6545_v27, %v9844_v52  ;;  %v9891_v29 = vld [vmem:[#allocation50_spill] sm:$0xff]  ;;  %v9892_v18 = vld [vmem:[#allocation52_spill] sm:$0xff] }
 0x1f3   : > { %v6606_v23 = vadd.f32 %v9849_v31, %v3368_v35  ;;  %v1081_v63 = vadd.f32 %v1057_v49, %v1029_v34  ;;  %v6616_v47 = vadd.f32 %v1058_v45, %v1030_v28  ;;  %v1391_v31 = vmul.f32 %v9882_v37, %v9844_v52 }
 0x1f4   : > { %v1310_v8 = vadd.f32 %v1286_v7, %v1258_v20  ;;  %v1311_v53 = vadd.f32 %v1287_v44, %v1259_v3  ;;  %v1442_v35 = vmul.f32 %v9891_v29, %v9867_v6  ;;  %v1443_v62 = vmul.f32 %v9891_v29, %v9884_v22 }
 0x1f5   : > { %9889 = vst [vmem:[#allocation81_spill] sm:$0xff] %v6606_v23  ;;  %v3414_v51 = vsel %vm3404_vm6, %v6606_v23, 0.0  ;;  %9890 = vst [vmem:[#allocation82_spill] sm:$0xff] %v6616_v47  ;;  %v1134_v38 = vrot.slane %v1081_v63, 1  ;;  %v9336_v15 = vrot.slane %v6616_v47, 1  ;;  %v1494_v49 = vmul.f32 %v9892_v18, %v6542_v57 }
 0x1f6   : > { %3415 = vadd.xlane.f32.xlu1 %v3414_v51  ;;  %v1495_v45 = vmul.f32 %v9892_v18, %v6578_v61  ;;  %v1362_v36 = vadd.f32 %v1338_v40, %v1310_v8  ;;  %v1363_v34 = vadd.f32 %v1339_v1, %v1311_v53  ;;  %v1643_v7 = vmul.f32 %v6519_v60, %v9806_v21 }
 0x1f7   : > { %v1644_v6 = vmul.f32 %v9871_v16, %v9806_v21  ;;  %v1136_v44 = vsel %vm1123_vm0, %v1134_v38, %v9336_v15  ;;  %v1671_v28 = vmul.f32 %v6527_v25, %v5767_v55  ;;  %v1672_v20 = vmul.f32 %v9873_v26, %v5767_v55  ;;  %v9893_v55 = vld [vmem:[#allocation56_spill] sm:$0xff] }
 0x1f8   : > { %v1723_v40 = vmul.f32 %v6532_v12, %v9847_v46  ;;  %v1184_v3 = vadd.f32 %v1136_v44, %v747_v32  ;;  %v1414_v1 = vadd.f32 %v1390_v0, %v1362_v36  ;;  %v1415_v51 = vadd.f32 %v1391_v31, %v1363_v34  ;;  %v6653_v36 = vld [vmem:[%s5550_s25 + $0xa8] sm:$0xff] }
 0x1f9   : > { %v1724_v63 = vmul.f32 %v9875_v56, %v9847_v46  ;;  %v1695_v8 = vadd.f32 %v1671_v28, %v1643_v7  ;;  %v1696_v53 = vadd.f32 %v1672_v20, %v1644_v6  ;;  %v1775_v38 = vmul.f32 %v6537_v42, %v9848_v33  ;;  %9894 = vst [vmem:[#allocation75_spill] sm:$0xff] %v6653_v36  ;;  %v9895_v34 = vld [vmem:[#allocation57_spill] sm:$0xff] }
 0x1fa   : > { %v1776_v15 = vmul.f32 %v9877_v59, %v9848_v33  ;;  %v1466_v23 = vadd.f32 %v1442_v35, %v1414_v1  ;;  %v1467_v47 = vadd.f32 %v1443_v62, %v1415_v51  ;;  %v1827_v21 = vmul.f32 %v6545_v27, %v9893_v55  ;;  %v9897_v35 = vld [vmem:[#allocation59_spill] sm:$0xff]  ;;  %v9898_v51 = vld [vmem:[#allocation60_spill] sm:$0xff] }
 0x1fb   : > { %v1828_v32 = vmul.f32 %v9882_v37, %v9893_v55  ;;  %v1747_v0 = vadd.f32 %v1723_v40, %v1695_v8  ;;  %v1748_v31 = vadd.f32 %v1724_v63, %v1696_v53  ;;  %v1879_v7 = vmul.f32 %v6653_v36, %v9895_v34 }
 0x1fc   : > { %v1880_v6 = vmul.f32 %v9895_v34, %v9884_v22  ;;  %v1518_v44 = vadd.f32 %v1494_v49, %v1466_v23  ;;  %v6659_v28 = vadd.f32 %v1495_v45, %v1467_v47  ;;  %v1931_v62 = vmul.f32 %v9897_v35, %v6542_v57  ;;  %v9899_v23 = vld [vmem:[#allocation61_spill] sm:$0xff] }
 0x1fd   : > { %v1932_v20 = vmul.f32 %v9897_v35, %v6578_v61  ;;  %v1799_v1 = vadd.f32 %v1775_v38, %v1747_v0  ;;  %v1800_v40 = vadd.f32 %v1776_v15, %v1748_v31  ;;  %v2080_v63 = vmul.f32 %v6519_v60, %v9898_v51  ;;  %v9900_v35 = vld [vmem:[#allocation62_spill] sm:$0xff] }
 0x1fe   : > { %9896 = vst [vmem:[#allocation83_spill] sm:$0xff] %v6659_v28  ;;  %v2081_v8 = vmul.f32 %v9871_v16, %v9898_v51  ;;  %v1571_v53 = vrot.slane %v1518_v44, 2  ;;  %v9350_v22 = vrot.slane %v6659_v28, 2  ;;  %v2108_v47 = vmul.f32 %v6527_v25, %v9899_v23  ;;  %v9901_v51 = vld [vmem:[#allocation63_spill] sm:$0xff] }
 0x1ff   : > { %v2109_v49 = vmul.f32 %v9873_v26, %v9899_v23  ;;  %v1851_v45 = vadd.f32 %v1827_v21, %v1799_v1  ;;  %v1852_v34 = vadd.f32 %v1828_v32, %v1800_v40  ;;  %v2160_v15 = vmul.f32 %v6532_v12, %v9900_v35 }
 0x200   : > { %v2161_v38 = vmul.f32 %v9875_v56, %v9900_v35  ;;  %v1573_v0 = vsel %vm1560_vm1, %v1571_v53, %v9350_v22  ;;  %v2132_v31 = vadd.f32 %v2108_v47, %v2080_v63  ;;  %v2212_v55 = vmul.f32 %v6537_v42, %v9901_v51  ;;  %v9904_v47 = vld [vmem:[#allocation67_spill] sm:$0xff] }
 0x201   : > { %v2133_v44 = vadd.f32 %v2109_v49, %v2081_v8  ;;  %v1621_v33 = vadd.f32 %v1573_v0, %v1184_v3  ;;  %v1903_v23 = vadd.f32 %v1879_v7, %v1851_v45  ;;  %v1904_v21 = vadd.f32 %v1880_v6, %v1852_v34  ;;  %v6694_v3 = vld [vmem:[%s5550_s25 + $0xb0] sm:$0xff] }
 0x202   : > { %v2213_v32 = vmul.f32 %v9877_v59, %v9901_v51  ;;  %v2184_v1 = vadd.f32 %v2160_v15, %v2132_v31  ;;  %v2264_v35 = vmul.f32 %v6545_v27, %v9776_v11  ;;  %v2265_v28 = vmul.f32 %v9882_v37, %v9776_v11  ;;  %9903 = vst [vmem:[#allocation84_spill] sm:$0xff] %v6694_v3 }
 0x203   : > { %v2185_v40 = vadd.f32 %v2161_v38, %v2133_v44  ;;  %v1955_v53 = vadd.f32 %v1931_v62, %v1903_v23  ;;  %v6689_v63 = vadd.f32 %v1932_v20, %v1904_v21  ;;  %v2316_v8 = vmul.f32 %v6653_v36, %v9778_v17  ;;  %v9905_v20 = vld [vmem:[#allocation68_spill] sm:$0xff] }
 0x204   : > { %v2317_v34 = vmul.f32 %v6694_v3, %v9778_v17  ;;  %v2236_v7 = vadd.f32 %v2212_v55, %v2184_v1  ;;  %v2368_v49 = vmul.f32 %v9904_v47, %v6542_v57  ;;  %v2369_v45 = vmul.f32 %v9904_v47, %v6578_v61 }
 0x205   : > { %9902 = vst [vmem:[#allocation51_spill] sm:$0xff] %v6689_v63  ;;  %v2237_v6 = vadd.f32 %v2213_v32, %v2185_v40  ;;  %v2008_v15 = vrot.slane %v1955_v53, 3  ;;  %v9353_v62 = vrot.slane %v6689_v63, 3  ;;  %v2517_v23 = vmul.f32 %v6519_v60, %v9905_v20  ;;  %v9906_v40 = vld [vmem:[#allocation71_spill] sm:$0xff]  ;;  %v9907_v63 = vld [vmem:[#allocation72_spill] sm:$0xff] }
 0x206   : > { %v2518_v38 = vmul.f32 %v9871_v16, %v9905_v20  ;;  %v2288_v0 = vadd.f32 %v2264_v35, %v2236_v7  ;;  %v2545_v55 = vmul.f32 %v6527_v25, %v9857_v24  ;;  %v2546_v44 = vmul.f32 %v9873_v26, %v9857_v24 }
 0x207   : > { %v2289_v31 = vadd.f32 %v2265_v28, %v2237_v6  ;;  %v2010_v21 = vsel %vm1997_vm2, %v2008_v15, %v9353_v62  ;;  %v2597_v32 = vmul.f32 %v6532_v12, %v9860_v50  ;;  %v2598_v1 = vmul.f32 %v9875_v56, %v9860_v50 }
 0x208   : > { %v2649_v35 = vmul.f32 %v6537_v42, %v9906_v40  ;;  %v2058_v28 = vadd.f32 %v2010_v21, %v1621_v33  ;;  %v2340_v53 = vadd.f32 %v2316_v8, %v2288_v0  ;;  %v2569_v6 = vadd.f32 %v2545_v55, %v2517_v23 }
 0x209   : > { %v2341_v7 = vadd.f32 %v2317_v34, %v2289_v31  ;;  %v2570_v22 = vadd.f32 %v2546_v44, %v2518_v38  ;;  %v2650_v24 = vmul.f32 %v9877_v59, %v9906_v40  ;;  %v2701_v15 = vmul.f32 %v6545_v27, %v9907_v63 }
 0x20a   : > { %v2702_v62 = vmul.f32 %v9882_v37, %v9907_v63  ;;  %v2392_v20 = vadd.f32 %v2368_v49, %v2340_v53  ;;  %v2621_v50 = vadd.f32 %v2597_v32, %v2569_v6  ;;  %v2753_v33 = vmul.f32 %v6653_v36, %v5922_v5 }
 0x20b   : > { %v6726_v47 = vadd.f32 %v2369_v45, %v2341_v7  ;;  %v2622_v8 = vadd.f32 %v2598_v1, %v2570_v22  ;;  %v2754_v34 = vmul.f32 %v6694_v3, %v5922_v5  ;;  %v2805_v23 = vmul.f32 %v5941_v39, %v6542_v57 }
 0x20c   : > { %v2806_v38 = vmul.f32 %v5941_v39, %v6578_v61  ;;  %v2445_v0 = vrot.slane %v2392_v20, 4  ;;  %v2673_v49 = vadd.f32 %v2649_v35, %v2621_v50  ;;  %v2954_v45 = vmul.f32 %v6519_v60, %v5945_v43 }
 0x20d   : > { %9908 = vst [vmem:[#allocation77_spill] sm:$0xff] %v6726_v47  ;;  %v9357_v31 = vrot.slane %v6726_v47, 4  ;;  %v2674_v55 = vadd.f32 %v2650_v24, %v2622_v8  ;;  %v2955_v22 = vmul.f32 %v9871_v16, %v5945_v43  ;;  %v2982_v44 = vmul.f32 %v6527_v25, %v5952_v19 }
 0x20e   : > { %v2983_v21 = vmul.f32 %v9873_v26, %v5952_v19  ;;  %v2725_v32 = vadd.f32 %v2701_v15, %v2673_v49  ;;  %v3034_v50 = vmul.f32 %v6532_v12, %v5956_v58  ;;  %v3035_v24 = vmul.f32 %v9875_v56, %v5956_v58 }
 0x20f   : > { %v2447_v20 = vsel %vm2434_vm3, %v2445_v0, %v9357_v31  ;;  %v2726_v1 = vadd.f32 %v2702_v62, %v2674_v55  ;;  %v3006_v35 = vadd.f32 %v2982_v44, %v2954_v45  ;;  %v3086_v6 = vmul.f32 %v6537_v42, %v5960_v10 }
 0x210   : > { %v2495_v60 = vadd.f32 %v2447_v20, %v2058_v28  ;;  %v3007_v53 = vadd.f32 %v2983_v21, %v2955_v22  ;;  %v2777_v7 = vadd.f32 %v2753_v33, %v2725_v32  ;;  %v3087_v8 = vmul.f32 %v9877_v59, %v5960_v10  ;;  %v9910_v20 = vld [vmem:[#allocation30_spill] sm:$0xff] }
 0x211   : > { %v3138_v15 = vmul.f32 %v6545_v27, %v5986_v48  ;;  %v2778_v0 = vadd.f32 %v2754_v34, %v2726_v1  ;;  %v3058_v49 = vadd.f32 %v3034_v50, %v3006_v35  ;;  %v3139_v47 = vmul.f32 %v9882_v37, %v5986_v48  ;;  %v9911_v32 = vld [vmem:[#allocation34_spill] sm:$0xff] }
 0x212   : > { %v3059_v31 = vadd.f32 %v3035_v24, %v3007_v53  ;;  %v2829_v28 = vadd.f32 %v2805_v23, %v2777_v7  ;;  %v3190_v62 = vmul.f32 %v6653_v36, %v5990_v9  ;;  %v3191_v33 = vmul.f32 %v6694_v3, %v5990_v9  ;;  %v9912_v24 = vld [vmem:[#allocation35_spill] sm:$0xff]  ;;  %v9913_v7 = vld [vmem:[#allocation36_spill] sm:$0xff]  ;;  %v9921_v36 = vld [vmem:[#allocation37_spill] sm:$0xff] }
 0x213   : > { %v3242_v45 = vmul.f32 %v5994_v13, %v6542_v57  ;;  %v6766_v55 = vadd.f32 %v2806_v38, %v2778_v0  ;;  %v3110_v22 = vadd.f32 %v3086_v6, %v3058_v49  ;;  %v3243_v34 = vmul.f32 %v5994_v13, %v6578_v61  ;;  %v9915_v49 = vld [vmem:[#allocation39_spill] sm:$0xff] }
 0x214   : > { %v3111_v44 = vadd.f32 %v3087_v8, %v3059_v31  ;;  %v2882_v21 = vrot.slane %v2829_v28, 5  ;;  %v532_v23 = vmul.f32 %v9871_v16, %v9910_v20  ;;  %v552_v50 = vmul.f32 %v9873_v26, %v9911_v32  ;;  %v9914_v8 = vld [vmem:[#allocation38_spill] sm:$0xff]  ;;  %v9916_v28 = vld [vmem:[#allocation40_spill] sm:$0xff] }
 0x215   : > { %9909 = vst [vmem:[#allocation90_spill] sm:$0xff] %v6766_v55  ;;  %v588_v1 = vmul.f32 %v9875_v56, %v9912_v24  ;;  %v9374_v35 = vrot.slane %v6766_v55, 5  ;;  %v3162_v38 = vadd.f32 %v3138_v15, %v3110_v22  ;;  %v624_v31 = vmul.f32 %v9877_v59, %v9913_v7  ;;  %v9918_v22 = vld [vmem:[#allocation85_spill] sm:$0xff]  ;;  %v9925_v55 = vld [vmem:[#allocation88_spill] sm:$0xff] }
 0x216   : > { %v3163_v53 = vadd.f32 %v3139_v47, %v3111_v44  ;;  %v568_v6 = vadd.f32 %v552_v50, %v532_v23  ;;  %v660_v0 = vmul.f32 %v9882_v37, %v9914_v8  ;;  %v696_v16 = vmul.f32 %v6694_v3, %v9915_v49  ;;  %v6789_v47 = vld [vmem:[%s5550_s25 + $0xd0] sm:$0x3f]  ;;  %v9923_v49 = vld [vmem:[#allocation41_spill] sm:$0xff] }
 0x217   : > { %v732_v26 = vmul.f32 %v9916_v28, %v6578_v61  ;;  %v2884_v56 = vsel %vm2871_vm4, %v2882_v21, %v9374_v35  ;;  %v3214_v57 = vadd.f32 %v3190_v62, %v3162_v38  ;;  %9917 = vst [vmem:[#allocation71_spill] sm:$0xff] %v6789_v47  ;;  %v9919_v44 = vld [vmem:[#allocation31_spill] sm:$0xff]  ;;  %v9920_v37 = vld [vmem:[#allocation86_spill] sm:$0xff] }
 0x218   : > { %v3215_v15 = vadd.f32 %v3191_v33, %v3163_v53  ;;  %v771_v23 = vmul.f32 %v9919_v44, %v9918_v22  ;;  %v2932_v50 = vadd.f32 %v2884_v56, %v2495_v60  ;;  %v604_v59 = vadd.f32 %v588_v1, %v568_v6  ;;  %v9922_v3 = vld [vmem:[#allocation87_spill] sm:$0xff]  ;;  %v9926_v21 = vld [vmem:[#allocation42_spill] sm:$0xff]  ;;  %v9927_v33 = vld [vmem:[#allocation89_spill] sm:$0xff] }
 0x219   : > { %v799_v8 = vmul.f32 %v9921_v36, %v9920_v37  ;;  %v851_v27 = vmul.f32 %v9923_v49, %v9922_v3  ;;  %v3266_v61 = vadd.f32 %v3242_v45, %v3214_v57  ;;  %v903_v62 = vmul.f32 %v9926_v21, %v9925_v55  ;;  %v9928_v44 = vld [vmem:[#allocation73_spill] sm:$0xff] }
 0x21a   : > { %v6797_v28 = vadd.f32 %v3243_v34, %v3215_v15  ;;  %v955_v38 = vmul.f32 %v9878_v54, %v9927_v33  ;;  %v640_v53 = vadd.f32 %v624_v31, %v604_v59  ;;  %v1007_v56 = vmul.f32 %v9883_v41, %v9928_v44  ;;  %v9929_v59 = vld [vmem:[#allocation47_spill] sm:$0xff] }
 0x21b   : > { %v823_v35 = vadd.f32 %v799_v8, %v771_v23  ;;  %v1059_v60 = vmul.f32 %v9885_v14, %v6789_v47  ;;  %v3319_v1 = vrot.slane %v3266_v61, 6  ;;  %v1208_v57 = vmul.f32 %v9888_v30, %v9918_v22 }
 0x21c   : > { %9924 = vst [vmem:[#allocation72_spill] sm:$0xff] %v6797_v28  ;;  %v9380_v6 = vrot.slane %v6797_v28, 6  ;;  %v1236_v45 = vmul.f32 %v9841_v2, %v9920_v37  ;;  %v676_v34 = vadd.f32 %v660_v0, %v640_v53  ;;  %v1288_v31 = vmul.f32 %v9929_v59, %v9922_v3  ;;  %v9931_v28 = vld [vmem:[#allocation53_spill] sm:$0xff] }
 0x21d   : > { %v875_v15 = vadd.f32 %v851_v27, %v823_v35  ;;  %v1340_v8 = vmul.f32 %v9843_v4, %v9925_v55  ;;  %v1392_v14 = vmul.f32 %v9844_v52, %v9927_v33  ;;  %v1444_v30 = vmul.f32 %v9891_v29, %v9928_v44  ;;  %v9930_v4 = vld [vmem:[#allocation33_spill] sm:$0xff] }
 0x21e   : > { %v3321_v61 = vsel %vm3308_vm5, %v3319_v1, %v9380_v6  ;;  %v1260_v23 = vadd.f32 %v1236_v45, %v1208_v57  ;;  %v712_v0 = vadd.f32 %v696_v16, %v676_v34  ;;  %v1496_v35 = vmul.f32 %v9892_v18, %v6789_v47  ;;  %v6831_v45 = vld [vmem:[#allocation7] ss:$0 sm:$0xff] }
 0x21f   : > { %v3369_v2 = vadd.f32 %v3321_v61, %v2932_v50  ;;  %v927_v27 = vadd.f32 %v903_v62, %v875_v15  ;;  %v1645_v59 = vmul.f32 %v9930_v4, %v9918_v22  ;;  %v1673_v1 = vmul.f32 %v9931_v28, %v9920_v37  ;;  %9932 = vst [vmem:[#allocation85_spill] sm:$0xff] %v6831_v45  ;;  %v9934_v62 = vld [vmem:[#allocation55_spill] sm:$0xff]  ;;  %v9935_v61 = vld [vmem:[#allocation56_spill] sm:$0xff]  ;;  %v9936_v28 = vld [vmem:[#allocation57_spill] sm:$0xff] }
 0x220   : > { %v1312_v53 = vadd.f32 %v1288_v31, %v1260_v23  ;;  %v1725_v57 = vmul.f32 %v9847_v46, %v9922_v3  ;;  %v748_v16 = vadd.f32 %v732_v26, %v712_v0  ;;  %v1777_v34 = vmul.f32 %v9934_v62, %v9925_v55  ;;  %v9938_v26 = vld [vmem:[#allocation60_spill] sm:$0xff] }
 0x221   : > { %v6834_v6 = vadd.f32 %v6831_v45, %v3369_v2  ;;  %v979_v50 = vadd.f32 %v955_v38, %v927_v27  ;;  %v1697_v31 = vadd.f32 %v1673_v1, %v1645_v59  ;;  %v1829_v23 = vmul.f32 %v9935_v61, %v9927_v33  ;;  %v9937_v2 = vld [vmem:[#allocation59_spill] sm:$0xff]  ;;  %v9939_v59 = vld [vmem:[#allocation61_spill] sm:$0xff] }
 0x222   : > { %v1364_v15 = vadd.f32 %v1340_v8, %v1312_v53  ;;  %v1881_v4 = vmul.f32 %v9936_v28, %v9928_v44  ;;  %v1933_v29 = vmul.f32 %v9937_v2, %v6789_v47  ;;  %v2082_v38 = vmul.f32 %v9938_v26, %v9918_v22  ;;  %v9940_v53 = vld [vmem:[#allocation62_spill] sm:$0xff] }
 0x223   : > { %9933 = vst [vmem:[#allocation86_spill] sm:$0xff] %v6834_v6  ;;  %v3417_v46 = vsel %vm3404_vm6, %v6834_v6, 0.0  ;;  %v1031_v18 = vadd.f32 %v1007_v56, %v979_v50  ;;  %v1749_v8 = vadd.f32 %v1725_v57, %v1697_v31  ;;  %v2110_v27 = vmul.f32 %v9939_v59, %v9920_v37  ;;  %v9941_v57 = vld [vmem:[#allocation67_spill] sm:$0xff]  ;;  %v9942_v59 = vld [vmem:[#allocation68_spill] sm:$0xff] }
 0x224   : > { %3418 = vadd.xlane.f32.xlu0 %v3417_v46  ;;  %v1416_v0 = vadd.f32 %v1392_v14, %v1364_v15  ;;  %v2162_v1 = vmul.f32 %v9940_v53, %v9922_v3  ;;  %v2214_v6 = vmul.f32 %v9901_v51, %v9925_v55  ;;  %v2266_v56 = vmul.f32 %v9776_v11, %v9927_v33  ;;  %v9944_v51 = vld [vmem:[#allocation70_spill] sm:$0xff] }
 0x225   : > { %v1083_v28 = vadd.f32 %v1059_v60, %v1031_v18  ;;  %v2318_v50 = vmul.f32 %v9778_v17, %v9928_v44  ;;  %v1801_v46 = vadd.f32 %v1777_v34, %v1749_v8  ;;  %v2134_v14 = vadd.f32 %v2110_v27, %v2082_v38  ;;  %v9943_v18 = vld [vmem:[#allocation69_spill] sm:$0xff]  ;;  %v9945_v38 = vld [vmem:[#allocation82_spill] sm:$0xff] }
 0x226   : > { %v1468_v26 = vadd.f32 %v1444_v30, %v1416_v0  ;;  %v2370_v15 = vmul.f32 %v9941_v57, %v6789_v47  ;;  %v2519_v53 = vmul.f32 %v9942_v59, %v9918_v22  ;;  %v2547_v60 = vmul.f32 %v9943_v18, %v9920_v37 }
 0x227   : > { %v1137_v31 = vrot.slane %v1083_v28, 1  ;;  %v2599_v11 = vmul.f32 %v9944_v51, %v9922_v3  ;;  %v1853_v17 = vadd.f32 %v1829_v23, %v1801_v46  ;;  %v2186_v30 = vadd.f32 %v2162_v1, %v2134_v14  ;;  %v4661_v1 = vld [vmem:[%s5550_s25 + $0x40] sm:$0x3f]  ;;  %v6880_v46 = vld [vmem:[%s5550_s25 + $0x58] sm:$0x3f] }
 0x228   : > { %v1520_v2 = vadd.f32 %v1496_v35, %v1468_v26  ;;  %v2651_v34 = vmul.f32 %v9906_v40, %v9925_v55  ;;  %v9946_v0 = vrot.slane %v9945_v38, 1  ;;  %v2571_v8 = vadd.f32 %v2547_v60, %v2519_v53  ;;  %9947 = vst [vmem:[#allocation87_spill] sm:$0xff] %v6880_v46  ;;  %v9948_v14 = vld [vmem:[#allocation83_spill] sm:$0xff]  ;;  %v6893_v38 = vld [vmem:[%s5550_s25 + $0x88] sm:$0x3f] }
 0x229   : > { %v2703_v37 = vmul.f32 %v9907_v63, %v9927_v33  ;;  %v2755_v22 = vmul.f32 %v5922_v5, %v9928_v44  ;;  %v1905_v26 = vadd.f32 %v1881_v4, %v1853_v17  ;;  %v2238_v23 = vadd.f32 %v2214_v6, %v2186_v30  ;;  %v6888_v6 = vld [vmem:[%s5550_s25 + $0x70] sm:$0x3f]  ;;  %9951 = vst [vmem:[#allocation89_spill] sm:$0xff] %v6893_v38 }
 0x22a   : > { %v1138_v28 = vsel %vm1123_vm0, %v9946_v0, %v1137_v31  ;;  %v1574_v35 = vrot.slane %v1520_v2, 2  ;;  %v2623_v27 = vadd.f32 %v2599_v11, %v2571_v8  ;;  %v2807_v55 = vmul.f32 %v5941_v39, %v6789_v47  ;;  %9950 = vst [vmem:[#allocation88_spill] sm:$0xff] %v6888_v6 }
 0x22b   : > { %v1185_v3 = vadd.f32 %v1138_v28, %v748_v16  ;;  %v2956_v53 = vmul.f32 %v4661_v1, %v5945_v43  ;;  %v2984_v33 = vmul.f32 %v6880_v46, %v5952_v19  ;;  %v9949_v31 = vrot.slane %v9948_v14, 2  ;;  %v6898_v1 = vld [vmem:[%s5550_s25 + $0xa0] sm:$0x3f] }
 0x22c   : > { %v1957_v17 = vadd.f32 %v1933_v29, %v1905_v26  ;;  %v2290_v4 = vadd.f32 %v2266_v56, %v2238_v23  ;;  %v3036_v11 = vmul.f32 %v6888_v6, %v5956_v58  ;;  %v2675_v60 = vadd.f32 %v2651_v34, %v2623_v27  ;;  %9952 = vst [vmem:[#allocation73_spill] sm:$0xff] %v6898_v1  ;;  %v9953_v23 = vld [vmem:[#allocation51_spill] sm:$0xff] }
 0x22d   : > { %v1575_v16 = vsel %vm1560_vm1, %v9949_v31, %v1574_v35  ;;  %v3008_v30 = vadd.f32 %v2984_v33, %v2956_v53  ;;  %v3088_v0 = vmul.f32 %v6893_v38, %v5960_v10  ;;  %v3140_v29 = vmul.f32 %v6898_v1, %v5986_v48  ;;  %v9960_v38 = vld [vmem:[#allocation40_spill] sm:$0xff] }
 0x22e   : > { %v1622_v2 = vadd.f32 %v1575_v16, %v1185_v3  ;;  %v2011_v28 = vrot.slane %v1957_v17, 3  ;;  %v2342_v8 = vadd.f32 %v2318_v50, %v2290_v4  ;;  %v3192_v56 = vmul.f32 %v5990_v9, %v9928_v44  ;;  %v9955_v16 = vld [vmem:[#allocation78_spill] sm:$0xff] }
 0x22f   : > { %v2727_v35 = vadd.f32 %v2703_v37, %v2675_v60  ;;  %v3060_v3 = vadd.f32 %v3036_v11, %v3008_v30  ;;  %v3244_v34 = vmul.f32 %v5994_v13, %v6789_v47  ;;  %v533_v26 = vmul.f32 %v6527_v25, %v9910_v20  ;;  %v6918_v11 = vld [vmem:[%s5550_s25 + $0xd8] sm:$0xff]  ;;  %v9956_v30 = vld [vmem:[#allocation38_spill] sm:$0xff] }
 0x230   : > { %v9954_v27 = vrot.slane %v9953_v23, 3  ;;  %v2394_v53 = vadd.f32 %v2370_v15, %v2342_v8  ;;  %v553_v33 = vmul.f32 %v6532_v12, %v9911_v32  ;;  %v589_v14 = vmul.f32 %v6537_v42, %v9912_v24  ;;  %v9957_v23 = vld [vmem:[#allocation75_spill] sm:$0xff]  ;;  %v9958_v15 = vld [vmem:[#allocation76_spill] sm:$0xff] }
 0x231   : > { %v2779_v37 = vadd.f32 %v2755_v22, %v2727_v35  ;;  %v3112_v31 = vadd.f32 %v3088_v0, %v3060_v3  ;;  %v625_v17 = vmul.f32 %v9955_v16, %v9913_v7  ;;  %v9959_v8 = vld [vmem:[#allocation39_spill] sm:$0xff]  ;;  %v9962_v35 = vld [vmem:[#allocation77_spill] sm:$0xff]  ;;  %v800_v6 = vmul.f32 %v6532_v12, %v9921_v36 }
 0x232   : > { %v2012_v50 = vsel %vm1997_vm2, %v9954_v27, %v2011_v28  ;;  %v2448_v4 = vrot.slane %v2394_v53, 4  ;;  %v569_v60 = vadd.f32 %v553_v33, %v533_v26  ;;  %v661_v28 = vmul.f32 %v9957_v23, %v9956_v30  ;;  %v9961_v22 = vld [vmem:[#allocation31_spill] sm:$0xff]  ;;  %v9964_v26 = vld [vmem:[#allocation58_spill] sm:$0xff] }
 0x233   : > { %v2059_v44 = vadd.f32 %v2012_v50, %v1622_v2  ;;  %v697_v27 = vmul.f32 %v9959_v8, %v9958_v15  ;;  %v2831_v47 = vadd.f32 %v2807_v55, %v2779_v37  ;;  %v3164_v1 = vadd.f32 %v3140_v29, %v3112_v31  ;;  %v9965_v31 = vld [vmem:[#allocation66_spill] sm:$0xff] }
 0x234   : > { %v733_v2 = vmul.f32 %v9960_v38, %v6918_v11  ;;  %v772_v0 = vmul.f32 %v6527_v25, %v9961_v22  ;;  %v9963_v3 = vrot.slane %v9962_v35, 4  ;;  %v605_v53 = vadd.f32 %v589_v14, %v569_v60  ;;  %v9966_v14 = vld [vmem:[#allocation92_spill] sm:$0xff]  ;;  %v9967_v60 = vld [vmem:[#allocation90_spill] sm:$0xff] }
 0x235   : > { %v773_v33 = vmul.f32 %v9964_v26, %v9961_v22  ;;  %v2885_v29 = vrot.slane %v2831_v47, 5  ;;  %v3216_v37 = vadd.f32 %v3192_v56, %v3164_v1  ;;  %v801_v46 = vmul.f32 %v9965_v31, %v9921_v36  ;;  %v6947_v56 = vld [vmem:[%s5550_s25 + $0xe0] sm:$0xff] }
 0x236   : > { %v2449_v50 = vsel %vm2434_vm3, %v9963_v3, %v2448_v4  ;;  %v641_v38 = vadd.f32 %v625_v17, %v605_v53  ;;  %v824_v8 = vadd.f32 %v800_v6, %v772_v0  ;;  %v852_v35 = vmul.f32 %v6537_v42, %v9923_v49  ;;  %9969 = vst [vmem:[#allocation82_spill] sm:$0xff] %v6947_v56  ;;  %v9970_v17 = vld [vmem:[#allocation93_spill] sm:$0xff] }
 0x237   : > { %v2496_v55 = vadd.f32 %v2449_v50, %v2059_v44  ;;  %v853_v4 = vmul.f32 %v9966_v14, %v9923_v49  ;;  %v9968_v3 = vrot.slane %v9967_v60, 5  ;;  %v3268_v30 = vadd.f32 %v3244_v34, %v3216_v37 }
 0x238   : > { %v825_v7 = vadd.f32 %v801_v46, %v773_v33  ;;  %v904_v47 = vmul.f32 %v9955_v16, %v9926_v21  ;;  %v677_v44 = vadd.f32 %v661_v28, %v641_v38  ;;  %v876_v6 = vadd.f32 %v852_v35, %v824_v8  ;;  %v9973_v28 = vld [vmem:[#allocation72_spill] sm:$0xff] }
 0x239   : > { %v2886_v22 = vsel %vm2871_vm4, %v9968_v3, %v2885_v29  ;;  %v905_v0 = vmul.f32 %v9970_v17, %v9926_v21  ;;  %v3322_v50 = vrot.slane %v3268_v30, 6  ;;  %v956_v60 = vmul.f32 %v9957_v23, %v9878_v54  ;;  %v9971_v29 = vld [vmem:[#allocation84_spill] sm:$0xff] }
 0x23a   : > { %v2933_v1 = vadd.f32 %v2886_v22, %v2496_v55  ;;  %v877_v53 = vadd.f32 %v853_v4, %v825_v7  ;;  %v957_v34 = vmul.f32 %v9971_v29, %v9878_v54  ;;  %v713_v46 = vadd.f32 %v697_v27, %v677_v44  ;;  %v9972_v55 = vld [vmem:[#allocation80_spill] sm:$0xff]  ;;  %v9975_v7 = vld [vmem:[#allocation45_spill] sm:$0xff] }
 0x23b   : > { %v928_v33 = vadd.f32 %v904_v47, %v876_v6  ;;  %v1008_v22 = vmul.f32 %v9883_v41, %v9958_v15  ;;  %v1009_v38 = vmul.f32 %v9883_v41, %v9972_v55  ;;  %v9974_v8 = vrot.slane %v9973_v28, 6  ;;  %v9976_v44 = vld [vmem:[#allocation32_spill] sm:$0xff]  ;;  %v9977_v28 = vld [vmem:[#allocation46_spill] sm:$0xff] }
 0x23c   : > { %v929_v30 = vadd.f32 %v905_v0, %v877_v53  ;;  %v1060_v35 = vmul.f32 %v9975_v7, %v6918_v11  ;;  %v1061_v4 = vmul.f32 %v9975_v7, %v6947_v56  ;;  %v749_v27 = vadd.f32 %v733_v2, %v713_v46 }
 0x23d   : > { %v3323_v37 = vsel %vm3308_vm5, %v9974_v8, %v3322_v50  ;;  %v980_v47 = vadd.f32 %v956_v60, %v928_v33  ;;  %v1209_v6 = vmul.f32 %v6527_v25, %v9976_v44  ;;  %v1210_v41 = vmul.f32 %v9964_v26, %v9976_v44 }
 0x23e   : > { %v3370_v3 = vadd.f32 %v3323_v37, %v2933_v1  ;;  %v981_v54 = vadd.f32 %v957_v34, %v929_v30  ;;  %v1237_v50 = vmul.f32 %v6532_v12, %v9977_v28  ;;  %v1238_v0 = vmul.f32 %v9965_v31, %v9977_v28  ;;  %v9979_v1 = vld [vmem:[#allocation47_spill] sm:$0xff]  ;;  %v9980_v37 = vld [vmem:[#allocation48_spill] sm:$0xff] }
 0x23f   : > { %v1032_v8 = vadd.f32 %v1008_v22, %v980_v47  ;;  %v1289_v2 = vmul.f32 %v6537_v42, %v9979_v1  ;;  %v1290_v60 = vmul.f32 %v9966_v14, %v9979_v1  ;;  %v1341_v30 = vmul.f32 %v9955_v16, %v9980_v37 }
 0x240   : > { %v6975_v53 = vadd.f32 %v6831_v45, %v3370_v3  ;;  %v1033_v34 = vadd.f32 %v1009_v38, %v981_v54  ;;  %v1261_v46 = vadd.f32 %v1237_v50, %v1209_v6  ;;  %v1262_v33 = vadd.f32 %v1238_v0, %v1210_v41  ;;  %v9982_v6 = vld [vmem:[#allocation50_spill] sm:$0xff]  ;;  %v9983_v0 = vld [vmem:[#allocation52_spill] sm:$0xff] }
 0x241   : > { %v1084_v28 = vadd.f32 %v1060_v35, %v1032_v8  ;;  %v1342_v3 = vmul.f32 %v9970_v17, %v9980_v37  ;;  %v1393_v22 = vmul.f32 %v9957_v23, %v9844_v52  ;;  %v1394_v41 = vmul.f32 %v9971_v29, %v9844_v52 }
 0x242   : > { %9978 = vst [vmem:[#allocation83_spill] sm:$0xff] %v6975_v53  ;;  %v3420_v44 = vsel %vm3404_vm6, %v6975_v53, 0.0  ;;  %v6989_v47 = vadd.f32 %v1061_v4, %v1033_v34  ;;  %v1313_v45 = vadd.f32 %v1289_v2, %v1261_v46  ;;  %v1314_v54 = vadd.f32 %v1290_v60, %v1262_v33  ;;  %v9984_v60 = vld [vmem:[#allocation33_spill] sm:$0xff] }
 0x243   : > { %3421 = vadd.xlane.f32.xlu1 %v3420_v44  ;;  %v1139_v38 = vrot.slane %v1084_v28, 1  ;;  %v1445_v50 = vmul.f32 %v9982_v6, %v9958_v15  ;;  %v1446_v35 = vmul.f32 %v9982_v6, %v9972_v55  ;;  %v1497_v8 = vmul.f32 %v9983_v0, %v6918_v11  ;;  %v9985_v46 = vld [vmem:[#allocation53_spill] sm:$0xff] }
 0x244   : > { %9981 = vst [vmem:[#allocation51_spill] sm:$0xff] %v6989_v47  ;;  %v9415_v53 = vrot.slane %v6989_v47, 1  ;;  %v1365_v44 = vadd.f32 %v1341_v30, %v1313_v45  ;;  %v1366_v4 = vadd.f32 %v1342_v3, %v1314_v54  ;;  %v1498_v2 = vmul.f32 %v9983_v0, %v6947_v56  ;;  %v9986_v54 = vld [vmem:[#allocation54_spill] sm:$0xff] }
 0x245   : > { %v1646_v34 = vmul.f32 %v6527_v25, %v9984_v60  ;;  %v1647_v28 = vmul.f32 %v9964_v26, %v9984_v60  ;;  %v1674_v33 = vmul.f32 %v6532_v12, %v9985_v46  ;;  %v1675_v6 = vmul.f32 %v9965_v31, %v9985_v46 }
 0x246   : > { %v1141_v45 = vsel %vm1123_vm0, %v1139_v38, %v9415_v53  ;;  %v1417_v30 = vadd.f32 %v1393_v22, %v1365_v44  ;;  %v1418_v3 = vadd.f32 %v1394_v41, %v1366_v4  ;;  %v1726_v0 = vmul.f32 %v6537_v42, %v9986_v54 }
 0x247   : > { %v1186_v52 = vadd.f32 %v1141_v45, %v749_v27  ;;  %v1698_v37 = vadd.f32 %v1674_v33, %v1646_v34  ;;  %v1699_v1 = vadd.f32 %v1675_v6, %v1647_v28  ;;  %v1727_v26 = vmul.f32 %v9966_v14, %v9986_v54  ;;  %v9991_v45 = vld [vmem:[#allocation61_spill] sm:$0xff] }
 0x248   : > { %v1469_v60 = vadd.f32 %v1445_v50, %v1417_v30  ;;  %v1470_v7 = vadd.f32 %v1446_v35, %v1418_v3  ;;  %v1778_v31 = vmul.f32 %v9955_v16, %v9934_v62  ;;  %v1779_v47 = vmul.f32 %v9970_v17, %v9934_v62  ;;  %v9988_v50 = vld [vmem:[#allocation57_spill] sm:$0xff] }
 0x249   : > { %v1750_v22 = vadd.f32 %v1726_v0, %v1698_v37  ;;  %v1751_v41 = vadd.f32 %v1727_v26, %v1699_v1  ;;  %v1830_v38 = vmul.f32 %v9957_v23, %v9935_v61  ;;  %v1831_v27 = vmul.f32 %v9971_v29, %v9935_v61  ;;  %v9989_v1 = vld [vmem:[#allocation59_spill] sm:$0xff]  ;;  %v7046_v3 = vld [vmem:[%s5550_s25 + $0x68] sm:$0xff] }
 0x24a   : > { %v1521_v6 = vadd.f32 %v1497_v8, %v1469_v60  ;;  %v7025_v14 = vadd.f32 %v1498_v2, %v1470_v7  ;;  %v1882_v35 = vmul.f32 %v9988_v50, %v9958_v15  ;;  %v1883_v44 = vmul.f32 %v9988_v50, %v9972_v55  ;;  %v9990_v7 = vld [vmem:[#allocation60_spill] sm:$0xff]  ;;  %v7039_v60 = vld [vmem:[%s5550_s25 + $0x50] sm:$0xff]  ;;  %9992 = vst [vmem:[#allocation75_spill] sm:$0xff] %v7046_v3 }
 0x24b   : > { %v1802_v17 = vadd.f32 %v1778_v31, %v1750_v22  ;;  %v1803_v37 = vadd.f32 %v1779_v47, %v1751_v41  ;;  %v1934_v0 = vmul.f32 %v9989_v1, %v6918_v11  ;;  %v1935_v4 = vmul.f32 %v9989_v1, %v6947_v56  ;;  %v9993_v22 = vld [vmem:[#allocation62_spill] sm:$0xff]  ;;  %v7063_v50 = vld [vmem:[%s5550_s25 + $0x98] sm:$0xff] }
 0x24c   : > { %9987 = vst [vmem:[#allocation78_spill] sm:$0xff] %v7025_v14  ;;  %v1576_v34 = vrot.slane %v1521_v6, 2  ;;  %v9420_v8 = vrot.slane %v7025_v14, 2  ;;  %v2083_v2 = vmul.f32 %v6527_v25, %v9990_v7  ;;  %v2084_v28 = vmul.f32 %v7039_v60, %v9990_v7  ;;  %v7056_v6 = vld [vmem:[%s5550_s25 + $0x80] sm:$0xff]  ;;  %9996 = vst [vmem:[#allocation77_spill] sm:$0xff] %v7063_v50 }
 0x24d   : > { %v1854_v33 = vadd.f32 %v1830_v38, %v1802_v17  ;;  %v1855_v47 = vadd.f32 %v1831_v27, %v1803_v37  ;;  %v2111_v30 = vmul.f32 %v6532_v12, %v9991_v45  ;;  %v2112_v26 = vmul.f32 %v7046_v3, %v9991_v45  ;;  %9994 = vst [vmem:[#allocation76_spill] sm:$0xff] %v7056_v6  ;;  %v9995_v27 = vld [vmem:[#allocation63_spill] sm:$0xff] }
 0x24e   : > { %v1578_v31 = vsel %vm1560_vm1, %v1576_v34, %v9420_v8  ;;  %v2163_v41 = vmul.f32 %v6537_v42, %v9993_v22  ;;  %v2164_v38 = vmul.f32 %v7056_v6, %v9993_v22  ;;  %v2215_v17 = vmul.f32 %v9955_v16, %v9995_v27  ;;  %v9997_v8 = vld [vmem:[#allocation64_spill] sm:$0xff] }
 0x24f   : > { %v1623_v37 = vadd.f32 %v1578_v31, %v1186_v52  ;;  %v1906_v53 = vadd.f32 %v1882_v35, %v1854_v33  ;;  %v1907_v7 = vadd.f32 %v1883_v44, %v1855_v47  ;;  %v2135_v1 = vadd.f32 %v2111_v30, %v2083_v2  ;;  %v9999_v52 = vld [vmem:[#allocation65_spill] sm:$0xff] }
 0x250   : > { %v2136_v45 = vadd.f32 %v2112_v26, %v2084_v28  ;;  %v2216_v34 = vmul.f32 %v7063_v50, %v9995_v27  ;;  %v2267_v14 = vmul.f32 %v9957_v23, %v9997_v8  ;;  %v2268_v61 = vmul.f32 %v9971_v29, %v9997_v8 }
 0x251   : > { %v1958_v22 = vadd.f32 %v1934_v0, %v1906_v53  ;;  %v7071_v62 = vadd.f32 %v1935_v4, %v1907_v7  ;;  %v2187_v54 = vadd.f32 %v2163_v41, %v2135_v1  ;;  %v2319_v35 = vmul.f32 %v9999_v52, %v9958_v15 }
 0x252   : > { %v2188_v44 = vadd.f32 %v2164_v38, %v2136_v45  ;;  %v2320_v2 = vmul.f32 %v9999_v52, %v9972_v55  ;;  %v2371_v28 = vmul.f32 %v9941_v57, %v6918_v11  ;;  %v2372_v33 = vmul.f32 %v9941_v57, %v6947_v56 }
 0x253   : > { %9998 = vst [vmem:[#allocation58_spill] sm:$0xff] %v7071_v62  ;;  %v2013_v47 = vrot.slane %v1958_v22, 3  ;;  %v9428_v30 = vrot.slane %v7071_v62, 3  ;;  %v2239_v53 = vadd.f32 %v2215_v17, %v2187_v54  ;;  %v2520_v1 = vmul.f32 %v6527_v25, %v9942_v59 }
 0x254   : > { %v2240_v0 = vadd.f32 %v2216_v34, %v2188_v44  ;;  %v2521_v4 = vmul.f32 %v7039_v60, %v9942_v59  ;;  %v2548_v7 = vmul.f32 %v6532_v12, %v9943_v18  ;;  %v2549_v45 = vmul.f32 %v7046_v3, %v9943_v18 }
 0x255   : > { %v2015_v26 = vsel %vm1997_vm2, %v2013_v47, %v9428_v30  ;;  %v2291_v31 = vadd.f32 %v2267_v14, %v2239_v53  ;;  %v2600_v54 = vmul.f32 %v6537_v42, %v9944_v51  ;;  %v2601_v22 = vmul.f32 %v7056_v6, %v9944_v51 }
 0x256   : > { %v2060_v41 = vadd.f32 %v2015_v26, %v1623_v37  ;;  %v2292_v38 = vadd.f32 %v2268_v61, %v2240_v0  ;;  %v2572_v17 = vadd.f32 %v2548_v7, %v2520_v1  ;;  %v2573_v34 = vadd.f32 %v2549_v45, %v2521_v4 }
 0x257   : > { %v2343_v44 = vadd.f32 %v2319_v35, %v2291_v31  ;;  %v2652_v59 = vmul.f32 %v9955_v16, %v9906_v40  ;;  %v2653_v62 = vmul.f32 %v7063_v50, %v9906_v40  ;;  %v2704_v14 = vmul.f32 %v9957_v23, %v9907_v63 }
 0x258   : > { %v2344_v47 = vadd.f32 %v2320_v2, %v2292_v38  ;;  %v2624_v53 = vadd.f32 %v2600_v54, %v2572_v17  ;;  %v2625_v30 = vadd.f32 %v2601_v22, %v2573_v34  ;;  %v2705_v51 = vmul.f32 %v9971_v29, %v9907_v63 }
 0x259   : > { %v2395_v37 = vadd.f32 %v2371_v28, %v2343_v44  ;;  %v2756_v61 = vmul.f32 %v5922_v5, %v9958_v15  ;;  %v2757_v35 = vmul.f32 %v5922_v5, %v9972_v55  ;;  %v2808_v1 = vmul.f32 %v5941_v39, %v6918_v11 }
 0x25a   : > { %v7111_v0 = vadd.f32 %v2372_v33, %v2344_v47  ;;  %v2676_v4 = vadd.f32 %v2652_v59, %v2624_v53  ;;  %v2677_v7 = vadd.f32 %v2653_v62, %v2625_v30  ;;  %v2809_v2 = vmul.f32 %v5941_v39, %v6947_v56 }
 0x25b   : > { %v2450_v45 = vrot.slane %v2395_v37, 4  ;;  %v2957_v28 = vmul.f32 %v6527_v25, %v5945_v43  ;;  %v2958_v26 = vmul.f32 %v7039_v60, %v5945_v43  ;;  %v2985_v31 = vmul.f32 %v6532_v12, %v5952_v19 }
 0x25c   : > { %10000 = vst [vmem:[#allocation66_spill] sm:$0xff] %v7111_v0  ;;  %v9431_v54 = vrot.slane %v7111_v0, 4  ;;  %v2728_v22 = vadd.f32 %v2704_v14, %v2676_v4  ;;  %v2729_v33 = vadd.f32 %v2705_v51, %v2677_v7  ;;  %v2986_v62 = vmul.f32 %v7046_v3, %v5952_v19 }
 0x25d   : > { %v3009_v59 = vadd.f32 %v2985_v31, %v2957_v28  ;;  %v3037_v30 = vmul.f32 %v6537_v42, %v5956_v58  ;;  %v3038_v25 = vmul.f32 %v7056_v6, %v5956_v58  ;;  %v3089_v38 = vmul.f32 %v9955_v16, %v5960_v10 }
 0x25e   : > { %v2452_v12 = vsel %vm2434_vm3, %v2450_v45, %v9431_v54  ;;  %v2780_v17 = vadd.f32 %v2756_v61, %v2728_v22  ;;  %v2781_v34 = vadd.f32 %v2757_v35, %v2729_v33  ;;  %v3010_v51 = vadd.f32 %v2986_v62, %v2958_v26  ;;  %v10002_v62 = vld [vmem:[#allocation36_spill] sm:$0xff] }
 0x25f   : > { %v2497_v44 = vadd.f32 %v2452_v12, %v2060_v41  ;;  %v3061_v14 = vadd.f32 %v3037_v30, %v3009_v59  ;;  %v3090_v47 = vmul.f32 %v7063_v50, %v5960_v10  ;;  %v3141_v42 = vmul.f32 %v9957_v23, %v5986_v48  ;;  %v10003_v30 = vld [vmem:[#allocation38_spill] sm:$0xff]  ;;  %v10016_v54 = vld [vmem:[#allocation44_spill] sm:$0xff] }
 0x260   : > { %v2832_v53 = vadd.f32 %v2808_v1, %v2780_v17  ;;  %v7137_v37 = vadd.f32 %v2809_v2, %v2781_v34  ;;  %v3062_v4 = vadd.f32 %v3038_v25, %v3010_v51  ;;  %v3142_v16 = vmul.f32 %v9971_v29, %v5986_v48  ;;  %v10004_v17 = vld [vmem:[#allocation39_spill] sm:$0xff] }
 0x261   : > { %v3113_v7 = vadd.f32 %v3089_v38, %v3061_v14  ;;  %v3193_v61 = vmul.f32 %v5990_v9, %v9958_v15  ;;  %v3194_v41 = vmul.f32 %v5990_v9, %v9972_v55  ;;  %v3245_v35 = vmul.f32 %v5994_v13, %v6918_v11  ;;  %v7166_v14 = vld [vmem:[%s5550_s25 + $0xe8] sm:$0x3f] }
 0x262   : > { %10001 = vst [vmem:[#allocation92_spill] sm:$0xff] %v7137_v37  ;;  %v2887_v45 = vrot.slane %v2832_v53, 5  ;;  %v9430_v23 = vrot.slane %v7137_v37, 5  ;;  %v3114_v1 = vadd.f32 %v3090_v47, %v3062_v4  ;;  %v3246_v2 = vmul.f32 %v5994_v13, %v6947_v56  ;;  %10005 = vst [vmem:[#allocation90_spill] sm:$0xff] %v7166_v14  ;;  %v10006_v47 = vld [vmem:[#allocation40_spill] sm:$0xff]  ;;  %v10007_v53 = vld [vmem:[#allocation31_spill] sm:$0xff] }
 0x263   : > { %v3165_v28 = vadd.f32 %v3141_v42, %v3113_v7  ;;  %v534_v26 = vmul.f32 %v7039_v60, %v9910_v20  ;;  %v554_v15 = vmul.f32 %v7046_v3, %v9911_v32  ;;  %v590_v31 = vmul.f32 %v7056_v6, %v9912_v24  ;;  %v10008_v4 = vld [vmem:[#allocation87_spill] sm:$0xff]  ;;  %v10009_v7 = vld [vmem:[#allocation88_spill] sm:$0xff] }
 0x264   : > { %v2889_v22 = vsel %vm2871_vm4, %v2887_v45, %v9430_v23  ;;  %v3166_v33 = vadd.f32 %v3142_v16, %v3114_v1  ;;  %v626_v59 = vmul.f32 %v7063_v50, %v10002_v62  ;;  %v662_v25 = vmul.f32 %v9971_v29, %v10003_v30  ;;  %v10015_v23 = vld [vmem:[#allocation71_spill] sm:$0xff]  ;;  %v10021_v6 = vld [vmem:[#allocation48_spill] sm:$0xff] }
 0x265   : > { %v2934_v38 = vadd.f32 %v2889_v22, %v2497_v44  ;;  %v3217_v60 = vadd.f32 %v3193_v61, %v3165_v28  ;;  %v570_v12 = vadd.f32 %v554_v15, %v534_v26  ;;  %v698_v34 = vmul.f32 %v10004_v17, %v9972_v55  ;;  %v10010_v44 = vld [vmem:[#allocation89_spill] sm:$0xff]  ;;  %v7181_v15 = vld [vmem:[%s5550_s25 + $0xb8] sm:$0x3f] }
 0x266   : > { %v3218_v51 = vadd.f32 %v3194_v41, %v3166_v33  ;;  %v734_v42 = vmul.f32 %v10006_v47, %v6947_v56  ;;  %v774_v16 = vmul.f32 %v10008_v4, %v10007_v53  ;;  %v802_v45 = vmul.f32 %v10009_v7, %v9921_v36  ;;  %v10011_v28 = vld [vmem:[#allocation73_spill] sm:$0xff]  ;;  %10013 = vst [vmem:[#allocation84_spill] sm:$0xff] %v7181_v15  ;;  %v10014_v22 = vld [vmem:[#allocation43_spill] sm:$0xff] }
 0x267   : > { %v3269_v29 = vadd.f32 %v3245_v35, %v3217_v60  ;;  %v606_v1 = vadd.f32 %v590_v31, %v570_v12  ;;  %v854_v61 = vmul.f32 %v10010_v44, %v9923_v49  ;;  %v906_v55 = vmul.f32 %v10011_v28, %v9926_v21  ;;  %v10017_v31 = vld [vmem:[#allocation45_spill] sm:$0xff]  ;;  %v10018_v12 = vld [vmem:[#allocation32_spill] sm:$0xff]  ;;  %v10020_v21 = vld [vmem:[#allocation47_spill] sm:$0xff] }
 0x268   : > { %v7178_v41 = vadd.f32 %v3246_v2, %v3218_v51  ;;  %v826_v26 = vadd.f32 %v802_v45, %v774_v16  ;;  %v958_v33 = vmul.f32 %v7181_v15, %v10014_v22  ;;  %v1010_v56 = vmul.f32 %v10016_v54, %v10015_v23  ;;  %v10019_v16 = vld [vmem:[#allocation46_spill] sm:$0xff]  ;;  %v10027_v53 = vld [vmem:[#allocation55_spill] sm:$0xff] }
 0x269   : > { %v3324_v37 = vrot.slane %v3269_v29, 6  ;;  %v642_v35 = vadd.f32 %v626_v59, %v606_v1  ;;  %v1062_v60 = vmul.f32 %v10017_v31, %v7166_v14  ;;  %v1211_v50 = vmul.f32 %v10008_v4, %v10018_v12  ;;  %v10022_v59 = vld [vmem:[#allocation49_spill] sm:$0xff]  ;;  %v10023_v31 = vld [vmem:[#allocation50_spill] sm:$0xff] }
 0x26a   : > { %10012 = vst [vmem:[#allocation93_spill] sm:$0xff] %v7178_v41  ;;  %v9446_v2 = vrot.slane %v7178_v41, 6  ;;  %v878_v51 = vadd.f32 %v854_v61, %v826_v26  ;;  %v1239_v45 = vmul.f32 %v10009_v7, %v10019_v16  ;;  %v1291_v22 = vmul.f32 %v10010_v44, %v10020_v21  ;;  %v10024_v16 = vld [vmem:[#allocation52_spill] sm:$0xff] }
 0x26b   : > { %v678_v49 = vadd.f32 %v662_v25, %v642_v35  ;;  %v1343_v29 = vmul.f32 %v10011_v28, %v10021_v6  ;;  %v1395_v1 = vmul.f32 %v7181_v15, %v10022_v59  ;;  %v1447_v54 = vmul.f32 %v10023_v31, %v10015_v23  ;;  %v10025_v35 = vld [vmem:[#allocation33_spill] sm:$0xff]  ;;  %v10026_v31 = vld [vmem:[#allocation54_spill] sm:$0xff] }
 0x26c   : > { %v3326_v61 = vsel %vm3308_vm5, %v3324_v37, %v9446_v2  ;;  %v930_v26 = vadd.f32 %v906_v55, %v878_v51  ;;  %v1263_v12 = vadd.f32 %v1239_v45, %v1211_v50  ;;  %v1499_v36 = vmul.f32 %v10024_v16, %v7166_v14  ;;  %v10028_v50 = vld [vmem:[#allocation85_spill] sm:$0xff] }
 0x26d   : > { %v3371_v21 = vadd.f32 %v3326_v61, %v2934_v38  ;;  %v714_v25 = vadd.f32 %v698_v34, %v678_v49  ;;  %v1648_v6 = vmul.f32 %v10008_v4, %v10025_v35  ;;  %v1676_v59 = vmul.f32 %v10009_v7, %v9985_v46  ;;  %v10030_v49 = vld [vmem:[#allocation56_spill] sm:$0xff]  ;;  %v10031_v2 = vld [vmem:[#allocation57_spill] sm:$0xff] }
 0x26e   : > { %v982_v3 = vadd.f32 %v958_v33, %v930_v26  ;;  %v1315_v0 = vadd.f32 %v1291_v22, %v1263_v12  ;;  %v1728_v41 = vmul.f32 %v10010_v44, %v10026_v31  ;;  %v1780_v37 = vmul.f32 %v10011_v28, %v10027_v53  ;;  %v10032_v22 = vld [vmem:[#allocation59_spill] sm:$0xff]  ;;  %v10033_v31 = vld [vmem:[#allocation60_spill] sm:$0xff] }
 0x26f   : > { %v7216_v55 = vadd.f32 %v10028_v50, %v3371_v21  ;;  %v750_v51 = vadd.f32 %v734_v42, %v714_v25  ;;  %v1700_v38 = vadd.f32 %v1676_v59, %v1648_v6  ;;  %v1832_v34 = vmul.f32 %v7181_v15, %v10030_v49  ;;  %v10034_v42 = vld [vmem:[#allocation61_spill] sm:$0xff] }
 0x270   : > { %v1034_v45 = vadd.f32 %v1010_v56, %v982_v3  ;;  %v1367_v61 = vadd.f32 %v1343_v29, %v1315_v0  ;;  %v1884_v33 = vmul.f32 %v10031_v2, %v10015_v23  ;;  %v1936_v12 = vmul.f32 %v10032_v22, %v7166_v14  ;;  %v10035_v3 = vld [vmem:[#allocation62_spill] sm:$0xff] }
 0x271   : > { %10029 = vst [vmem:[#allocation80_spill] sm:$0xff] %v7216_v55  ;;  %v3423_v26 = vsel %vm3404_vm6, %v7216_v55, 0.0  ;;  %v1752_v53 = vadd.f32 %v1728_v41, %v1700_v38  ;;  %v2085_v21 = vmul.f32 %v10008_v4, %v10033_v31  ;;  %v2113_v6 = vmul.f32 %v10009_v7, %v10034_v42 }
 0x272   : > { %3424 = vadd.xlane.f32.xlu0 %v3423_v26  ;;  %v1086_v59 = vadd.f32 %v1062_v60, %v1034_v45  ;;  %v1419_v56 = vadd.f32 %v1395_v1, %v1367_v61  ;;  %v2165_v0 = vmul.f32 %v10010_v44, %v10035_v3  ;;  %v2217_v29 = vmul.f32 %v10011_v28, %v9995_v27  ;;  %v10036_v1 = vld [vmem:[#allocation68_spill] sm:$0xff] }
 0x273   : > { %v1804_v25 = vadd.f32 %v1780_v37, %v1752_v53  ;;  %v2137_v22 = vadd.f32 %v2113_v6, %v2085_v21  ;;  %v2269_v41 = vmul.f32 %v7181_v15, %v9997_v8  ;;  %v2321_v38 = vmul.f32 %v9999_v52, %v10015_v23  ;;  %v10037_v37 = vld [vmem:[#allocation70_spill] sm:$0xff]  ;;  %v10038_v6 = vld [vmem:[#allocation51_spill] sm:$0xff] }
 0x274   : > { %v1142_v55 = vrot.slane %v1086_v59, 1  ;;  %v1471_v31 = vadd.f32 %v1447_v54, %v1419_v56  ;;  %v2373_v60 = vmul.f32 %v9941_v57, %v7166_v14  ;;  %v2522_v45 = vmul.f32 %v10008_v4, %v10036_v1 }
 0x275   : > { %v1856_v61 = vadd.f32 %v1832_v34, %v1804_v25  ;;  %v2189_v26 = vadd.f32 %v2165_v0, %v2137_v22  ;;  %v2550_v53 = vmul.f32 %v10009_v7, %v9943_v18  ;;  %v2602_v21 = vmul.f32 %v10010_v44, %v10037_v37 }
 0x276   : > { %v10039_v8 = vrot.slane %v10038_v6, 1  ;;  %v1523_v59 = vadd.f32 %v1499_v36, %v1471_v31  ;;  %v2654_v54 = vmul.f32 %v10011_v28, %v9906_v40  ;;  %v2706_v56 = vmul.f32 %v7181_v15, %v9907_v63 }
 0x277   : > { %v1908_v34 = vadd.f32 %v1884_v33, %v1856_v61  ;;  %v2241_v22 = vadd.f32 %v2217_v29, %v2189_v26  ;;  %v2574_v0 = vadd.f32 %v2550_v53, %v2522_v45  ;;  %v2758_v18 = vmul.f32 %v5922_v5, %v10015_v23 }
 0x278   : > { %v1143_v52 = vsel %vm1123_vm0, %v10039_v8, %v1142_v55  ;;  %v1579_v25 = vrot.slane %v1523_v59, 2  ;;  %v2810_v6 = vmul.f32 %v5941_v39, %v7166_v14  ;;  %v2959_v36 = vmul.f32 %v10008_v4, %v5945_v43 }
 0x279   : > { %v1187_v1 = vadd.f32 %v1143_v52, %v750_v51  ;;  %v1960_v8 = vadd.f32 %v1936_v12, %v1908_v34  ;;  %v2293_v31 = vadd.f32 %v2269_v41, %v2241_v22  ;;  %v2626_v55 = vadd.f32 %v2602_v21, %v2574_v0  ;;  %v10040_v51 = vld [vmem:[#allocation78_spill] sm:$0xff]  ;;  %v7283_v0 = vld [vmem:[%s5550_s25 + $0x78] sm:$0xff] }
 0x27a   : > { %v2987_v52 = vmul.f32 %v10009_v7, %v5952_v19  ;;  %v10041_v33 = vrot.slane %v10040_v51, 2  ;;  %v3039_v45 = vmul.f32 %v10010_v44, %v5956_v58  ;;  %v3091_v61 = vmul.f32 %v10011_v28, %v5960_v10  ;;  %v7275_v44 = vld [vmem:[%s5550_s25 + $0x60] sm:$0xff]  ;;  %v10042_v34 = vld [vmem:[#allocation58_spill] sm:$0xff] }
 0x27b   : > { %v3143_v4 = vmul.f32 %v7181_v15, %v5986_v48  ;;  %v2016_v41 = vrot.slane %v1960_v8, 3  ;;  %v2345_v26 = vadd.f32 %v2321_v38, %v2293_v31  ;;  %v2678_v7 = vadd.f32 %v2654_v54, %v2626_v55  ;;  %v7288_v8 = vld [vmem:[%s5550_s25 + $0x90] sm:$0xff]  ;;  %v7293_v55 = vld [vmem:[%s5550_s25 + $0xa8] sm:$0xff]  ;;  %v10051_v15 = vld [vmem:[#allocation76_spill] sm:$0xff] }
 0x27c   : > { %v1580_v29 = vsel %vm1560_vm1, %v10041_v33, %v1579_v25  ;;  %v3011_v53 = vadd.f32 %v2987_v52, %v2959_v36  ;;  %v3195_v21 = vmul.f32 %v5990_v9, %v10015_v23  ;;  %v3247_v59 = vmul.f32 %v5994_v13, %v7166_v14 }
 0x27d   : > { %v1624_v12 = vadd.f32 %v1580_v29, %v1187_v1  ;;  %v535_v28 = vmul.f32 %v7275_v44, %v9910_v20  ;;  %v10043_v1 = vrot.slane %v10042_v34, 3  ;;  %v2397_v22 = vadd.f32 %v2373_v60, %v2345_v26  ;;  %v7301_v29 = vld [vmem:[%s5550_s25 + $0xc0] sm:$0xff]  ;;  %v10047_v34 = vld [vmem:[#allocation66_spill] sm:$0xff] }
 0x27e   : > { %v2730_v54 = vadd.f32 %v2706_v56, %v2678_v7  ;;  %v555_v23 = vmul.f32 %v7283_v0, %v9911_v32  ;;  %v3063_v36 = vadd.f32 %v3039_v45, %v3011_v53  ;;  %v591_v31 = vmul.f32 %v7288_v8, %v9912_v24  ;;  %v7298_v56 = vld [vmem:[%s5550_s25 + $0xf0] sm:$0xff]  ;;  %10045 = vst [vmem:[#allocation87_spill] sm:$0xff] %v7301_v29  ;;  %v10069_v20 = vld [vmem:[#allocation48_spill] sm:$0xff] }
 0x27f   : > { %v2017_v38 = vsel %vm1997_vm2, %v10043_v1, %v2016_v41  ;;  %v627_v52 = vmul.f32 %v7293_v55, %v10002_v62  ;;  %v2453_v51 = vrot.slane %v2397_v22, 4  ;;  %10044 = vst [vmem:[#allocation72_spill] sm:$0xff] %v7298_v56  ;;  %v663_v45 = vmul.f32 %v7301_v29, %v10003_v30  ;;  %v10046_v7 = vld [vmem:[#allocation31_spill] sm:$0xff] }
 0x280   : > { %v2061_v25 = vadd.f32 %v2017_v38, %v1624_v12  ;;  %v2782_v60 = vadd.f32 %v2758_v18, %v2730_v54  ;;  %v571_v33 = vadd.f32 %v555_v23, %v535_v28  ;;  %v3115_v12 = vadd.f32 %v3091_v61, %v3063_v36  ;;  %v10049_v22 = vld [vmem:[#allocation75_spill] sm:$0xff]  ;;  %v10050_v36 = vld [vmem:[#allocation37_spill] sm:$0xff] }
 0x281   : > { %v699_v41 = vmul.f32 %v10004_v17, %v6918_v11  ;;  %v735_v26 = vmul.f32 %v10006_v47, %v7298_v56  ;;  %v775_v53 = vmul.f32 %v7275_v44, %v10046_v7  ;;  %v10048_v18 = vrot.slane %v10047_v34, 4  ;;  %v10052_v34 = vld [vmem:[#allocation41_spill] sm:$0xff] }
 0x282   : > { %v2834_v28 = vadd.f32 %v2810_v6, %v2782_v60  ;;  %v607_v38 = vadd.f32 %v591_v31, %v571_v33  ;;  %v776_v54 = vmul.f32 %v10049_v22, %v10046_v7  ;;  %v3167_v23 = vadd.f32 %v3143_v4, %v3115_v12  ;;  %v10053_v6 = vld [vmem:[#allocation77_spill] sm:$0xff]  ;;  %v10054_v4 = vld [vmem:[#allocation42_spill] sm:$0xff] }
 0x283   : > { %v2454_v1 = vsel %vm2434_vm3, %v10048_v18, %v2453_v51  ;;  %v803_v14 = vmul.f32 %v7283_v0, %v10050_v36  ;;  %v804_v47 = vmul.f32 %v10051_v15, %v10050_v36  ;;  %v855_v51 = vmul.f32 %v7288_v8, %v10052_v34  ;;  %v10055_v18 = vld [vmem:[#allocation92_spill] sm:$0xff] }
 0x284   : > { %v2498_v61 = vadd.f32 %v2454_v1, %v2061_v25  ;;  %v2890_v17 = vrot.slane %v2834_v28, 5  ;;  %v643_v30 = vadd.f32 %v627_v52, %v607_v38  ;;  %v856_v31 = vmul.f32 %v10053_v6, %v10052_v34  ;;  %v7330_v28 = vld [vmem:[%s5550_s25 + $0xb0] sm:$0xff] }
 0x285   : > { %v3219_v60 = vadd.f32 %v3195_v21, %v3167_v23  ;;  %v827_v33 = vadd.f32 %v803_v14, %v775_v53  ;;  %v828_v25 = vadd.f32 %v804_v47, %v776_v54  ;;  %v907_v12 = vmul.f32 %v7293_v55, %v10054_v4  ;;  %10057 = vst [vmem:[#allocation88_spill] sm:$0xff] %v7330_v28  ;;  %v10058_v38 = vld [vmem:[#allocation43_spill] sm:$0xff]  ;;  %v7340_v23 = vld [vmem:[%s5550_s25 + $0xc8] sm:$0xff] }
 0x286   : > { %v10056_v1 = vrot.slane %v10055_v18, 5  ;;  %v679_v7 = vadd.f32 %v663_v45, %v643_v30  ;;  %v908_v52 = vmul.f32 %v7330_v28, %v10054_v4  ;;  %v959_v34 = vmul.f32 %v7301_v29, %v10058_v38  ;;  %v7337_v14 = vld [vmem:[%s5550_s25 + $0xf8] sm:$0xff]  ;;  %10060 = vst [vmem:[#allocation73_spill] sm:$0xff] %v7340_v23  ;;  %v10062_v18 = vld [vmem:[#allocation82_spill] sm:$0xff] }
 0x287   : > { %v3271_v21 = vadd.f32 %v3247_v59, %v3219_v60  ;;  %10059 = vst [vmem:[#allocation89_spill] sm:$0xff] %v7337_v14  ;;  %v879_v47 = vadd.f32 %v855_v51, %v827_v33  ;;  %v880_v53 = vadd.f32 %v856_v31, %v828_v25  ;;  %v960_v30 = vmul.f32 %v7340_v23, %v10058_v38  ;;  %v10063_v59 = vld [vmem:[#allocation45_spill] sm:$0xff] }
 0x288   : > { %v2891_v36 = vsel %vm2871_vm4, %v10056_v1, %v2890_v17  ;;  %v715_v54 = vadd.f32 %v699_v41, %v679_v7  ;;  %v10061_v17 = vld [vmem:[#allocation44_spill] sm:$0xff]  ;;  %v1064_v41 = vmul.f32 %v10063_v59, %v7337_v14  ;;  %v10065_v33 = vld [vmem:[#allocation93_spill] sm:$0xff] }
 0x289   : > { %v2935_v62 = vadd.f32 %v2891_v36, %v2498_v61  ;;  %v1011_v45 = vmul.f32 %v10061_v17, %v6918_v11  ;;  %v1012_v1 = vmul.f32 %v10061_v17, %v10062_v18  ;;  %v3327_v4 = vrot.slane %v3271_v21, 6  ;;  %v10064_v7 = vld [vmem:[#allocation32_spill] sm:$0xff] }
 0x28a   : > { %v931_v24 = vadd.f32 %v907_v12, %v879_v47  ;;  %v932_v61 = vadd.f32 %v908_v52, %v880_v53  ;;  %v1063_v36 = vmul.f32 %v10063_v59, %v7298_v56  ;;  %v751_v51 = vadd.f32 %v735_v26, %v715_v54  ;;  %v10067_v52 = vld [vmem:[#allocation46_spill] sm:$0xff]  ;;  %v10068_v54 = vld [vmem:[#allocation47_spill] sm:$0xff] }
 0x28b   : > { %v1212_v31 = vmul.f32 %v7275_v44, %v10064_v7  ;;  %v1213_v60 = vmul.f32 %v10049_v22, %v10064_v7  ;;  %v10066_v25 = vrot.slane %v10065_v33, 6  ;;  %v1240_v47 = vmul.f32 %v7283_v0, %v10067_v52 }
 0x28c   : > { %v983_v21 = vadd.f32 %v959_v34, %v931_v24  ;;  %v984_v12 = vadd.f32 %v960_v30, %v932_v61  ;;  %v1241_v26 = vmul.f32 %v10051_v15, %v10067_v52  ;;  %v1292_v59 = vmul.f32 %v7288_v8, %v10068_v54  ;;  %v10071_v30 = vld [vmem:[#allocation49_spill] sm:$0xff] }
 0x28d   : > { %v3328_v17 = vsel %vm3308_vm5, %v10066_v25, %v3327_v4  ;;  %v1293_v38 = vmul.f32 %v10053_v6, %v10068_v54  ;;  %v1264_v33 = vadd.f32 %v1240_v47, %v1212_v31  ;;  %v1344_v24 = vmul.f32 %v7293_v55, %v10069_v20 }
 0x28e   : > { %v3372_v53 = vadd.f32 %v3328_v17, %v2935_v62  ;;  %v1035_v7 = vadd.f32 %v1011_v45, %v983_v21  ;;  %v1036_v32 = vadd.f32 %v1012_v1, %v984_v12  ;;  %v1265_v4 = vadd.f32 %v1241_v26, %v1213_v60 }
 0x28f   : > { %v1345_v62 = vmul.f32 %v7330_v28, %v10069_v20  ;;  %v1396_v17 = vmul.f32 %v7301_v29, %v10071_v30  ;;  %v1316_v54 = vadd.f32 %v1292_v59, %v1264_v33  ;;  %v1397_v45 = vmul.f32 %v7340_v23, %v10071_v30 }
 0x290   : > { %v7370_v34 = vadd.f32 %v10028_v50, %v3372_v53  ;;  %v1087_v61 = vadd.f32 %v1063_v36, %v1035_v7  ;;  %v7376_v25 = vadd.f32 %v1064_v41, %v1036_v32  ;;  %v1317_v31 = vadd.f32 %v1293_v38, %v1265_v4  ;;  %v10073_v50 = vld [vmem:[#allocation50_spill] sm:$0xff] }
 0x291   : > { %v1448_v60 = vmul.f32 %v10073_v50, %v6918_v11  ;;  %v1449_v21 = vmul.f32 %v10073_v50, %v10062_v18  ;;  %v1368_v32 = vadd.f32 %v1344_v24, %v1316_v54  ;;  %v1500_v59 = vmul.f32 %v10024_v16, %v7298_v56 }
 0x292   : > { %10070 = vst [vmem:[#allocation71_spill] sm:$0xff] %v7370_v34  ;;  %10072 = vst [vmem:[#allocation85_spill] sm:$0xff] %v7376_v25  ;;  %v3426_v1 = vsel %vm3404_vm6, %v7370_v34, 0.0  ;;  %v1144_v12 = vrot.slane %v1087_v61, 1  ;;  %v9474_v36 = vrot.slane %v7376_v25, 1  ;;  %v1369_v41 = vadd.f32 %v1345_v62, %v1317_v31  ;;  %v10074_v62 = vld [vmem:[#allocation54_spill] sm:$0xff] }
 0x293   : > { %3427 = vadd.xlane.f32.xlu1 %v3426_v1  ;;  %v1501_v7 = vmul.f32 %v10024_v16, %v7337_v14  ;;  %v1649_v38 = vmul.f32 %v7275_v44, %v10025_v35  ;;  %v1650_v47 = vmul.f32 %v10049_v22, %v10025_v35  ;;  %v1420_v26 = vadd.f32 %v1396_v17, %v1368_v32  ;;  %v10075_v35 = vld [vmem:[#allocation55_spill] sm:$0xff] }
 0x294   : > { %v1146_v53 = vsel %vm1123_vm0, %v1144_v12, %v9474_v36  ;;  %v1677_v54 = vmul.f32 %v7283_v0, %v9985_v46  ;;  %v1678_v33 = vmul.f32 %v10051_v15, %v9985_v46  ;;  %v1421_v4 = vadd.f32 %v1397_v45, %v1369_v41 }
 0x295   : > { %v1188_v24 = vadd.f32 %v1146_v53, %v751_v51  ;;  %v1729_v61 = vmul.f32 %v7288_v8, %v10074_v62  ;;  %v1730_v1 = vmul.f32 %v10053_v6, %v10074_v62  ;;  %v1472_v31 = vadd.f32 %v1448_v60, %v1420_v26 }
 0x296   : > { %v1701_v34 = vadd.f32 %v1677_v54, %v1649_v38  ;;  %v1702_v25 = vadd.f32 %v1678_v33, %v1650_v47  ;;  %v1781_v17 = vmul.f32 %v7293_v55, %v10075_v35  ;;  %v1473_v12 = vadd.f32 %v1449_v21, %v1421_v4  ;;  %v10077_v47 = vld [vmem:[#allocation59_spill] sm:$0xff] }
 0x297   : > { %v1782_v32 = vmul.f32 %v7330_v28, %v10075_v35  ;;  %v1833_v51 = vmul.f32 %v7301_v29, %v10030_v49  ;;  %v1834_v45 = vmul.f32 %v7340_v23, %v10030_v49  ;;  %v1524_v41 = vadd.f32 %v1500_v59, %v1472_v31  ;;  %v10078_v59 = vld [vmem:[#allocation60_spill] sm:$0xff] }
 0x298   : > { %v1753_v53 = vadd.f32 %v1729_v61, %v1701_v34  ;;  %v1754_v36 = vadd.f32 %v1730_v1, %v1702_v25  ;;  %v1885_v60 = vmul.f32 %v10031_v2, %v6918_v11  ;;  %v7416_v38 = vadd.f32 %v1501_v7, %v1473_v12 }
 0x299   : > { %v1886_v21 = vmul.f32 %v10031_v2, %v10062_v18  ;;  %v1937_v26 = vmul.f32 %v10077_v47, %v7298_v56  ;;  %v1938_v54 = vmul.f32 %v10077_v47, %v7337_v14  ;;  %v1581_v33 = vrot.slane %v1524_v41, 2 }
 0x29a   : > { %10076 = vst [vmem:[#allocation51_spill] sm:$0xff] %v7416_v38  ;;  %v1805_v4 = vadd.f32 %v1781_v17, %v1753_v53  ;;  %v1806_v49 = vadd.f32 %v1782_v32, %v1754_v36  ;;  %v2086_v34 = vmul.f32 %v7275_v44, %v10078_v59  ;;  %v9482_v25 = vrot.slane %v7416_v38, 2 }
 0x29b   : > { %v2087_v7 = vmul.f32 %v10049_v22, %v10078_v59  ;;  %v2114_v61 = vmul.f32 %v7283_v0, %v10034_v42  ;;  %v2115_v1 = vmul.f32 %v10051_v15, %v10034_v42  ;;  %v2166_v17 = vmul.f32 %v7288_v8, %v10035_v3 }
 0x29c   : > { %v1857_v31 = vadd.f32 %v1833_v51, %v1805_v4  ;;  %v1858_v12 = vadd.f32 %v1834_v45, %v1806_v49  ;;  %v2167_v36 = vmul.f32 %v10053_v6, %v10035_v3  ;;  %v1583_v32 = vsel %vm1560_vm1, %v1581_v33, %v9482_v25  ;;  %v10079_v4 = vld [vmem:[#allocation64_spill] sm:$0xff] }
 0x29d   : > { %v2138_v41 = vadd.f32 %v2114_v61, %v2086_v34  ;;  %v2139_v53 = vadd.f32 %v2115_v1, %v2087_v7  ;;  %v2218_v59 = vmul.f32 %v7293_v55, %v9995_v27  ;;  %v1625_v47 = vadd.f32 %v1583_v32, %v1188_v24  ;;  %v10081_v7 = vld [vmem:[#allocation65_spill] sm:$0xff] }
 0x29e   : > { %v1909_v2 = vadd.f32 %v1885_v60, %v1857_v31  ;;  %v1910_v42 = vadd.f32 %v1886_v21, %v1858_v12  ;;  %v2219_v49 = vmul.f32 %v7330_v28, %v9995_v27  ;;  %v2270_v3 = vmul.f32 %v7301_v29, %v10079_v4  ;;  %v10083_v32 = vld [vmem:[#allocation69_spill] sm:$0xff] }
 0x29f   : > { %v2190_v51 = vadd.f32 %v2166_v17, %v2138_v41  ;;  %v2191_v45 = vadd.f32 %v2167_v36, %v2139_v53  ;;  %v2271_v38 = vmul.f32 %v7340_v23, %v10079_v4  ;;  %v2322_v61 = vmul.f32 %v10081_v7, %v6918_v11 }
 0x2a0   : > { %v1961_v33 = vadd.f32 %v1937_v26, %v1909_v2  ;;  %v7448_v34 = vadd.f32 %v1938_v54, %v1910_v42  ;;  %v2323_v24 = vmul.f32 %v10081_v7, %v10062_v18  ;;  %v2374_v1 = vmul.f32 %v9941_v57, %v7298_v56  ;;  %v10082_v2 = vld [vmem:[#allocation68_spill] sm:$0xff] }
 0x2a1   : > { %v2242_v60 = vadd.f32 %v2218_v59, %v2190_v51  ;;  %v2243_v21 = vadd.f32 %v2219_v49, %v2191_v45  ;;  %v2375_v31 = vmul.f32 %v9941_v57, %v7337_v14  ;;  %v2523_v42 = vmul.f32 %v7275_v44, %v10082_v2 }
 0x2a2   : > { %10080 = vst [vmem:[#allocation78_spill] sm:$0xff] %v7448_v34  ;;  %v2018_v12 = vrot.slane %v1961_v33, 3  ;;  %v9483_v17 = vrot.slane %v7448_v34, 3  ;;  %v2524_v26 = vmul.f32 %v10049_v22, %v10082_v2  ;;  %v2551_v59 = vmul.f32 %v7283_v0, %v10083_v32 }
 0x2a3   : > { %v2294_v54 = vadd.f32 %v2270_v3, %v2242_v60  ;;  %v2295_v36 = vadd.f32 %v2271_v38, %v2243_v21  ;;  %v2552_v41 = vmul.f32 %v10051_v15, %v10083_v32  ;;  %v2603_v49 = vmul.f32 %v7288_v8, %v10037_v37 }
 0x2a4   : > { %v2020_v53 = vsel %vm1997_vm2, %v2018_v12, %v9483_v17  ;;  %v2604_v51 = vmul.f32 %v10053_v6, %v10037_v37  ;;  %v2655_v3 = vmul.f32 %v7293_v55, %v9906_v40  ;;  %v2575_v60 = vadd.f32 %v2551_v59, %v2523_v42 }
 0x2a5   : > { %v2062_v38 = vadd.f32 %v2020_v53, %v1625_v47  ;;  %v2346_v45 = vadd.f32 %v2322_v61, %v2294_v54  ;;  %v2347_v33 = vadd.f32 %v2323_v24, %v2295_v36  ;;  %v2576_v21 = vadd.f32 %v2552_v41, %v2524_v26 }
 0x2a6   : > { %v2656_v25 = vmul.f32 %v7330_v28, %v9906_v40  ;;  %v2707_v12 = vmul.f32 %v7301_v29, %v9907_v63  ;;  %v2708_v17 = vmul.f32 %v7340_v23, %v9907_v63  ;;  %v2627_v37 = vadd.f32 %v2603_v49, %v2575_v60 }
 0x2a7   : > { %v2398_v34 = vadd.f32 %v2374_v1, %v2346_v45  ;;  %v7482_v32 = vadd.f32 %v2375_v31, %v2347_v33  ;;  %v2759_v47 = vmul.f32 %v5922_v5, %v6918_v11  ;;  %v2628_v61 = vadd.f32 %v2604_v51, %v2576_v21 }
 0x2a8   : > { %v2760_v24 = vmul.f32 %v5922_v5, %v10062_v18  ;;  %v2811_v42 = vmul.f32 %v5941_v39, %v7298_v56  ;;  %v2812_v26 = vmul.f32 %v5941_v39, %v7337_v14  ;;  %v2679_v1 = vadd.f32 %v2655_v3, %v2627_v37 }
 0x2a9   : > { %10084 = vst [vmem:[#allocation58_spill] sm:$0xff] %v7482_v32  ;;  %v2455_v54 = vrot.slane %v2398_v34, 4  ;;  %v9487_v36 = vrot.slane %v7482_v32, 4  ;;  %v2960_v31 = vmul.f32 %v7275_v44, %v5945_v43  ;;  %v2680_v59 = vadd.f32 %v2656_v25, %v2628_v61 }
 0x2aa   : > { %v2961_v41 = vmul.f32 %v10049_v22, %v5945_v43  ;;  %v2988_v53 = vmul.f32 %v7283_v0, %v5952_v19  ;;  %v2989_v49 = vmul.f32 %v10051_v15, %v5952_v19  ;;  %v2731_v51 = vadd.f32 %v2707_v12, %v2679_v1 }
 0x2ab   : > { %v2457_v34 = vsel %vm2434_vm3, %v2455_v54, %v9487_v36  ;;  %v3040_v37 = vmul.f32 %v7288_v8, %v5956_v58  ;;  %v3041_v44 = vmul.f32 %v10053_v6, %v5956_v58  ;;  %v2732_v3 = vadd.f32 %v2708_v17, %v2680_v59 }
 0x2ac   : > { %v2499_v25 = vadd.f32 %v2457_v34, %v2062_v38  ;;  %v3012_v45 = vadd.f32 %v2988_v53, %v2960_v31  ;;  %v3013_v33 = vadd.f32 %v2989_v49, %v2961_v41  ;;  %v2783_v60 = vadd.f32 %v2759_v47, %v2731_v51  ;;  %v10086_v34 = vld [vmem:[#allocation30_spill] sm:$0xff] }
 0x2ad   : > { %v3092_v21 = vmul.f32 %v7293_v55, %v5960_v10  ;;  %v3093_v61 = vmul.f32 %v7330_v28, %v5960_v10  ;;  %v3144_v12 = vmul.f32 %v7301_v29, %v5986_v48  ;;  %v2784_v54 = vadd.f32 %v2760_v24, %v2732_v3 }
 0x2ae   : > { %v3064_v1 = vadd.f32 %v3040_v37, %v3012_v45  ;;  %v3065_v36 = vadd.f32 %v3041_v44, %v3013_v33  ;;  %v3145_v32 = vmul.f32 %v7340_v23, %v5986_v48  ;;  %v2835_v38 = vadd.f32 %v2811_v42, %v2783_v60  ;;  %v10088_v37 = vld [vmem:[#allocation35_spill] sm:$0xff]  ;;  %v10089_v45 = vld [vmem:[#allocation36_spill] sm:$0xff] }
 0x2af   : > { %v3196_v17 = vmul.f32 %v5990_v9, %v6918_v11  ;;  %v3197_v47 = vmul.f32 %v5990_v9, %v10062_v18  ;;  %v3248_v31 = vmul.f32 %v5994_v13, %v7298_v56  ;;  %v7522_v59 = vadd.f32 %v2812_v26, %v2784_v54  ;;  %v10087_v11 = vld [vmem:[#allocation34_spill] sm:$0xff] }
 0x2b0   : > { %v3116_v41 = vadd.f32 %v3092_v21, %v3064_v1  ;;  %v3117_v53 = vadd.f32 %v3093_v61, %v3065_v36  ;;  %v3249_v24 = vmul.f32 %v5994_v13, %v7337_v14  ;;  %v2892_v49 = vrot.slane %v2835_v38, 5  ;;  %v10090_v21 = vld [vmem:[#allocation38_spill] sm:$0xff]  ;;  %v7545_v38 = vld [vmem:[%s5550_s25 + $0x100] sm:$0x3f] }
 0x2b1   : > { %10085 = vst [vmem:[#allocation66_spill] sm:$0xff] %v7522_v59  ;;  %v536_v42 = vmul.f32 %v10049_v22, %v10086_v34  ;;  %v556_v51 = vmul.f32 %v10051_v15, %v10087_v11  ;;  %v592_v44 = vmul.f32 %v10053_v6, %v10088_v37  ;;  %v9496_v26 = vrot.slane %v7522_v59, 5  ;;  %v10091_v22 = vld [vmem:[#allocation39_spill] sm:$0xff]  ;;  %v10092_v15 = vld [vmem:[#allocation40_spill] sm:$0xff]  ;;  %10093 = vst [vmem:[#allocation75_spill] sm:$0xff] %v7545_v38 }
 0x2b2   : > { %v3168_v3 = vadd.f32 %v3144_v12, %v3116_v41  ;;  %v3169_v36 = vadd.f32 %v3145_v32, %v3117_v53  ;;  %v628_v33 = vmul.f32 %v7330_v28, %v10089_v45  ;;  %v664_v61 = vmul.f32 %v7340_v23, %v10090_v21  ;;  %v7548_v41 = vld [vmem:[%s5550_s25 + $0x70] sm:$0x3f]  ;;  %v10096_v28 = vld [vmem:[#allocation37_spill] sm:$0xff] }
 0x2b3   : > { %v572_v60 = vadd.f32 %v556_v51, %v536_v42  ;;  %v700_v54 = vmul.f32 %v10091_v22, %v10062_v18  ;;  %v736_v1 = vmul.f32 %v10092_v15, %v7337_v14  ;;  %v2894_v6 = vsel %vm2871_vm4, %v2892_v49, %v9496_v26  ;;  %v10094_v53 = vld [vmem:[#allocation31_spill] sm:$0xff]  ;;  %v7553_v18 = vld [vmem:[%s5550_s25 + $0x88] sm:$0x3f]  ;;  %v7558_v59 = vld [vmem:[%s5550_s25 + $0xa0] sm:$0x3f] }
 0x2b4   : > { %v3220_v32 = vadd.f32 %v3196_v17, %v3168_v3  ;;  %v3221_v12 = vadd.f32 %v3197_v47, %v3169_v36  ;;  %v777_v42 = vmul.f32 %v7548_v41, %v10094_v53  ;;  %v2936_v51 = vadd.f32 %v2894_v6, %v2499_v25  ;;  %10095 = vst [vmem:[#allocation76_spill] sm:$0xff] %v7553_v18  ;;  %v10098_v15 = vld [vmem:[#allocation41_spill] sm:$0xff]  ;;  %v10099_v3 = vld [vmem:[#allocation42_spill] sm:$0xff]  ;;  %v10100_v36 = vld [vmem:[#allocation84_spill] sm:$0xff] }
 0x2b5   : > { %v608_v23 = vadd.f32 %v592_v44, %v572_v60  ;;  %v805_v14 = vmul.f32 %v7553_v18, %v10096_v28  ;;  %10097 = vst [vmem:[#allocation77_spill] sm:$0xff] %v7558_v59  ;;  %v857_v17 = vmul.f32 %v7558_v59, %v10098_v15  ;;  %v909_v26 = vmul.f32 %v10100_v36, %v10099_v3  ;;  %v7567_v22 = vld [vmem:[%s5550_s25 + $0xd0] sm:$0x3f]  ;;  %v10104_v28 = vld [vmem:[#allocation44_spill] sm:$0xff]  ;;  %v10105_v21 = vld [vmem:[#allocation45_spill] sm:$0xff] }
 0x2b6   : > { %v3272_v47 = vadd.f32 %v3248_v31, %v3220_v32  ;;  %v7562_v49 = vadd.f32 %v3249_v24, %v3221_v12  ;;  %10101 = vst [vmem:[#allocation92_spill] sm:$0xff] %v7567_v22  ;;  %v10102_v25 = vld [vmem:[#allocation43_spill] sm:$0xff]  ;;  %v10103_v53 = vld [vmem:[#allocation90_spill] sm:$0xff]  ;;  %v1065_v29 = vmul.f32 %v10105_v21, %v7545_v38  ;;  %v10106_v24 = vld [vmem:[#allocation32_spill] sm:$0xff]  ;;  %v1242_v12 = vmul.f32 %v7553_v18, %v10067_v52 }
 0x2b7   : > { %v961_v44 = vmul.f32 %v7567_v22, %v10102_v25  ;;  %v644_v60 = vadd.f32 %v628_v33, %v608_v23  ;;  %v829_v6 = vadd.f32 %v805_v14, %v777_v42  ;;  %v1013_v56 = vmul.f32 %v10104_v28, %v10103_v53  ;;  %v10107_v25 = vld [vmem:[#allocation47_spill] sm:$0xff] }
 0x2b8   : > { %v3329_v15 = vrot.slane %v3272_v47, 6  ;;  %v9503_v31 = vrot.slane %v7562_v49, 6  ;;  %v1214_v32 = vmul.f32 %v7548_v41, %v10106_v24  ;;  %v1294_v14 = vmul.f32 %v7558_v59, %v10107_v25  ;;  %v10108_v25 = vld [vmem:[#allocation33_spill] sm:$0xff] }
 0x2b9   : > { %v680_v3 = vadd.f32 %v664_v61, %v644_v60  ;;  %v881_v45 = vadd.f32 %v857_v17, %v829_v6  ;;  %v1346_v23 = vmul.f32 %v10100_v36, %v10069_v20  ;;  %v1398_v47 = vmul.f32 %v7567_v22, %v10071_v30 }
 0x2ba   : > { %v3331_v33 = vsel %vm3308_vm5, %v3329_v15, %v9503_v31  ;;  %v1266_v42 = vadd.f32 %v1242_v12, %v1214_v32  ;;  %v1450_v24 = vmul.f32 %v10073_v50, %v10103_v53  ;;  %v1502_v60 = vmul.f32 %v10024_v16, %v7545_v38  ;;  %v7599_v12 = vld [vmem:[#allocation7] ss:$0 sm:$0xff] }
 0x2bb   : > { %v3373_v52 = vadd.f32 %v3331_v33, %v2936_v51  ;;  %v716_v61 = vadd.f32 %v700_v54, %v680_v3  ;;  %v933_v17 = vadd.f32 %v909_v26, %v881_v45  ;;  %v1651_v20 = vmul.f32 %v7548_v41, %v10108_v25  ;;  %10109 = vst [vmem:[#allocation82_spill] sm:$0xff] %v7599_v12 }
 0x2bc   : > { %v1318_v6 = vadd.f32 %v1294_v14, %v1266_v42  ;;  %v1679_v15 = vmul.f32 %v7553_v18, %v9985_v46  ;;  %v1731_v32 = vmul.f32 %v7558_v59, %v10074_v62  ;;  %v1783_v45 = vmul.f32 %v10100_v36, %v10075_v35  ;;  %v10111_v14 = vld [vmem:[#allocation56_spill] sm:$0xff]  ;;  %v10112_v42 = vld [vmem:[#allocation57_spill] sm:$0xff] }
 0x2bd   : > { %v7602_v31 = vadd.f32 %v7599_v12, %v3373_v52  ;;  %v752_v54 = vadd.f32 %v736_v1, %v716_v61  ;;  %v985_v26 = vadd.f32 %v961_v44, %v933_v17  ;;  %v1835_v33 = vmul.f32 %v7567_v22, %v10111_v14  ;;  %v10113_v52 = vld [vmem:[#allocation59_spill] sm:$0xff]  ;;  %v10114_v1 = vld [vmem:[#allocation60_spill] sm:$0xff] }
 0x2be   : > { %v1370_v51 = vadd.f32 %v1346_v23, %v1318_v6  ;;  %v1703_v3 = vadd.f32 %v1679_v15, %v1651_v20  ;;  %v1887_v46 = vmul.f32 %v10112_v42, %v10103_v53  ;;  %v1939_v16 = vmul.f32 %v10113_v52, %v7545_v38  ;;  %v10115_v20 = vld [vmem:[#allocation61_spill] sm:$0xff]  ;;  %v10116_v6 = vld [vmem:[#allocation62_spill] sm:$0xff] }
 0x2bf   : > { %10110 = vst [vmem:[#allocation93_spill] sm:$0xff] %v7602_v31  ;;  %v3429_v62 = vsel %vm3404_vm6, %v7602_v31, 0.0  ;;  %v1037_v25 = vadd.f32 %v1013_v56, %v985_v26  ;;  %v2088_v44 = vmul.f32 %v7548_v41, %v10114_v1  ;;  %v2116_v17 = vmul.f32 %v7553_v18, %v10115_v20 }
 0x2c0   : > { %3430 = vadd.xlane.f32.xlu0 %v3429_v62  ;;  %v1422_v61 = vadd.f32 %v1398_v47, %v1370_v51  ;;  %v1755_v23 = vadd.f32 %v1731_v32, %v1703_v3  ;;  %v2168_v15 = vmul.f32 %v7558_v59, %v10116_v6  ;;  %v2220_v31 = vmul.f32 %v10100_v36, %v9995_v27  ;;  %v10118_v27 = vld [vmem:[#allocation70_spill] sm:$0xff] }
 0x2c1   : > { %v1089_v42 = vadd.f32 %v1065_v29, %v1037_v25  ;;  %v2272_v56 = vmul.f32 %v7567_v22, %v10079_v4  ;;  %v2324_v26 = vmul.f32 %v10081_v7, %v10103_v53  ;;  %v2140_v47 = vadd.f32 %v2116_v17, %v2088_v44  ;;  %v10117_v29 = vld [vmem:[#allocation69_spill] sm:$0xff] }
 0x2c2   : > { %v1474_v1 = vadd.f32 %v1450_v24, %v1422_v61  ;;  %v1807_v62 = vadd.f32 %v1783_v45, %v1755_v23  ;;  %v2376_v32 = vmul.f32 %v9941_v57, %v7545_v38  ;;  %v2525_v3 = vmul.f32 %v7548_v41, %v10082_v2  ;;  %v10119_v45 = vld [vmem:[#allocation85_spill] sm:$0xff] }
 0x2c3   : > { %v1147_v51 = vrot.slane %v1089_v42, 1  ;;  %v2553_v25 = vmul.f32 %v7553_v18, %v10117_v29  ;;  %v2605_v6 = vmul.f32 %v7558_v59, %v10118_v27  ;;  %v2192_v52 = vadd.f32 %v2168_v15, %v2140_v47  ;;  %v10121_v47 = vld [vmem:[#allocation51_spill] sm:$0xff] }
 0x2c4   : > { %v1526_v4 = vadd.f32 %v1502_v60, %v1474_v1  ;;  %v1859_v20 = vadd.f32 %v1835_v33, %v1807_v62  ;;  %v2657_v24 = vmul.f32 %v10100_v36, %v9906_v40  ;;  %v10120_v44 = vrot.slane %v10119_v45, 1 }
 0x2c5   : > { %v2577_v42 = vadd.f32 %v2553_v25, %v2525_v3  ;;  %v2709_v23 = vmul.f32 %v7567_v22, %v9907_v63  ;;  %v2761_v17 = vmul.f32 %v5922_v5, %v10103_v53  ;;  %v2244_v60 = vadd.f32 %v2220_v31, %v2192_v52 }
 0x2c6   : > { %v1148_v61 = vsel %vm1123_vm0, %v10120_v44, %v1147_v51  ;;  %v1584_v2 = vrot.slane %v1526_v4, 2  ;;  %v1911_v27 = vadd.f32 %v1887_v46, %v1859_v20  ;;  %v2813_v1 = vmul.f32 %v5941_v39, %v7545_v38 }
 0x2c7   : > { %v1189_v29 = vadd.f32 %v1148_v61, %v752_v54  ;;  %v2629_v33 = vadd.f32 %v2605_v6, %v2577_v42  ;;  %v2962_v15 = vmul.f32 %v7548_v41, %v5945_v43  ;;  %v2990_v62 = vmul.f32 %v7553_v18, %v5952_v19  ;;  %v10138_v18 = vld [vmem:[#allocation66_spill] sm:$0xff] }
 0x2c8   : > { %v10122_v51 = vrot.slane %v10121_v47, 2  ;;  %v1963_v25 = vadd.f32 %v1939_v16, %v1911_v27  ;;  %v2296_v45 = vadd.f32 %v2272_v56, %v2244_v60  ;;  %v3042_v46 = vmul.f32 %v7558_v59, %v5956_v58 }
 0x2c9   : > { %v2681_v31 = vadd.f32 %v2657_v24, %v2629_v33  ;;  %v3014_v54 = vadd.f32 %v2990_v62, %v2962_v15  ;;  %v3094_v52 = vmul.f32 %v10100_v36, %v5960_v10  ;;  %v3146_v6 = vmul.f32 %v7567_v22, %v5986_v48  ;;  %v10123_v24 = vld [vmem:[#allocation78_spill] sm:$0xff]  ;;  %v10125_v33 = vld [vmem:[#allocation36_spill] sm:$0xff]  ;;  %v10126_v15 = vld [vmem:[#allocation87_spill] sm:$0xff] }
 0x2ca   : > { %v1585_v3 = vsel %vm1560_vm1, %v10122_v51, %v1584_v2  ;;  %v2021_v20 = vrot.slane %v1963_v25, 3  ;;  %v2348_v41 = vadd.f32 %v2324_v26, %v2296_v45  ;;  %v3198_v2 = vmul.f32 %v5990_v9, %v10103_v53  ;;  %v7674_v51 = vld [vmem:[%s5550_s25 + $0x108] sm:$0xff]  ;;  %v7677_v25 = vld [vmem:[%s5550_s25 + $0xd8] sm:$0xff] }
 0x2cb   : > { %v1626_v4 = vadd.f32 %v1585_v3, %v1189_v29  ;;  %v2733_v27 = vadd.f32 %v2709_v23, %v2681_v31  ;;  %v3066_v16 = vadd.f32 %v3042_v46, %v3014_v54  ;;  %v3250_v56 = vmul.f32 %v5994_v13, %v7545_v38  ;;  %v10128_v46 = vld [vmem:[#allocation72_spill] sm:$0xff]  ;;  %v10129_v31 = vld [vmem:[#allocation39_spill] sm:$0xff] }
 0x2cc   : > { %v537_v29 = vmul.f32 %v7283_v0, %v10086_v34  ;;  %v10124_v36 = vrot.slane %v10123_v24, 3  ;;  %v2400_v44 = vadd.f32 %v2376_v32, %v2348_v41  ;;  %v557_v61 = vmul.f32 %v7288_v8, %v10087_v11  ;;  %v10127_v32 = vld [vmem:[#allocation38_spill] sm:$0xff]  ;;  %v10131_v41 = vld [vmem:[#allocation31_spill] sm:$0xff] }
 0x2cd   : > { %v593_v53 = vmul.f32 %v7293_v55, %v10088_v37  ;;  %v2785_v23 = vadd.f32 %v2761_v17, %v2733_v27  ;;  %v3118_v60 = vadd.f32 %v3094_v52, %v3066_v16  ;;  %v629_v62 = vmul.f32 %v10126_v15, %v10125_v33  ;;  %v10130_v17 = vld [vmem:[#allocation40_spill] sm:$0xff]  ;;  %v10132_v16 = vld [vmem:[#allocation58_spill] sm:$0xff] }
 0x2ce   : > { %v2022_v26 = vsel %vm1997_vm2, %v10124_v36, %v2021_v20  ;;  %v2458_v47 = vrot.slane %v2400_v44, 4  ;;  %v573_v3 = vadd.f32 %v557_v61, %v537_v29  ;;  %v665_v45 = vmul.f32 %v7677_v25, %v10127_v32  ;;  %v10134_v61 = vld [vmem:[#allocation37_spill] sm:$0xff]  ;;  %v7698_v38 = vld [vmem:[%s5550_s25 + $0x98] sm:$0xff] }
 0x2cf   : > { %v2063_v42 = vadd.f32 %v2022_v26, %v1626_v4  ;;  %v701_v54 = vmul.f32 %v10129_v31, %v10128_v46  ;;  %v2837_v4 = vadd.f32 %v2813_v1, %v2785_v23  ;;  %v3170_v20 = vadd.f32 %v3146_v6, %v3118_v60  ;;  %v7691_v26 = vld [vmem:[%s5550_s25 + $0x80] sm:$0xff]  ;;  %10135 = vst [vmem:[#allocation30_spill] sm:$0xff] %v7698_v38 }
 0x2d0   : > { %v737_v52 = vmul.f32 %v10130_v17, %v7674_v51  ;;  %v778_v27 = vmul.f32 %v7283_v0, %v10131_v41  ;;  %v10133_v24 = vrot.slane %v10132_v16, 4  ;;  %v609_v36 = vadd.f32 %v593_v53, %v573_v3  ;;  %v7719_v33 = vld [vmem:[%s5550_s25 + $0xe0] sm:$0xff] }
 0x2d1   : > { %v779_v44 = vmul.f32 %v7691_v26, %v10131_v41  ;;  %v806_v1 = vmul.f32 %v7288_v8, %v10134_v61  ;;  %v2895_v23 = vrot.slane %v2837_v4, 5  ;;  %v3222_v60 = vadd.f32 %v3198_v2, %v3170_v20  ;;  %v10140_v20 = vld [vmem:[#allocation42_spill] sm:$0xff]  ;;  %10144 = vst [vmem:[#allocation84_spill] sm:$0xff] %v7719_v33 }
 0x2d2   : > { %v2459_v29 = vsel %vm2434_vm3, %v10133_v24, %v2458_v47  ;;  %v807_v16 = vmul.f32 %v7698_v38, %v10134_v61  ;;  %v645_v22 = vadd.f32 %v629_v62, %v609_v36  ;;  %v10136_v47 = vld [vmem:[#allocation41_spill] sm:$0xff]  ;;  %v10137_v24 = vld [vmem:[#allocation88_spill] sm:$0xff]  ;;  %v10139_v41 = vrot.slane %v10138_v18, 5  ;;  %v7712_v61 = vld [vmem:[%s5550_s25 + $0x110] sm:$0xff] }
 0x2d3   : > { %v2500_v6 = vadd.f32 %v2459_v29, %v2063_v42  ;;  %v830_v53 = vadd.f32 %v806_v1, %v778_v27  ;;  %v858_v3 = vmul.f32 %v7293_v55, %v10136_v47  ;;  %v859_v59 = vmul.f32 %v10137_v24, %v10136_v47  ;;  %10141 = vst [vmem:[#allocation34_spill] sm:$0xff] %v7712_v61  ;;  %v10142_v36 = vld [vmem:[#allocation73_spill] sm:$0xff]  ;;  %v10143_v47 = vld [vmem:[#allocation43_spill] sm:$0xff] }
 0x2d4   : > { %v2896_v42 = vsel %vm2871_vm4, %v10139_v41, %v2895_v23  ;;  %v3274_v4 = vadd.f32 %v3250_v56, %v3222_v60  ;;  %v831_v2 = vadd.f32 %v807_v16, %v779_v44  ;;  %v910_v29 = vmul.f32 %v10126_v15, %v10140_v20 }
 0x2d5   : > { %v2937_v17 = vadd.f32 %v2896_v42, %v2500_v6  ;;  %v681_v62 = vadd.f32 %v665_v45, %v645_v22  ;;  %v882_v27 = vadd.f32 %v858_v3, %v830_v53  ;;  %v911_v1 = vmul.f32 %v10142_v36, %v10140_v20  ;;  %v10145_v22 = vld [vmem:[#allocation89_spill] sm:$0xff] }
 0x2d6   : > { %v3332_v31 = vrot.slane %v3274_v4, 6  ;;  %v883_v32 = vadd.f32 %v859_v59, %v831_v2  ;;  %v962_v18 = vmul.f32 %v7677_v25, %v10143_v47  ;;  %v963_v56 = vmul.f32 %v7719_v33, %v10143_v47  ;;  %v10147_v4 = vld [vmem:[#allocation32_spill] sm:$0xff] }
 0x2d7   : > { %v717_v41 = vadd.f32 %v701_v54, %v681_v62  ;;  %v934_v44 = vadd.f32 %v910_v29, %v882_v27  ;;  %v1014_v6 = vmul.f32 %v10104_v28, %v10128_v46  ;;  %v1015_v45 = vmul.f32 %v10104_v28, %v10145_v22 }
 0x2d8   : > { %v10146_v23 = vrot.slane %v7562_v49, 6  ;;  %v935_v60 = vadd.f32 %v911_v1, %v883_v32  ;;  %v1066_v16 = vmul.f32 %v10105_v21, %v7674_v51  ;;  %v1067_v53 = vmul.f32 %v10105_v21, %v7712_v61  ;;  %v10148_v49 = vld [vmem:[#allocation46_spill] sm:$0xff] }
 0x2d9   : > { %v753_v54 = vadd.f32 %v737_v52, %v717_v41  ;;  %v986_v42 = vadd.f32 %v962_v18, %v934_v44  ;;  %v1215_v2 = vmul.f32 %v7283_v0, %v10147_v4  ;;  %v1216_v62 = vmul.f32 %v7691_v26, %v10147_v4 }
 0x2da   : > { %v3333_v59 = vsel %vm3308_vm5, %v10146_v23, %v3332_v31  ;;  %v987_v29 = vadd.f32 %v963_v56, %v935_v60  ;;  %v1243_v31 = vmul.f32 %v7288_v8, %v10148_v49  ;;  %v1244_v32 = vmul.f32 %v7698_v38, %v10148_v49  ;;  %v10151_v23 = vld [vmem:[#allocation48_spill] sm:$0xff] }
 0x2db   : > { %v3374_v3 = vadd.f32 %v3333_v59, %v2937_v17  ;;  %v1038_v1 = vadd.f32 %v1014_v6, %v986_v42  ;;  %v10150_v17 = vld [vmem:[#allocation47_spill] sm:$0xff]  ;;  %v1347_v59 = vmul.f32 %v10126_v15, %v10151_v23  ;;  %v1399_v6 = vmul.f32 %v7677_v25, %v10071_v30 }
 0x2dc   : > { %v1295_v52 = vmul.f32 %v7293_v55, %v10150_v17  ;;  %v1296_v18 = vmul.f32 %v10137_v24, %v10150_v17  ;;  %v1039_v56 = vadd.f32 %v1015_v45, %v987_v29  ;;  %v1267_v41 = vadd.f32 %v1243_v31, %v1215_v2  ;;  %v10153_v31 = vld [vmem:[#allocation52_spill] sm:$0xff] }
 0x2dd   : > { %v7743_v27 = vadd.f32 %v7599_v12, %v3374_v3  ;;  %v1268_v44 = vadd.f32 %v1244_v32, %v1216_v62  ;;  %v1090_v49 = vadd.f32 %v1066_v16, %v1038_v1  ;;  %v1348_v3 = vmul.f32 %v10142_v36, %v10151_v23 }
 0x2de   : > { %v7757_v42 = vadd.f32 %v1067_v53, %v1039_v56  ;;  %v1319_v12 = vadd.f32 %v1295_v52, %v1267_v41  ;;  %v1400_v2 = vmul.f32 %v7719_v33, %v10071_v30  ;;  %v1451_v62 = vmul.f32 %v10073_v50, %v10128_v46  ;;  %v10155_v41 = vld [vmem:[#allocation53_spill] sm:$0xff] }
 0x2df   : > { %10149 = vst [vmem:[#allocation90_spill] sm:$0xff] %v7743_v27  ;;  %v3432_v60 = vsel %vm3404_vm6, %v7743_v27, 0.0  ;;  %v1320_v45 = vadd.f32 %v1296_v18, %v1268_v44  ;;  %v1149_v29 = vrot.slane %v1090_v49, 1  ;;  %v1452_v16 = vmul.f32 %v10073_v50, %v10145_v22  ;;  %v10154_v18 = vld [vmem:[#allocation33_spill] sm:$0xff] }
 0x2e0   : > { %3433 = vadd.xlane.f32.xlu1 %v3432_v60  ;;  %10152 = vst [vmem:[#allocation85_spill] sm:$0xff] %v7757_v42  ;;  %v1503_v32 = vmul.f32 %v10153_v31, %v7674_v51  ;;  %v9535_v1 = vrot.slane %v7757_v42, 1  ;;  %v1371_v60 = vadd.f32 %v1347_v59, %v1319_v12  ;;  %v1504_v52 = vmul.f32 %v10153_v31, %v7712_v61 }
 0x2e1   : > { %v1372_v53 = vadd.f32 %v1348_v3, %v1320_v45  ;;  %v1652_v56 = vmul.f32 %v7283_v0, %v10154_v18  ;;  %v1653_v49 = vmul.f32 %v7691_v26, %v10154_v18  ;;  %v1680_v44 = vmul.f32 %v7288_v8, %v10155_v41  ;;  %v10156_v45 = vld [vmem:[#allocation54_spill] sm:$0xff] }
 0x2e2   : > { %v1681_v27 = vmul.f32 %v7698_v38, %v10155_v41  ;;  %v1151_v12 = vsel %vm1123_vm0, %v1149_v29, %v9535_v1  ;;  %v1423_v59 = vadd.f32 %v1399_v6, %v1371_v60  ;;  %v1732_v31 = vmul.f32 %v7293_v55, %v10156_v45  ;;  %v10163_v1 = vld [vmem:[#allocation63_spill] sm:$0xff] }
 0x2e3   : > { %v1424_v3 = vadd.f32 %v1400_v2, %v1372_v53  ;;  %v1190_v50 = vadd.f32 %v1151_v12, %v753_v54  ;;  %v1704_v30 = vadd.f32 %v1680_v44, %v1652_v56  ;;  %v1733_v18 = vmul.f32 %v10137_v24, %v10156_v45 }
 0x2e4   : > { %v1705_v23 = vadd.f32 %v1681_v27, %v1653_v49  ;;  %v1475_v17 = vadd.f32 %v1451_v62, %v1423_v59  ;;  %v1784_v41 = vmul.f32 %v10126_v15, %v10075_v35  ;;  %v1785_v42 = vmul.f32 %v10142_v36, %v10075_v35  ;;  %v10158_v62 = vld [vmem:[#allocation57_spill] sm:$0xff] }
 0x2e5   : > { %v1476_v4 = vadd.f32 %v1452_v16, %v1424_v3  ;;  %v1756_v29 = vadd.f32 %v1732_v31, %v1704_v30  ;;  %v1836_v2 = vmul.f32 %v7677_v25, %v10111_v14  ;;  %v1837_v54 = vmul.f32 %v7719_v33, %v10111_v14  ;;  %v10159_v30 = vld [vmem:[#allocation59_spill] sm:$0xff]  ;;  %v10161_v59 = vld [vmem:[#allocation61_spill] sm:$0xff] }
 0x2e6   : > { %v1757_v6 = vadd.f32 %v1733_v18, %v1705_v23  ;;  %v1527_v27 = vadd.f32 %v1503_v32, %v1475_v17  ;;  %v1888_v16 = vmul.f32 %v10158_v62, %v10128_v46  ;;  %v1889_v53 = vmul.f32 %v10158_v62, %v10145_v22  ;;  %v10160_v17 = vld [vmem:[#allocation60_spill] sm:$0xff] }
 0x2e7   : > { %v7793_v60 = vadd.f32 %v1504_v52, %v1476_v4  ;;  %v1808_v56 = vadd.f32 %v1784_v41, %v1756_v29  ;;  %v1940_v23 = vmul.f32 %v10159_v30, %v7674_v51  ;;  %v1941_v31 = vmul.f32 %v10159_v30, %v7712_v61  ;;  %v10162_v29 = vld [vmem:[#allocation62_spill] sm:$0xff] }
 0x2e8   : > { %v1809_v49 = vadd.f32 %v1785_v42, %v1757_v6  ;;  %v1586_v18 = vrot.slane %v1527_v27, 2  ;;  %v2089_v4 = vmul.f32 %v7283_v0, %v10160_v17  ;;  %v2090_v32 = vmul.f32 %v7691_v26, %v10160_v17 }
 0x2e9   : > { %10157 = vst [vmem:[#allocation51_spill] sm:$0xff] %v7793_v60  ;;  %v9540_v44 = vrot.slane %v7793_v60, 2  ;;  %v1860_v52 = vadd.f32 %v1836_v2, %v1808_v56  ;;  %v2117_v42 = vmul.f32 %v7288_v8, %v10161_v59  ;;  %v2118_v41 = vmul.f32 %v7698_v38, %v10161_v59  ;;  %v10164_v60 = vld [vmem:[#allocation64_spill] sm:$0xff] }
 0x2ea   : > { %v1861_v12 = vadd.f32 %v1837_v54, %v1809_v49  ;;  %v2169_v6 = vmul.f32 %v7293_v55, %v10162_v29  ;;  %v2170_v27 = vmul.f32 %v10137_v24, %v10162_v29  ;;  %v2221_v2 = vmul.f32 %v10126_v15, %v10163_v1 }
 0x2eb   : > { %v1588_v3 = vsel %vm1560_vm1, %v1586_v18, %v9540_v44  ;;  %v1912_v56 = vadd.f32 %v1888_v16, %v1860_v52  ;;  %v2141_v17 = vadd.f32 %v2117_v42, %v2089_v4  ;;  %v2142_v30 = vadd.f32 %v2118_v41, %v2090_v32  ;;  %v10167_v41 = vld [vmem:[#allocation69_spill] sm:$0xff] }
 0x2ec   : > { %v1627_v54 = vadd.f32 %v1588_v3, %v1190_v50  ;;  %v1913_v49 = vadd.f32 %v1889_v53, %v1861_v12  ;;  %v2222_v59 = vmul.f32 %v10142_v36, %v10163_v1  ;;  %v2273_v18 = vmul.f32 %v7677_v25, %v10164_v60 }
 0x2ed   : > { %v2274_v44 = vmul.f32 %v7719_v33, %v10164_v60  ;;  %v1964_v62 = vadd.f32 %v1940_v23, %v1912_v56  ;;  %v2193_v29 = vadd.f32 %v2169_v6, %v2141_v17  ;;  %v2325_v50 = vmul.f32 %v10081_v7, %v10128_v46  ;;  %v10168_v56 = vld [vmem:[#allocation70_spill] sm:$0xff] }
 0x2ee   : > { %v7827_v14 = vadd.f32 %v1941_v31, %v1913_v49  ;;  %v2194_v16 = vadd.f32 %v2170_v27, %v2142_v30  ;;  %v2326_v53 = vmul.f32 %v10081_v7, %v10145_v22  ;;  %v2377_v4 = vmul.f32 %v9941_v57, %v7674_v51  ;;  %v10166_v31 = vld [vmem:[#allocation68_spill] sm:$0xff] }
 0x2ef   : > { %v2378_v32 = vmul.f32 %v9941_v57, %v7712_v61  ;;  %v2023_v52 = vrot.slane %v1964_v62, 3  ;;  %v2245_v23 = vadd.f32 %v2221_v2, %v2193_v29  ;;  %v2526_v17 = vmul.f32 %v7283_v0, %v10166_v31 }
 0x2f0   : > { %10165 = vst [vmem:[#allocation78_spill] sm:$0xff] %v7827_v14  ;;  %v9548_v12 = vrot.slane %v7827_v14, 3  ;;  %v2246_v42 = vadd.f32 %v2222_v59, %v2194_v16  ;;  %v2527_v30 = vmul.f32 %v7691_v26, %v10166_v31  ;;  %v2554_v3 = vmul.f32 %v7288_v8, %v10167_v41 }
 0x2f1   : > { %v2555_v6 = vmul.f32 %v7698_v38, %v10167_v41  ;;  %v2297_v27 = vadd.f32 %v2273_v18, %v2245_v23  ;;  %v2606_v29 = vmul.f32 %v7293_v55, %v10168_v56  ;;  %v2607_v59 = vmul.f32 %v10137_v24, %v10168_v56 }
 0x2f2   : > { %v2025_v62 = vsel %vm1997_vm2, %v2023_v52, %v9548_v12  ;;  %v2298_v49 = vadd.f32 %v2274_v44, %v2246_v42  ;;  %v2578_v16 = vadd.f32 %v2554_v3, %v2526_v17  ;;  %v2658_v7 = vmul.f32 %v10126_v15, %v9906_v40 }
 0x2f3   : > { %v2064_v2 = vadd.f32 %v2025_v62, %v1627_v54  ;;  %v2579_v31 = vadd.f32 %v2555_v6, %v2527_v30  ;;  %v2349_v57 = vadd.f32 %v2325_v50, %v2297_v27  ;;  %v2659_v14 = vmul.f32 %v10142_v36, %v9906_v40 }
 0x2f4   : > { %v2710_v18 = vmul.f32 %v7677_v25, %v9907_v63  ;;  %v2350_v52 = vadd.f32 %v2326_v53, %v2298_v49  ;;  %v2630_v23 = vadd.f32 %v2606_v29, %v2578_v16  ;;  %v2711_v56 = vmul.f32 %v7719_v33, %v9907_v63 }
 0x2f5   : > { %v2631_v12 = vadd.f32 %v2607_v59, %v2579_v31  ;;  %v2401_v54 = vadd.f32 %v2377_v4, %v2349_v57  ;;  %v2762_v44 = vmul.f32 %v5922_v5, %v10128_v46  ;;  %v2763_v50 = vmul.f32 %v5922_v5, %v10145_v22 }
 0x2f6   : > { %v2814_v17 = vmul.f32 %v5941_v39, %v7674_v51  ;;  %v7867_v42 = vadd.f32 %v2378_v32, %v2350_v52  ;;  %v2682_v30 = vadd.f32 %v2658_v7, %v2630_v23  ;;  %v2815_v53 = vmul.f32 %v5941_v39, %v7712_v61 }
 0x2f7   : > { %v2683_v3 = vadd.f32 %v2659_v14, %v2631_v12  ;;  %v2460_v31 = vrot.slane %v2401_v54, 4  ;;  %v2963_v57 = vmul.f32 %v7283_v0, %v5945_v43  ;;  %v2964_v4 = vmul.f32 %v7691_v26, %v5945_v43 }
 0x2f8   : > { %10169 = vst [vmem:[#allocation87_spill] sm:$0xff] %v7867_v42  ;;  %v2991_v6 = vmul.f32 %v7288_v8, %v5952_v19  ;;  %v9551_v62 = vrot.slane %v7867_v42, 4  ;;  %v2734_v27 = vadd.f32 %v2710_v18, %v2682_v30  ;;  %v2992_v7 = vmul.f32 %v7698_v38, %v5952_v19 }
 0x2f9   : > { %v2735_v32 = vadd.f32 %v2711_v56, %v2683_v3  ;;  %v3043_v12 = vmul.f32 %v7293_v55, %v5956_v58  ;;  %v3044_v0 = vmul.f32 %v10137_v24, %v5956_v58  ;;  %v3095_v29 = vmul.f32 %v10126_v15, %v5960_v10 }
 0x2fa   : > { %v3015_v14 = vadd.f32 %v2991_v6, %v2963_v57  ;;  %v2462_v8 = vsel %vm2434_vm3, %v2460_v31, %v9551_v62  ;;  %v2786_v59 = vadd.f32 %v2762_v44, %v2734_v27  ;;  %v3016_v56 = vadd.f32 %v2992_v7, %v2964_v4  ;;  %v10184_v62 = vld [vmem:[#allocation75_spill] sm:$0xff] }
 0x2fb   : > { %v2787_v49 = vadd.f32 %v2763_v50, %v2735_v32  ;;  %v2501_v16 = vadd.f32 %v2462_v8, %v2064_v2  ;;  %v3096_v52 = vmul.f32 %v10142_v36, %v5960_v10  ;;  %v3147_v55 = vmul.f32 %v7677_v25, %v5986_v48 }
 0x2fc   : > { %v3067_v18 = vadd.f32 %v3043_v12, %v3015_v14  ;;  %v2838_v23 = vadd.f32 %v2814_v17, %v2786_v59  ;;  %v3068_v30 = vadd.f32 %v3044_v0, %v3016_v56  ;;  %v3148_v15 = vmul.f32 %v7719_v33, %v5986_v48  ;;  %v10171_v14 = vld [vmem:[#allocation36_spill] sm:$0xff]  ;;  %v10172_v0 = vld [vmem:[#allocation38_spill] sm:$0xff] }
 0x2fd   : > { %v7893_v54 = vadd.f32 %v2815_v53, %v2787_v49  ;;  %v3199_v44 = vmul.f32 %v5990_v9, %v10128_v46  ;;  %v3200_v2 = vmul.f32 %v5990_v9, %v10145_v22  ;;  %v3251_v50 = vmul.f32 %v5994_v13, %v7674_v51  ;;  %v10173_v49 = vld [vmem:[#allocation39_spill] sm:$0xff] }
 0x2fe   : > { %v3119_v3 = vadd.f32 %v3095_v29, %v3067_v18  ;;  %v2897_v31 = vrot.slane %v2838_v23, 5  ;;  %v3120_v17 = vadd.f32 %v3096_v52, %v3068_v30  ;;  %v3252_v53 = vmul.f32 %v5994_v13, %v7712_v61  ;;  %v7922_v18 = vld [vmem:[%s5550_s25 + $0x118] sm:$0x3f] }
 0x2ff   : > { %10170 = vst [vmem:[#allocation72_spill] sm:$0xff] %v7893_v54  ;;  %v9550_v57 = vrot.slane %v7893_v54, 5  ;;  %v538_v6 = vmul.f32 %v7691_v26, %v10086_v34  ;;  %v558_v46 = vmul.f32 %v7698_v38, %v10087_v11  ;;  %v594_v27 = vmul.f32 %v10137_v24, %v10088_v37  ;;  %10174 = vst [vmem:[#allocation58_spill] sm:$0xff] %v7922_v18  ;;  %v10175_v52 = vld [vmem:[#allocation40_spill] sm:$0xff]  ;;  %v10176_v23 = vld [vmem:[#allocation31_spill] sm:$0xff] }
 0x300   : > { %v3171_v4 = vadd.f32 %v3147_v55, %v3119_v3  ;;  %v3172_v7 = vadd.f32 %v3148_v15, %v3120_v17  ;;  %v630_v12 = vmul.f32 %v10142_v36, %v10171_v14  ;;  %v666_v29 = vmul.f32 %v7719_v33, %v10172_v0  ;;  %v10177_v30 = vld [vmem:[#allocation76_spill] sm:$0xff]  ;;  %v10178_v36 = vld [vmem:[#allocation37_spill] sm:$0xff]  ;;  %v10187_v54 = vld [vmem:[#allocation47_spill] sm:$0xff] }
 0x301   : > { %v2899_v32 = vsel %vm2871_vm4, %v2897_v31, %v9550_v57  ;;  %v574_v59 = vadd.f32 %v558_v46, %v538_v6  ;;  %v702_v56 = vmul.f32 %v10173_v49, %v10145_v22  ;;  %v738_v55 = vmul.f32 %v10175_v52, %v7712_v61  ;;  %v10179_v3 = vld [vmem:[#allocation77_spill] sm:$0xff]  ;;  %v10182_v22 = vld [vmem:[#allocation92_spill] sm:$0xff] }
 0x302   : > { %v2938_v8 = vadd.f32 %v2899_v32, %v2501_v16  ;;  %v3223_v26 = vadd.f32 %v3199_v44, %v3171_v4  ;;  %v3224_v24 = vadd.f32 %v3200_v2, %v3172_v7  ;;  %v780_v15 = vmul.f32 %v10177_v30, %v10176_v23  ;;  %v7931_v32 = vld [vmem:[%s5550_s25 + $0xb8] sm:$0x3f]  ;;  %v10181_v44 = vld [vmem:[#allocation41_spill] sm:$0xff] }
 0x303   : > { %v808_v31 = vmul.f32 %v10179_v3, %v10178_v36  ;;  %v610_v16 = vadd.f32 %v594_v27, %v574_v59  ;;  %10180 = vst [vmem:[#allocation88_spill] sm:$0xff] %v7931_v32  ;;  %v860_v4 = vmul.f32 %v7931_v32, %v10181_v44  ;;  %v912_v2 = vmul.f32 %v10182_v22, %v10140_v20  ;;  %v7940_v7 = vld [vmem:[%s5550_s25 + $0xe8] sm:$0x3f]  ;;  %v10185_v61 = vld [vmem:[#allocation32_spill] sm:$0xff] }
 0x304   : > { %v3275_v17 = vadd.f32 %v3251_v50, %v3223_v26  ;;  %v7937_v6 = vadd.f32 %v3252_v53, %v3224_v24  ;;  %10183 = vst [vmem:[#allocation66_spill] sm:$0xff] %v7940_v7  ;;  %v964_v57 = vmul.f32 %v7940_v7, %v10143_v47  ;;  %v1016_v50 = vmul.f32 %v10104_v28, %v10184_v62  ;;  %v10188_v44 = vld [vmem:[#allocation48_spill] sm:$0xff]  ;;  %v10193_v38 = vld [vmem:[#allocation53_spill] sm:$0xff] }
 0x305   : > { %v832_v46 = vadd.f32 %v808_v31, %v780_v15  ;;  %v646_v26 = vadd.f32 %v630_v12, %v610_v16  ;;  %v1068_v59 = vmul.f32 %v10105_v21, %v7922_v18  ;;  %v1217_v33 = vmul.f32 %v10177_v30, %v10185_v61  ;;  %v10186_v15 = vld [vmem:[#allocation46_spill] sm:$0xff]  ;;  %v10189_v12 = vld [vmem:[#allocation49_spill] sm:$0xff] }
 0x306   : > { %v3334_v27 = vrot.slane %v3275_v17, 6  ;;  %v9564_v53 = vrot.slane %v7937_v6, 6  ;;  %v1245_v31 = vmul.f32 %v10179_v3, %v10186_v15  ;;  %v1297_v47 = vmul.f32 %v7931_v32, %v10187_v54  ;;  %v10190_v21 = vld [vmem:[#allocation50_spill] sm:$0xff]  ;;  %v10191_v15 = vld [vmem:[#allocation52_spill] sm:$0xff] }
 0x307   : > { %v884_v24 = vadd.f32 %v860_v4, %v832_v46  ;;  %v682_v20 = vadd.f32 %v666_v29, %v646_v26  ;;  %v1349_v17 = vmul.f32 %v10182_v22, %v10188_v44  ;;  %v1401_v16 = vmul.f32 %v7940_v7, %v10189_v12  ;;  %v10192_v26 = vld [vmem:[#allocation33_spill] sm:$0xff] }
 0x308   : > { %v1453_v28 = vmul.f32 %v10190_v21, %v10184_v62  ;;  %v3336_v4 = vsel %vm3308_vm5, %v3334_v27, %v9564_v53  ;;  %v1269_v61 = vadd.f32 %v1245_v31, %v1217_v33  ;;  %v1505_v36 = vmul.f32 %v10191_v15, %v7922_v18  ;;  %v10194_v33 = vld [vmem:[#allocation82_spill] sm:$0xff]  ;;  %v10197_v53 = vld [vmem:[#allocation57_spill] sm:$0xff] }
 0x309   : > { %v936_v46 = vadd.f32 %v912_v2, %v884_v24  ;;  %v3375_v54 = vadd.f32 %v3336_v4, %v2938_v8  ;;  %v718_v29 = vadd.f32 %v702_v56, %v682_v20  ;;  %v1654_v44 = vmul.f32 %v10177_v30, %v10192_v26  ;;  %v10196_v20 = vld [vmem:[#allocation56_spill] sm:$0xff] }
 0x30a   : > { %v1682_v12 = vmul.f32 %v10179_v3, %v10193_v38  ;;  %v1321_v23 = vadd.f32 %v1297_v47, %v1269_v61  ;;  %v1734_v21 = vmul.f32 %v7931_v32, %v10156_v45  ;;  %v1786_v2 = vmul.f32 %v10182_v22, %v10075_v35  ;;  %v10198_v61 = vld [vmem:[#allocation59_spill] sm:$0xff]  ;;  %v10199_v45 = vld [vmem:[#allocation60_spill] sm:$0xff] }
 0x30b   : > { %v988_v42 = vadd.f32 %v964_v57, %v936_v46  ;;  %v7975_v27 = vadd.f32 %v10194_v33, %v3375_v54  ;;  %v754_v24 = vadd.f32 %v738_v55, %v718_v29  ;;  %v1838_v56 = vmul.f32 %v7940_v7, %v10196_v20  ;;  %v10200_v55 = vld [vmem:[#allocation61_spill] sm:$0xff] }
 0x30c   : > { %v1706_v8 = vadd.f32 %v1682_v12, %v1654_v44  ;;  %v1373_v4 = vadd.f32 %v1349_v17, %v1321_v23  ;;  %v1890_v57 = vmul.f32 %v10197_v53, %v10184_v62  ;;  %v1942_v47 = vmul.f32 %v10198_v61, %v7922_v18  ;;  %v10201_v23 = vld [vmem:[#allocation62_spill] sm:$0xff] }
 0x30d   : > { %10195 = vst [vmem:[#allocation73_spill] sm:$0xff] %v7975_v27  ;;  %v1040_v31 = vadd.f32 %v1016_v50, %v988_v42  ;;  %v3435_v46 = vsel %vm3404_vm6, %v7975_v27, 0.0  ;;  %v2091_v54 = vmul.f32 %v10177_v30, %v10199_v45  ;;  %v2119_v44 = vmul.f32 %v10179_v3, %v10200_v55 }
 0x30e   : > { %v1758_v35 = vadd.f32 %v1734_v21, %v1706_v8  ;;  %3436 = vadd.xlane.f32.xlu0 %v3435_v46  ;;  %v1425_v42 = vadd.f32 %v1401_v16, %v1373_v4  ;;  %v2171_v50 = vmul.f32 %v7931_v32, %v10201_v23  ;;  %v2223_v17 = vmul.f32 %v10182_v22, %v10163_v1  ;;  %v10202_v8 = vld [vmem:[#allocation65_spill] sm:$0xff]  ;;  %v10203_v46 = vld [vmem:[#allocation67_spill] sm:$0xff]  ;;  %v10204_v16 = vld [vmem:[#allocation68_spill] sm:$0xff] }
 0x30f   : > { %v1092_v12 = vadd.f32 %v1068_v59, %v1040_v31  ;;  %v2143_v61 = vadd.f32 %v2119_v44, %v2091_v54  ;;  %v2275_v21 = vmul.f32 %v7940_v7, %v10164_v60  ;;  %v2327_v27 = vmul.f32 %v10202_v8, %v10184_v62  ;;  %v10206_v44 = vld [vmem:[#allocation85_spill] sm:$0xff] }
 0x310   : > { %v1810_v29 = vadd.f32 %v1786_v2, %v1758_v35  ;;  %v1477_v53 = vadd.f32 %v1453_v28, %v1425_v42  ;;  %v2379_v59 = vmul.f32 %v10203_v46, %v7922_v18  ;;  %v2528_v31 = vmul.f32 %v10177_v30, %v10204_v16  ;;  %v10205_v2 = vld [vmem:[#allocation70_spill] sm:$0xff] }
 0x311   : > { %v1152_v45 = vrot.slane %v1092_v12, 1  ;;  %v2195_v23 = vadd.f32 %v2171_v50, %v2143_v61  ;;  %v2556_v35 = vmul.f32 %v10179_v3, %v10167_v41  ;;  %v2608_v54 = vmul.f32 %v7931_v32, %v10205_v2 }
 0x312   : > { %v1862_v4 = vadd.f32 %v1838_v56, %v1810_v29  ;;  %v10207_v60 = vrot.slane %v10206_v44, 1  ;;  %v1529_v12 = vadd.f32 %v1505_v36, %v1477_v53  ;;  %v2660_v28 = vmul.f32 %v10182_v22, %v9906_v40 }
 0x313   : > { %v2712_v42 = vmul.f32 %v7940_v7, %v9907_v63  ;;  %v2247_v61 = vadd.f32 %v2223_v17, %v2195_v23  ;;  %v2580_v50 = vadd.f32 %v2556_v35, %v2528_v31  ;;  %v2764_v41 = vmul.f32 %v5922_v5, %v10184_v62 }
 0x314   : > { %v1153_v8 = vsel %vm1123_vm0, %v10207_v60, %v1152_v45  ;;  %v1914_v56 = vadd.f32 %v1890_v57, %v1862_v4  ;;  %v1589_v29 = vrot.slane %v1529_v12, 2  ;;  %v2816_v44 = vmul.f32 %v5941_v39, %v7922_v18  ;;  %v10208_v57 = vld [vmem:[#allocation51_spill] sm:$0xff] }
 0x315   : > { %v1191_v16 = vadd.f32 %v1153_v8, %v754_v24  ;;  %v2965_v45 = vmul.f32 %v10177_v30, %v5945_v43  ;;  %v2299_v36 = vadd.f32 %v2275_v21, %v2247_v61  ;;  %v2632_v53 = vadd.f32 %v2608_v54, %v2580_v50  ;;  %v10210_v61 = vld [vmem:[#allocation78_spill] sm:$0xff] }
 0x316   : > { %v1966_v60 = vadd.f32 %v1942_v47, %v1914_v56  ;;  %v2993_v24 = vmul.f32 %v10179_v3, %v5952_v19  ;;  %v10209_v23 = vrot.slane %v10208_v57, 2  ;;  %v3045_v8 = vmul.f32 %v7931_v32, %v5956_v58  ;;  %v8034_v56 = vld [vmem:[%s5550_s25 + $0x90] sm:$0xff] }
 0x317   : > { %v3097_v31 = vmul.f32 %v10182_v22, %v5960_v10  ;;  %v3149_v30 = vmul.f32 %v7940_v7, %v5986_v48  ;;  %v2351_v4 = vadd.f32 %v2327_v27, %v2299_v36  ;;  %v2684_v35 = vadd.f32 %v2660_v28, %v2632_v53  ;;  %v8047_v36 = vld [vmem:[%s5550_s25 + $0xc0] sm:$0xff]  ;;  %v8075_v7 = vld [vmem:[%s5550_s25 + $0xb0] sm:$0xff] }
 0x318   : > { %v1590_v17 = vsel %vm1560_vm1, %v10209_v23, %v1589_v29  ;;  %v2026_v21 = vrot.slane %v1966_v60, 3  ;;  %v3017_v3 = vadd.f32 %v2993_v24, %v2965_v45  ;;  %v3201_v54 = vmul.f32 %v5990_v9, %v10184_v62  ;;  %v8042_v29 = vld [vmem:[%s5550_s25 + $0xa8] sm:$0xff]  ;;  %10218 = vst [vmem:[#allocation76_spill] sm:$0xff] %v8075_v7 }
 0x319   : > { %v1628_v47 = vadd.f32 %v1590_v17, %v1191_v16  ;;  %v3253_v12 = vmul.f32 %v5994_v13, %v7922_v18  ;;  %v539_v22 = vmul.f32 %v8034_v56, %v10086_v34  ;;  %v10211_v16 = vrot.slane %v10210_v61, 3  ;;  %v8057_v17 = vld [vmem:[%s5550_s25 + $0xf0] sm:$0xff] }
 0x31a   : > { %v2403_v27 = vadd.f32 %v2379_v59, %v2351_v4  ;;  %v2736_v28 = vadd.f32 %v2712_v42, %v2684_v35  ;;  %v559_v62 = vmul.f32 %v8042_v29, %v10087_v11  ;;  %v3069_v60 = vadd.f32 %v3045_v8, %v3017_v3  ;;  %v8054_v59 = vld [vmem:[%s5550_s25 + $0x120] sm:$0xff]  ;;  %v10213_v35 = vld [vmem:[#allocation31_spill] sm:$0xff] }
 0x31b   : > { %v2027_v50 = vsel %vm1997_vm2, %v10211_v16, %v2026_v21  ;;  %v595_v53 = vmul.f32 %v8047_v36, %v10088_v37  ;;  %v631_v24 = vmul.f32 %v7677_v25, %v10171_v14  ;;  %10212 = vst [vmem:[#allocation89_spill] sm:$0xff] %v8054_v59  ;;  %v703_v21 = vmul.f32 %v10173_v49, %v7674_v51  ;;  %v10214_v3 = vld [vmem:[#allocation87_spill] sm:$0xff]  ;;  %v10219_v49 = vld [vmem:[#allocation41_spill] sm:$0xff] }
 0x31c   : > { %v2065_v45 = vadd.f32 %v2027_v50, %v1628_v47  ;;  %v2463_v57 = vrot.slane %v2403_v27, 4  ;;  %v2788_v23 = vadd.f32 %v2764_v41, %v2736_v28  ;;  %v575_v42 = vadd.f32 %v559_v62, %v539_v22  ;;  %v10216_v27 = vld [vmem:[#allocation30_spill] sm:$0xff] }
 0x31d   : > { %v667_v47 = vmul.f32 %v8057_v17, %v10172_v0  ;;  %v3121_v8 = vadd.f32 %v3097_v31, %v3069_v60  ;;  %v739_v4 = vmul.f32 %v10175_v52, %v8054_v59  ;;  %v781_v41 = vmul.f32 %v8034_v56, %v10213_v35  ;;  %v10217_v60 = vld [vmem:[#allocation37_spill] sm:$0xff] }
 0x31e   : > { %v10215_v61 = vrot.slane %v10214_v3, 4  ;;  %v2840_v16 = vadd.f32 %v2816_v44, %v2788_v23  ;;  %v611_v50 = vadd.f32 %v595_v53, %v575_v42  ;;  %v782_v28 = vmul.f32 %v10216_v27, %v10213_v35  ;;  %v8082_v53 = vld [vmem:[%s5550_s25 + $0xc8] sm:$0xff]  ;;  %v10225_v35 = vld [vmem:[#allocation43_spill] sm:$0xff] }
 0x31f   : > { %v3173_v62 = vadd.f32 %v3149_v30, %v3121_v8  ;;  %v809_v18 = vmul.f32 %v8042_v29, %v10217_v60  ;;  %v810_v32 = vmul.f32 %v8075_v7, %v10217_v60  ;;  %v861_v44 = vmul.f32 %v8047_v36, %v10219_v49  ;;  %10220 = vst [vmem:[#allocation77_spill] sm:$0xff] %v8082_v53  ;;  %v10221_v42 = vld [vmem:[#allocation42_spill] sm:$0xff] }
 0x320   : > { %v2464_v22 = vsel %vm2434_vm3, %v10215_v61, %v2463_v57  ;;  %v2900_v52 = vrot.slane %v2840_v16, 5  ;;  %v647_v3 = vadd.f32 %v631_v24, %v611_v50  ;;  %v862_v30 = vmul.f32 %v8082_v53, %v10219_v49  ;;  %v10222_v61 = vld [vmem:[#allocation72_spill] sm:$0xff]  ;;  %v8096_v49 = vld [vmem:[%s5550_s25 + $0x128] sm:$0xff] }
 0x321   : > { %v2502_v31 = vadd.f32 %v2464_v22, %v2065_v45  ;;  %v3225_v45 = vadd.f32 %v3201_v54, %v3173_v62  ;;  %v833_v57 = vadd.f32 %v809_v18, %v781_v41  ;;  %v834_v23 = vadd.f32 %v810_v32, %v782_v28  ;;  %v10224_v50 = vld [vmem:[#allocation84_spill] sm:$0xff]  ;;  %10226 = vst [vmem:[#allocation92_spill] sm:$0xff] %v8096_v49  ;;  %v10229_v62 = vld [vmem:[#allocation34_spill] sm:$0xff] }
 0x322   : > { %v913_v8 = vmul.f32 %v7677_v25, %v10221_v42  ;;  %v10223_v22 = vrot.slane %v10222_v61, 5  ;;  %v683_v24 = vadd.f32 %v667_v47, %v647_v3  ;;  %v914_v60 = vmul.f32 %v10224_v50, %v10221_v42  ;;  %v8099_v41 = vld [vmem:[%s5550_s25 + $0xf8] sm:$0xff] }
 0x323   : > { %v965_v0 = vmul.f32 %v8057_v17, %v10225_v35  ;;  %v3277_v37 = vadd.f32 %v3253_v12, %v3225_v45  ;;  %v885_v18 = vadd.f32 %v861_v44, %v833_v57  ;;  %v886_v32 = vadd.f32 %v862_v30, %v834_v23  ;;  %10227 = vst [vmem:[#allocation75_spill] sm:$0xff] %v8099_v41  ;;  %v10230_v12 = vld [vmem:[#allocation45_spill] sm:$0xff]  ;;  %v10231_v30 = vld [vmem:[#allocation32_spill] sm:$0xff] }
 0x324   : > { %v2901_v16 = vsel %vm2871_vm4, %v10223_v22, %v2900_v52  ;;  %v719_v54 = vadd.f32 %v703_v21, %v683_v24  ;;  %v966_v28 = vmul.f32 %v8099_v41, %v10225_v35  ;;  %v10228_v52 = vld [vmem:[#allocation44_spill] sm:$0xff]  ;;  %v1069_v45 = vmul.f32 %v10230_v12, %v8054_v59 }
 0x325   : > { %v2939_v14 = vadd.f32 %v2901_v16, %v2502_v31  ;;  %v1017_v47 = vmul.f32 %v10228_v52, %v7674_v51  ;;  %v1018_v3 = vmul.f32 %v10228_v52, %v10229_v62  ;;  %v3337_v61 = vrot.slane %v3277_v37, 6  ;;  %v10235_v42 = vld [vmem:[#allocation48_spill] sm:$0xff] }
 0x326   : > { %v937_v22 = vadd.f32 %v913_v8, %v885_v18  ;;  %v938_v31 = vadd.f32 %v914_v60, %v886_v32  ;;  %v755_v44 = vadd.f32 %v739_v4, %v719_v54  ;;  %v1070_v21 = vmul.f32 %v10230_v12, %v8096_v49  ;;  %v10233_v60 = vld [vmem:[#allocation46_spill] sm:$0xff]  ;;  %v10234_v54 = vld [vmem:[#allocation47_spill] sm:$0xff] }
 0x327   : > { %v1218_v57 = vmul.f32 %v8034_v56, %v10231_v30  ;;  %v1219_v23 = vmul.f32 %v10216_v27, %v10231_v30  ;;  %v10232_v16 = vrot.slane %v7937_v6, 6  ;;  %v1246_v18 = vmul.f32 %v8042_v29, %v10233_v60 }
 0x328   : > { %v989_v37 = vadd.f32 %v965_v0, %v937_v22  ;;  %v990_v8 = vadd.f32 %v966_v28, %v938_v31  ;;  %v1247_v4 = vmul.f32 %v8075_v7, %v10233_v60  ;;  %v1298_v12 = vmul.f32 %v8047_v36, %v10234_v54  ;;  %v10237_v22 = vld [vmem:[#allocation49_spill] sm:$0xff] }
 0x329   : > { %v3338_v24 = vsel %vm3308_vm5, %v10232_v16, %v3337_v61  ;;  %v1299_v52 = vmul.f32 %v8082_v53, %v10234_v54  ;;  %v1270_v6 = vadd.f32 %v1246_v18, %v1218_v57  ;;  %v1350_v0 = vmul.f32 %v7677_v25, %v10235_v42 }
 0x32a   : > { %v3376_v32 = vadd.f32 %v3338_v24, %v2939_v14  ;;  %v1041_v30 = vadd.f32 %v1017_v47, %v989_v37  ;;  %v1042_v35 = vadd.f32 %v1018_v3, %v990_v8  ;;  %v1271_v61 = vadd.f32 %v1247_v4, %v1219_v23 }
 0x32b   : > { %v1351_v14 = vmul.f32 %v10224_v50, %v10235_v42  ;;  %v1402_v31 = vmul.f32 %v8057_v17, %v10237_v22  ;;  %v1322_v54 = vadd.f32 %v1298_v12, %v1270_v6  ;;  %v1403_v47 = vmul.f32 %v8099_v41, %v10237_v22 }
 0x32c   : > { %v8129_v28 = vadd.f32 %v10194_v33, %v3376_v32  ;;  %v1093_v16 = vadd.f32 %v1069_v45, %v1041_v30  ;;  %v8135_v24 = vadd.f32 %v1070_v21, %v1042_v35  ;;  %v1323_v57 = vadd.f32 %v1299_v52, %v1271_v61  ;;  %v10239_v33 = vld [vmem:[#allocation50_spill] sm:$0xff] }
 0x32d   : > { %v1454_v23 = vmul.f32 %v10239_v33, %v7674_v51  ;;  %v1455_v37 = vmul.f32 %v10239_v33, %v10229_v62  ;;  %v1374_v35 = vadd.f32 %v1350_v0, %v1322_v54  ;;  %v1506_v12 = vmul.f32 %v10191_v15, %v8054_v59 }
 0x32e   : > { %10236 = vst [vmem:[#allocation82_spill] sm:$0xff] %v8129_v28  ;;  %10238 = vst [vmem:[#allocation85_spill] sm:$0xff] %v8135_v24  ;;  %v3438_v3 = vsel %vm3404_vm6, %v8129_v28, 0.0  ;;  %v1154_v8 = vrot.slane %v1093_v16, 1  ;;  %v9593_v45 = vrot.slane %v8135_v24, 1  ;;  %v1375_v21 = vadd.f32 %v1351_v14, %v1323_v57  ;;  %v10240_v14 = vld [vmem:[#allocation54_spill] sm:$0xff] }
 0x32f   : > { %3439 = vadd.xlane.f32.xlu1 %v3438_v3  ;;  %v1507_v30 = vmul.f32 %v10191_v15, %v8096_v49  ;;  %v1655_v52 = vmul.f32 %v8034_v56, %v10192_v26  ;;  %v1656_v18 = vmul.f32 %v10216_v27, %v10192_v26  ;;  %v1426_v4 = vadd.f32 %v1402_v31, %v1374_v35  ;;  %v10241_v26 = vld [vmem:[#allocation55_spill] sm:$0xff] }
 0x330   : > { %v1156_v32 = vsel %vm1123_vm0, %v1154_v8, %v9593_v45  ;;  %v1683_v54 = vmul.f32 %v8042_v29, %v10193_v38  ;;  %v1684_v6 = vmul.f32 %v8075_v7, %v10193_v38  ;;  %v1427_v61 = vadd.f32 %v1403_v47, %v1375_v21 }
 0x331   : > { %v1192_v0 = vadd.f32 %v1156_v32, %v755_v44  ;;  %v1735_v16 = vmul.f32 %v8047_v36, %v10240_v14  ;;  %v1736_v3 = vmul.f32 %v8082_v53, %v10240_v14  ;;  %v1478_v57 = vadd.f32 %v1454_v23, %v1426_v4  ;;  %v10242_v23 = vld [vmem:[#allocation57_spill] sm:$0xff]  ;;  %v10244_v4 = vld [vmem:[#allocation59_spill] sm:$0xff] }
 0x332   : > { %v1707_v28 = vadd.f32 %v1683_v54, %v1655_v52  ;;  %v1708_v24 = vadd.f32 %v1684_v6, %v1656_v18  ;;  %v1787_v31 = vmul.f32 %v7677_v25, %v10241_v26  ;;  %v1479_v8 = vadd.f32 %v1455_v37, %v1427_v61 }
 0x333   : > { %v1788_v35 = vmul.f32 %v10224_v50, %v10241_v26  ;;  %v1839_v44 = vmul.f32 %v8057_v17, %v10196_v20  ;;  %v1840_v47 = vmul.f32 %v8099_v41, %v10196_v20  ;;  %v1530_v21 = vadd.f32 %v1506_v12, %v1478_v57  ;;  %v10245_v12 = vld [vmem:[#allocation60_spill] sm:$0xff] }
 0x334   : > { %v1759_v32 = vadd.f32 %v1735_v16, %v1707_v28  ;;  %v1760_v45 = vadd.f32 %v1736_v3, %v1708_v24  ;;  %v1891_v52 = vmul.f32 %v10242_v23, %v7674_v51  ;;  %v8175_v18 = vadd.f32 %v1507_v30, %v1479_v8 }
 0x335   : > { %v1892_v37 = vmul.f32 %v10242_v23, %v10229_v62  ;;  %v1943_v54 = vmul.f32 %v10244_v4, %v8054_v59  ;;  %v1944_v6 = vmul.f32 %v10244_v4, %v8096_v49  ;;  %v1591_v61 = vrot.slane %v1530_v21, 2  ;;  %v10246_v4 = vld [vmem:[#allocation62_spill] sm:$0xff] }
 0x336   : > { %10243 = vst [vmem:[#allocation51_spill] sm:$0xff] %v8175_v18  ;;  %v1811_v26 = vadd.f32 %v1787_v31, %v1759_v32  ;;  %v1812_v20 = vadd.f32 %v1788_v35, %v1760_v45  ;;  %v2092_v28 = vmul.f32 %v8034_v56, %v10245_v12  ;;  %v9603_v24 = vrot.slane %v8175_v18, 2 }
 0x337   : > { %v2093_v30 = vmul.f32 %v10216_v27, %v10245_v12  ;;  %v2120_v16 = vmul.f32 %v8042_v29, %v10200_v55  ;;  %v2121_v3 = vmul.f32 %v8075_v7, %v10200_v55  ;;  %v2172_v31 = vmul.f32 %v8047_v36, %v10246_v4 }
 0x338   : > { %v1863_v57 = vadd.f32 %v1839_v44, %v1811_v26  ;;  %v1864_v8 = vadd.f32 %v1840_v47, %v1812_v20  ;;  %v2173_v45 = vmul.f32 %v8082_v53, %v10246_v4  ;;  %v1593_v35 = vsel %vm1560_vm1, %v1591_v61, %v9603_v24  ;;  %v10247_v47 = vld [vmem:[#allocation64_spill] sm:$0xff] }
 0x339   : > { %v2144_v21 = vadd.f32 %v2120_v16, %v2092_v28  ;;  %v2145_v32 = vadd.f32 %v2121_v3, %v2093_v30  ;;  %v2224_v12 = vmul.f32 %v7677_v25, %v10163_v1  ;;  %v1629_v23 = vadd.f32 %v1593_v35, %v1192_v0  ;;  %v10249_v30 = vld [vmem:[#allocation65_spill] sm:$0xff] }
 0x33a   : > { %v1915_v14 = vadd.f32 %v1891_v52, %v1863_v57  ;;  %v1916_v55 = vadd.f32 %v1892_v37, %v1864_v8  ;;  %v2225_v26 = vmul.f32 %v10224_v50, %v10163_v1  ;;  %v2276_v4 = vmul.f32 %v8057_v17, %v10247_v47  ;;  %v10251_v35 = vld [vmem:[#allocation69_spill] sm:$0xff] }
 0x33b   : > { %v2196_v20 = vadd.f32 %v2172_v31, %v2144_v21  ;;  %v2197_v44 = vadd.f32 %v2173_v45, %v2145_v32  ;;  %v2277_v18 = vmul.f32 %v8099_v41, %v10247_v47  ;;  %v2328_v16 = vmul.f32 %v10249_v30, %v7674_v51 }
 0x33c   : > { %v1967_v61 = vadd.f32 %v1943_v54, %v1915_v14  ;;  %v8207_v28 = vadd.f32 %v1944_v6, %v1916_v55  ;;  %v2329_v0 = vmul.f32 %v10249_v30, %v10229_v62  ;;  %v2380_v3 = vmul.f32 %v10203_v46, %v8054_v59  ;;  %v10250_v14 = vld [vmem:[#allocation68_spill] sm:$0xff] }
 0x33d   : > { %v2248_v52 = vadd.f32 %v2224_v12, %v2196_v20  ;;  %v2249_v37 = vadd.f32 %v2225_v26, %v2197_v44  ;;  %v2381_v57 = vmul.f32 %v10203_v46, %v8096_v49  ;;  %v2529_v55 = vmul.f32 %v8034_v56, %v10250_v14 }
 0x33e   : > { %10248 = vst [vmem:[#allocation78_spill] sm:$0xff] %v8207_v28  ;;  %v2028_v8 = vrot.slane %v1967_v61, 3  ;;  %v9604_v31 = vrot.slane %v8207_v28, 3  ;;  %v2530_v54 = vmul.f32 %v10216_v27, %v10250_v14  ;;  %v2557_v12 = vmul.f32 %v8042_v29, %v10251_v35 }
 0x33f   : > { %v2300_v6 = vadd.f32 %v2276_v4, %v2248_v52  ;;  %v2301_v45 = vadd.f32 %v2277_v18, %v2249_v37  ;;  %v2558_v21 = vmul.f32 %v8075_v7, %v10251_v35  ;;  %v2609_v26 = vmul.f32 %v8047_v36, %v10205_v2 }
 0x340   : > { %v2030_v32 = vsel %vm1997_vm2, %v2028_v8, %v9604_v31  ;;  %v2610_v20 = vmul.f32 %v8082_v53, %v10205_v2  ;;  %v2661_v4 = vmul.f32 %v7677_v25, %v9906_v40  ;;  %v2581_v52 = vadd.f32 %v2557_v12, %v2529_v55 }
 0x341   : > { %v2066_v18 = vadd.f32 %v2030_v32, %v1629_v23  ;;  %v2352_v44 = vadd.f32 %v2328_v16, %v2300_v6  ;;  %v2353_v61 = vadd.f32 %v2329_v0, %v2301_v45  ;;  %v2582_v37 = vadd.f32 %v2558_v21, %v2530_v54 }
 0x342   : > { %v2662_v24 = vmul.f32 %v10224_v50, %v9906_v40  ;;  %v2713_v8 = vmul.f32 %v8057_v17, %v9907_v63  ;;  %v2714_v31 = vmul.f32 %v8099_v41, %v9907_v63  ;;  %v2633_v2 = vadd.f32 %v2609_v26, %v2581_v52 }
 0x343   : > { %v2404_v28 = vadd.f32 %v2380_v3, %v2352_v44  ;;  %v8241_v35 = vadd.f32 %v2381_v57, %v2353_v61  ;;  %v2765_v23 = vmul.f32 %v5922_v5, %v7674_v51  ;;  %v2634_v16 = vadd.f32 %v2610_v20, %v2582_v37 }
 0x344   : > { %v2766_v0 = vmul.f32 %v5922_v5, %v10229_v62  ;;  %v2817_v55 = vmul.f32 %v5941_v39, %v8054_v59  ;;  %v2818_v54 = vmul.f32 %v5941_v39, %v8096_v49  ;;  %v2685_v3 = vadd.f32 %v2661_v4, %v2633_v2 }
 0x345   : > { %10252 = vst [vmem:[#allocation87_spill] sm:$0xff] %v8241_v35  ;;  %v2465_v6 = vrot.slane %v2404_v28, 4  ;;  %v9608_v45 = vrot.slane %v8241_v35, 4  ;;  %v2966_v57 = vmul.f32 %v8034_v56, %v5945_v43  ;;  %v2686_v12 = vadd.f32 %v2662_v24, %v2634_v16 }
 0x346   : > { %v2967_v21 = vmul.f32 %v10216_v27, %v5945_v43  ;;  %v2994_v32 = vmul.f32 %v8042_v29, %v5952_v19  ;;  %v2995_v26 = vmul.f32 %v8075_v7, %v5952_v19  ;;  %v2737_v20 = vadd.f32 %v2713_v8, %v2685_v3 }
 0x347   : > { %v2467_v28 = vsel %vm2434_vm3, %v2465_v6, %v9608_v45  ;;  %v3046_v2 = vmul.f32 %v8047_v36, %v5956_v58  ;;  %v3047_v56 = vmul.f32 %v8082_v53, %v5956_v58  ;;  %v2738_v4 = vadd.f32 %v2714_v31, %v2686_v12 }
 0x348   : > { %v2503_v24 = vadd.f32 %v2467_v28, %v2066_v18  ;;  %v3018_v44 = vadd.f32 %v2994_v32, %v2966_v57  ;;  %v3019_v61 = vadd.f32 %v2995_v26, %v2967_v21  ;;  %v2789_v52 = vadd.f32 %v2765_v23, %v2737_v20  ;;  %v10254_v26 = vld [vmem:[#allocation35_spill] sm:$0xff] }
 0x349   : > { %v3098_v37 = vmul.f32 %v7677_v25, %v5960_v10  ;;  %v3099_v16 = vmul.f32 %v10224_v50, %v5960_v10  ;;  %v3150_v8 = vmul.f32 %v8057_v17, %v5986_v48  ;;  %v2790_v6 = vadd.f32 %v2766_v0, %v2738_v4 }
 0x34a   : > { %v3070_v3 = vadd.f32 %v3046_v2, %v3018_v44  ;;  %v3071_v45 = vadd.f32 %v3047_v56, %v3019_v61  ;;  %v3151_v35 = vmul.f32 %v8099_v41, %v5986_v48  ;;  %v2841_v18 = vadd.f32 %v2817_v55, %v2789_v52  ;;  %v10255_v2 = vld [vmem:[#allocation36_spill] sm:$0xff]  ;;  %v10256_v44 = vld [vmem:[#allocation38_spill] sm:$0xff] }
 0x34b   : > { %v3202_v31 = vmul.f32 %v5990_v9, %v7674_v51  ;;  %v3203_v23 = vmul.f32 %v5990_v9, %v10229_v62  ;;  %v3254_v25 = vmul.f32 %v5994_v13, %v8054_v59  ;;  %v8281_v57 = vadd.f32 %v2818_v54, %v2790_v6 }
 0x34c   : > { %v3122_v12 = vadd.f32 %v3098_v37, %v3070_v3  ;;  %v3123_v21 = vadd.f32 %v3099_v16, %v3071_v45  ;;  %v3255_v0 = vmul.f32 %v5994_v13, %v8096_v49  ;;  %v2902_v32 = vrot.slane %v2841_v18, 5  ;;  %v10258_v37 = vld [vmem:[#allocation40_spill] sm:$0xff]  ;;  %v8304_v3 = vld [vmem:[%s5550_s25 + $0x130] sm:$0x3f] }
 0x34d   : > { %10253 = vst [vmem:[#allocation30_spill] sm:$0xff] %v8281_v57  ;;  %v540_v55 = vmul.f32 %v10216_v27, %v10086_v34  ;;  %v560_v51 = vmul.f32 %v8075_v7, %v10087_v11  ;;  %v596_v28 = vmul.f32 %v8082_v53, %v10254_v26  ;;  %v9617_v54 = vrot.slane %v8281_v57, 5  ;;  %v10257_v27 = vld [vmem:[#allocation39_spill] sm:$0xff]  ;;  %10259 = vst [vmem:[#allocation72_spill] sm:$0xff] %v8304_v3 }
 0x34e   : > { %v3174_v20 = vadd.f32 %v3150_v8, %v3122_v12  ;;  %v3175_v45 = vadd.f32 %v3151_v35, %v3123_v21  ;;  %v632_v56 = vmul.f32 %v10224_v50, %v10255_v2  ;;  %v668_v61 = vmul.f32 %v8099_v41, %v10256_v44  ;;  %v8307_v50 = vld [vmem:[%s5550_s25 + $0xa0] sm:$0x3f]  ;;  %v10260_v18 = vld [vmem:[#allocation31_spill] sm:$0xff] }
 0x34f   : > { %v576_v4 = vadd.f32 %v560_v51, %v540_v55  ;;  %v704_v52 = vmul.f32 %v10257_v27, %v10229_v62  ;;  %v740_v16 = vmul.f32 %v10258_v37, %v8096_v49  ;;  %v2904_v8 = vsel %vm2871_vm4, %v2902_v32, %v9617_v54  ;;  %v10261_v62 = vld [vmem:[#allocation37_spill] sm:$0xff]  ;;  %v10262_v51 = vld [vmem:[#allocation88_spill] sm:$0xff]  ;;  %v8314_v53 = vld [vmem:[%s5550_s25 + $0xd0] sm:$0x3f] }
 0x350   : > { %v3226_v6 = vadd.f32 %v3202_v31, %v3174_v20  ;;  %v3227_v35 = vadd.f32 %v3203_v23, %v3175_v45  ;;  %v783_v12 = vmul.f32 %v8307_v50, %v10260_v18  ;;  %v2940_v21 = vadd.f32 %v2904_v8, %v2503_v24  ;;  %10263 = vst [vmem:[#allocation84_spill] sm:$0xff] %v8314_v53  ;;  %v10264_v49 = vld [vmem:[#allocation41_spill] sm:$0xff]  ;;  %v10265_v23 = vld [vmem:[#allocation42_spill] sm:$0xff]  ;;  %v10268_v7 = vld [vmem:[#allocation43_spill] sm:$0xff] }
 0x351   : > { %v612_v55 = vadd.f32 %v596_v28, %v576_v4  ;;  %v811_v41 = vmul.f32 %v10262_v51, %v10261_v62  ;;  %v863_v57 = vmul.f32 %v8314_v53, %v10264_v49  ;;  %v10266_v20 = vld [vmem:[#allocation66_spill] sm:$0xff]  ;;  %v8323_v54 = vld [vmem:[%s5550_s25 + $0x100] sm:$0x3f] }
 0x352   : > { %v3278_v32 = vadd.f32 %v3254_v25, %v3226_v6  ;;  %v8318_v31 = vadd.f32 %v3255_v0, %v3227_v35  ;;  %v915_v45 = vmul.f32 %v10266_v20, %v10265_v23  ;;  %10267 = vst [vmem:[#allocation34_spill] sm:$0xff] %v8323_v54  ;;  %v967_v24 = vmul.f32 %v8323_v54, %v10268_v7  ;;  %v10269_v8 = vld [vmem:[#allocation58_spill] sm:$0xff]  ;;  %v10270_v62 = vld [vmem:[#allocation44_spill] sm:$0xff]  ;;  %v10271_v37 = vld [vmem:[#allocation45_spill] sm:$0xff] }
 0x353   : > { %v648_v28 = vadd.f32 %v632_v56, %v612_v55  ;;  %v835_v4 = vadd.f32 %v811_v41, %v783_v12  ;;  %v1019_v18 = vmul.f32 %v10270_v62, %v10269_v8  ;;  %v1071_v27 = vmul.f32 %v10271_v37, %v8304_v3  ;;  %v10272_v0 = vld [vmem:[#allocation32_spill] sm:$0xff]  ;;  %v10273_v7 = vld [vmem:[#allocation47_spill] sm:$0xff] }
 0x354   : > { %v3339_v49 = vrot.slane %v3278_v32, 6  ;;  %v9624_v25 = vrot.slane %v8318_v31, 6  ;;  %v1220_v6 = vmul.f32 %v8307_v50, %v10272_v0  ;;  %v1248_v35 = vmul.f32 %v10262_v51, %v10233_v60 }
 0x355   : > { %v684_v23 = vadd.f32 %v668_v61, %v648_v28  ;;  %v887_v59 = vadd.f32 %v863_v57, %v835_v4  ;;  %v1300_v41 = vmul.f32 %v8314_v53, %v10273_v7  ;;  %v1352_v56 = vmul.f32 %v10266_v20, %v10235_v42  ;;  %v10274_v7 = vld [vmem:[#allocation33_spill] sm:$0xff] }
 0x356   : > { %v3341_v12 = vsel %vm3308_vm5, %v3339_v49, %v9624_v25  ;;  %v1272_v55 = vadd.f32 %v1248_v35, %v1220_v6  ;;  %v1404_v32 = vmul.f32 %v8323_v54, %v10237_v22  ;;  %v1456_v0 = vmul.f32 %v10239_v33, %v10269_v8  ;;  %v10275_v6 = vld [vmem:[#allocation54_spill] sm:$0xff]  ;;  %v8355_v25 = vld [vmem:[#allocation7] ss:$0 sm:$0xff] }
 0x357   : > { %v3377_v60 = vadd.f32 %v3341_v12, %v2940_v21  ;;  %v720_v61 = vadd.f32 %v704_v52, %v684_v23  ;;  %v939_v57 = vadd.f32 %v915_v45, %v887_v59  ;;  %v1508_v28 = vmul.f32 %v10191_v15, %v8304_v3  ;;  %10276 = vst [vmem:[#allocation35_spill] sm:$0xff] %v8355_v25  ;;  %v10278_v21 = vld [vmem:[#allocation55_spill] sm:$0xff]  ;;  %v10279_v12 = vld [vmem:[#allocation56_spill] sm:$0xff] }
 0x358   : > { %v1324_v4 = vadd.f32 %v1300_v41, %v1272_v55  ;;  %v1657_v42 = vmul.f32 %v8307_v50, %v10274_v7  ;;  %v1685_v49 = vmul.f32 %v10262_v51, %v10193_v38  ;;  %v1737_v35 = vmul.f32 %v8314_v53, %v10275_v6  ;;  %v10280_v38 = vld [vmem:[#allocation57_spill] sm:$0xff] }
 0x359   : > { %v8358_v33 = vadd.f32 %v8355_v25, %v3377_v60  ;;  %v756_v52 = vadd.f32 %v740_v16, %v720_v61  ;;  %v991_v59 = vadd.f32 %v967_v24, %v939_v57  ;;  %v1789_v23 = vmul.f32 %v10266_v20, %v10278_v21  ;;  %v10281_v60 = vld [vmem:[#allocation59_spill] sm:$0xff]  ;;  %v10282_v16 = vld [vmem:[#allocation60_spill] sm:$0xff] }
 0x35a   : > { %v1376_v45 = vadd.f32 %v1352_v56, %v1324_v4  ;;  %v1709_v41 = vadd.f32 %v1685_v49, %v1657_v42  ;;  %v1841_v55 = vmul.f32 %v8323_v54, %v10279_v12  ;;  %v1893_v7 = vmul.f32 %v10280_v38, %v10269_v8  ;;  %v10283_v42 = vld [vmem:[#allocation61_spill] sm:$0xff]  ;;  %v10284_v4 = vld [vmem:[#allocation62_spill] sm:$0xff] }
 0x35b   : > { %10277 = vst [vmem:[#allocation36_spill] sm:$0xff] %v8358_v33  ;;  %v3441_v6 = vsel %vm3404_vm6, %v8358_v33, 0.0  ;;  %v1043_v15 = vadd.f32 %v1019_v18, %v991_v59  ;;  %v1945_v22 = vmul.f32 %v10281_v60, %v8304_v3  ;;  %v2094_v24 = vmul.f32 %v8307_v50, %v10282_v16 }
 0x35c   : > { %3442 = vadd.xlane.f32.xlu0 %v3441_v6  ;;  %v1428_v61 = vadd.f32 %v1404_v32, %v1376_v45  ;;  %v1761_v56 = vadd.f32 %v1737_v35, %v1709_v41  ;;  %v2122_v57 = vmul.f32 %v10262_v51, %v10283_v42  ;;  %v2174_v49 = vmul.f32 %v8314_v53, %v10284_v4 }
 0x35d   : > { %v1095_v38 = vadd.f32 %v1071_v27, %v1043_v15  ;;  %v2226_v33 = vmul.f32 %v10266_v20, %v10163_v1  ;;  %v2278_v18 = vmul.f32 %v8323_v54, %v10247_v47  ;;  %v2330_v59 = vmul.f32 %v10249_v30, %v10269_v8  ;;  %v10285_v15 = vld [vmem:[#allocation69_spill] sm:$0xff]  ;;  %v10286_v1 = vld [vmem:[#allocation70_spill] sm:$0xff] }
 0x35e   : > { %v1480_v16 = vadd.f32 %v1456_v0, %v1428_v61  ;;  %v1813_v6 = vadd.f32 %v1789_v23, %v1761_v56  ;;  %v2146_v32 = vadd.f32 %v2122_v57, %v2094_v24  ;;  %v2382_v35 = vmul.f32 %v10203_v46, %v8304_v3  ;;  %v10287_v23 = vld [vmem:[#allocation85_spill] sm:$0xff] }
 0x35f   : > { %v1157_v45 = vrot.slane %v1095_v38, 1  ;;  %v2531_v41 = vmul.f32 %v8307_v50, %v10250_v14  ;;  %v2559_v27 = vmul.f32 %v10262_v51, %v10285_v15  ;;  %v2611_v4 = vmul.f32 %v8314_v53, %v10286_v1 }
 0x360   : > { %v1532_v47 = vadd.f32 %v1508_v28, %v1480_v16  ;;  %v1865_v42 = vadd.f32 %v1841_v55, %v1813_v6  ;;  %v2198_v60 = vadd.f32 %v2174_v49, %v2146_v32  ;;  %v2663_v0 = vmul.f32 %v10266_v20, %v9906_v40  ;;  %v10289_v32 = vld [vmem:[#allocation51_spill] sm:$0xff] }
 0x361   : > { %v10288_v24 = vrot.slane %v10287_v23, 1  ;;  %v2583_v38 = vadd.f32 %v2559_v27, %v2531_v41  ;;  %v2715_v56 = vmul.f32 %v8323_v54, %v9907_v63  ;;  %v2767_v57 = vmul.f32 %v5922_v5, %v10269_v8 }
 0x362   : > { %v1594_v14 = vrot.slane %v1532_v47, 2  ;;  %v1917_v1 = vadd.f32 %v1893_v7, %v1865_v42  ;;  %v2250_v28 = vadd.f32 %v2226_v33, %v2198_v60  ;;  %v2819_v16 = vmul.f32 %v5941_v39, %v8304_v3 }
 0x363   : > { %v1158_v61 = vsel %vm1123_vm0, %v10288_v24, %v1157_v45  ;;  %v2635_v55 = vadd.f32 %v2611_v4, %v2583_v38  ;;  %v2968_v49 = vmul.f32 %v8307_v50, %v5945_v43  ;;  %v2996_v6 = vmul.f32 %v10262_v51, %v5952_v19 }
 0x364   : > { %v1193_v15 = vadd.f32 %v1158_v61, %v756_v52  ;;  %v10290_v45 = vrot.slane %v10289_v32, 2  ;;  %v1969_v27 = vadd.f32 %v1945_v22, %v1917_v1  ;;  %v2302_v23 = vadd.f32 %v2278_v18, %v2250_v28  ;;  %v8426_v61 = vld [vmem:[%s5550_s25 + $0xd8] sm:$0xff] }
 0x365   : > { %v3048_v7 = vmul.f32 %v8314_v53, %v5956_v58  ;;  %v2687_v47 = vadd.f32 %v2663_v0, %v2635_v55  ;;  %v3020_v52 = vadd.f32 %v2996_v6, %v2968_v49  ;;  %v3100_v60 = vmul.f32 %v10266_v20, %v5960_v10  ;;  %v8433_v6 = vld [vmem:[%s5550_s25 + $0x138] sm:$0xff] }
 0x366   : > { %v1595_v41 = vsel %vm1560_vm1, %v10290_v45, %v1594_v14  ;;  %v2031_v50 = vrot.slane %v1969_v27, 3  ;;  %v2354_v42 = vadd.f32 %v2330_v59, %v2302_v23  ;;  %v3152_v51 = vmul.f32 %v8323_v54, %v5986_v48  ;;  %v8436_v45 = vld [vmem:[%s5550_s25 + $0x108] sm:$0xff]  ;;  %v10294_v27 = vld [vmem:[#allocation39_spill] sm:$0xff] }
 0x367   : > { %v1630_v33 = vadd.f32 %v1595_v41, %v1193_v15  ;;  %v3204_v1 = vmul.f32 %v5990_v9, %v10269_v8  ;;  %v2739_v22 = vadd.f32 %v2715_v56, %v2687_v47  ;;  %v3072_v14 = vadd.f32 %v3048_v7, %v3020_v52  ;;  %v10291_v15 = vld [vmem:[#allocation78_spill] sm:$0xff]  ;;  %v10293_v41 = vld [vmem:[#allocation89_spill] sm:$0xff]  ;;  %v10296_v52 = vld [vmem:[#allocation31_spill] sm:$0xff] }
 0x368   : > { %v3256_v4 = vmul.f32 %v5994_v13, %v8304_v3  ;;  %v541_v18 = vmul.f32 %v8042_v29, %v10086_v34  ;;  %v10292_v20 = vrot.slane %v10291_v15, 3  ;;  %v2406_v0 = vadd.f32 %v2382_v35, %v2354_v42  ;;  %v10302_v54 = vld [vmem:[#allocation41_spill] sm:$0xff] }
 0x369   : > { %v561_v24 = vmul.f32 %v8047_v36, %v10087_v11  ;;  %v597_v8 = vmul.f32 %v8426_v61, %v10254_v26  ;;  %v2791_v56 = vadd.f32 %v2767_v57, %v2739_v22  ;;  %v3124_v28 = vadd.f32 %v3100_v60, %v3072_v14  ;;  %v10295_v57 = vld [vmem:[#allocation40_spill] sm:$0xff] }
 0x36a   : > { %v2032_v59 = vsel %vm1997_vm2, %v10292_v20, %v2031_v50  ;;  %v633_v55 = vmul.f32 %v8057_v17, %v10255_v2  ;;  %v2468_v49 = vrot.slane %v2406_v0, 4  ;;  %v669_v35 = vmul.f32 %v8436_v45, %v10256_v44  ;;  %v10297_v50 = vld [vmem:[#allocation87_spill] sm:$0xff]  ;;  %v10300_v20 = vld [vmem:[#allocation37_spill] sm:$0xff] }
 0x36b   : > { %v2067_v38 = vadd.f32 %v2032_v59, %v1630_v33  ;;  %v577_v32 = vadd.f32 %v561_v24, %v541_v18  ;;  %v705_v23 = vmul.f32 %v10294_v27, %v10293_v41  ;;  %v2843_v7 = vadd.f32 %v2819_v16, %v2791_v56  ;;  %v10299_v18 = vld [vmem:[#allocation76_spill] sm:$0xff]  ;;  %v10301_v24 = vld [vmem:[#allocation77_spill] sm:$0xff] }
 0x36c   : > { %v3176_v33 = vadd.f32 %v3152_v51, %v3124_v28  ;;  %v741_v47 = vmul.f32 %v10295_v57, %v8433_v6  ;;  %v784_v60 = vmul.f32 %v8042_v29, %v10296_v52  ;;  %v10298_v42 = vrot.slane %v10297_v50, 4  ;;  %v10303_v50 = vld [vmem:[#allocation30_spill] sm:$0xff]  ;;  %v10306_v57 = vld [vmem:[#allocation75_spill] sm:$0xff] }
 0x36d   : > { %v613_v14 = vadd.f32 %v597_v8, %v577_v32  ;;  %v785_v15 = vmul.f32 %v10299_v18, %v10296_v52  ;;  %v812_v59 = vmul.f32 %v8047_v36, %v10300_v20  ;;  %v2905_v51 = vrot.slane %v2843_v7, 5  ;;  %v8458_v8 = vld [vmem:[%s5550_s25 + $0xe0] sm:$0xff]  ;;  %v8475_v52 = vld [vmem:[%s5550_s25 + $0x110] sm:$0xff] }
 0x36e   : > { %v2469_v22 = vsel %vm2434_vm3, %v10298_v42, %v2468_v49  ;;  %v3228_v0 = vadd.f32 %v3204_v1, %v3176_v33  ;;  %v813_v56 = vmul.f32 %v10301_v24, %v10300_v20  ;;  %v864_v49 = vmul.f32 %v8426_v61, %v10302_v54  ;;  %v10305_v33 = vld [vmem:[#allocation42_spill] sm:$0xff] }
 0x36f   : > { %v2504_v16 = vadd.f32 %v2469_v22, %v2067_v38  ;;  %v649_v28 = vadd.f32 %v633_v55, %v613_v14  ;;  %v836_v3 = vadd.f32 %v812_v59, %v784_v60  ;;  %v865_v32 = vmul.f32 %v8458_v8, %v10302_v54  ;;  %v8468_v60 = vld [vmem:[%s5550_s25 + $0x140] sm:$0xff]  ;;  %v10307_v54 = vld [vmem:[#allocation43_spill] sm:$0xff] }
 0x370   : > { %v10304_v42 = vrot.slane %v10303_v50, 5  ;;  %v3280_v7 = vadd.f32 %v3256_v4, %v3228_v0  ;;  %v837_v1 = vadd.f32 %v813_v56, %v785_v15  ;;  %v916_v22 = vmul.f32 %v8057_v17, %v10305_v33 }
 0x371   : > { %v685_v14 = vadd.f32 %v669_v35, %v649_v28  ;;  %v888_v59 = vadd.f32 %v864_v49, %v836_v3  ;;  %v917_v27 = vmul.f32 %v10306_v57, %v10305_v33  ;;  %v968_v50 = vmul.f32 %v8436_v45, %v10307_v54  ;;  %v10308_v35 = vld [vmem:[#allocation92_spill] sm:$0xff] }
 0x372   : > { %v2906_v38 = vsel %vm2871_vm4, %v10304_v42, %v2905_v51  ;;  %v3342_v53 = vrot.slane %v3280_v7, 6  ;;  %v889_v20 = vadd.f32 %v865_v32, %v837_v1  ;;  %v969_v4 = vmul.f32 %v8475_v52, %v10307_v54  ;;  %v10310_v7 = vld [vmem:[#allocation32_spill] sm:$0xff] }
 0x373   : > { %v2941_v55 = vadd.f32 %v2906_v38, %v2504_v16  ;;  %v721_v15 = vadd.f32 %v705_v23, %v685_v14  ;;  %v940_v51 = vadd.f32 %v916_v22, %v888_v59  ;;  %v1020_v16 = vmul.f32 %v10270_v62, %v10293_v41 }
 0x374   : > { %v1021_v3 = vmul.f32 %v10270_v62, %v10308_v35  ;;  %v10309_v0 = vrot.slane %v8318_v31, 6  ;;  %v941_v28 = vadd.f32 %v917_v27, %v889_v20  ;;  %v1072_v49 = vmul.f32 %v10271_v37, %v8433_v6  ;;  %v10311_v31 = vld [vmem:[#allocation46_spill] sm:$0xff] }
 0x375   : > { %v1073_v32 = vmul.f32 %v10271_v37, %v8468_v60  ;;  %v757_v23 = vadd.f32 %v741_v47, %v721_v15  ;;  %v992_v38 = vadd.f32 %v968_v50, %v940_v51  ;;  %v1221_v1 = vmul.f32 %v8042_v29, %v10310_v7 }
 0x376   : > { %v3343_v56 = vsel %vm3308_vm5, %v10309_v0, %v3342_v53  ;;  %v993_v22 = vadd.f32 %v969_v4, %v941_v28  ;;  %v1222_v14 = vmul.f32 %v10299_v18, %v10310_v7  ;;  %v1249_v53 = vmul.f32 %v8047_v36, %v10311_v31  ;;  %v10314_v0 = vld [vmem:[#allocation48_spill] sm:$0xff] }
 0x377   : > { %v3378_v42 = vadd.f32 %v3343_v56, %v2941_v55  ;;  %v1250_v27 = vmul.f32 %v10301_v24, %v10311_v31  ;;  %v1044_v59 = vadd.f32 %v1020_v16, %v992_v38  ;;  %v10313_v55 = vld [vmem:[#allocation47_spill] sm:$0xff]  ;;  %v1353_v56 = vmul.f32 %v8057_v17, %v10314_v0  ;;  %v10315_v16 = vld [vmem:[#allocation49_spill] sm:$0xff] }
 0x378   : > { %v1301_v47 = vmul.f32 %v8426_v61, %v10313_v55  ;;  %v1302_v50 = vmul.f32 %v8458_v8, %v10313_v55  ;;  %v1045_v4 = vadd.f32 %v1021_v3, %v993_v22  ;;  %v1273_v15 = vadd.f32 %v1249_v53, %v1221_v1 }
 0x379   : > { %v8499_v20 = vadd.f32 %v8355_v25, %v3378_v42  ;;  %v1274_v51 = vadd.f32 %v1250_v27, %v1222_v14  ;;  %v1096_v37 = vadd.f32 %v1072_v49, %v1044_v59  ;;  %v1354_v42 = vmul.f32 %v10306_v57, %v10314_v0  ;;  %v10317_v14 = vld [vmem:[#allocation50_spill] sm:$0xff]  ;;  %v10318_v27 = vld [vmem:[#allocation52_spill] sm:$0xff] }
 0x37a   : > { %v1405_v38 = vmul.f32 %v8436_v45, %v10315_v16  ;;  %v8513_v25 = vadd.f32 %v1073_v32, %v1045_v4  ;;  %v1325_v62 = vadd.f32 %v1301_v47, %v1273_v15  ;;  %v1406_v1 = vmul.f32 %v8475_v52, %v10315_v16  ;;  %v10320_v15 = vld [vmem:[#allocation53_spill] sm:$0xff] }
 0x37b   : > { %10312 = vst [vmem:[#allocation38_spill] sm:$0xff] %v8499_v20  ;;  %v3444_v28 = vsel %vm3404_vm6, %v8499_v20, 0.0  ;;  %v1326_v3 = vadd.f32 %v1302_v50, %v1274_v51  ;;  %v1159_v22 = vrot.slane %v1096_v37, 1  ;;  %v1457_v53 = vmul.f32 %v10317_v14, %v10293_v41  ;;  %v10319_v50 = vld [vmem:[#allocation33_spill] sm:$0xff] }
 0x37c   : > { %3445 = vadd.xlane.f32.xlu1 %v3444_v28  ;;  %10316 = vst [vmem:[#allocation88_spill] sm:$0xff] %v8513_v25  ;;  %v1458_v49 = vmul.f32 %v10317_v14, %v10308_v35  ;;  %v1509_v59 = vmul.f32 %v10318_v27, %v8433_v6  ;;  %v9657_v20 = vrot.slane %v8513_v25, 1  ;;  %v1377_v28 = vadd.f32 %v1353_v56, %v1325_v62 }
 0x37d   : > { %v1378_v32 = vadd.f32 %v1354_v42, %v1326_v3  ;;  %v1510_v47 = vmul.f32 %v10318_v27, %v8468_v60  ;;  %v1658_v4 = vmul.f32 %v8042_v29, %v10319_v50  ;;  %v1659_v37 = vmul.f32 %v10299_v18, %v10319_v50  ;;  %v10321_v3 = vld [vmem:[#allocation54_spill] sm:$0xff] }
 0x37e   : > { %v1686_v51 = vmul.f32 %v8047_v36, %v10320_v15  ;;  %v1687_v14 = vmul.f32 %v10301_v24, %v10320_v15  ;;  %v1161_v62 = vsel %vm1123_vm0, %v1159_v22, %v9657_v20  ;;  %v1429_v56 = vadd.f32 %v1405_v38, %v1377_v28  ;;  %v10328_v20 = vld [vmem:[#allocation63_spill] sm:$0xff] }
 0x37f   : > { %v1430_v42 = vadd.f32 %v1406_v1, %v1378_v32  ;;  %v1738_v27 = vmul.f32 %v8426_v61, %v10321_v3  ;;  %v1194_v16 = vadd.f32 %v1161_v62, %v757_v23  ;;  %v1739_v50 = vmul.f32 %v8458_v8, %v10321_v3 }
 0x380   : > { %v1710_v0 = vadd.f32 %v1686_v51, %v1658_v4  ;;  %v1711_v55 = vadd.f32 %v1687_v14, %v1659_v37  ;;  %v1481_v31 = vadd.f32 %v1457_v53, %v1429_v56  ;;  %v1790_v15 = vmul.f32 %v8057_v17, %v10278_v21  ;;  %v10323_v53 = vld [vmem:[#allocation57_spill] sm:$0xff] }
 0x381   : > { %v1482_v7 = vadd.f32 %v1458_v49, %v1430_v42  ;;  %v1791_v25 = vmul.f32 %v10306_v57, %v10278_v21  ;;  %v1842_v1 = vmul.f32 %v8436_v45, %v10279_v12  ;;  %v1843_v23 = vmul.f32 %v8475_v52, %v10279_v12  ;;  %v10326_v56 = vld [vmem:[#allocation61_spill] sm:$0xff] }
 0x382   : > { %v1762_v22 = vadd.f32 %v1738_v27, %v1710_v0  ;;  %v1763_v38 = vadd.f32 %v1739_v50, %v1711_v55  ;;  %v1533_v14 = vadd.f32 %v1509_v59, %v1481_v31  ;;  %v1894_v49 = vmul.f32 %v10323_v53, %v10293_v41  ;;  %v10324_v0 = vld [vmem:[#allocation59_spill] sm:$0xff]  ;;  %v10325_v31 = vld [vmem:[#allocation60_spill] sm:$0xff] }
 0x383   : > { %v8549_v28 = vadd.f32 %v1510_v47, %v1482_v7  ;;  %v1895_v32 = vmul.f32 %v10323_v53, %v10308_v35  ;;  %v1946_v55 = vmul.f32 %v10324_v0, %v8433_v6  ;;  %v1947_v27 = vmul.f32 %v10324_v0, %v8468_v60 }
 0x384   : > { %v1814_v4 = vadd.f32 %v1790_v15, %v1762_v22  ;;  %v1815_v37 = vadd.f32 %v1791_v25, %v1763_v38  ;;  %v1596_v50 = vrot.slane %v1533_v14, 2  ;;  %v2095_v7 = vmul.f32 %v8042_v29, %v10325_v31  ;;  %v10327_v22 = vld [vmem:[#allocation62_spill] sm:$0xff] }
 0x385   : > { %10322 = vst [vmem:[#allocation66_spill] sm:$0xff] %v8549_v28  ;;  %v9662_v51 = vrot.slane %v8549_v28, 2  ;;  %v2096_v59 = vmul.f32 %v10299_v18, %v10325_v31  ;;  %v2123_v25 = vmul.f32 %v8047_v36, %v10326_v56  ;;  %v2124_v15 = vmul.f32 %v10301_v24, %v10326_v56  ;;  %v10329_v28 = vld [vmem:[#allocation64_spill] sm:$0xff] }
 0x386   : > { %v1866_v47 = vadd.f32 %v1842_v1, %v1814_v4  ;;  %v1867_v62 = vadd.f32 %v1843_v23, %v1815_v37  ;;  %v2175_v38 = vmul.f32 %v8426_v61, %v10327_v22  ;;  %v2176_v14 = vmul.f32 %v8458_v8, %v10327_v22 }
 0x387   : > { %v1598_v42 = vsel %vm1560_vm1, %v1596_v50, %v9662_v51  ;;  %v2227_v1 = vmul.f32 %v8057_v17, %v10328_v20  ;;  %v2147_v0 = vadd.f32 %v2123_v25, %v2095_v7  ;;  %v2148_v53 = vadd.f32 %v2124_v15, %v2096_v59  ;;  %v10332_v15 = vld [vmem:[#allocation69_spill] sm:$0xff] }
 0x388   : > { %v1631_v23 = vadd.f32 %v1598_v42, %v1194_v16  ;;  %v1918_v4 = vadd.f32 %v1894_v49, %v1866_v47  ;;  %v1919_v37 = vadd.f32 %v1895_v32, %v1867_v62  ;;  %v2228_v56 = vmul.f32 %v10306_v57, %v10328_v20 }
 0x389   : > { %v2279_v50 = vmul.f32 %v8436_v45, %v10329_v28  ;;  %v2280_v51 = vmul.f32 %v8475_v52, %v10329_v28  ;;  %v2199_v22 = vadd.f32 %v2175_v38, %v2147_v0  ;;  %v2331_v16 = vmul.f32 %v10249_v30, %v10293_v41 }
 0x38a   : > { %v1970_v31 = vadd.f32 %v1946_v55, %v1918_v4  ;;  %v8583_v12 = vadd.f32 %v1947_v27, %v1919_v37  ;;  %v2200_v49 = vadd.f32 %v2176_v14, %v2148_v53  ;;  %v2332_v32 = vmul.f32 %v10249_v30, %v10308_v35  ;;  %v10331_v27 = vld [vmem:[#allocation68_spill] sm:$0xff]  ;;  %v10333_v4 = vld [vmem:[#allocation70_spill] sm:$0xff] }
 0x38b   : > { %v2383_v7 = vmul.f32 %v10203_v46, %v8433_v6  ;;  %v2384_v59 = vmul.f32 %v10203_v46, %v8468_v60  ;;  %v2251_v55 = vadd.f32 %v2227_v1, %v2199_v22  ;;  %v2532_v0 = vmul.f32 %v8042_v29, %v10331_v27 }
 0x38c   : > { %10330 = vst [vmem:[#allocation58_spill] sm:$0xff] %v8583_v12  ;;  %v2033_v47 = vrot.slane %v1970_v31, 3  ;;  %v9670_v62 = vrot.slane %v8583_v12, 3  ;;  %v2252_v25 = vadd.f32 %v2228_v56, %v2200_v49  ;;  %v2533_v53 = vmul.f32 %v10299_v18, %v10331_v27 }
 0x38d   : > { %v2560_v42 = vmul.f32 %v8047_v36, %v10332_v15  ;;  %v2561_v38 = vmul.f32 %v10301_v24, %v10332_v15  ;;  %v2303_v14 = vadd.f32 %v2279_v50, %v2251_v55  ;;  %v2612_v22 = vmul.f32 %v8426_v61, %v10333_v4 }
 0x38e   : > { %v2035_v31 = vsel %vm1997_vm2, %v2033_v47, %v9670_v62  ;;  %v2613_v56 = vmul.f32 %v8458_v8, %v10333_v4  ;;  %v2304_v37 = vadd.f32 %v2280_v51, %v2252_v25  ;;  %v2664_v27 = vmul.f32 %v8057_v17, %v9906_v40 }
 0x38f   : > { %v2068_v1 = vadd.f32 %v2035_v31, %v1631_v23  ;;  %v2584_v49 = vadd.f32 %v2560_v42, %v2532_v0  ;;  %v2585_v46 = vadd.f32 %v2561_v38, %v2533_v53  ;;  %v2355_v30 = vadd.f32 %v2331_v16, %v2303_v14 }
 0x390   : > { %v2665_v12 = vmul.f32 %v10306_v57, %v9906_v40  ;;  %v2716_v50 = vmul.f32 %v8436_v45, %v9907_v63  ;;  %v2356_v47 = vadd.f32 %v2332_v32, %v2304_v37  ;;  %v2717_v4 = vmul.f32 %v8475_v52, %v9907_v63 }
 0x391   : > { %v2636_v55 = vadd.f32 %v2612_v22, %v2584_v49  ;;  %v2637_v62 = vadd.f32 %v2613_v56, %v2585_v46  ;;  %v2407_v23 = vadd.f32 %v2383_v7, %v2355_v30  ;;  %v2768_v51 = vmul.f32 %v5922_v5, %v10293_v41 }
 0x392   : > { %v2769_v16 = vmul.f32 %v5922_v5, %v10308_v35  ;;  %v2820_v0 = vmul.f32 %v5941_v39, %v8433_v6  ;;  %v8623_v25 = vadd.f32 %v2384_v59, %v2356_v47  ;;  %v2821_v46 = vmul.f32 %v5941_v39, %v8468_v60 }
 0x393   : > { %v2688_v53 = vadd.f32 %v2664_v27, %v2636_v55  ;;  %v2689_v42 = vadd.f32 %v2665_v12, %v2637_v62  ;;  %v2470_v32 = vrot.slane %v2407_v23, 4  ;;  %v2969_v30 = vmul.f32 %v8042_v29, %v5945_v43 }
 0x394   : > { %v2970_v7 = vmul.f32 %v10299_v18, %v5945_v43  ;;  %v2997_v38 = vmul.f32 %v8047_v36, %v5952_v19  ;;  %v2471_v31 = vrot.slane %v8623_v25, 4  ;;  %v2998_v12 = vmul.f32 %v10301_v24, %v5952_v19 }
 0x395   : > { %v2740_v14 = vadd.f32 %v2716_v50, %v2688_v53  ;;  %v2741_v59 = vadd.f32 %v2717_v4, %v2689_v42  ;;  %v3049_v27 = vmul.f32 %v8426_v61, %v5956_v58  ;;  %v3050_v29 = vmul.f32 %v8458_v8, %v5956_v58 }
 0x396   : > { %v3021_v62 = vadd.f32 %v2997_v38, %v2969_v30  ;;  %v3101_v22 = vmul.f32 %v8057_v17, %v5960_v10  ;;  %v2472_v36 = vsel %vm2434_vm3, %v2470_v32, %v2471_v31  ;;  %v3022_v4 = vadd.f32 %v2998_v12, %v2970_v7 }
 0x397   : > { %v2792_v56 = vadd.f32 %v2768_v51, %v2740_v14  ;;  %v2793_v37 = vadd.f32 %v2769_v16, %v2741_v59  ;;  %v3102_v50 = vmul.f32 %v10306_v57, %v5960_v10  ;;  %v3153_v61 = vmul.f32 %v8436_v45, %v5986_v48 }
 0x398   : > { %v3073_v49 = vadd.f32 %v3049_v27, %v3021_v62  ;;  %v3074_v23 = vadd.f32 %v3050_v29, %v3022_v4  ;;  %v3154_v17 = vmul.f32 %v8475_v52, %v5986_v48  ;;  %v2505_v53 = vadd.f32 %v2472_v36, %v2068_v1  ;;  %v10335_v27 = vld [vmem:[#allocation37_spill] sm:$0xff]  ;;  %v10336_v29 = vld [vmem:[#allocation84_spill] sm:$0xff] }
 0x399   : > { %v2844_v47 = vadd.f32 %v2820_v0, %v2792_v56  ;;  %v8649_v55 = vadd.f32 %v2821_v46, %v2793_v37  ;;  %v3205_v51 = vmul.f32 %v5990_v9, %v10293_v41  ;;  %v3206_v16 = vmul.f32 %v5990_v9, %v10308_v35  ;;  %v10337_v37 = vld [vmem:[#allocation39_spill] sm:$0xff] }
 0x39a   : > { %v3125_v42 = vadd.f32 %v3101_v22, %v3073_v49  ;;  %v3126_v45 = vadd.f32 %v3102_v50, %v3074_v23  ;;  %v3257_v0 = vmul.f32 %v5994_v13, %v8433_v6  ;;  %v542_v7 = vmul.f32 %v10299_v18, %v10086_v34  ;;  %v8694_v50 = vld [vmem:[%s5550_s25 + $0x148] sm:$0x3f] }
 0x39b   : > { %v2907_v32 = vrot.slane %v2844_v47, 5  ;;  %v2908_v30 = vrot.slane %v8649_v55, 5  ;;  %v562_v1 = vmul.f32 %v10301_v24, %v10087_v11  ;;  %v598_v41 = vmul.f32 %v8458_v8, %v10254_v26  ;;  %v8676_v24 = vld [vmem:[%s5550_s25 + $0xb8] sm:$0x3f] }
 0x39c   : > { %v3177_v46 = vadd.f32 %v3153_v61, %v3125_v42  ;;  %v3178_v14 = vadd.f32 %v3154_v17, %v3126_v45  ;;  %v3258_v59 = vmul.f32 %v5994_v13, %v8468_v60  ;;  %v634_v34 = vmul.f32 %v10306_v57, %v10255_v2  ;;  %v10334_v8 = vld [vmem:[#allocation31_spill] sm:$0xff]  ;;  %v8685_v2 = vld [vmem:[%s5550_s25 + $0xe8] sm:$0x3f]  ;;  %v10339_v61 = vld [vmem:[#allocation40_spill] sm:$0xff] }
 0x39d   : > { %v2909_v38 = vsel %vm2871_vm4, %v2907_v32, %v2908_v30  ;;  %v578_v12 = vadd.f32 %v562_v1, %v542_v7  ;;  %v670_v11 = vmul.f32 %v8475_v52, %v10256_v44  ;;  %v786_v62 = vmul.f32 %v8676_v24, %v10334_v8  ;;  %v10338_v57 = vld [vmem:[#allocation41_spill] sm:$0xff]  ;;  %v8689_v52 = vpop.xlane.xlu0 %3406  ;;  %v10340_v17 = vld [vmem:[#allocation34_spill] sm:$0xff]  ;;  %v10341_v32 = vld [vmem:[#allocation32_spill] sm:$0xff] }
 0x39e   : > { %v3229_v6 = vadd.f32 %v3205_v51, %v3177_v46  ;;  %v2942_v18 = vadd.f32 %v2909_v38, %v2505_v53  ;;  %v3230_v26 = vadd.f32 %v3206_v16, %v3178_v14  ;;  %v814_v22 = vmul.f32 %v10336_v29, %v10335_v27  ;;  %v8701_v51 = vld [vmem:[%s5550_s25 + $0x118] sm:$0x3f]  ;;  %v10342_v7 = vld [vmem:[#allocation46_spill] sm:$0xff]  ;;  %v10348_v27 = vld [vmem:[#allocation49_spill] sm:$0xff] }
 0x39f   : > { %v614_v56 = vadd.f32 %v598_v41, %v578_v12  ;;  %v706_v4 = vmul.f32 %v10337_v37, %v10308_v35  ;;  %v866_v44 = vmul.f32 %v8685_v2, %v10338_v57  ;;  %v742_v47 = vmul.f32 %v10339_v61, %v8468_v60  ;;  %v10343_v1 = vld [vmem:[#allocation47_spill] sm:$0xff]  ;;  %v10344_v38 = vld [vmem:[#allocation72_spill] sm:$0xff]  ;;  %v10350_v57 = vld [vmem:[#allocation53_spill] sm:$0xff] }
 0x3a0   : > { %v3281_v36 = vadd.f32 %v3257_v0, %v3229_v6  ;;  %v8691_v49 = vadd.f32 %v3258_v59, %v3230_v26  ;;  %v838_v23 = vadd.f32 %v814_v22, %v786_v62  ;;  %v918_v53 = vmul.f32 %v10340_v17, %v10305_v33  ;;  %v10345_v14 = vld [vmem:[#allocation44_spill] sm:$0xff]  ;;  %v10346_v6 = vld [vmem:[#allocation45_spill] sm:$0xff] }
 0x3a1   : > { %v650_v35 = vadd.f32 %v634_v34, %v614_v56  ;;  %v970_v16 = vmul.f32 %v8701_v51, %v10307_v54  ;;  %v1223_v45 = vmul.f32 %v8676_v24, %v10341_v32  ;;  %v1251_v60 = vmul.f32 %v10336_v29, %v10342_v7  ;;  %v10347_v54 = vld [vmem:[#allocation48_spill] sm:$0xff]  ;;  %v10349_v56 = vld [vmem:[#allocation33_spill] sm:$0xff]  ;;  %v8727_v61 = vpop.xlane.xlu0 %3409  ;;  %v10351_v32 = vld [vmem:[#allocation50_spill] sm:$0xff] }
 0x3a2   : > { %v3344_v42 = vrot.slane %v3281_v36, 6  ;;  %v3345_v0 = vrot.slane %v8691_v49, 6  ;;  %v890_v46 = vadd.f32 %v866_v44, %v838_v23  ;;  %v1303_v41 = vmul.f32 %v8685_v2, %v10343_v1 }
 0x3a3   : > { %v686_v33 = vadd.f32 %v670_v11, %v650_v35  ;;  %v1022_v59 = vmul.f32 %v10345_v14, %v10344_v38  ;;  %v1074_v12 = vmul.f32 %v10346_v6, %v8694_v50  ;;  %v1355_v34 = vmul.f32 %v10340_v17, %v10347_v54  ;;  %v10355_v54 = vld [vmem:[#allocation60_spill] sm:$0xff] }
 0x3a4   : > { %v3346_v26 = vsel %vm3308_vm5, %v3344_v42, %v3345_v0  ;;  %v942_v8 = vadd.f32 %v918_v53, %v890_v46  ;;  %v1275_v62 = vadd.f32 %v1251_v60, %v1223_v45  ;;  %v1407_v22 = vmul.f32 %v8701_v51, %v10348_v27  ;;  %v10352_v45 = vld [vmem:[#allocation35_spill] sm:$0xff] }
 0x3a5   : > { %v3379_v36 = vadd.f32 %v3346_v26, %v2942_v18  ;;  %v722_v11 = vadd.f32 %v706_v4, %v686_v33  ;;  %v1660_v37 = vmul.f32 %v8676_v24, %v10349_v56  ;;  %v1688_v44 = vmul.f32 %v10336_v29, %v10350_v57  ;;  %v10353_v18 = vld [vmem:[#allocation52_spill] sm:$0xff]  ;;  %v10359_v56 = vld [vmem:[#allocation59_spill] sm:$0xff] }
 0x3a6   : > { %v994_v23 = vadd.f32 %v970_v16, %v942_v8  ;;  %v1327_v35 = vadd.f32 %v1303_v41, %v1275_v62  ;;  %v1459_v42 = vmul.f32 %v10351_v32, %v10344_v38  ;;  %v1740_v53 = vmul.f32 %v8685_v2, %v10321_v3  ;;  %v10354_v41 = vld [vmem:[#allocation56_spill] sm:$0xff]  ;;  %v10356_v8 = vld [vmem:[#allocation61_spill] sm:$0xff] }
 0x3a7   : > { %v8734_v46 = vadd.f32 %v10352_v45, %v3379_v36  ;;  %v1511_v4 = vmul.f32 %v10353_v18, %v8694_v50  ;;  %v1712_v7 = vadd.f32 %v1688_v44, %v1660_v37  ;;  %v1792_v60 = vmul.f32 %v10340_v17, %v10278_v21  ;;  %v10357_v21 = vld [vmem:[#allocation57_spill] sm:$0xff] }
 0x3a8   : > { %v758_v1 = vadd.f32 %v742_v47, %v722_v11  ;;  %v1046_v33 = vadd.f32 %v1022_v59, %v994_v23  ;;  %v1379_v16 = vadd.f32 %v1355_v34, %v1327_v35  ;;  %v1844_v14 = vmul.f32 %v8701_v51, %v10354_v41  ;;  %v10358_v59 = vld [vmem:[#allocation62_spill] sm:$0xff]  ;;  %v3419_v23 = vpop.xlane.xlu0 %3418  ;;  %v10362_v41 = vld [vmem:[#allocation88_spill] sm:$0xff] }
 0x3a9   : > { %v3447_v6 = vsel %vm3404_vm6, %v8734_v46, 0.0  ;;  %v1764_v3 = vadd.f32 %v1740_v53, %v1712_v7  ;;  %v2097_v26 = vmul.f32 %v8676_v24, %v10355_v54  ;;  %v2125_v62 = vmul.f32 %v10336_v29, %v10356_v8 }
 0x3aa   : > { %3448 = vadd.xlane.f32.xlu0 %v3447_v6  ;;  %v1098_v27 = vadd.f32 %v1074_v12, %v1046_v33  ;;  %v1431_v36 = vadd.f32 %v1407_v22, %v1379_v16  ;;  %v1896_v47 = vmul.f32 %v10357_v21, %v10344_v38  ;;  %v2177_v34 = vmul.f32 %v8685_v2, %v10358_v59  ;;  %v10360_v22 = vld [vmem:[#allocation68_spill] sm:$0xff]  ;;  %v10361_v33 = vld [vmem:[#allocation70_spill] sm:$0xff]  ;;  %v3413_v59 = vpop.xlane.xlu1 %3412 }
 0x3ab   : > { %v1816_v11 = vadd.f32 %v1792_v60, %v1764_v3  ;;  %v1948_v37 = vmul.f32 %v10359_v56, %v8694_v50  ;;  %v2149_v57 = vadd.f32 %v2125_v62, %v2097_v26  ;;  %v2229_v44 = vmul.f32 %v10340_v17, %v10328_v20 }
 0x3ac   : > { %v1162_v35 = vrot.slane %v1098_v27, 1  ;;  %v1483_v32 = vadd.f32 %v1459_v42, %v1431_v36  ;;  %v2281_v12 = vmul.f32 %v8701_v51, %v10329_v28  ;;  %v2534_v53 = vmul.f32 %v8676_v24, %v10360_v22  ;;  %v10364_v42 = vld [vmem:[#allocation65_spill] sm:$0xff] }
 0x3ad   : > { %v1868_v18 = vadd.f32 %v1844_v14, %v1816_v11  ;;  %v2201_v7 = vadd.f32 %v2177_v34, %v2149_v57  ;;  %v2562_v60 = vmul.f32 %v10336_v29, %v10332_v15  ;;  %v2614_v16 = vmul.f32 %v8685_v2, %v10361_v33  ;;  %v10365_v15 = vld [vmem:[#allocation67_spill] sm:$0xff] }
 0x3ae   : > { %v10363_v6 = vrot.slane %v10362_v41, 1  ;;  %v1535_v3 = vadd.f32 %v1511_v4, %v1483_v32  ;;  %v2333_v54 = vmul.f32 %v10364_v42, %v10344_v38  ;;  %v2666_v28 = vmul.f32 %v10340_v17, %v9906_v40 }
 0x3af   : > { %v1920_v14 = vadd.f32 %v1896_v47, %v1868_v18  ;;  %v2253_v8 = vadd.f32 %v2229_v44, %v2201_v7  ;;  %v2586_v62 = vadd.f32 %v2562_v60, %v2534_v53  ;;  %v2385_v36 = vmul.f32 %v10365_v15, %v8694_v50  ;;  %v10366_v47 = vld [vmem:[#allocation66_spill] sm:$0xff] }
 0x3b0   : > { %v1163_v20 = vsel %vm1123_vm0, %v10363_v6, %v1162_v35  ;;  %v1599_v27 = vrot.slane %v1535_v3, 2  ;;  %v2718_v21 = vmul.f32 %v8701_v51, %v9907_v63  ;;  %v2971_v4 = vmul.f32 %v8676_v24, %v5945_v43  ;;  %v10368_v53 = vld [vmem:[#allocation58_spill] sm:$0xff] }
 0x3b1   : > { %v1195_v26 = vadd.f32 %v1163_v20, %v758_v1  ;;  %v1972_v34 = vadd.f32 %v1948_v37, %v1920_v14  ;;  %v2305_v11 = vadd.f32 %v2281_v12, %v2253_v8  ;;  %v2638_v56 = vadd.f32 %v2614_v16, %v2586_v62  ;;  %v3425_v1 = vpop.xlane.xlu0 %3424  ;;  %v10370_v16 = vld [vmem:[#allocation79_spill] sm:$0xff] }
 0x3b2   : > { %v2999_v40 = vmul.f32 %v10336_v29, %v5952_v19  ;;  %v10367_v57 = vrot.slane %v10366_v47, 2  ;;  %v2770_v35 = vmul.f32 %v5922_v5, %v10344_v38  ;;  %v3051_v63 = vmul.f32 %v8685_v2, %v5956_v58 }
 0x3b3   : > { %v2036_v43 = vrot.slane %v1972_v34, 3  ;;  %v2357_v24 = vadd.f32 %v2333_v54, %v2305_v11  ;;  %v2690_v37 = vadd.f32 %v2666_v28, %v2638_v56  ;;  %v2822_v12 = vmul.f32 %v5941_v39, %v8694_v50  ;;  %v3416_v39 = vpop.xlane.xlu1 %3415  ;;  %v10373_v11 = vld [vmem:[#allocation80_spill] sm:$0xff] }
 0x3b4   : > { %v1600_v44 = vsel %vm1560_vm1, %v10367_v57, %v1599_v27  ;;  %v3023_v22 = vadd.f32 %v2999_v40, %v2971_v4  ;;  %v3103_v19 = vmul.f32 %v10340_v17, %v5960_v10  ;;  %v3454_v29 = vmul.f32 0.25, %v8689_v52  ;;  %v10371_v17 = vld [vmem:[#allocation91_spill] sm:$0xff]  ;;  %v10372_v27 = vld [vmem:[#allocation86_spill] sm:$0xff] }
 0x3b5   : > { %v1632_v32 = vadd.f32 %v1600_v44, %v1195_v26  ;;  %v10369_v18 = vrot.slane %v10368_v53, 3  ;;  %v2409_v7 = vadd.f32 %v2385_v36, %v2357_v24  ;;  %v2742_v60 = vadd.f32 %v2718_v21, %v2690_v37  ;;  %v3431_v3 = vpop.xlane.xlu0 %3430  ;;  %v10374_v57 = vld [vmem:[#allocation74_spill] sm:$0xff] }
 0x3b6   : > { %v3456_v58 = vmul.f32 0.25, %v3413_v59  ;;  %v3075_v2 = vadd.f32 %v3051_v63, %v3023_v22  ;;  %v3155_v33 = vmul.f32 %v8701_v51, %v5986_v48  ;;  %v8797_v41 = vsub.f32 %v10370_v16, %v3454_v29  ;;  %v10375_v63 = vld [vmem:[#allocation93_spill] sm:$0xff] }
 0x3b7   : > { %v2037_v5 = vsel %vm1997_vm2, %v10369_v18, %v2036_v43  ;;  %v2473_v20 = vrot.slane %v2409_v7, 4  ;;  %v2794_v10 = vadd.f32 %v2770_v35, %v2742_v60  ;;  %v3207_v54 = vmul.f32 %v5990_v9, %v10344_v38  ;;  %v3422_v25 = vpop.xlane.xlu1 %3421  ;;  %v10376_v22 = vld [vmem:[#allocation73_spill] sm:$0xff] }
 0x3b8   : > { %v2069_v6 = vadd.f32 %v2037_v5, %v1632_v32  ;;  %v8800_v52 = vsub.f32 %v10371_v17, %v3456_v58  ;;  %v3127_v42 = vadd.f32 %v3103_v19, %v3075_v2  ;;  %v3486_v28 = vmul.f32 %v8797_v41, %v8797_v41  ;;  %v10377_v18 = vld [vmem:[#allocation81_spill] sm:$0xff] }
 0x3b9   : > { %v3458_v26 = vmul.f32 0.25, %v3419_v23  ;;  %v2474_v48 = vsel %vm2434_vm3, %v2471_v31, %v2473_v20  ;;  %v2846_v51 = vadd.f32 %v2822_v12, %v2794_v10  ;;  %v3259_v8 = vmul.f32 %v5994_v13, %v8694_v50  ;;  %v3437_v59 = vpop.xlane.xlu0 %3436  ;;  %v10379_v10 = vld [vmem:[#allocation71_spill] sm:$0xff] }
 0x3ba   : > { %v3179_v14 = vadd.f32 %v3155_v33, %v3127_v42  ;;  %v3502_v62 = vsel %vm3404_vm6, %v3486_v28, 0.0  ;;  %v2506_v36 = vadd.f32 %v2474_v48, %v2069_v6  ;;  %v3488_v38 = vmul.f32 %v8800_v52, %v8800_v52 }
 0x3bb   : > { %v8813_v15 = vsub.f32 %v10372_v27, %v3458_v26  ;;  %v2910_v9 = vrot.slane %v2846_v51, 5  ;;  %3503 = vadd.xlane.f32.xlu0 %v3502_v62  ;;  %v3460_v21 = vmul.f32 0.25, %v3425_v1  ;;  %v3455_v13 = vmul.f32 0.25, %v8727_v61  ;;  %v3428_v24 = vpop.xlane.xlu1 %3427  ;;  %v10380_v26 = vld [vmem:[#allocation90_spill] sm:$0xff] }
 0x3bc   : > { %v3231_v23 = vadd.f32 %v3207_v54, %v3179_v14  ;;  %v3508_v50 = vsel %vm3404_vm6, %v3488_v38, 0.0  ;;  %v3462_v47 = vmul.f32 0.25, %v3431_v3  ;;  %v3464_v61 = vmul.f32 0.25, %v3437_v59  ;;  %v10381_v62 = vld [vmem:[#allocation82_spill] sm:$0xff] }
 0x3bd   : > { %v2911_v31 = vsel %vm2871_vm4, %v2908_v30, %v2910_v9  ;;  %v3490_v4 = vmul.f32 %v8813_v15, %v8813_v15  ;;  %v8825_v56 = vsub.f32 %v10373_v11, %v3460_v21  ;;  %v8831_v44 = vsub.f32 %v10374_v57, %v3455_v13  ;;  %v10382_v13 = vld [vmem:[#allocation36_spill] sm:$0xff] }
 0x3be   : > { %v3283_v34 = vadd.f32 %v3259_v8, %v3231_v23  ;;  %v2943_v40 = vadd.f32 %v2911_v31, %v2506_v36  ;;  %v3457_v35 = vmul.f32 0.25, %v3416_v39  ;;  %v8834_v32 = vsub.f32 %v10375_v63, %v3462_v47 }
 0x3bf   : > { %3509 = vadd.xlane.f32.xlu0 %v3508_v50  ;;  %v3514_v55 = vsel %vm3404_vm6, %v3490_v4, 0.0  ;;  %v3492_v30 = vmul.f32 %v8825_v56, %v8825_v56  ;;  %v8841_v19 = vsub.f32 %v10376_v22, %v3464_v61  ;;  %v3459_v49 = vmul.f32 0.25, %v3422_v25  ;;  %v3434_v60 = vpop.xlane.xlu1 %3433 }
 0x3c0   : > { %v3347_v1 = vrot.slane %v3283_v34, 6  ;;  %v3494_v29 = vmul.f32 %v8834_v32, %v8834_v32  ;;  %v8849_v5 = vsub.f32 %v10377_v18, %v3457_v35  ;;  %v3461_v39 = vmul.f32 0.25, %v3428_v24 }
 0x3c1   : > { %v3520_v12 = vsel %vm3404_vm6, %v3492_v30, 0.0  ;;  %v3496_v2 = vmul.f32 %v8841_v19, %v8841_v19  ;;  %v3463_v42 = vmul.f32 0.25, %v3434_v60  ;;  %v3668_v30 = vld [vmem:[#allocation11] sm:$0x3] }
 0x3c2   : > { %v3348_v43 = vsel %vm3308_vm5, %v3345_v0, %v3347_v1  ;;  %v3487_v0 = vmul.f32 %v8831_v44, %v8831_v44  ;;  %v3526_v58 = vsel %vm3404_vm6, %v3494_v29, 0.0  ;;  %v3489_v6 = vmul.f32 %v8849_v5, %v8849_v5  ;;  %4389 = vmatprep.subr.msk.bf16.mxu0 %vm3308_vm5, %v3668_v30 }
 0x3c3   : > { %v3380_v37 = vadd.f32 %v3348_v43, %v2943_v40  ;;  %3515 = vadd.xlane.f32.xlu0 %v3514_v55  ;;  %v3532_v20 = vsel %vm3404_vm6, %v3496_v2, 0.0  ;;  %v8866_v17 = vsub.f32 %v10379_v10, %v3461_v39  ;;  %v3440_v28 = vpop.xlane.xlu1 %3439  ;;  %v8872_v48 = vsub.f32 %v10380_v26, %v3463_v42  ;;  %v10383_v40 = vld [vmem:[#allocation38_spill] sm:$0xff] }
 0x3c4   : > { %v3505_v16 = vsel %vm3404_vm6, %v3487_v0, 0.0  ;;  %v3511_v3 = vsel %vm3404_vm6, %v3489_v6, 0.0  ;;  %v3465_v14 = vmul.f32 0.25, %v3440_v28 }
 0x3c5   : > { %v8846_v53 = vadd.f32 %v10352_v45, %v3380_v37  ;;  %v10378_v45 = vld [vmem:[#allocation83_spill] sm:$0xff]  ;;  %v3493_v8 = vmul.f32 %v8866_v17, %v8866_v17  ;;  %v3495_v9 = vmul.f32 %v8872_v48, %v8872_v48 }
 0x3c6   : > { %v8859_v33 = vsub.f32 %v10378_v45, %v3459_v49  ;;  %v8878_v27 = vsub.f32 %v10381_v62, %v3465_v14 }
 0x3c7   : > { %v3450_v7 = vsel %vm3404_vm6, %v8846_v53, 0.0  ;;  %3521 = vadd.xlane.f32.xlu0 %v3520_v12  ;;  %v3523_v36 = vsel %vm3404_vm6, %v3493_v8, 0.0  ;;  %v3529_v38 = vsel %vm3404_vm6, %v3495_v9, 0.0 }
 0x3c8   : > { %3451 = vadd.xlane.f32.xlu1 %v3450_v7  ;;  %v3491_v54 = vmul.f32 %v8859_v33, %v8859_v33  ;;  %v3497_v23 = vmul.f32 %v8878_v27, %v8878_v27 }
 0x3ca   : > { %v3517_v51 = vsel %vm3404_vm6, %v3491_v54, 0.0  ;;  %v3535_v25 = vsel %vm3404_vm6, %v3497_v23, 0.0  ;;  %v3701_v54 = vsel %vm3308_vm5, %v3668_v30, 0 }
 0x3cb   : > { %3527 = vadd.xlane.f32.xlu0 %v3526_v58  ;;  %4354 = vmatpush3.bf16.msra.mxu0 %v3701_v54 }
 0x3cc   : > { %3506 = vadd.xlane.f32.xlu1 %v3505_v16 }
 0x3cf   : > { %3533 = vadd.xlane.f32.xlu0 %v3532_v20 }
 0x3d0   : > { %3512 = vadd.xlane.f32.xlu1 %v3511_v3 }
 0x3d4   : > { %3518 = vadd.xlane.f32.xlu1 %v3517_v51 }
 0x3d8   : > { %3524 = vadd.xlane.f32.xlu1 %v3523_v36 }
 0x3dc   : > { %3530 = vadd.xlane.f32.xlu1 %v3529_v38 }
 0x3e0   : > { %3536 = vadd.xlane.f32.xlu1 %v3535_v25 }
 0x3e9   : > { %v3443_v21 = vpop.xlane.xlu0 %3442 }
 0x3ea   : > { %v3466_v31 = vmul.f32 0.25, %v3443_v21 }
 0x3ec   : > { %v8888_v50 = vsub.f32 %v10382_v13, %v3466_v31  ;;  %v8914_v31 = vld [vmem:[#allocation8] ss:$0 sm:$0xff] }
 0x3ee   : > { %v3498_v4 = vmul.f32 %v8888_v50, %v8888_v50 }
 0x3f0   : > { %v3538_v59 = vsel %vm3404_vm6, %v3498_v4, 0.0 }
 0x3f1   : > { %3539 = vadd.xlane.f32.xlu0 %v3538_v59 }
 0x409   : > { %v3446_v34 = vpop.xlane.xlu1 %3445 }
 0x40a   : > { %v3467_v11 = vmul.f32 0.25, %v3446_v34 }
 0x40c   : > { %v8894_v47 = vsub.f32 %v10383_v40, %v3467_v11 }
 0x40e   : > { %v3499_v1 = vmul.f32 %v8894_v47, %v8894_v47 }
 0x410   : > { %v3541_v55 = vsel %vm3404_vm6, %v3499_v1, 0.0 }
 0x411   : > { %3542 = vadd.xlane.f32.xlu1 %v3541_v55 }
 0x437   : > { %v3449_v61 = vpop.xlane.xlu0 %3448 }
 0x438   : > { %v3468_v57 = vmul.f32 0.25, %v3449_v61  ;;  %v8919_v61 = vld [vmem:[#allocation10] ss:$0 sm:$0xff] }
 0x43a   : > { %v8901_v35 = vsub.f32 %v8734_v46, %v3468_v57 }
 0x43c   : > { %v3500_v63 = vmul.f32 %v8901_v35, %v8901_v35 }
 0x43e   : > { %v3544_v43 = vsel %vm3404_vm6, %v3500_v63, 0.0 }
 0x43f   : > { %3545 = vadd.xlane.f32.xlu0 %v3544_v43 }
 0x448   : > { %v3504_v24 = vpop.xlane.xlu0 %3503 }
 0x449   : > { %v3550_v12 = vmul.f32 0.25, %v3504_v24 }
 0x44b   : > { %v3566_v29 = vadd.f32 1e-06, %v3550_v12 }
 0x44c   : > { %v3510_v37 = vpop.xlane.xlu0 %3509 }
 0x44d   : > { %v3552_v18 = vmul.f32 0.25, %v3510_v37  ;;  %4583 = vrsqrt.f32 %v3566_v29 }
 0x44f   : > { %v3568_v46 = vadd.f32 1e-06, %v3552_v18 }
 0x450   : > { %v3516_v22 = vpop.xlane.xlu0 %3515 }
 0x451   : > { %v3554_v58 = vmul.f32 0.25, %v3516_v22  ;;  %4585 = vrsqrt.f32 %v3568_v46 }
 0x453   : > { %v3570_v3 = vadd.f32 1e-06, %v3554_v58 }
 0x454   : > { %v3522_v0 = vpop.xlane.xlu0 %3521 }
 0x455   : > { %v3452_v49 = vpop.xlane.xlu1 %3451  ;;  %v3556_v39 = vmul.f32 0.25, %v3522_v0 }
 0x456   : > { %v3469_v7 = vmul.f32 0.25, %v3452_v49 }
 0x457   : > { %v3572_v28 = vadd.f32 1e-06, %v3556_v39  ;;  %v4584_v14 = vpop.eup %4583 }
 0x458   : > { %v8907_v60 = vsub.f32 %v8846_v53, %v3469_v7  ;;  %v3528_v6 = vpop.xlane.xlu0 %3527  ;;  %v3598_v25 = vmul.f32 %v4584_v14, %v8797_v41 }
 0x459   : > { %v3507_v2 = vpop.xlane.xlu1 %3506  ;;  %v3558_v51 = vmul.f32 0.25, %v3528_v6 }
 0x45a   : > { %v3501_v45 = vmul.f32 %v8907_v60, %v8907_v60  ;;  %v3551_v16 = vmul.f32 0.25, %v3507_v2  ;;  %v3621_v40 = vmul.f32 %v8914_v31, %v3598_v25 }
 0x45b   : > { %v3574_v38 = vadd.f32 1e-06, %v3558_v51  ;;  %v4586_v13 = vpop.eup %4585 }
 0x45c   : > { %v3547_v20 = vsel %vm3404_vm6, %v3501_v45, 0.0  ;;  %v3567_v10 = vadd.f32 1e-06, %v3551_v16  ;;  %v3534_v62 = vpop.xlane.xlu0 %3533  ;;  %v3600_v1 = vmul.f32 %v4586_v13, %v8800_v52  ;;  %v3644_v37 = vadd.f32 %v8919_v61, %v3621_v40 }
 0x45d   : > { %3548 = vadd.xlane.f32.xlu1 %v3547_v20  ;;  %v3513_v42 = vpop.xlane.xlu1 %3512  ;;  %v3560_v23 = vmul.f32 0.25, %v3534_v62 }
 0x45e   : > { %4587 = vrsqrt.f32 %v3567_v10  ;;  %v3553_v53 = vmul.f32 0.25, %v3513_v42  ;;  %v3623_v18 = vmul.f32 %v8914_v31, %v3600_v1 }
 0x45f   : > { %4589 = vrsqrt.f32 %v3570_v3  ;;  %v3576_v11 = vadd.f32 1e-06, %v3560_v23 }
 0x460   : > { %v3569_v26 = vadd.f32 1e-06, %v3553_v53 }
 0x461   : > { %v3519_v8 = vpop.xlane.xlu1 %3518 }
 0x462   : > { %4591 = vrsqrt.f32 %v3569_v26  ;;  %v3555_v36 = vmul.f32 0.25, %v3519_v8 }
 0x463   : > { %4593 = vrsqrt.f32 %v3572_v28 }
 0x464   : > { %v3571_v9 = vadd.f32 1e-06, %v3555_v36 }
 0x465   : > { %v3525_v21 = vpop.xlane.xlu1 %3524 }
 0x466   : > { %4595 = vrsqrt.f32 %v3571_v9  ;;  %v3557_v4 = vmul.f32 0.25, %v3525_v21 }
 0x467   : > { %4597 = vrsqrt.f32 %v3574_v38 }
 0x468   : > { %v4588_v59 = vpop.eup %4587  ;;  %v3573_v34 = vadd.f32 1e-06, %v3557_v4 }
 0x469   : > { %v3531_v55 = vpop.xlane.xlu1 %3530  ;;  %v3599_v30 = vmul.f32 %v4588_v59, %v8831_v44  ;;  %v4590_v41 = vpop.eup %4589 }
 0x46a   : > { %4599 = vrsqrt.f32 %v3573_v34  ;;  %v3559_v57 = vmul.f32 0.25, %v3531_v55  ;;  %v3602_v52 = vmul.f32 %v4590_v41, %v8813_v15  ;;  %v3646_v15 = vadd.f32 %v8919_v61, %v3623_v18 }
 0x46b   : > { %v3622_v63 = vmul.f32 %v8914_v31, %v3599_v30  ;;  %4601 = vrsqrt.f32 %v3576_v11 }
 0x46c   : > { %v4592_v43 = vpop.eup %4591  ;;  %v3575_v24 = vadd.f32 1e-06, %v3559_v57  ;;  %v3625_v16 = vmul.f32 %v8914_v31, %v3602_v52 }
 0x46d   : > { %v4594_v12 = vpop.eup %4593  ;;  %v3601_v22 = vmul.f32 %v4592_v43, %v8849_v5  ;;  %v3537_v29 = vpop.xlane.xlu1 %3536  ;;  %v3645_v44 = vadd.f32 %v8919_v61, %v3622_v63 }
 0x46e   : > { %4603 = vrsqrt.f32 %v3575_v24  ;;  %v3561_v49 = vmul.f32 0.25, %v3537_v29  ;;  %v3604_v58 = vmul.f32 %v4594_v12, %v8825_v56  ;;  %v3648_v42 = vadd.f32 %v8919_v61, %v3625_v16 }
 0x46f   : > { %v3660_v0 = vpack.c.bf16 %v3645_v44, %v3644_v37  ;;  %v3624_v7 = vmul.f32 %v8914_v31, %v3601_v22 }
 0x470   : > { %v4596_v46 = vpop.eup %4595  ;;  %v3577_v2 = vadd.f32 1e-06, %v3561_v49  ;;  %v3627_v3 = vmul.f32 %v8914_v31, %v3604_v58 }
 0x471   : > { %v3603_v45 = vmul.f32 %v4596_v46, %v8859_v33  ;;  %4355 = vmatprep.mubr.msk.bf16.mxu0 %vm3404_vm6, %v3660_v0  ;;  %v3647_v5 = vadd.f32 %v8919_v61, %v3624_v7  ;;  %v4598_v39 = vpop.eup %4597 }
 0x472   : > { %4605 = vrsqrt.f32 %v3577_v2  ;;  %v3606_v33 = vmul.f32 %v4598_v39, %v8834_v32  ;;  %v3650_v14 = vadd.f32 %v8919_v61, %v3627_v3 }
 0x473   : > { %v3661_v6 = vpack.c.bf16 %v3647_v5, %v3646_v15  ;;  %v3626_v20 = vmul.f32 %v8914_v31, %v3603_v45 }
 0x474   : > { %v4600_v10 = vpop.eup %4599 }
 0x475   : > { %v3605_v56 = vmul.f32 %v4600_v10, %v8866_v17  ;;  %4356 = vmatmul.mubr.msk.bf16.vlgmr.msra.gmra.mrb[0].mxu0 %vm3404_vm6, %v3661_v6  ;;  %v3649_v54 = vadd.f32 %v8919_v61, %v3626_v20  ;;  %v4602_v53 = vpop.eup %4601  ;;  %v3629_v17 = vmul.f32 %v8914_v31, %v3606_v33  ;;  %v8973_v6 = vld [vmem:[#allocation13] ss:$0 sm:$0xff] }
 0x476   : > { %v3608_v62 = vmul.f32 %v4602_v53, %v8841_v19 }
 0x477   : > { %v3662_v28 = vpack.c.bf16 %v3649_v54, %v3648_v42  ;;  %v3628_v26 = vmul.f32 %v8914_v31, %v3605_v56  ;;  %v3652_v25 = vadd.f32 %v8919_v61, %v3629_v17 }
 0x478   : > { %v4604_v51 = vpop.eup %4603  ;;  %v3631_v19 = vmul.f32 %v8914_v31, %v3608_v62 }
 0x479   : > { %v3607_v8 = vmul.f32 %v4604_v51, %v8872_v48  ;;  %4359 = vmatprep.mubr.msk.bf16.mxu0 %vm3404_vm6, %v3662_v28  ;;  %v3651_v32 = vadd.f32 %v8919_v61, %v3628_v26 }
 0x47a   : > { %v3654_v4 = vadd.f32 %v8919_v61, %v3631_v19 }
 0x47b   : > { %v3663_v36 = vpack.c.bf16 %v3651_v32, %v3650_v14  ;;  %v3630_v9 = vmul.f32 %v8914_v31, %v3607_v8 }
 0x47c   : > { %v4606_v38 = vpop.eup %4605 }
 0x47d   : > { %v3609_v23 = vmul.f32 %v4606_v38, %v8878_v27  ;;  %4360 = vmatmul.mubr.msk.bf16.gmra.mrb[4].mxu0 %vm3404_vm6, %v3663_v36  ;;  %v3653_v48 = vadd.f32 %v8919_v61, %v3630_v9 }
 0x47e   : > { %v3540_v27 = vpop.xlane.xlu0 %3539 }
 0x47f   : > { %v3664_v21 = vpack.c.bf16 %v3653_v48, %v3652_v25  ;;  %v3632_v13 = vmul.f32 %v8914_v31, %v3609_v23  ;;  %v3562_v11 = vmul.f32 0.25, %v3540_v27 }
 0x481   : > { %4363 = vmatprep.mubr.msk.bf16.mxu0 %vm3404_vm6, %v3664_v21  ;;  %v3655_v59 = vadd.f32 %v8919_v61, %v3632_v13  ;;  %v3578_v40 = vadd.f32 1e-06, %v3562_v11 }
 0x483   : > { %v3665_v34 = vpack.c.bf16 %v3655_v59, %v3654_v4  ;;  %4607 = vrsqrt.f32 %v3578_v40 }
 0x485   : > { %4364 = vmatmul.mubr.msk.bf16.gmra.mrb[8].mxu0 %vm3404_vm6, %v3665_v34 }
 0x48d   : > { %v4608_v41 = vpop.eup %4607 }
 0x48e   : > { %v3610_v57 = vmul.f32 %v4608_v41, %v8888_v50 }
 0x490   : > { %v3633_v24 = vmul.f32 %v8914_v31, %v3610_v57 }
 0x492   : > { %v3656_v12 = vadd.f32 %v8919_v61, %v3633_v24 }
 0x49e   : > { %v3543_v1 = vpop.xlane.xlu1 %3542 }
 0x49f   : > { %v3563_v55 = vmul.f32 0.25, %v3543_v1 }
 0x4a1   : > { %v3579_v30 = vadd.f32 1e-06, %v3563_v55 }
 0x4a3   : > { %4609 = vrsqrt.f32 %v3579_v30 }
 0x4ad   : > { %v4610_v63 = vpop.eup %4609 }
 0x4ae   : > { %v3611_v43 = vmul.f32 %v4610_v63, %v8894_v47  ;;  %v4582_v47 = vld [vmem:[#allocation14] sm:$0xff]  }
 0x4af   : > { %4371 = vmatprep.subr.bf16.mxu1 %v4582_v47 }
 0x4b0   : > { %v3634_v37 = vmul.f32 %v8914_v31, %v3611_v43  ;;  %4372 = vmatpush3.bf16.msra.mxu1 %v4582_v47 }
 0x4b2   : > { %v3657_v22 = vadd.f32 %v8919_v61, %v3634_v37 }
 0x4b4   : > { %v3666_v52 = vpack.c.bf16 %v3657_v22, %v3656_v12 }
 0x4b6   : > { %4367 = vmatprep.mubr.msk.bf16.mxu0 %vm3404_vm6, %v3666_v52 }
 0x4cc   : > { %v3546_v29 = vpop.xlane.xlu0 %3545 }
 0x4cd   : > { %v3564_v44 = vmul.f32 0.25, %v3546_v29 }
 0x4cf   : > { %v3580_v18 = vadd.f32 1e-06, %v3564_v44 }
 0x4d1   : > { %4611 = vrsqrt.f32 %v3580_v18 }
 0x4db   : > { %v4612_v7 = vpop.eup %4611 }
 0x4dc   : > { %v3612_v46 = vmul.f32 %v4612_v7, %v8901_v35 }
 0x4de   : > { %v3635_v45 = vmul.f32 %v8914_v31, %v3612_v46 }
 0x4e0   : > { %v3658_v5 = vadd.f32 %v8919_v61, %v3635_v45 }
 0x4ea   : > { %v3549_v49 = vpop.xlane.xlu1 %3548 }
 0x4eb   : > { %v3565_v50 = vmul.f32 0.25, %v3549_v49 }
 0x4ed   : > { %v3581_v0 = vadd.f32 1e-06, %v3565_v50 }
 0x4ef   : > { %4613 = vrsqrt.f32 %v3581_v0 }
 0x4f9   : > { %v4614_v58 = vpop.eup %4613 }
 0x4fa   : > { %v3613_v2 = vmul.f32 %v4614_v58, %v8907_v60 }
 0x4fc   : > { %v3636_v15 = vmul.f32 %v8914_v31, %v3613_v2 }
 0x4fe   : > { %v3659_v16 = vadd.f32 %v8919_v61, %v3636_v15 }
 0x500   : > { %v3667_v39 = vpack.c.bf16 %v3659_v16, %v3658_v5 }
 0x502   : > { %4368 = vmatmul.mubr.msk.bf16.gmra.mrb[12].mxu0 %vm3404_vm6, %v3667_v39 }
 0x548   : > { %v4357_v20 = vpop.f32.mrb[0].mxu0 }
 0x549   : > { %v3746_v10 = vadd.f32 %v4357_v20, %v8973_v6  ;;  %v3737_v35 = vpop.f32.mrb[1].mxu0 }
 0x54a   : > { %v3738_v3 = vadd.f32 %v8973_v6, %v3737_v35  ;;  %v4358_v60 = vpop.f32.mrb[2].mxu0 }
 0x54b   : > { %v3818_v56 = vmul.f32 0.70710677, %v3746_v10  ;;  %v3749_v33 = vadd.f32 %v4358_v60, %v8973_v6  ;;  %v3740_v31 = vpop.f32.mrb[3].mxu0  ;;  %v3802_v27 = vmul.f32 0.5, %v3746_v10 }
 0x54c   : > { %v3816_v42 = vmul.f32 0.70710677, %v3738_v3  ;;  %v3741_v54 = vadd.f32 %v8973_v6, %v3740_v31  ;;  %v3800_v52 = vmul.f32 0.5, %v3738_v3 }
 0x54d   : > { %4615 = verf.f32 %v3818_v56  ;;  %v3819_v61 = vmul.f32 0.70710677, %v3749_v33  ;;  %v3803_v11 = vmul.f32 0.5, %v3749_v33 }
 0x54e   : > { %4617 = verf.f32 %v3816_v42  ;;  %v3817_v53 = vmul.f32 0.70710677, %v3741_v54  ;;  %v3801_v29 = vmul.f32 0.5, %v3741_v54 }
 0x54f   : > { %4619 = verf.f32 %v3819_v61 }
 0x550   : > { %4621 = verf.f32 %v3817_v53  ;;  %v4361_v28 = vpop.f32.mrb[4].mxu0 }
 0x551   : > { %v3762_v26 = vadd.f32 %v4361_v28, %v8973_v6  ;;  %v3753_v51 = vpop.f32.mrb[5].mxu0 }
 0x552   : > { %v3754_v14 = vadd.f32 %v8973_v6, %v3753_v51  ;;  %v4362_v8 = vpop.f32.mrb[6].mxu0 }
 0x553   : > { %v3822_v62 = vmul.f32 0.70710677, %v3762_v26  ;;  %v3765_v32 = vadd.f32 %v4362_v8, %v8973_v6  ;;  %v3756_v17 = vpop.f32.mrb[7].mxu0  ;;  %v3806_v5 = vmul.f32 0.5, %v3762_v26 }
 0x554   : > { %v3820_v36 = vmul.f32 0.70710677, %v3754_v14  ;;  %v3757_v9 = vadd.f32 %v8973_v6, %v3756_v17  ;;  %v3804_v20 = vmul.f32 0.5, %v3754_v14 }
 0x555   : > { %4623 = verf.f32 %v3822_v62  ;;  %v3823_v38 = vmul.f32 0.70710677, %v3765_v32  ;;  %v3807_v16 = vmul.f32 0.5, %v3765_v32 }
 0x556   : > { %4625 = verf.f32 %v3820_v36  ;;  %v3821_v23 = vmul.f32 0.70710677, %v3757_v9  ;;  %v3805_v10 = vmul.f32 0.5, %v3757_v9 }
 0x557   : > { %v4616_v25 = vpop.eup %4615  ;;  %4627 = verf.f32 %v3823_v38 }
 0x558   : > { %v4618_v48 = vpop.eup %4617  ;;  %v3850_v19 = vadd.f32 1.0, %v4616_v25  ;;  %4629 = verf.f32 %v3821_v23  ;;  %v4365_v21 = vpop.f32.mrb[8].mxu0 }
 0x559   : > { %v4620_v13 = vpop.eup %4619  ;;  %v3778_v4 = vadd.f32 %v4365_v21, %v8973_v6  ;;  %v3769_v59 = vpop.f32.mrb[9].mxu0  ;;  %v3848_v63 = vadd.f32 1.0, %v4618_v48 }
 0x55a   : > { %v4622_v34 = vpop.eup %4621  ;;  %v3851_v40 = vadd.f32 1.0, %v4620_v13  ;;  %v3770_v1 = vadd.f32 %v8973_v6, %v3769_v59  ;;  %v4366_v55 = vpop.f32.mrb[10].mxu0  ;;  %v3866_v24 = vmul.f32 %v3850_v19, %v3802_v27 }
 0x55b   : > { %v3826_v30 = vmul.f32 0.70710677, %v3778_v4  ;;  %v3781_v41 = vadd.f32 %v4366_v55, %v8973_v6  ;;  %v3772_v57 = vpop.f32.mrb[11].mxu0  ;;  %v3849_v43 = vadd.f32 1.0, %v4622_v34  ;;  %v3864_v0 = vmul.f32 %v3848_v63, %v3800_v52 }
 0x55c   : > { %v3867_v37 = vmul.f32 %v3851_v40, %v3803_v11  ;;  %v3824_v12 = vmul.f32 0.70710677, %v3770_v1  ;;  %v3773_v22 = vadd.f32 %v8973_v6, %v3772_v57  ;;  %v3810_v14 = vmul.f32 0.5, %v3778_v4 }
 0x55d   : > { %4631 = verf.f32 %v3826_v30  ;;  %v3827_v44 = vmul.f32 0.70710677, %v3781_v41  ;;  %v3865_v47 = vmul.f32 %v3849_v43, %v3801_v29  ;;  %v3811_v8 = vmul.f32 0.5, %v3781_v41 }
 0x55e   : > { %v3881_v18 = vpack.c.bf16 %v3867_v37, %v3866_v24  ;;  %4633 = verf.f32 %v3824_v12  ;;  %v3825_v49 = vmul.f32 0.70710677, %v3773_v22  ;;  %v3808_v32 = vmul.f32 0.5, %v3770_v1 }
 0x55f   : > { %v4624_v50 = vpop.eup %4623  ;;  %4635 = verf.f32 %v3827_v44  ;;  %v3880_v45 = vpack.c.bf16 %v3865_v47, %v3864_v0  ;;  %v3809_v17 = vmul.f32 0.5, %v3773_v22 }
 0x560   : > { %v4626_v7 = vpop.eup %4625  ;;  %v3854_v46 = vadd.f32 1.0, %v4624_v50  ;;  %4637 = verf.f32 %v3825_v49 }
 0x561   : > { %v4628_v58 = vpop.eup %4627  ;;  %v3852_v2 = vadd.f32 1.0, %v4626_v7  ;;  %4373 = vmatprep.mubr.msk.bf16.mxu1 %vm3903_vm7, %v3880_v45  ;;  %v4313_v45 = vld [vmem:[%s5550_s25 + $0x63] sm:$0xff] }
 0x562   : > { %v4630_v15 = vpop.eup %4629  ;;  %v3855_v39 = vadd.f32 1.0, %v4628_v58  ;;  %v3870_v3 = vmul.f32 %v3854_v46, %v3806_v5  ;;  %4374 = vmatmul.mubr.msk.bf16.vlgmr.msra.gmra.mrb[0].mxu1 %vm3903_vm7, %v3881_v18  ;;  %v9000_v58 = vld [vmem:[#allocation16] ss:$0 sm:$0xff] }
 0x563   : > { %v3853_v35 = vadd.f32 1.0, %v4630_v15  ;;  %v3868_v56 = vmul.f32 %v3852_v2, %v3804_v20 }
 0x564   : > { %v3871_v60 = vmul.f32 %v3855_v39, %v3807_v16  ;;  %v4311_v16 = vld [vmem:[%s5550_s25 + $0x4b] sm:$0xff] }
 0x565   : > { %v3869_v33 = vmul.f32 %v3853_v35, %v3805_v10  ;;  %v4314_v10 = vld [vmem:[%s5550_s25 + $0x6b] sm:$0xff] }
 0x566   : > { %v3883_v31 = vpack.c.bf16 %v3871_v60, %v3870_v3 }
 0x567   : > { %v4632_v42 = vpop.eup %4631  ;;  %v3882_v54 = vpack.c.bf16 %v3869_v33, %v3868_v56  ;;  %v4312_v56 = vld [vmem:[%s5550_s25 + $0x53] sm:$0xff] }
 0x568   : > { %v4634_v61 = vpop.eup %4633  ;;  %v3858_v53 = vadd.f32 1.0, %v4632_v42 }
 0x569   : > { %v4636_v28 = vpop.eup %4635  ;;  %v3856_v26 = vadd.f32 1.0, %v4634_v61  ;;  %4377 = vmatprep.mubr.msk.bf16.mxu1 %vm3903_vm7, %v3882_v54 }
 0x56a   : > { %v4638_v51 = vpop.eup %4637  ;;  %v3859_v62 = vadd.f32 1.0, %v4636_v28  ;;  %v3874_v9 = vmul.f32 %v3858_v53, %v3810_v14  ;;  %4378 = vmatmul.mubr.msk.bf16.gmra.mrb[4].mxu1 %vm3903_vm7, %v3883_v31  ;;  %v4317_v53 = vld [vmem:[%s5550_s25 + $0x93] sm:$0xff] }
 0x56b   : > { %v3857_v36 = vadd.f32 1.0, %v4638_v51  ;;  %v3872_v23 = vmul.f32 %v3856_v26, %v3808_v32  ;;  %v4315_v51 = vld [vmem:[%s5550_s25 + $0x7b] sm:$0xff] }
 0x56c   : > { %v3875_v38 = vmul.f32 %v3859_v62, %v3811_v8  ;;  %v4318_v62 = vld [vmem:[%s5550_s25 + $0x9b] sm:$0xff] }
 0x56d   : > { %v3873_v25 = vmul.f32 %v3857_v36, %v3809_v17 }
 0x56e   : > { %v3885_v48 = vpack.c.bf16 %v3875_v38, %v3874_v9  ;;  %v4316_v9 = vld [vmem:[%s5550_s25 + $0x83] sm:$0xff] }
 0x56f   : > { %v3884_v19 = vpack.c.bf16 %v3873_v25, %v3872_v23 }
 0x571   : > { %4381 = vmatprep.mubr.msk.bf16.mxu1 %vm3903_vm7, %v3884_v19 }
 0x572   : > { %4382 = vmatmul.mubr.msk.bf16.gmra.mrb[8].mxu1 %vm3903_vm7, %v3885_v48 }
 0x5d5   : > { %v4369_v21 = vpop.f32.mrb[12].mxu0 }
 0x5d6   : > { %v3794_v13 = vadd.f32 %v4369_v21, %v8973_v6  ;;  %v3785_v4 = vpop.f32.mrb[13].mxu0  ;;  %v4321_v21 = vld [vmem:[%s5550_s25 + $0xc3] sm:$0xff] }
 0x5d7   : > { %v3786_v59 = vadd.f32 %v8973_v6, %v3785_v4  ;;  %v4370_v34 = vpop.f32.mrb[14].mxu0 }
 0x5d8   : > { %v3830_v27 = vmul.f32 0.70710677, %v3794_v13  ;;  %v3797_v11 = vadd.f32 %v4370_v34, %v8973_v6  ;;  %v3788_v40 = vpop.f32.mrb[15].mxu0  ;;  %v3814_v22 = vmul.f32 0.5, %v3794_v13 }
 0x5d9   : > { %v3828_v1 = vmul.f32 0.70710677, %v3786_v59  ;;  %v3789_v55 = vadd.f32 %v8973_v6, %v3788_v40  ;;  %v3812_v44 = vmul.f32 0.5, %v3786_v59  ;;  %v4319_v59 = vld [vmem:[%s5550_s25 + $0xab] sm:$0xff] }
 0x5da   : > { %4639 = verf.f32 %v3830_v27  ;;  %v3831_v30 = vmul.f32 0.70710677, %v3797_v11  ;;  %v3815_v52 = vmul.f32 0.5, %v3797_v11  ;;  %v4322_v11 = vld [vmem:[%s5550_s25 + $0xcb] sm:$0xff] }
 0x5db   : > { %4641 = verf.f32 %v3828_v1  ;;  %v3829_v41 = vmul.f32 0.70710677, %v3789_v55  ;;  %v3813_v6 = vmul.f32 0.5, %v3789_v55 }
 0x5dc   : > { %4643 = verf.f32 %v3831_v30  ;;  %v4320_v30 = vld [vmem:[%s5550_s25 + $0xb3] sm:$0xff] }
 0x5dd   : > { %4645 = verf.f32 %v3829_v41 }
 0x5e4   : > { %v4640_v57 = vpop.eup %4639 }
 0x5e5   : > { %v4642_v63 = vpop.eup %4641  ;;  %v3862_v43 = vadd.f32 1.0, %v4640_v57 }
 0x5e6   : > { %v4644_v24 = vpop.eup %4643  ;;  %v3860_v37 = vadd.f32 1.0, %v4642_v63 }
 0x5e7   : > { %v4646_v12 = vpop.eup %4645  ;;  %v3863_v29 = vadd.f32 1.0, %v4644_v24  ;;  %v3878_v49 = vmul.f32 %v3862_v43, %v3814_v22 }
 0x5e8   : > { %v3861_v18 = vadd.f32 1.0, %v4646_v12  ;;  %v3876_v0 = vmul.f32 %v3860_v37, %v3812_v44  ;;  %v4325_v37 = vld [vmem:[%s5550_s25 + $0xf3] sm:$0xff] }
 0x5e9   : > { %v3879_v50 = vmul.f32 %v3863_v29, %v3815_v52  ;;  %v4323_v52 = vld [vmem:[%s5550_s25 + $0xdb] sm:$0xff] }
 0x5ea   : > { %v3877_v47 = vmul.f32 %v3861_v18, %v3813_v6  ;;  %v4326_v6 = vld [vmem:[%s5550_s25 + $0xfb] sm:$0xff] }
 0x5eb   : > { %v3887_v7 = vpack.c.bf16 %v3879_v50, %v3878_v49 }
 0x5ec   : > { %v3886_v46 = vpack.c.bf16 %v3877_v47, %v3876_v0  ;;  %v4324_v0 = vld [vmem:[%s5550_s25 + $0xe3] sm:$0xff]  ;;  %s9082_s25 = scalar_lea.sflag [#allocation4], %s466_s23 }
 0x5ee   : > { %4385 = vmatprep.mubr.msk.bf16.mxu1 %vm3903_vm7, %v3886_v46 }
 0x5ef   : > { %4386 = vmatmul.mubr.msk.bf16.gmra.mrb[12].mxu1 %vm3903_vm7, %v3887_v7 }
 0x635   : > { %v4375_v2 = vpop.f32.mrb[0].mxu1 }
 0x636   : > { %v3971_v15 = vadd.f32 %v4375_v2, %v9000_v58  ;;  %v3962_v5 = vpop.f32.mrb[1].mxu1 }
 0x637   : > { %v3963_v39 = vadd.f32 %v9000_v58, %v3962_v5  ;;  %v4376_v20 = vpop.f32.mrb[2].mxu1 }
 0x638   : > { %v4046_v35 = vadd.f32 %v4313_v45, %v3971_v15  ;;  %v3974_v3 = vadd.f32 %v4376_v20, %v9000_v58  ;;  %v3965_v60 = vpop.f32.mrb[3].mxu1 }
 0x639   : > { %v4044_v33 = vadd.f32 %v4311_v16, %v3963_v39  ;;  %v3966_v31 = vadd.f32 %v9000_v58, %v3965_v60 }
 0x63a   : > { %4062 = vst.msk [vmem:[%s9012_s30 + $0x10] sm:$0xff] %vm3404_vm6, %v4046_v35  ;;  %v4047_v42 = vadd.f32 %v4314_v10, %v3974_v3 }
 0x63b   : > { %4060 = vst.msk [vmem:[%s9012_s30] sm:$0xff] %vm3404_vm6, %v4044_v33  ;;  %v4045_v54 = vadd.f32 %v4312_v56, %v3966_v31 }
 0x63c   : > { %4063 = vst.msk [vmem:[%s9012_s30 + $0x18] sm:$0xff] %vm3404_vm6, %v4047_v42 }
 0x63d   : > { %4061 = vst.msk [vmem:[%s9012_s30 + $0x8] sm:$0xff] %vm3404_vm6, %v4045_v54  ;;  %v4379_v61 = vpop.f32.mrb[4].mxu1 }
 0x63e   : > { %v3987_v28 = vadd.f32 %v4379_v61, %v9000_v58  ;;  %v3978_v26 = vpop.f32.mrb[5].mxu1 }
 0x63f   : > { %v3979_v14 = vadd.f32 %v9000_v58, %v3978_v26  ;;  %v4380_v8 = vpop.f32.mrb[6].mxu1 }
 0x640   : > { %v4050_v32 = vadd.f32 %v4317_v53, %v3987_v28  ;;  %v3990_v17 = vadd.f32 %v4380_v8, %v9000_v58  ;;  %v3981_v36 = vpop.f32.mrb[7].mxu1 }
 0x641   : > { %v4048_v38 = vadd.f32 %v4315_v51, %v3979_v14  ;;  %v3982_v23 = vadd.f32 %v9000_v58, %v3981_v36 }
 0x642   : > { %4066 = vst.msk [vmem:[%s9012_s30 + $0x30] sm:$0xff] %vm3404_vm6, %v4050_v32  ;;  %v4051_v25 = vadd.f32 %v4318_v62, %v3990_v17 }
 0x643   : > { %4064 = vst.msk [vmem:[%s9012_s30 + $0x20] sm:$0xff] %vm3404_vm6, %v4048_v38  ;;  %v4049_v48 = vadd.f32 %v4316_v9, %v3982_v23 }
 0x644   : > { %4067 = vst.msk [vmem:[%s9012_s30 + $0x38] sm:$0xff] %vm3404_vm6, %v4051_v25 }
 0x645   : > { %4065 = vst.msk [vmem:[%s9012_s30 + $0x28] sm:$0xff] %vm3404_vm6, %v4049_v48  ;;  %v4383_v19 = vpop.f32.mrb[8].mxu1 }
 0x646   : > { %v4003_v13 = vadd.f32 %v4383_v19, %v9000_v58  ;;  %v3994_v4 = vpop.f32.mrb[9].mxu1 }
 0x647   : > { %v3995_v34 = vadd.f32 %v9000_v58, %v3994_v4  ;;  %v4384_v27 = vpop.f32.mrb[10].mxu1 }
 0x648   : > { %v4054_v40 = vadd.f32 %v4321_v21, %v4003_v13  ;;  %v4006_v1 = vadd.f32 %v4384_v27, %v9000_v58  ;;  %v3997_v55 = vpop.f32.mrb[11].mxu1 }
 0x649   : > { %v4052_v41 = vadd.f32 %v4319_v59, %v3995_v34  ;;  %v3998_v57 = vadd.f32 %v9000_v58, %v3997_v55 }
 0x64a   : > { %4070 = vst.msk [vmem:[%s9012_s30 + $0x50] sm:$0xff] %vm3404_vm6, %v4054_v40  ;;  %v4055_v63 = vadd.f32 %v4322_v11, %v4006_v1 }
 0x64b   : > { %4068 = vst.msk [vmem:[%s9012_s30 + $0x40] sm:$0xff] %vm3404_vm6, %v4052_v41  ;;  %v4053_v43 = vadd.f32 %v4320_v30, %v3998_v57 }
 0x64c   : > { %4071 = vst.msk [vmem:[%s9012_s30 + $0x58] sm:$0xff] %vm3404_vm6, %v4055_v63 }
 0x64d   : > { %4069 = vst.msk [vmem:[%s9012_s30 + $0x48] sm:$0xff] %vm3404_vm6, %v4053_v43 }
 0x6c2   : > { %v4387_v24 = vpop.f32.mrb[12].mxu1 }
 0x6c3   : > { %v4019_v12 = vadd.f32 %v4387_v24, %v9000_v58  ;;  %v4010_v22 = vpop.f32.mrb[13].mxu1 }
 0x6c4   : > { %v4011_v29 = vadd.f32 %v9000_v58, %v4010_v22  ;;  %v4388_v44 = vpop.f32.mrb[14].mxu1 }
 0x6c5   : > { %v4058_v18 = vadd.f32 %v4325_v37, %v4019_v12  ;;  %v4022_v49 = vadd.f32 %v4388_v44, %v9000_v58  ;;  %v4013_v50 = vpop.f32.mrb[15].mxu1 }
 0x6c6   : > { %v4056_v47 = vadd.f32 %v4323_v52, %v4011_v29  ;;  %v4014_v7 = vadd.f32 %v9000_v58, %v4013_v50 }
 0x6c7   : > { %4074 = vst.msk [vmem:[%s9012_s30 + $0x70] sm:$0xff] %vm3404_vm6, %v4058_v18  ;;  %v4059_v46 = vadd.f32 %v4326_v6, %v4022_v49 }
 0x6c8   : > { %4072 = vst.msk [vmem:[%s9012_s30 + $0x60] sm:$0xff] %vm3404_vm6, %v4056_v47  ;;  %v4057_v2 = vadd.f32 %v4324_v0, %v4014_v7 }
 0x6c9   : > { %4075 = vst.msk [vmem:[%s9012_s30 + $0x78] sm:$0xff] %vm3404_vm6, %v4059_v46 }
 0x6ca   : > { %4073 = vst.msk [vmem:[%s9012_s30 + $0x68] sm:$0xff] %vm3404_vm6, %v4057_v2 }
 0x6cb   : > { %4974 = shalt.err (!%p4971_p5)
}
 0x6cc   : > { %s4975_s21 = scalar_lea.hbm %s9070_s24, 2048  ;;  %s4979_s12 = scalar_lea.hbm %s10386_s29, 8192 }
 0x6cd   : > { %p4976_p13 = scmp.ne.s32.totalorder %s9070_s24, %s4975_s21  ;;  %p4980_p8 = scmp.lt.u32.totalorder %s9070_s24, %s10386_s29 }
 0x6ce   : > { %p4981_p12 = scmp.lt.u32.totalorder %s4979_s12, %s4975_s21  ;;  %p4983_p0 = scmp.lt.u32.totalorder %s4975_s21, %s9070_s24 }
 0x6cf   : > { %p4977_p4 = pnand %p4976_p13, %p10387_p1 }
 0x6d0   : > { %p4982_p9 = por %p4981_p12, %p4980_p8 }
 0x6d1   : > { %p4978_p6 = pneg %p4977_p4 }
 0x6d2   : > { %p4984_p3 = por %p4983_p0, %p4982_p9 }
 0x6d4   : > { %p4985_p2 = pnand %p4984_p3, %p4978_p6 }
 0x6d6   : > { %4988 = shalt.err (!%p4985_p2)
}
 0x6d7   : > { %s5115_s26 = smov 128   ;;  %s5116_s0 = smov 8  }
 0x6d8   : > { %4427 = dma.vmem_to_hbm [thread:$0]  (%p10387_p1), %s9072_s16, 2048, %s9070_s24, %s9082_s25, %s5115_s26, %s5115_s26, %s5116_s0  }
 0x6d9 PF: > { %s10388_s4 = sld [smem:[#allocation24_spill]]  ;;  %p4479_p10 = scmp.ge.s32.totalorder %s5099_s19, 2 }
 0x6da   : > { %p10389_p7 = scmp.ne.s32.totalorder %s9700_s1, 0 }
 0x6dc   : > { %p4459_p11 = pnand %p4479_p10, %p10389_p7 }
 0x6df   : > { %s4108_s3 = sand.u32 1, %s10388_s4  }
 0x6e0   : > { %s4109_s28 = scalar_lea.sflag [#allocation4], %s4108_s3 }
 0x6e1   : > { %5054 = dma.done.wait (!%p4459_p11), %s4109_s28, 2048  }
 0x6e2   : > { %5056 = vsyncadd (!%p4459_p11), %s4109_s28, 4294965248  ;;  %s29_s19 = sadd.s32 1, %s5099_s19   ;;  %s10390_s30 = sld [smem:[#allocation25_spill]] }
 0x6e3   : > { %p26_p5 = scmp.ge.s32.totalorder %s29_s19, 6   ;;  %s10391_s10 = sld [smem:[#allocation26_spill]] }
 0x6e4   : > { %s10392_s9 = smov %s5468_s11  ;;  %s10393_s24 = smov %s10403_s15 }
 0x6e5   : > { %s10394_s11 = smov %s10409_s22  ;;  %s10395_s12 = smov %s5075_s13 }
 0x6e6   : > { %s10396_s13 = smov %s5079_s14  ;;  %s10397_s14 = smov %s10392_s9 }
 0x6e7   : > { %s10398_s15 = smov %s5091_s17  ;;  %s10399_s16 = smov %s5095_s18 }
 0x6e8   : > { %s10400_s17 = smov %s10393_s24  ;;  %s10401_s18 = smov %s10407_s20 }
 0x6e9   :  { %28 = sbr.rel (!%p26_p5) target bundleno = 20 (0x14), region = 135 }
 0x6f0   :  { %4114 = vsyncpa [#allocation3], 1 }
 0x6f1   :  { %4116 = vsyncpa [#allocation3 + $0x1], 1 }
 0x6f2   :  { %4117 = vsyncpa [#allocation6], 1 }
 0x6f3   :  { %4118 = vsyncpa [#allocation9], 1 }
 0x6f4   :  { %4119 = vsyncpa [#allocation12], 1 }
 0x6f5   :  { %4120 = vsyncpa [#allocation15], 1 }
 0x6f6   :  { %4121 = vsyncpa [#allocation4], 1 }
 0x6f7   :  { %4123 = vsyncpa [#allocation4 + $0x1], 1 }

</bundles_post_ra>
